<compile_context>
chip_gen: v7x
topology: tpu7x:2x2x1
jax: 0.10.0
libtpu: 0.0.40
codegen_flags: <defaults>
</compile_context>

<pallas_src>
import jax
import jax.numpy as jnp
from jax.experimental import pallas as pl
from jax.experimental.pallas import tpu as pltpu

EPS = 1e-5
LANES = 128


def _round_up(x, m):
    return (x + m - 1) // m * m


# --------------------------- in-kernel helpers --------------------------------
def _fill_padded(pad_ref, x, H, W, C):
    """Write bf16 activation x (1,H,W,C) into pad_ref (1,H+2,W+2,C) with a zero
    1-element spatial halo.  Only the halo is zeroed; the interior store doubles
    as the f32->bf16 repack when x was just computed in f32."""
    zrow = jnp.zeros((1, 1, W + 2, C), jnp.bfloat16)
    zcol = jnp.zeros((1, H, 1, C), jnp.bfloat16)
    pad_ref[:, 0:1, :, :] = zrow
    pad_ref[:, H + 1:H + 2, :, :] = zrow
    pad_ref[:, 1:H + 1, 0:1, :] = zcol
    pad_ref[:, 1:H + 1, W + 1:W + 2, :] = zcol
    pad_ref[:, 1:H + 1, 1:W + 1, :] = x


def _im2col_matmul(pad_ref, w_ref, H, W, C):
    """pad_ref: (1,H+2,W+2,C) bf16 padded activation; w_ref: (9*C, Ncols) bf16,
    tap-major rows.  One big-K MXU matmul, f32 accumulation -> (H*W, Ncols)."""
    xp = pad_ref[...]
    taps = [xp[:, dy:dy + H, dx:dx + W, :] for dy in range(3) for dx in range(3)]
    slab = jnp.concatenate(taps, axis=-1).reshape(H * W, 9 * C)
    return jnp.dot(slab, w_ref[...], preferred_element_type=jnp.float32)


# ------------------------------- kernels ---------------------------------------
def conv1_ds_kernel(x_ref, w_ref, y1_ref, yd_ref, st_ref, pad_ref):
    """Pass 1 (per band): conv1 and the fused 1x1 downsample in one 256-wide
    matmul; emit per-band BN1 / BNd partial statistics."""
    _, H, W, C = x_ref.shape
    _fill_padded(pad_ref, x_ref[...], H, W, C)
    y = _im2col_matmul(pad_ref, w_ref, H, W, C)          # (H*W, 2*C) f32
    y1 = y[:, :C]
    yd = y[:, C:]
    y1_ref[...] = y1.reshape(1, H, W, C)
    yd_ref[...] = yd.reshape(1, H, W, C)
    st_ref[:, 0:1, :] = jnp.sum(y1, axis=0, keepdims=True).reshape(1, 1, C)
    st_ref[:, 1:2, :] = jnp.sum(y1 * y1, axis=0, keepdims=True).reshape(1, 1, C)
    st_ref[:, 2:3, :] = jnp.sum(yd, axis=0, keepdims=True).reshape(1, 1, C)
    st_ref[:, 3:4, :] = jnp.sum(yd * yd, axis=0, keepdims=True).reshape(1, 1, C)


def bn1_conv2_kernel(y1_ref, ab1_ref, w_ref, y2_ref, st_ref, pad_ref):
    """Pass 2 (per band): apply BN1 (folded scale/shift) + ReLU to the f32 conv1
    output, run conv2; emit per-band BN2 partial statistics."""
    _, H, W, C = y1_ref.shape
    scale = ab1_ref[0:1, :].reshape(1, 1, 1, C)
    shift = ab1_ref[1:2, :].reshape(1, 1, 1, C)
    a = jnp.maximum(y1_ref[...] * scale + shift, 0.0).astype(jnp.bfloat16)
    _fill_padded(pad_ref, a, H, W, C)
    y2 = _im2col_matmul(pad_ref, w_ref, H, W, C)          # (H*W, C) f32
    y2_ref[...] = y2.reshape(1, H, W, C)
    st_ref[:, 0:1, :] = jnp.sum(y2, axis=0, keepdims=True).reshape(1, 1, C)
    st_ref[:, 1:2, :] = jnp.sum(y2 * y2, axis=0, keepdims=True).reshape(1, 1, C)


def finalize_kernel(y2_ref, yd_ref, ab2_ref, abd_ref, o_ref):
    """Pass 3 (per band): BN2+ReLU, BNd+ReLU, residual add (f32), bf16 store."""
    _, H, W, C = y2_ref.shape
    s2 = ab2_ref[0:1, :].reshape(1, 1, 1, C)
    h2 = ab2_ref[1:2, :].reshape(1, 1, 1, C)
    sd = abd_ref[0:1, :].reshape(1, 1, 1, C)
    hd = abd_ref[1:2, :].reshape(1, 1, 1, C)
    out2 = jnp.maximum(y2_ref[...] * s2 + h2, 0.0)
    ds = jnp.maximum(yd_ref[...] * sd + hd, 0.0)
    o_ref[...] = (ds + out2).astype(jnp.bfloat16)


# ------------------------------- wrapper ---------------------------------------
def _band_spec(H, W, C):
    return pl.BlockSpec((1, H, W, C), lambda i: (i, 0, 0, 0))


def _full_spec(shape):
    nd = len(shape)
    return pl.BlockSpec(shape, lambda i, _nd=nd: (0,) * _nd)


@jax.jit
def resblock_forward(x_nchw, params):
    """x_nchw: (N, Cin, H, W) float32 (PyTorch layout). Returns (N, Cout, H, W) f32."""
    N, Cin, H, W = x_nchw.shape
    Cout = params["w1"].shape[0]
    Cp = max(_round_up(Cin, LANES), _round_up(Cout, LANES))
    n_rows = N * H * W

    # NHWC, channel-pad to one lane-dense width Cp, bf16 (MXU operand dtype).
    x = jnp.transpose(x_nchw, (0, 2, 3, 1))
    x = jnp.pad(x, ((0, 0), (0, 0), (0, 0), (0, Cp - Cin))).astype(jnp.bfloat16)

    def repack_conv1_ds(w3, w1x1):
        # fused (9*Cp, 2*Cp): cols [0,Cp) = conv1 taps; cols [Cp,2Cp) = 1x1
        # downsample weight in the centre-tap (dy=dx=1) rows only, zeros elsewhere.
        co, ci = w3.shape[0], w3.shape[1]
        w = jnp.zeros((9, Cp, 2 * Cp), jnp.float32)
        w = w.at[:, :ci, :co].set(jnp.transpose(w3, (2, 3, 1, 0)).reshape(9, ci, co))
        w = w.at[4, :ci, Cp:Cp + co].set(jnp.transpose(w1x1[:, :, 0, 0], (1, 0)))
        return w.reshape(9 * Cp, 2 * Cp).astype(jnp.bfloat16)

    def repack_conv(w3):
        co, ci = w3.shape[0], w3.shape[1]
        w = jnp.zeros((9, Cp, Cp), jnp.float32)
        w = w.at[:, :ci, :co].set(jnp.transpose(w3, (2, 3, 1, 0)).reshape(9, ci, co))
        return w.reshape(9 * Cp, Cp).astype(jnp.bfloat16)

    def vec(v):
        return jnp.pad(v.astype(jnp.float32), (0, Cp - v.shape[0]))

    def bn_scale_shift(s, ss, gamma, beta):
        mean = s / n_rows
        var = jnp.maximum(ss / n_rows - mean * mean, 0.0)   # clamp one-pass var
        inv = jax.lax.rsqrt(var + EPS)
        scale = gamma * inv
        return jnp.stack([scale, beta - mean * scale], axis=0)   # (2, Cp)

    w1d = repack_conv1_ds(params["w1"], params["wd"])
    w2 = repack_conv(params["w2"])

    band = _band_spec(H, W, Cp)
    act = jax.ShapeDtypeStruct((N, H, W, Cp), jnp.float32)
    pad_scratch = pltpu.VMEM((1, H + 2, W + 2, Cp), jnp.bfloat16)
    # per band: x 64KiB + fused weight 576KiB + two f32 outputs 256KiB (x2 buffers)
    # + pad scratch 81KiB + im2col slab ~0.8MiB of temporaries  ->  ~4 MiB.
    conv_params = pltpu.CompilerParams(dimension_semantics=("parallel",),
                                       vmem_limit_bytes=16 * 1024 * 1024)

    # ---- pass 1: conv1 + fused 1x1 downsample, per-band BN1/BNd stats --------
    y1, yd, st1 = pl.pallas_call(
        conv1_ds_kernel,
        out_shape=(act, act, jax.ShapeDtypeStruct((N, 4, Cp), jnp.float32)),
        grid=(N,),
        in_specs=[band, _full_spec(w1d.shape)],
        out_specs=(band, band, pl.BlockSpec((1, 4, Cp), lambda i: (i, 0, 0))),
        scratch_shapes=[pad_scratch],
        compiler_params=conv_params,
    )(x, w1d)

    st1 = jnp.sum(st1, axis=0)                              # (4, Cp)
    ab1 = bn_scale_shift(st1[0], st1[1], vec(params["g1"]), vec(params["be1"]))
    abd = bn_scale_shift(st1[2], st1[3], vec(params["gd"]), vec(params["bed"]))

    # ---- pass 2: BN1 + ReLU -> conv2, per-band BN2 stats ----------------------
    y2, st2 = pl.pallas_call(
        bn1_conv2_kernel,
        out_shape=(act, jax.ShapeDtypeStruct((N, 2, Cp), jnp.float32)),
        grid=(N,),
        in_specs=[band, _full_spec(ab1.shape), _full_spec(w2.shape)],
        out_specs=(band, pl.BlockSpec((1, 2, Cp), lambda i: (i, 0, 0))),
        scratch_shapes=[pad_scratch],
        compiler_params=conv_params,
    )(y1, ab1, w2)

    st2 = jnp.sum(st2, axis=0)                              # (2, Cp)
    ab2 = bn_scale_shift(st2[0], st2[1], vec(params["g2"]), vec(params["be2"]))

    # ---- pass 3: BN2+ReLU, BNd+ReLU, residual add; bf16 writeback -------------
    out = pl.pallas_call(
        finalize_kernel,
        out_shape=jax.ShapeDtypeStruct((N, H, W, Cp), jnp.bfloat16),
        grid=(N,),
        in_specs=[band, band, _full_spec(ab2.shape), _full_spec(abd.shape)],
        out_specs=band,
        compiler_params=pltpu.CompilerParams(dimension_semantics=("parallel",),
                                             vmem_limit_bytes=8 * 1024 * 1024),
    )(y2, yd, ab2, abd)

    # drop channel padding, back to NCHW, module-level f32
    return jnp.transpose(out[:, :, :, :Cout].astype(jnp.float32), (0, 3, 1, 2))


# ---------------------------- pure-JAX reference -------------------------------
def ref_forward(x, p):
    def conv(x, w, b, pad):
        y = jax.lax.conv_general_dilated(
            x, w, (1, 1), [(pad, pad), (pad, pad)],
            dimension_numbers=("NCHW", "OIHW", "NCHW"))
        return y + b[None, :, None, None]

    def bn(x, g, be):
        mean = x.mean(axis=(0, 2, 3), keepdims=True)
        var = ((x - mean) ** 2).mean(axis=(0, 2, 3), keepdims=True)
        return ((x - mean) / jnp.sqrt(var + EPS)) * g[None, :, None, None] \
            + be[None, :, None, None]

    out = jax.nn.relu(bn(conv(x, p["w1"], p["b1"], 1), p["g1"], p["be1"]))
    out = jax.nn.relu(bn(conv(out, p["w2"], p["b2"], 1), p["g2"], p["be2"]))
    xd = jax.nn.relu(bn(conv(x, p["wd"], p["bd"], 0), p["gd"], p["bed"]))
    return xd + out


if __name__ == "__main__":
    N, Cin, Cout, H, W = 2, 4, 8, 16, 16
    key = jax.random.PRNGKey(0)
    ks = jax.random.split(key, 12)

    params = {
        "w1": 0.1 * jax.random.normal(ks[0], (Cout, Cin, 3, 3), jnp.float32),
        "b1": 0.1 * jax.random.normal(ks[1], (Cout,), jnp.float32),
        "g1": 1.0 + 0.1 * jax.random.normal(ks[2], (Cout,), jnp.float32),
        "be1": 0.1 * jax.random.normal(ks[3], (Cout,), jnp.float32),
        "w2": 0.1 * jax.random.normal(ks[4], (Cout, Cout, 3, 3), jnp.float32),
        "b2": 0.1 * jax.random.normal(ks[5], (Cout,), jnp.float32),
        "g2": 1.0 + 0.1 * jax.random.normal(ks[6], (Cout,), jnp.float32),
        "be2": 0.1 * jax.random.normal(ks[7], (Cout,), jnp.float32),
        "wd": 0.1 * jax.random.normal(ks[8], (Cout, Cin, 1, 1), jnp.float32),
        "bd": 0.1 * jax.random.normal(ks[9], (Cout,), jnp.float32),
        "gd": 1.0 + 0.1 * jax.random.normal(ks[10], (Cout,), jnp.float32),
        "bed": 0.1 * jax.random.normal(ks[11], (Cout,), jnp.float32),
    }

    x = jax.random.normal(jax.random.PRNGKey(42), (N, Cin, H, W), jnp.float32)

    out = jax.block_until_ready(resblock_forward(x, params))
    ref = jax.block_until_ready(ref_forward(x, params))

    assert out.shape == (N, Cout, H, W), out.shape
    # bf16 MXU operands + bf16 final writeback vs. the f32 reference
    assert jnp.allclose(out, ref, rtol=5e-2, atol=6e-2), \
        f"max abs err {jnp.max(jnp.abs(out - ref))}"
    print("KERNEL_OK")
</pallas_src>

<mosaic_0001>
module attributes {stable_mosaic.version = 11 : i64} {
  func.func @conv1_ds_kernel(%arg0: i32, %arg1: memref<1x16x16x128xbf16, #tpu.memory_space<vmem>>, %arg2: memref<1152x256xbf16, #tpu.memory_space<vmem>>, %arg3: memref<1x16x16x128xf32, #tpu.memory_space<vmem>>, %arg4: memref<1x16x16x128xf32, #tpu.memory_space<vmem>>, %arg5: memref<1x4x128xf32, #tpu.memory_space<vmem>>, %arg6: memref<1x18x18x128xbf16, #tpu.memory_space<vmem>>) attributes {dimension_semantics = [#tpu.dimension_semantics<parallel>], iteration_bounds = array<i64: 2>, scalar_prefetch = 0 : i64, scratch_operands = 1 : i64, tpu.core_type = #tpu.core_type<tc>, window_params = [{transform_indices = @transform_0, window_bounds = array<i64: 1, 16, 16, 128>}, {pipeline_mode = #tpu.pipeline_mode<synchronous>, transform_indices = @transform_1, window_bounds = array<i64: 1152, 256>}, {transform_indices = @transform_2, window_bounds = array<i64: 1, 16, 16, 128>}, {transform_indices = @transform_3, window_bounds = array<i64: 1, 16, 16, 128>}, {transform_indices = @transform_4, window_bounds = array<i64: 1, 4, 128>}]} {
    %c0 = arith.constant 0 : index
    %c0_0 = arith.constant 0 : index
    %c0_1 = arith.constant 0 : index
    %c0_2 = arith.constant 0 : index
    %0 = vector.load %arg1[%c0, %c0_0, %c0_1, %c0_2] : memref<1x16x16x128xbf16, #tpu.memory_space<vmem>>, vector<1x16x16x128xbf16>
    %cst = arith.constant 0.000000e+00 : bf16
    %1 = vector.broadcast %cst : bf16 to vector<1x1x18x128xbf16>
    %cst_3 = arith.constant 0.000000e+00 : bf16
    %2 = vector.broadcast %cst_3 : bf16 to vector<1x16x1x128xbf16>
    %c0_4 = arith.constant 0 : index
    %c0_5 = arith.constant 0 : index
    %c0_6 = arith.constant 0 : index
    %c0_7 = arith.constant 0 : index
    %3 = vector.load %arg6[%c0_4, %c0_5, %c0_6, %c0_7] : memref<1x18x18x128xbf16, #tpu.memory_space<vmem>>, vector<1x1x18x128xbf16>
    tpu.vector_store %arg6[%c0_4, %c0_5, %c0_6, %c0_7], %1 {strides = array<i32>} : memref<1x18x18x128xbf16, #tpu.memory_space<vmem>>, vector<1x1x18x128xbf16>,
    %c0_8 = arith.constant 0 : index
    %c17 = arith.constant 17 : index
    %c0_9 = arith.constant 0 : index
    %c0_10 = arith.constant 0 : index
    %4 = vector.load %arg6[%c0_8, %c17, %c0_9, %c0_10] : memref<1x18x18x128xbf16, #tpu.memory_space<vmem>>, vector<1x1x18x128xbf16>
    tpu.vector_store %arg6[%c0_8, %c17, %c0_9, %c0_10], %1 {strides = array<i32>} : memref<1x18x18x128xbf16, #tpu.memory_space<vmem>>, vector<1x1x18x128xbf16>,
    %c0_11 = arith.constant 0 : index
    %c1 = arith.constant 1 : index
    %c0_12 = arith.constant 0 : index
    %c0_13 = arith.constant 0 : index
    %5 = vector.load %arg6[%c0_11, %c1, %c0_12, %c0_13] : memref<1x18x18x128xbf16, #tpu.memory_space<vmem>>, vector<1x16x1x128xbf16>
    tpu.vector_store %arg6[%c0_11, %c1, %c0_12, %c0_13], %2 {strides = array<i32>} : memref<1x18x18x128xbf16, #tpu.memory_space<vmem>>, vector<1x16x1x128xbf16>,
    %c0_14 = arith.constant 0 : index
    %c1_15 = arith.constant 1 : index
    %c17_16 = arith.constant 17 : index
    %c0_17 = arith.constant 0 : index
    %6 = vector.load %arg6[%c0_14, %c1_15, %c17_16, %c0_17] : memref<1x18x18x128xbf16, #tpu.memory_space<vmem>>, vector<1x16x1x128xbf16>
    tpu.vector_store %arg6[%c0_14, %c1_15, %c17_16, %c0_17], %2 {strides = array<i32>} : memref<1x18x18x128xbf16, #tpu.memory_space<vmem>>, vector<1x16x1x128xbf16>,
    %c0_18 = arith.constant 0 : index
    %c1_19 = arith.constant 1 : index
    %c1_20 = arith.constant 1 : index
    %c0_21 = arith.constant 0 : index
    %7 = vector.load %arg6[%c0_18, %c1_19, %c1_20, %c0_21] : memref<1x18x18x128xbf16, #tpu.memory_space<vmem>>, vector<1x16x16x128xbf16>
    tpu.vector_store %arg6[%c0_18, %c1_19, %c1_20, %c0_21], %0 {strides = array<i32>} : memref<1x18x18x128xbf16, #tpu.memory_space<vmem>>, vector<1x16x16x128xbf16>,
    %c0_22 = arith.constant 0 : index
    %c0_23 = arith.constant 0 : index
    %c0_24 = arith.constant 0 : index
    %c0_25 = arith.constant 0 : index
    %8 = vector.load %arg6[%c0_22, %c0_23, %c0_24, %c0_25] : memref<1x18x18x128xbf16, #tpu.memory_space<vmem>>, vector<1x18x18x128xbf16>
    %9 = vector.extract_strided_slice %8 {offsets = [0, 0, 0, 0], sizes = [1, 16, 16, 128], strides = [1, 1, 1, 1]} : vector<1x18x18x128xbf16> to vector<1x16x16x128xbf16>
    %10 = vector.extract_strided_slice %8 {offsets = [0, 0, 1, 0], sizes = [1, 16, 16, 128], strides = [1, 1, 1, 1]} : vector<1x18x18x128xbf16> to vector<1x16x16x128xbf16>
    %11 = vector.extract_strided_slice %8 {offsets = [0, 0, 2, 0], sizes = [1, 16, 16, 128], strides = [1, 1, 1, 1]} : vector<1x18x18x128xbf16> to vector<1x16x16x128xbf16>
    %12 = vector.extract_strided_slice %8 {offsets = [0, 1, 0, 0], sizes = [1, 16, 16, 128], strides = [1, 1, 1, 1]} : vector<1x18x18x128xbf16> to vector<1x16x16x128xbf16>
    %13 = vector.extract_strided_slice %8 {offsets = [0, 1, 1, 0], sizes = [1, 16, 16, 128], strides = [1, 1, 1, 1]} : vector<1x18x18x128xbf16> to vector<1x16x16x128xbf16>
    %14 = vector.extract_strided_slice %8 {offsets = [0, 1, 2, 0], sizes = [1, 16, 16, 128], strides = [1, 1, 1, 1]} : vector<1x18x18x128xbf16> to vector<1x16x16x128xbf16>
    %15 = vector.extract_strided_slice %8 {offsets = [0, 2, 0, 0], sizes = [1, 16, 16, 128], strides = [1, 1, 1, 1]} : vector<1x18x18x128xbf16> to vector<1x16x16x128xbf16>
    %16 = vector.extract_strided_slice %8 {offsets = [0, 2, 1, 0], sizes = [1, 16, 16, 128], strides = [1, 1, 1, 1]} : vector<1x18x18x128xbf16> to vector<1x16x16x128xbf16>
    %17 = vector.extract_strided_slice %8 {offsets = [0, 2, 2, 0], sizes = [1, 16, 16, 128], strides = [1, 1, 1, 1]} : vector<1x18x18x128xbf16> to vector<1x16x16x128xbf16>
    %18 = tpu.concatenate %9, %10, %11, %12, %13, %14, %15, %16, %17 in 3 : vector<1x16x16x128xbf16>, vector<1x16x16x128xbf16>, vector<1x16x16x128xbf16>, vector<1x16x16x128xbf16>, vector<1x16x16x128xbf16>, vector<1x16x16x128xbf16>, vector<1x16x16x128xbf16>, vector<1x16x16x128xbf16>, vector<1x16x16x128xbf16> -> vector<1x16x16x1152xbf16>
    %19 = vector.shape_cast %18 : vector<1x16x16x1152xbf16> to vector<256x1152xbf16>
    %c0_26 = arith.constant 0 : index
    %c0_27 = arith.constant 0 : index
    %20 = vector.load %arg2[%c0_26, %c0_27] : memref<1152x256xbf16, #tpu.memory_space<vmem>>, vector<1152x256xbf16>
    %cst_28 = arith.constant dense<0.000000e+00> : vector<256x256xf32>
    %21 = tpu.matmul %19, %20, %cst_28 {dimension_numbers = #tpu.dot_dimension_numbers<[1], [0], [0], [1], [0, 0, 1, 1], [], []>} : vector<256x1152xbf16>, vector<1152x256xbf16>, vector<256x256xf32> -> vector<256x256xf32>
    %22 = vector.extract_strided_slice %21 {offsets = [0, 0], sizes = [256, 128], strides = [1, 1]} : vector<256x256xf32> to vector<256x128xf32>
    %23 = vector.extract_strided_slice %21 {offsets = [0, 128], sizes = [256, 128], strides = [1, 1]} : vector<256x256xf32> to vector<256x128xf32>
    %24 = vector.shape_cast %22 : vector<256x128xf32> to vector<1x16x16x128xf32>
    %c0_29 = arith.constant 0 : index
    %c0_30 = arith.constant 0 : index
    %c0_31 = arith.constant 0 : index
    %c0_32 = arith.constant 0 : index
    %25 = vector.load %arg3[%c0_29, %c0_30, %c0_31, %c0_32] : memref<1x16x16x128xf32, #tpu.memory_space<vmem>>, vector<1x16x16x128xf32>
    tpu.vector_store %arg3[%c0_29, %c0_30, %c0_31, %c0_32], %24 {strides = array<i32>} : memref<1x16x16x128xf32, #tpu.memory_space<vmem>>, vector<1x16x16x128xf32>,
    %26 = vector.shape_cast %23 : vector<256x128xf32> to vector<1x16x16x128xf32>
    %c0_33 = arith.constant 0 : index
    %c0_34 = arith.constant 0 : index
    %c0_35 = arith.constant 0 : index
    %c0_36 = arith.constant 0 : index
    %27 = vector.load %arg4[%c0_33, %c0_34, %c0_35, %c0_36] : memref<1x16x16x128xf32, #tpu.memory_space<vmem>>, vector<1x16x16x128xf32>
    tpu.vector_store %arg4[%c0_33, %c0_34, %c0_35, %c0_36], %26 {strides = array<i32>} : memref<1x16x16x128xf32, #tpu.memory_space<vmem>>, vector<1x16x16x128xf32>,
    %cst_37 = arith.constant dense<0.000000e+00> : vector<128xf32>
    %28 = vector.multi_reduction <add>, %22, %cst_37 [0] : vector<256x128xf32> to vector<128xf32>
    %29 = vector.shape_cast %28 : vector<128xf32> to vector<1x128xf32>
    %30 = vector.shape_cast %29 : vector<1x128xf32> to vector<1x1x128xf32>
    %c0_38 = arith.constant 0 : index
    %c0_39 = arith.constant 0 : index
    %c0_40 = arith.constant 0 : index
    %31 = vector.load %arg5[%c0_38, %c0_39, %c0_40] : memref<1x4x128xf32, #tpu.memory_space<vmem>>, vector<1x1x128xf32>
    tpu.vector_store %arg5[%c0_38, %c0_39, %c0_40], %30 {strides = array<i32>} : memref<1x4x128xf32, #tpu.memory_space<vmem>>, vector<1x1x128xf32>,
    %32 = arith.mulf %22, %22 : vector<256x128xf32>
    %cst_41 = arith.constant dense<0.000000e+00> : vector<128xf32>
    %33 = vector.multi_reduction <add>, %32, %cst_41 [0] : vector<256x128xf32> to vector<128xf32>
    %34 = vector.shape_cast %33 : vector<128xf32> to vector<1x128xf32>
    %35 = vector.shape_cast %34 : vector<1x128xf32> to vector<1x1x128xf32>
    %c0_42 = arith.constant 0 : index
    %c1_43 = arith.constant 1 : index
    %c0_44 = arith.constant 0 : index
    %36 = vector.load %arg5[%c0_42, %c1_43, %c0_44] : memref<1x4x128xf32, #tpu.memory_space<vmem>>, vector<1x1x128xf32>
    tpu.vector_store %arg5[%c0_42, %c1_43, %c0_44], %35 {strides = array<i32>} : memref<1x4x128xf32, #tpu.memory_space<vmem>>, vector<1x1x128xf32>,
    %cst_45 = arith.constant dense<0.000000e+00> : vector<128xf32>
    %37 = vector.multi_reduction <add>, %23, %cst_45 [0] : vector<256x128xf32> to vector<128xf32>
    %38 = vector.shape_cast %37 : vector<128xf32> to vector<1x128xf32>
    %39 = vector.shape_cast %38 : vector<1x128xf32> to vector<1x1x128xf32>
    %c0_46 = arith.constant 0 : index
    %c2 = arith.constant 2 : index
    %c0_47 = arith.constant 0 : index
    %40 = vector.load %arg5[%c0_46, %c2, %c0_47] : memref<1x4x128xf32, #tpu.memory_space<vmem>>, vector<1x1x128xf32>
    tpu.vector_store %arg5[%c0_46, %c2, %c0_47], %39 {strides = array<i32>} : memref<1x4x128xf32, #tpu.memory_space<vmem>>, vector<1x1x128xf32>,
    %41 = arith.mulf %23, %23 : vector<256x128xf32>
    %cst_48 = arith.constant dense<0.000000e+00> : vector<128xf32>
    %42 = vector.multi_reduction <add>, %41, %cst_48 [0] : vector<256x128xf32> to vector<128xf32>
    %43 = vector.shape_cast %42 : vector<128xf32> to vector<1x128xf32>
    %44 = vector.shape_cast %43 : vector<1x128xf32> to vector<1x1x128xf32>
    %c0_49 = arith.constant 0 : index
    %c3 = arith.constant 3 : index
    %c0_50 = arith.constant 0 : index
    %45 = vector.load %arg5[%c0_49, %c3, %c0_50] : memref<1x4x128xf32, #tpu.memory_space<vmem>>, vector<1x1x128xf32>
    tpu.vector_store %arg5[%c0_49, %c3, %c0_50], %44 {strides = array<i32>} : memref<1x4x128xf32, #tpu.memory_space<vmem>>, vector<1x1x128xf32>,
    return
  }
  func.func @transform_0(%arg0: i32) -> (i32, i32, i32, i32) {
    %c0_i32 = arith.constant 0 : i32
    %c0_i32_0 = arith.constant 0 : i32
    %c0_i32_1 = arith.constant 0 : i32
    %c0_i32_2 = arith.constant 0 : i32
    return %arg0, %c0_i32, %c0_i32_0, %c0_i32_1 : i32, i32, i32, i32
  }
  func.func @transform_1(%arg0: i32) -> (i32, i32) {
    %c0_i32 = arith.constant 0 : i32
    %c0_i32_0 = arith.constant 0 : i32
    %c0_i32_1 = arith.constant 0 : i32
    return %c0_i32, %c0_i32_0 : i32, i32
  }
  func.func @transform_2(%arg0: i32) -> (i32, i32, i32, i32) {
    %c0_i32 = arith.constant 0 : i32
    %c0_i32_0 = arith.constant 0 : i32
    %c0_i32_1 = arith.constant 0 : i32
    %c0_i32_2 = arith.constant 0 : i32
    return %arg0, %c0_i32, %c0_i32_0, %c0_i32_1 : i32, i32, i32, i32
  }
  func.func @transform_3(%arg0: i32) -> (i32, i32, i32, i32) {
    %c0_i32 = arith.constant 0 : i32
    %c0_i32_0 = arith.constant 0 : i32
    %c0_i32_1 = arith.constant 0 : i32
    %c0_i32_2 = arith.constant 0 : i32
    return %arg0, %c0_i32, %c0_i32_0, %c0_i32_1 : i32, i32, i32, i32
  }
  func.func @transform_4(%arg0: i32) -> (i32, i32, i32) {
    %c0_i32 = arith.constant 0 : i32
    %c0_i32_0 = arith.constant 0 : i32
    %c0_i32_1 = arith.constant 0 : i32
    return %arg0, %c0_i32, %c0_i32_0 : i32, i32, i32
  }
}

module attributes {stable_mosaic.version = 11 : i64} {
  func.func @bn1_conv2_kernel(%arg0: i32, %arg1: memref<1x16x16x128xf32, #tpu.memory_space<vmem>>, %arg2: memref<2x128xf32, #tpu.memory_space<vmem>>, %arg3: memref<1152x128xbf16, #tpu.memory_space<vmem>>, %arg4: memref<1x16x16x128xf32, #tpu.memory_space<vmem>>, %arg5: memref<1x2x128xf32, #tpu.memory_space<vmem>>, %arg6: memref<1x18x18x128xbf16, #tpu.memory_space<vmem>>) attributes {dimension_semantics = [#tpu.dimension_semantics<parallel>], iteration_bounds = array<i64: 2>, scalar_prefetch = 0 : i64, scratch_operands = 1 : i64, tpu.core_type = #tpu.core_type<tc>, window_params = [{transform_indices = @transform_0, window_bounds = array<i64: 1, 16, 16, 128>}, {pipeline_mode = #tpu.pipeline_mode<synchronous>, transform_indices = @transform_1, window_bounds = array<i64: 2, 128>}, {pipeline_mode = #tpu.pipeline_mode<synchronous>, transform_indices = @transform_2, window_bounds = array<i64: 1152, 128>}, {transform_indices = @transform_3, window_bounds = array<i64: 1, 16, 16, 128>}, {transform_indices = @transform_4, window_bounds = array<i64: 1, 2, 128>}]} {
    %c0 = arith.constant 0 : index
    %c0_0 = arith.constant 0 : index
    %0 = vector.load %arg2[%c0, %c0_0] : memref<2x128xf32, #tpu.memory_space<vmem>>, vector<1x128xf32>
    %1 = vector.shape_cast %0 : vector<1x128xf32> to vector<1x1x1x128xf32>
    %c1 = arith.constant 1 : index
    %c0_1 = arith.constant 0 : index
    %2 = vector.load %arg2[%c1, %c0_1] : memref<2x128xf32, #tpu.memory_space<vmem>>, vector<1x128xf32>
    %3 = vector.shape_cast %2 : vector<1x128xf32> to vector<1x1x1x128xf32>
    %c0_2 = arith.constant 0 : index
    %c0_3 = arith.constant 0 : index
    %c0_4 = arith.constant 0 : index
    %c0_5 = arith.constant 0 : index
    %4 = vector.load %arg1[%c0_2, %c0_3, %c0_4, %c0_5] : memref<1x16x16x128xf32, #tpu.memory_space<vmem>>, vector<1x16x16x128xf32>
    %5 = vector.broadcast %1 : vector<1x1x1x128xf32> to vector<1x16x16x128xf32>
    %6 = arith.mulf %4, %5 : vector<1x16x16x128xf32>
    %7 = vector.broadcast %3 : vector<1x1x1x128xf32> to vector<1x16x16x128xf32>
    %8 = arith.addf %6, %7 : vector<1x16x16x128xf32>
    %cst = arith.constant 0.000000e+00 : f32
    %9 = vector.broadcast %cst : f32 to vector<1x16x16x128xf32>
    %10 = arith.maximumf %8, %9 : vector<1x16x16x128xf32>
    %11 = arith.truncf %10 : vector<1x16x16x128xf32> to vector<1x16x16x128xbf16>
    %cst_6 = arith.constant 0.000000e+00 : bf16
    %12 = vector.broadcast %cst_6 : bf16 to vector<1x1x18x128xbf16>
    %cst_7 = arith.constant 0.000000e+00 : bf16
    %13 = vector.broadcast %cst_7 : bf16 to vector<1x16x1x128xbf16>
    %c0_8 = arith.constant 0 : index
    %c0_9 = arith.constant 0 : index
    %c0_10 = arith.constant 0 : index
    %c0_11 = arith.constant 0 : index
    %14 = vector.load %arg6[%c0_8, %c0_9, %c0_10, %c0_11] : memref<1x18x18x128xbf16, #tpu.memory_space<vmem>>, vector<1x1x18x128xbf16>
    tpu.vector_store %arg6[%c0_8, %c0_9, %c0_10, %c0_11], %12 {strides = array<i32>} : memref<1x18x18x128xbf16, #tpu.memory_space<vmem>>, vector<1x1x18x128xbf16>,
    %c0_12 = arith.constant 0 : index
    %c17 = arith.constant 17 : index
    %c0_13 = arith.constant 0 : index
    %c0_14 = arith.constant 0 : index
    %15 = vector.load %arg6[%c0_12, %c17, %c0_13, %c0_14] : memref<1x18x18x128xbf16, #tpu.memory_space<vmem>>, vector<1x1x18x128xbf16>
    tpu.vector_store %arg6[%c0_12, %c17, %c0_13, %c0_14], %12 {strides = array<i32>} : memref<1x18x18x128xbf16, #tpu.memory_space<vmem>>, vector<1x1x18x128xbf16>,
    %c0_15 = arith.constant 0 : index
    %c1_16 = arith.constant 1 : index
    %c0_17 = arith.constant 0 : index
    %c0_18 = arith.constant 0 : index
    %16 = vector.load %arg6[%c0_15, %c1_16, %c0_17, %c0_18] : memref<1x18x18x128xbf16, #tpu.memory_space<vmem>>, vector<1x16x1x128xbf16>
    tpu.vector_store %arg6[%c0_15, %c1_16, %c0_17, %c0_18], %13 {strides = array<i32>} : memref<1x18x18x128xbf16, #tpu.memory_space<vmem>>, vector<1x16x1x128xbf16>,
    %c0_19 = arith.constant 0 : index
    %c1_20 = arith.constant 1 : index
    %c17_21 = arith.constant 17 : index
    %c0_22 = arith.constant 0 : index
    %17 = vector.load %arg6[%c0_19, %c1_20, %c17_21, %c0_22] : memref<1x18x18x128xbf16, #tpu.memory_space<vmem>>, vector<1x16x1x128xbf16>
    tpu.vector_store %arg6[%c0_19, %c1_20, %c17_21, %c0_22], %13 {strides = array<i32>} : memref<1x18x18x128xbf16, #tpu.memory_space<vmem>>, vector<1x16x1x128xbf16>,
    %c0_23 = arith.constant 0 : index
    %c1_24 = arith.constant 1 : index
    %c1_25 = arith.constant 1 : index
    %c0_26 = arith.constant 0 : index
    %18 = vector.load %arg6[%c0_23, %c1_24, %c1_25, %c0_26] : memref<1x18x18x128xbf16, #tpu.memory_space<vmem>>, vector<1x16x16x128xbf16>
    tpu.vector_store %arg6[%c0_23, %c1_24, %c1_25, %c0_26], %11 {strides = array<i32>} : memref<1x18x18x128xbf16, #tpu.memory_space<vmem>>, vector<1x16x16x128xbf16>,
    %c0_27 = arith.constant 0 : index
    %c0_28 = arith.constant 0 : index
    %c0_29 = arith.constant 0 : index
    %c0_30 = arith.constant 0 : index
    %19 = vector.load %arg6[%c0_27, %c0_28, %c0_29, %c0_30] : memref<1x18x18x128xbf16, #tpu.memory_space<vmem>>, vector<1x18x18x128xbf16>
    %20 = vector.extract_strided_slice %19 {offsets = [0, 0, 0, 0], sizes = [1, 16, 16, 128], strides = [1, 1, 1, 1]} : vector<1x18x18x128xbf16> to vector<1x16x16x128xbf16>
    %21 = vector.extract_strided_slice %19 {offsets = [0, 0, 1, 0], sizes = [1, 16, 16, 128], strides = [1, 1, 1, 1]} : vector<1x18x18x128xbf16> to vector<1x16x16x128xbf16>
    %22 = vector.extract_strided_slice %19 {offsets = [0, 0, 2, 0], sizes = [1, 16, 16, 128], strides = [1, 1, 1, 1]} : vector<1x18x18x128xbf16> to vector<1x16x16x128xbf16>
    %23 = vector.extract_strided_slice %19 {offsets = [0, 1, 0, 0], sizes = [1, 16, 16, 128], strides = [1, 1, 1, 1]} : vector<1x18x18x128xbf16> to vector<1x16x16x128xbf16>
    %24 = vector.extract_strided_slice %19 {offsets = [0, 1, 1, 0], sizes = [1, 16, 16, 128], strides = [1, 1, 1, 1]} : vector<1x18x18x128xbf16> to vector<1x16x16x128xbf16>
    %25 = vector.extract_strided_slice %19 {offsets = [0, 1, 2, 0], sizes = [1, 16, 16, 128], strides = [1, 1, 1, 1]} : vector<1x18x18x128xbf16> to vector<1x16x16x128xbf16>
    %26 = vector.extract_strided_slice %19 {offsets = [0, 2, 0, 0], sizes = [1, 16, 16, 128], strides = [1, 1, 1, 1]} : vector<1x18x18x128xbf16> to vector<1x16x16x128xbf16>
    %27 = vector.extract_strided_slice %19 {offsets = [0, 2, 1, 0], sizes = [1, 16, 16, 128], strides = [1, 1, 1, 1]} : vector<1x18x18x128xbf16> to vector<1x16x16x128xbf16>
    %28 = vector.extract_strided_slice %19 {offsets = [0, 2, 2, 0], sizes = [1, 16, 16, 128], strides = [1, 1, 1, 1]} : vector<1x18x18x128xbf16> to vector<1x16x16x128xbf16>
    %29 = tpu.concatenate %20, %21, %22, %23, %24, %25, %26, %27, %28 in 3 : vector<1x16x16x128xbf16>, vector<1x16x16x128xbf16>, vector<1x16x16x128xbf16>, vector<1x16x16x128xbf16>, vector<1x16x16x128xbf16>, vector<1x16x16x128xbf16>, vector<1x16x16x128xbf16>, vector<1x16x16x128xbf16>, vector<1x16x16x128xbf16> -> vector<1x16x16x1152xbf16>
    %30 = vector.shape_cast %29 : vector<1x16x16x1152xbf16> to vector<256x1152xbf16>
    %c0_31 = arith.constant 0 : index
    %c0_32 = arith.constant 0 : index
    %31 = vector.load %arg3[%c0_31, %c0_32] : memref<1152x128xbf16, #tpu.memory_space<vmem>>, vector<1152x128xbf16>
    %cst_33 = arith.constant dense<0.000000e+00> : vector<256x128xf32>
    %32 = tpu.matmul %30, %31, %cst_33 {dimension_numbers = #tpu.dot_dimension_numbers<[1], [0], [0], [1], [0, 0, 1, 1], [], []>} : vector<256x1152xbf16>, vector<1152x128xbf16>, vector<256x128xf32> -> vector<256x128xf32>
    %33 = vector.shape_cast %32 : vector<256x128xf32> to vector<1x16x16x128xf32>
    %c0_34 = arith.constant 0 : index
    %c0_35 = arith.constant 0 : index
    %c0_36 = arith.constant 0 : index
    %c0_37 = arith.constant 0 : index
    %34 = vector.load %arg4[%c0_34, %c0_35, %c0_36, %c0_37] : memref<1x16x16x128xf32, #tpu.memory_space<vmem>>, vector<1x16x16x128xf32>
    tpu.vector_store %arg4[%c0_34, %c0_35, %c0_36, %c0_37], %33 {strides = array<i32>} : memref<1x16x16x128xf32, #tpu.memory_space<vmem>>, vector<1x16x16x128xf32>,
    %cst_38 = arith.constant dense<0.000000e+00> : vector<128xf32>
    %35 = vector.multi_reduction <add>, %32, %cst_38 [0] : vector<256x128xf32> to vector<128xf32>
    %36 = vector.shape_cast %35 : vector<128xf32> to vector<1x128xf32>
    %37 = vector.shape_cast %36 : vector<1x128xf32> to vector<1x1x128xf32>
    %c0_39 = arith.constant 0 : index
    %c0_40 = arith.constant 0 : index
    %c0_41 = arith.constant 0 : index
    %38 = vector.load %arg5[%c0_39, %c0_40, %c0_41] : memref<1x2x128xf32, #tpu.memory_space<vmem>>, vector<1x1x128xf32>
    tpu.vector_store %arg5[%c0_39, %c0_40, %c0_41], %37 {strides = array<i32>} : memref<1x2x128xf32, #tpu.memory_space<vmem>>, vector<1x1x128xf32>,
    %39 = arith.mulf %32, %32 : vector<256x128xf32>
    %cst_42 = arith.constant dense<0.000000e+00> : vector<128xf32>
    %40 = vector.multi_reduction <add>, %39, %cst_42 [0] : vector<256x128xf32> to vector<128xf32>
    %41 = vector.shape_cast %40 : vector<128xf32> to vector<1x128xf32>
    %42 = vector.shape_cast %41 : vector<1x128xf32> to vector<1x1x128xf32>
    %c0_43 = arith.constant 0 : index
    %c1_44 = arith.constant 1 : index
    %c0_45 = arith.constant 0 : index
    %43 = vector.load %arg5[%c0_43, %c1_44, %c0_45] : memref<1x2x128xf32, #tpu.memory_space<vmem>>, vector<1x1x128xf32>
    tpu.vector_store %arg5[%c0_43, %c1_44, %c0_45], %42 {strides = array<i32>} : memref<1x2x128xf32, #tpu.memory_space<vmem>>, vector<1x1x128xf32>,
    return
  }
  func.func @transform_0(%arg0: i32) -> (i32, i32, i32, i32) {
    %c0_i32 = arith.constant 0 : i32
    %c0_i32_0 = arith.constant 0 : i32
    %c0_i32_1 = arith.constant 0 : i32
    %c0_i32_2 = arith.constant 0 : i32
    return %arg0, %c0_i32, %c0_i32_0, %c0_i32_1 : i32, i32, i32, i32
  }
  func.func @transform_1(%arg0: i32) -> (i32, i32) {
    %c0_i32 = arith.constant 0 : i32
    %c0_i32_0 = arith.constant 0 : i32
    %c0_i32_1 = arith.constant 0 : i32
    return %c0_i32, %c0_i32_0 : i32, i32
  }
  func.func @transform_2(%arg0: i32) -> (i32, i32) {
    %c0_i32 = arith.constant 0 : i32
    %c0_i32_0 = arith.constant 0 : i32
    %c0_i32_1 = arith.constant 0 : i32
    return %c0_i32, %c0_i32_0 : i32, i32
  }
  func.func @transform_3(%arg0: i32) -> (i32, i32, i32, i32) {
    %c0_i32 = arith.constant 0 : i32
    %c0_i32_0 = arith.constant 0 : i32
    %c0_i32_1 = arith.constant 0 : i32
    %c0_i32_2 = arith.constant 0 : i32
    return %arg0, %c0_i32, %c0_i32_0, %c0_i32_1 : i32, i32, i32, i32
  }
  func.func @transform_4(%arg0: i32) -> (i32, i32, i32) {
    %c0_i32 = arith.constant 0 : i32
    %c0_i32_0 = arith.constant 0 : i32
    %c0_i32_1 = arith.constant 0 : i32
    return %arg0, %c0_i32, %c0_i32_0 : i32, i32, i32
  }
}

module attributes {stable_mosaic.version = 11 : i64} {
  func.func @finalize_kernel(%arg0: i32, %arg1: memref<1x16x16x128xf32, #tpu.memory_space<vmem>>, %arg2: memref<1x16x16x128xf32, #tpu.memory_space<vmem>>, %arg3: memref<2x128xf32, #tpu.memory_space<vmem>>, %arg4: memref<2x128xf32, #tpu.memory_space<vmem>>, %arg5: memref<1x16x16x128xbf16, #tpu.memory_space<vmem>>) attributes {dimension_semantics = [#tpu.dimension_semantics<parallel>], iteration_bounds = array<i64: 2>, scalar_prefetch = 0 : i64, scratch_operands = 0 : i64, tpu.core_type = #tpu.core_type<tc>, window_params = [{transform_indices = @transform_0, window_bounds = array<i64: 1, 16, 16, 128>}, {transform_indices = @transform_1, window_bounds = array<i64: 1, 16, 16, 128>}, {pipeline_mode = #tpu.pipeline_mode<synchronous>, transform_indices = @transform_2, window_bounds = array<i64: 2, 128>}, {pipeline_mode = #tpu.pipeline_mode<synchronous>, transform_indices = @transform_3, window_bounds = array<i64: 2, 128>}, {transform_indices = @transform_4, window_bounds = array<i64: 1, 16, 16, 128>}]} {
    %c0 = arith.constant 0 : index
    %c0_0 = arith.constant 0 : index
    %0 = vector.load %arg3[%c0, %c0_0] : memref<2x128xf32, #tpu.memory_space<vmem>>, vector<1x128xf32>
    %1 = vector.shape_cast %0 : vector<1x128xf32> to vector<1x1x1x128xf32>
    %c1 = arith.constant 1 : index
    %c0_1 = arith.constant 0 : index
    %2 = vector.load %arg3[%c1, %c0_1] : memref<2x128xf32, #tpu.memory_space<vmem>>, vector<1x128xf32>
    %3 = vector.shape_cast %2 : vector<1x128xf32> to vector<1x1x1x128xf32>
    %c0_2 = arith.constant 0 : index
    %c0_3 = arith.constant 0 : index
    %4 = vector.load %arg4[%c0_2, %c0_3] : memref<2x128xf32, #tpu.memory_space<vmem>>, vector<1x128xf32>
    %5 = vector.shape_cast %4 : vector<1x128xf32> to vector<1x1x1x128xf32>
    %c1_4 = arith.constant 1 : index
    %c0_5 = arith.constant 0 : index
    %6 = vector.load %arg4[%c1_4, %c0_5] : memref<2x128xf32, #tpu.memory_space<vmem>>, vector<1x128xf32>
    %7 = vector.shape_cast %6 : vector<1x128xf32> to vector<1x1x1x128xf32>
    %c0_6 = arith.constant 0 : index
    %c0_7 = arith.constant 0 : index
    %c0_8 = arith.constant 0 : index
    %c0_9 = arith.constant 0 : index
    %8 = vector.load %arg1[%c0_6, %c0_7, %c0_8, %c0_9] : memref<1x16x16x128xf32, #tpu.memory_space<vmem>>, vector<1x16x16x128xf32>
    %9 = vector.broadcast %1 : vector<1x1x1x128xf32> to vector<1x16x16x128xf32>
    %10 = arith.mulf %8, %9 : vector<1x16x16x128xf32>
    %11 = vector.broadcast %3 : vector<1x1x1x128xf32> to vector<1x16x16x128xf32>
    %12 = arith.addf %10, %11 : vector<1x16x16x128xf32>
    %cst = arith.constant 0.000000e+00 : f32
    %13 = vector.broadcast %cst : f32 to vector<1x16x16x128xf32>
    %14 = arith.maximumf %12, %13 : vector<1x16x16x128xf32>
    %c0_10 = arith.constant 0 : index
    %c0_11 = arith.constant 0 : index
    %c0_12 = arith.constant 0 : index
    %c0_13 = arith.constant 0 : index
    %15 = vector.load %arg2[%c0_10, %c0_11, %c0_12, %c0_13] : memref<1x16x16x128xf32, #tpu.memory_space<vmem>>, vector<1x16x16x128xf32>
    %16 = vector.broadcast %5 : vector<1x1x1x128xf32> to vector<1x16x16x128xf32>
    %17 = arith.mulf %15, %16 : vector<1x16x16x128xf32>
    %18 = vector.broadcast %7 : vector<1x1x1x128xf32> to vector<1x16x16x128xf32>
    %19 = arith.addf %17, %18 : vector<1x16x16x128xf32>
    %cst_14 = arith.constant 0.000000e+00 : f32
    %20 = vector.broadcast %cst_14 : f32 to vector<1x16x16x128xf32>
    %21 = arith.maximumf %19, %20 : vector<1x16x16x128xf32>
    %22 = arith.addf %21, %14 : vector<1x16x16x128xf32>
    %23 = arith.truncf %22 : vector<1x16x16x128xf32> to vector<1x16x16x128xbf16>
    %c0_15 = arith.constant 0 : index
    %c0_16 = arith.constant 0 : index
    %c0_17 = arith.constant 0 : index
    %c0_18 = arith.constant 0 : index
    %24 = vector.load %arg5[%c0_15, %c0_16, %c0_17, %c0_18] : memref<1x16x16x128xbf16, #tpu.memory_space<vmem>>, vector<1x16x16x128xbf16>
    tpu.vector_store %arg5[%c0_15, %c0_16, %c0_17, %c0_18], %23 {strides = array<i32>} : memref<1x16x16x128xbf16, #tpu.memory_space<vmem>>, vector<1x16x16x128xbf16>,
    return
  }
  func.func @transform_0(%arg0: i32) -> (i32, i32, i32, i32) {
    %c0_i32 = arith.constant 0 : i32
    %c0_i32_0 = arith.constant 0 : i32
    %c0_i32_1 = arith.constant 0 : i32
    %c0_i32_2 = arith.constant 0 : i32
    return %arg0, %c0_i32, %c0_i32_0, %c0_i32_1 : i32, i32, i32, i32
  }
  func.func @transform_1(%arg0: i32) -> (i32, i32, i32, i32) {
    %c0_i32 = arith.constant 0 : i32
    %c0_i32_0 = arith.constant 0 : i32
    %c0_i32_1 = arith.constant 0 : i32
    %c0_i32_2 = arith.constant 0 : i32
    return %arg0, %c0_i32, %c0_i32_0, %c0_i32_1 : i32, i32, i32, i32
  }
  func.func @transform_2(%arg0: i32) -> (i32, i32) {
    %c0_i32 = arith.constant 0 : i32
    %c0_i32_0 = arith.constant 0 : i32
    %c0_i32_1 = arith.constant 0 : i32
    return %c0_i32, %c0_i32_0 : i32, i32
  }
  func.func @transform_3(%arg0: i32) -> (i32, i32) {
    %c0_i32 = arith.constant 0 : i32
    %c0_i32_0 = arith.constant 0 : i32
    %c0_i32_1 = arith.constant 0 : i32
    return %c0_i32, %c0_i32_0 : i32, i32
  }
  func.func @transform_4(%arg0: i32) -> (i32, i32, i32, i32) {
    %c0_i32 = arith.constant 0 : i32
    %c0_i32_0 = arith.constant 0 : i32
    %c0_i32_1 = arith.constant 0 : i32
    %c0_i32_2 = arith.constant 0 : i32
    return %arg0, %c0_i32, %c0_i32_0, %c0_i32_1 : i32, i32, i32, i32
  }
}

</mosaic_0001>

<bundles_post_ra>
// kernel: resblock_forward.5
= control target key start
LH: loop header
LB: loop body
LE: loop exit
PB: predicated region body
PF: predicated region fallthrough
CT: control target
= control target key end

     0   :  { %s973_s15 = smov 0   ;;  %s1231_s0 = inlined_call_operand.vmem [shape: f32[2,16,16,128], index: 0, kind: input, shape index: {}]   ;;  %s1232_s1 = inlined_call_operand.vmem [shape: f32[2,16,16,128], index: 1, kind: input, shape index: {}]   ;;  %s1233_s2 = inlined_call_operand.vmem [shape: f32[2,128], index: 2, kind: input, shape index: {}]   ;;  %s1234_s3 = inlined_call_operand.vmem [shape: f32[2,128], index: 3, kind: input, shape index: {}]   ;;  %s1235_s4 = inlined_call_operand.vmem [shape: bf16[2,16,16,128], index: 4, kind: output, shape index: {}]  }
   0x1 LB: > { %s753_s16 = sadd.s32 4294967295, %s946_s15   ;;  %p757_p0 = scmp.ge.s32.totalorder %s946_s15, 1  ;;  %s946_s15 = sphi %s973_s15, %s14_s15  }
   0x2   : > { %p172_p1 = scmp.lt.s32.totalorder %s946_s15, 3 }
   0x4   : > { %p173_p2 = pnand %p757_p0, %p172_p1 }
   0x5   : > { %p203_p3 = scmp.lt.s32.totalorder (!%p173_p2), %s753_s16, 1  ;;  %v987_v0 = vld [vmem:[%s1233_s2] ss:$0 sm:$0xff] (!%p173_p2)  ;;  %v1007_v2 = vld [vmem:[%s1233_s2 + $0x1] ss:$0 sm:$0xff] (!%p173_p2) }
   0x6   : > { %176 = sbr.rel (%p173_p2) target bundleno = 84 (0x54), region = 36  ;;  %v992_v1 = vld [vmem:[%s1234_s3] ss:$0 sm:$0xff] (!%p173_p2)  ;;  %v1012_v3 = vld [vmem:[%s1234_s3 + $0x1] ss:$0 sm:$0xff] (!%p173_p2) }
   0xd   : > { %s1237_s16 = smov (!%p203_p3, %s753_s16), 1 }
   0xe   : > { %s802_s17 = sshll.u32 %s1237_s16, 8  ;;  %s804_s6 = sshll.u32 %s1237_s16, 7 }
   0xf   : > { %s997_s24 = scalar_lea.vmem %s1231_s0, %s802_s17  ;;  %s1002_s27 = scalar_lea.vmem %s1232_s1, %s802_s17 }
  0x10   : > { %v222_v4 = vld [vmem:[%s997_s24] sm:$0xff]  ;;  %v223_v5 = vld [vmem:[%s997_s24 + $0x8] sm:$0xff]  ;;  %v224_v11 = vld [vmem:[%s997_s24 + $0x10] sm:$0xff]  ;;  %s1052_s9 = scalar_lea.vmem %s1235_s4, %s804_s6 }
  0x11   : > { %v358_v6 = vld [vmem:[%s1002_s27] sm:$0xff]  ;;  %v258_v7 = vmul.f32 %v987_v0, %v222_v4  ;;  %v259_v8 = vmul.f32 %v987_v0, %v223_v5  ;;  %v359_v9 = vld [vmem:[%s1002_s27 + $0x8] sm:$0xff]  ;;  %v225_v12 = vld [vmem:[%s997_s24 + $0x18] sm:$0xff]  ;;  %v260_v14 = vmul.f32 %v987_v0, %v224_v11 }
  0x12   : > { %v394_v10 = vmul.f32 %v992_v1, %v358_v6  ;;  %v395_v13 = vmul.f32 %v992_v1, %v359_v9  ;;  %v261_v15 = vmul.f32 %v987_v0, %v225_v12  ;;  %v360_v16 = vld [vmem:[%s1002_s27 + $0x10] sm:$0xff]  ;;  %v361_v17 = vld [vmem:[%s1002_s27 + $0x18] sm:$0xff]  ;;  %v226_v26 = vld [vmem:[%s997_s24 + $0x20] sm:$0xff] }
  0x13   : > { %v294_v18 = vadd.f32 %v1007_v2, %v258_v7  ;;  %v295_v19 = vadd.f32 %v1007_v2, %v259_v8  ;;  %v396_v21 = vmul.f32 %v992_v1, %v360_v16  ;;  %v296_v23 = vadd.f32 %v1007_v2, %v260_v14  ;;  %v227_v27 = vld [vmem:[%s997_s24 + $0x28] sm:$0xff]  ;;  %v362_v32 = vld [vmem:[%s1002_s27 + $0x20] sm:$0xff]  ;;  %v228_v38 = vld [vmem:[%s997_s24 + $0x30] sm:$0xff] }
  0x14   : > { %v430_v20 = vadd.f32 %v1012_v3, %v394_v10  ;;  %v431_v22 = vadd.f32 %v1012_v3, %v395_v13  ;;  %v297_v24 = vadd.f32 %v1007_v2, %v261_v15  ;;  %v397_v25 = vmul.f32 %v992_v1, %v361_v17  ;;  %v363_v33 = vld [vmem:[%s1002_s27 + $0x28] sm:$0xff]  ;;  %v229_v47 = vld [vmem:[%s997_s24 + $0x38] sm:$0xff]  ;;  %v364_v52 = vld [vmem:[%s1002_s27 + $0x30] sm:$0xff] }
  0x15   : > { %v326_v28 = vmax.f32 %v294_v18, 0.0  ;;  %v327_v29 = vmax.f32 %v295_v19, 0.0  ;;  %v432_v31 = vadd.f32 %v1012_v3, %v396_v21  ;;  %v328_v35 = vmax.f32 %v296_v23, 0.0  ;;  %v365_v57 = vld [vmem:[%s1002_s27 + $0x38] sm:$0xff]  ;;  %v230_v58 = vld [vmem:[%s997_s24 + $0x40] sm:$0xff]  ;;  %v231_v63 = vld [vmem:[%s997_s24 + $0x48] sm:$0xff] }
  0x16   : > { %v462_v30 = vmax.f32 %v430_v20, 0.0  ;;  %v463_v34 = vmax.f32 %v431_v22, 0.0  ;;  %v329_v36 = vmax.f32 %v297_v24, 0.0  ;;  %v433_v37 = vadd.f32 %v1012_v3, %v397_v25  ;;  %v366_v8 = vld [vmem:[%s1002_s27 + $0x40] sm:$0xff]  ;;  %v367_v13 = vld [vmem:[%s1002_s27 + $0x48] sm:$0xff]  ;;  %v232_v18 = vld [vmem:[%s997_s24 + $0x50] sm:$0xff] }
  0x17   : > { %v464_v40 = vmax.f32 %v432_v31, 0.0  ;;  %v262_v41 = vmul.f32 %v987_v0, %v226_v26  ;;  %v263_v42 = vmul.f32 %v987_v0, %v227_v27  ;;  %v398_v45 = vmul.f32 %v992_v1, %v362_v32  ;;  %v233_v23 = vld [vmem:[%s997_s24 + $0x58] sm:$0xff] }
  0x18   : > { %v494_v39 = vadd.f32 %v462_v30, %v326_v28  ;;  %v495_v43 = vadd.f32 %v463_v34, %v327_v29  ;;  %v465_v44 = vmax.f32 %v433_v37, 0.0  ;;  %v399_v46 = vmul.f32 %v992_v1, %v363_v33  ;;  %v368_v28 = vld [vmem:[%s1002_s27 + $0x50] sm:$0xff]  ;;  %v369_v33 = vld [vmem:[%s1002_s27 + $0x58] sm:$0xff]  ;;  %v234_v34 = vld [vmem:[%s997_s24 + $0x60] sm:$0xff] }
  0x19   : > { %v496_v48 = vadd.f32 %v464_v40, %v328_v35  ;;  %v298_v49 = vadd.f32 %v1007_v2, %v262_v41  ;;  %v299_v50 = vadd.f32 %v1007_v2, %v263_v42  ;;  %v264_v51 = vmul.f32 %v987_v0, %v228_v38 }
  0x1a   : > { %v840_v53 = vpack.c.bf16 %v495_v43, %v494_v39  ;;  %v497_v54 = vadd.f32 %v465_v44, %v329_v36  ;;  %v434_v55 = vadd.f32 %v1012_v3, %v398_v45  ;;  %v435_v56 = vadd.f32 %v1012_v3, %v399_v46  ;;  %v235_v43 = vld [vmem:[%s997_s24 + $0x68] sm:$0xff] }
  0x1b   : > { %v330_v59 = vmax.f32 %v298_v49, 0.0  ;;  %v331_v60 = vmax.f32 %v299_v50, 0.0  ;;  %v265_v61 = vmul.f32 %v987_v0, %v229_v47  ;;  %v300_v62 = vadd.f32 %v1007_v2, %v264_v51  ;;  %v371_v49 = vld [vmem:[%s1002_s27 + $0x68] sm:$0xff] }
  0x1c   : > { %841 = vst [vmem:[%s1052_s9] sm:$0xff] %v840_v53   ;;  %v845_v4 = vpack.c.bf16 %v497_v54, %v496_v48  ;;  %v466_v5 = vmax.f32 %v434_v55, 0.0  ;;  %v467_v6 = vmax.f32 %v435_v56, 0.0  ;;  %v400_v7 = vmul.f32 %v992_v1, %v364_v52  ;;  %v370_v48 = vld [vmem:[%s1002_s27 + $0x60] sm:$0xff]  ;;  %v236_v54 = vld [vmem:[%s997_s24 + $0x70] sm:$0xff] }
  0x1d   : > { %v301_v9 = vadd.f32 %v1007_v2, %v265_v61  ;;  %v332_v10 = vmax.f32 %v300_v62, 0.0  ;;  %v401_v11 = vmul.f32 %v992_v1, %v365_v57  ;;  %v266_v12 = vmul.f32 %v987_v0, %v230_v58 }
  0x1e   : > { %917 = vst [vmem:[%s1052_s9 + $0x8] sm:$0xff] %v845_v4   ;;  %v498_v14 = vadd.f32 %v466_v5, %v330_v59  ;;  %v499_v15 = vadd.f32 %v467_v6, %v331_v60  ;;  %v436_v16 = vadd.f32 %v1012_v3, %v400_v7  ;;  %v267_v17 = vmul.f32 %v987_v0, %v231_v63  ;;  %v237_v63 = vld [vmem:[%s997_s24 + $0x78] sm:$0xff] }
  0x1f   : > { %v333_v19 = vmax.f32 %v301_v9, 0.0  ;;  %v437_v20 = vadd.f32 %v1012_v3, %v401_v11  ;;  %v302_v21 = vadd.f32 %v1007_v2, %v266_v12  ;;  %v402_v22 = vmul.f32 %v992_v1, %v366_v8  ;;  %v372_v8 = vld [vmem:[%s1002_s27 + $0x70] sm:$0xff]  ;;  %v373_v9 = vld [vmem:[%s1002_s27 + $0x78] sm:$0xff] }
  0x20   : > { %v850_v24 = vpack.c.bf16 %v499_v15, %v498_v14  ;;  %v468_v25 = vmax.f32 %v436_v16, 0.0  ;;  %v303_v26 = vadd.f32 %v1007_v2, %v267_v17  ;;  %v403_v27 = vmul.f32 %v992_v1, %v367_v13  ;;  %v238_v14 = vld [vmem:[%s997_s24 + $0x80] sm:$0xff] }
  0x21   : > { %v469_v29 = vmax.f32 %v437_v20, 0.0  ;;  %v334_v30 = vmax.f32 %v302_v21, 0.0  ;;  %v438_v31 = vadd.f32 %v1012_v3, %v402_v22  ;;  %v268_v32 = vmul.f32 %v987_v0, %v232_v18 }
  0x22   : > { %918 = vst [vmem:[%s1052_s9 + $0x10] sm:$0xff] %v850_v24   ;;  %v500_v35 = vadd.f32 %v468_v25, %v332_v10  ;;  %v335_v36 = vmax.f32 %v303_v26, 0.0  ;;  %v439_v37 = vadd.f32 %v1012_v3, %v403_v27  ;;  %v269_v38 = vmul.f32 %v987_v0, %v233_v23  ;;  %v239_v23 = vld [vmem:[%s997_s24 + $0x88] sm:$0xff]  ;;  %v374_v24 = vld [vmem:[%s1002_s27 + $0x80] sm:$0xff] }
  0x23   : > { %v501_v39 = vadd.f32 %v469_v29, %v333_v19  ;;  %v470_v40 = vmax.f32 %v438_v31, 0.0  ;;  %v304_v41 = vadd.f32 %v1007_v2, %v268_v32  ;;  %v404_v42 = vmul.f32 %v992_v1, %v368_v28  ;;  %v375_v29 = vld [vmem:[%s1002_s27 + $0x88] sm:$0xff] }
  0x24   : > { %v471_v44 = vmax.f32 %v439_v37, 0.0  ;;  %v305_v45 = vadd.f32 %v1007_v2, %v269_v38  ;;  %v405_v46 = vmul.f32 %v992_v1, %v369_v33  ;;  %v270_v47 = vmul.f32 %v987_v0, %v234_v34  ;;  %v240_v34 = vld [vmem:[%s997_s24 + $0x90] sm:$0xff] }
  0x25   : > { %v855_v50 = vpack.c.bf16 %v501_v39, %v500_v35  ;;  %v502_v51 = vadd.f32 %v470_v40, %v334_v30  ;;  %v336_v52 = vmax.f32 %v304_v41, 0.0  ;;  %v440_v53 = vadd.f32 %v1012_v3, %v404_v42  ;;  %v241_v39 = vld [vmem:[%s997_s24 + $0x98] sm:$0xff] }
  0x26   : > { %v503_v55 = vadd.f32 %v471_v44, %v335_v36  ;;  %v337_v56 = vmax.f32 %v305_v45, 0.0  ;;  %v441_v57 = vadd.f32 %v1012_v3, %v405_v46  ;;  %v271_v58 = vmul.f32 %v987_v0, %v235_v43  ;;  %v376_v44 = vld [vmem:[%s1002_s27 + $0x90] sm:$0xff] }
  0x27   : > { %919 = vst [vmem:[%s1052_s9 + $0x18] sm:$0xff] %v855_v50   ;;  %v472_v59 = vmax.f32 %v440_v53, 0.0  ;;  %v306_v60 = vadd.f32 %v1007_v2, %v270_v47  ;;  %v406_v61 = vmul.f32 %v992_v1, %v370_v48  ;;  %v407_v62 = vmul.f32 %v992_v1, %v371_v49  ;;  %v377_v49 = vld [vmem:[%s1002_s27 + $0x98] sm:$0xff] }
  0x28   : > { %v860_v4 = vpack.c.bf16 %v503_v55, %v502_v51  ;;  %v473_v5 = vmax.f32 %v441_v57, 0.0  ;;  %v307_v6 = vadd.f32 %v1007_v2, %v271_v58  ;;  %v272_v7 = vmul.f32 %v987_v0, %v236_v54  ;;  %v242_v54 = vld [vmem:[%s997_s24 + $0xa0] sm:$0xff] }
  0x29   : > { %v504_v10 = vadd.f32 %v472_v59, %v336_v52  ;;  %v338_v11 = vmax.f32 %v306_v60, 0.0  ;;  %v442_v12 = vadd.f32 %v1012_v3, %v406_v61  ;;  %v443_v13 = vadd.f32 %v1012_v3, %v407_v62  ;;  %v243_v59 = vld [vmem:[%s997_s24 + $0xa8] sm:$0xff] }
  0x2a   : > { %920 = vst [vmem:[%s1052_s9 + $0x20] sm:$0xff] %v860_v4   ;;  %v505_v15 = vadd.f32 %v473_v5, %v337_v56  ;;  %v339_v16 = vmax.f32 %v307_v6, 0.0  ;;  %v273_v17 = vmul.f32 %v987_v0, %v237_v63  ;;  %v308_v18 = vadd.f32 %v1007_v2, %v272_v7  ;;  %v378_v4 = vld [vmem:[%s1002_s27 + $0xa0] sm:$0xff]  ;;  %v379_v5 = vld [vmem:[%s1002_s27 + $0xa8] sm:$0xff] }
  0x2b   : > { %v474_v19 = vmax.f32 %v442_v12, 0.0  ;;  %v475_v20 = vmax.f32 %v443_v13, 0.0  ;;  %v408_v21 = vmul.f32 %v992_v1, %v372_v8  ;;  %v409_v22 = vmul.f32 %v992_v1, %v373_v9 }
  0x2c   : > { %v865_v25 = vpack.c.bf16 %v505_v15, %v504_v10  ;;  %v309_v26 = vadd.f32 %v1007_v2, %v273_v17  ;;  %v340_v27 = vmax.f32 %v308_v18, 0.0  ;;  %v274_v28 = vmul.f32 %v987_v0, %v238_v14  ;;  %v244_v10 = vld [vmem:[%s997_s24 + $0xb0] sm:$0xff] }
  0x2d   : > { %v506_v30 = vadd.f32 %v474_v19, %v338_v11  ;;  %v507_v31 = vadd.f32 %v475_v20, %v339_v16  ;;  %v444_v32 = vadd.f32 %v1012_v3, %v408_v21  ;;  %v445_v33 = vadd.f32 %v1012_v3, %v409_v22  ;;  %v245_v19 = vld [vmem:[%s997_s24 + $0xb8] sm:$0xff] }
  0x2e   : > { %921 = vst [vmem:[%s1052_s9 + $0x28] sm:$0xff] %v865_v25   ;;  %v341_v35 = vmax.f32 %v309_v26, 0.0  ;;  %v275_v36 = vmul.f32 %v987_v0, %v239_v23  ;;  %v310_v37 = vadd.f32 %v1007_v2, %v274_v28  ;;  %v410_v38 = vmul.f32 %v992_v1, %v374_v24  ;;  %v380_v24 = vld [vmem:[%s1002_s27 + $0xb0] sm:$0xff]  ;;  %v381_v25 = vld [vmem:[%s1002_s27 + $0xb8] sm:$0xff] }
  0x2f   : > { %v870_v40 = vpack.c.bf16 %v507_v31, %v506_v30  ;;  %v476_v41 = vmax.f32 %v444_v32, 0.0  ;;  %v477_v42 = vmax.f32 %v445_v33, 0.0  ;;  %v411_v43 = vmul.f32 %v992_v1, %v375_v29  ;;  %v246_v30 = vld [vmem:[%s997_s24 + $0xc0] sm:$0xff] }
  0x30   : > { %v311_v45 = vadd.f32 %v1007_v2, %v275_v36  ;;  %v342_v46 = vmax.f32 %v310_v37, 0.0  ;;  %v446_v47 = vadd.f32 %v1012_v3, %v410_v38  ;;  %v276_v48 = vmul.f32 %v987_v0, %v240_v34 }
  0x31   : > { %922 = vst [vmem:[%s1052_s9 + $0x30] sm:$0xff] %v870_v40   ;;  %v508_v50 = vadd.f32 %v476_v41, %v340_v27  ;;  %v509_v51 = vadd.f32 %v477_v42, %v341_v35  ;;  %v447_v52 = vadd.f32 %v1012_v3, %v411_v43  ;;  %v277_v53 = vmul.f32 %v987_v0, %v241_v39  ;;  %v247_v39 = vld [vmem:[%s997_s24 + $0xc8] sm:$0xff]  ;;  %v382_v40 = vld [vmem:[%s1002_s27 + $0xc0] sm:$0xff] }
  0x32   : > { %v343_v55 = vmax.f32 %v311_v45, 0.0  ;;  %v478_v56 = vmax.f32 %v446_v47, 0.0  ;;  %v312_v57 = vadd.f32 %v1007_v2, %v276_v48  ;;  %v412_v58 = vmul.f32 %v992_v1, %v376_v44  ;;  %v383_v45 = vld [vmem:[%s1002_s27 + $0xc8] sm:$0xff] }
  0x33   : > { %v875_v60 = vpack.c.bf16 %v509_v51, %v508_v50  ;;  %v479_v61 = vmax.f32 %v447_v52, 0.0  ;;  %v313_v62 = vadd.f32 %v1007_v2, %v277_v53  ;;  %v413_v63 = vmul.f32 %v992_v1, %v377_v49  ;;  %v248_v50 = vld [vmem:[%s997_s24 + $0xd0] sm:$0xff] }
  0x34   : > { %v510_v6 = vadd.f32 %v478_v56, %v342_v46  ;;  %v344_v7 = vmax.f32 %v312_v57, 0.0  ;;  %v448_v8 = vadd.f32 %v1012_v3, %v412_v58  ;;  %v278_v9 = vmul.f32 %v987_v0, %v242_v54 }
  0x35   : > { %923 = vst [vmem:[%s1052_s9 + $0x38] sm:$0xff] %v875_v60   ;;  %v511_v11 = vadd.f32 %v479_v61, %v343_v55  ;;  %v345_v12 = vmax.f32 %v313_v62, 0.0  ;;  %v449_v13 = vadd.f32 %v1012_v3, %v413_v63  ;;  %v279_v14 = vmul.f32 %v987_v0, %v243_v59  ;;  %v249_v55 = vld [vmem:[%s997_s24 + $0xd8] sm:$0xff]  ;;  %v384_v60 = vld [vmem:[%s1002_s27 + $0xd0] sm:$0xff] }
  0x36   : > { %v480_v15 = vmax.f32 %v448_v8, 0.0  ;;  %v314_v16 = vadd.f32 %v1007_v2, %v278_v9  ;;  %v414_v17 = vmul.f32 %v992_v1, %v378_v4  ;;  %v415_v18 = vmul.f32 %v992_v1, %v379_v5  ;;  %v385_v5 = vld [vmem:[%s1002_s27 + $0xd8] sm:$0xff] }
  0x37   : > { %v880_v20 = vpack.c.bf16 %v511_v11, %v510_v6  ;;  %v481_v21 = vmax.f32 %v449_v13, 0.0  ;;  %v315_v22 = vadd.f32 %v1007_v2, %v279_v14  ;;  %v280_v23 = vmul.f32 %v987_v0, %v244_v10  ;;  %v250_v10 = vld [vmem:[%s997_s24 + $0xe0] sm:$0xff] }
  0x38   : > { %v512_v26 = vadd.f32 %v480_v15, %v344_v7  ;;  %v346_v27 = vmax.f32 %v314_v16, 0.0  ;;  %v450_v28 = vadd.f32 %v1012_v3, %v414_v17  ;;  %v451_v29 = vadd.f32 %v1012_v3, %v415_v18  ;;  %v251_v15 = vld [vmem:[%s997_s24 + $0xe8] sm:$0xff] }
  0x39   : > { %924 = vst [vmem:[%s1052_s9 + $0x40] sm:$0xff] %v880_v20   ;;  %v513_v31 = vadd.f32 %v481_v21, %v345_v12  ;;  %v347_v32 = vmax.f32 %v315_v22, 0.0  ;;  %v281_v33 = vmul.f32 %v987_v0, %v245_v19  ;;  %v316_v34 = vadd.f32 %v1007_v2, %v280_v23  ;;  %v386_v20 = vld [vmem:[%s1002_s27 + $0xe0] sm:$0xff]  ;;  %v387_v21 = vld [vmem:[%s1002_s27 + $0xe8] sm:$0xff] }
  0x3a   : > { %v482_v35 = vmax.f32 %v450_v28, 0.0  ;;  %v483_v36 = vmax.f32 %v451_v29, 0.0  ;;  %v416_v37 = vmul.f32 %v992_v1, %v380_v24  ;;  %v417_v38 = vmul.f32 %v992_v1, %v381_v25 }
  0x3b   : > { %v885_v41 = vpack.c.bf16 %v513_v31, %v512_v26  ;;  %v317_v42 = vadd.f32 %v1007_v2, %v281_v33  ;;  %v348_v43 = vmax.f32 %v316_v34, 0.0  ;;  %v282_v44 = vmul.f32 %v987_v0, %v246_v30  ;;  %v252_v26 = vld [vmem:[%s997_s24 + $0xf0] sm:$0xff] }
  0x3c   : > { %v514_v46 = vadd.f32 %v482_v35, %v346_v27  ;;  %v515_v47 = vadd.f32 %v483_v36, %v347_v32  ;;  %v452_v48 = vadd.f32 %v1012_v3, %v416_v37  ;;  %v453_v49 = vadd.f32 %v1012_v3, %v417_v38  ;;  %v253_v35 = vld [vmem:[%s997_s24 + $0xf8] sm:$0xff] }
  0x3d   : > { %925 = vst [vmem:[%s1052_s9 + $0x48] sm:$0xff] %v885_v41   ;;  %v349_v51 = vmax.f32 %v317_v42, 0.0  ;;  %v283_v52 = vmul.f32 %v987_v0, %v247_v39  ;;  %v318_v53 = vadd.f32 %v1007_v2, %v282_v44  ;;  %v418_v54 = vmul.f32 %v992_v1, %v382_v40  ;;  %v388_v40 = vld [vmem:[%s1002_s27 + $0xf0] sm:$0xff]  ;;  %v389_v41 = vld [vmem:[%s1002_s27 + $0xf8] sm:$0xff] }
  0x3e   : > { %v890_v56 = vpack.c.bf16 %v515_v47, %v514_v46  ;;  %v484_v57 = vmax.f32 %v452_v48, 0.0  ;;  %v485_v58 = vmax.f32 %v453_v49, 0.0  ;;  %v419_v59 = vmul.f32 %v992_v1, %v383_v45 }
  0x3f   : > { %v319_v61 = vadd.f32 %v1007_v2, %v283_v52  ;;  %v350_v62 = vmax.f32 %v318_v53, 0.0  ;;  %v454_v63 = vadd.f32 %v1012_v3, %v418_v54  ;;  %v284_v4 = vmul.f32 %v987_v0, %v248_v50 }
  0x40   : > { %926 = vst [vmem:[%s1052_s9 + $0x50] sm:$0xff] %v890_v56   ;;  %v516_v6 = vadd.f32 %v484_v57, %v348_v43  ;;  %v517_v7 = vadd.f32 %v485_v58, %v349_v51  ;;  %v455_v8 = vadd.f32 %v1012_v3, %v419_v59  ;;  %v285_v9 = vmul.f32 %v987_v0, %v249_v55 }
  0x41   : > { %v351_v11 = vmax.f32 %v319_v61, 0.0  ;;  %v486_v12 = vmax.f32 %v454_v63, 0.0  ;;  %v320_v13 = vadd.f32 %v1007_v2, %v284_v4  ;;  %v420_v14 = vmul.f32 %v992_v1, %v384_v60 }
  0x42   : > { %v895_v16 = vpack.c.bf16 %v517_v7, %v516_v6  ;;  %v487_v17 = vmax.f32 %v455_v8, 0.0  ;;  %v321_v18 = vadd.f32 %v1007_v2, %v285_v9  ;;  %v421_v19 = vmul.f32 %v992_v1, %v385_v5 }
  0x43   : > { %v518_v22 = vadd.f32 %v486_v12, %v350_v62  ;;  %v352_v23 = vmax.f32 %v320_v13, 0.0  ;;  %v456_v24 = vadd.f32 %v1012_v3, %v420_v14  ;;  %v286_v25 = vmul.f32 %v987_v0, %v250_v10 }
  0x44   : > { %927 = vst [vmem:[%s1052_s9 + $0x58] sm:$0xff] %v895_v16   ;;  %v519_v27 = vadd.f32 %v487_v17, %v351_v11  ;;  %v353_v28 = vmax.f32 %v321_v18, 0.0  ;;  %v457_v29 = vadd.f32 %v1012_v3, %v421_v19  ;;  %v287_v30 = vmul.f32 %v987_v0, %v251_v15 }
  0x45   : > { %v488_v31 = vmax.f32 %v456_v24, 0.0  ;;  %v322_v32 = vadd.f32 %v1007_v2, %v286_v25  ;;  %v422_v33 = vmul.f32 %v992_v1, %v386_v20  ;;  %v423_v34 = vmul.f32 %v992_v1, %v387_v21 }
  0x46   : > { %v900_v36 = vpack.c.bf16 %v519_v27, %v518_v22  ;;  %v489_v37 = vmax.f32 %v457_v29, 0.0  ;;  %v323_v38 = vadd.f32 %v1007_v2, %v287_v30  ;;  %v288_v39 = vmul.f32 %v987_v0, %v252_v26 }
  0x47   : > { %v520_v42 = vadd.f32 %v488_v31, %v352_v23  ;;  %v354_v43 = vmax.f32 %v322_v32, 0.0  ;;  %v458_v44 = vadd.f32 %v1012_v3, %v422_v33  ;;  %v459_v45 = vadd.f32 %v1012_v3, %v423_v34 }
  0x48   : > { %928 = vst [vmem:[%s1052_s9 + $0x60] sm:$0xff] %v900_v36   ;;  %v521_v46 = vadd.f32 %v489_v37, %v353_v28  ;;  %v355_v47 = vmax.f32 %v323_v38, 0.0  ;;  %v289_v48 = vmul.f32 %v987_v0, %v253_v35  ;;  %v324_v49 = vadd.f32 %v1007_v2, %v288_v39 }
  0x49   : > { %v490_v50 = vmax.f32 %v458_v44, 0.0  ;;  %v491_v51 = vmax.f32 %v459_v45, 0.0  ;;  %v424_v52 = vmul.f32 %v992_v1, %v388_v40  ;;  %v425_v53 = vmul.f32 %v992_v1, %v389_v41 }
  0x4a   : > { %v905_v54 = vpack.c.bf16 %v521_v46, %v520_v42  ;;  %v325_v55 = vadd.f32 %v1007_v2, %v289_v48  ;;  %v356_v56 = vmax.f32 %v324_v49, 0.0 }
  0x4b   : > { %v522_v57 = vadd.f32 %v490_v50, %v354_v43  ;;  %v523_v58 = vadd.f32 %v491_v51, %v355_v47  ;;  %v460_v59 = vadd.f32 %v1012_v3, %v424_v52  ;;  %v461_v0 = vadd.f32 %v1012_v3, %v425_v53 }
  0x4c   : > { %929 = vst [vmem:[%s1052_s9 + $0x68] sm:$0xff] %v905_v54   ;;  %v357_v60 = vmax.f32 %v325_v55, 0.0 }
  0x4d   : > { %v910_v61 = vpack.c.bf16 %v523_v58, %v522_v57  ;;  %v492_v62 = vmax.f32 %v460_v59, 0.0  ;;  %v493_v63 = vmax.f32 %v461_v0, 0.0 }
  0x4f   : > { %930 = vst [vmem:[%s1052_s9 + $0x70] sm:$0xff] %v910_v61   ;;  %v524_v4 = vadd.f32 %v492_v62, %v356_v56  ;;  %v525_v5 = vadd.f32 %v493_v63, %v357_v60 }
  0x51   : > { %v915_v1 = vpack.c.bf16 %v525_v5, %v524_v4 }
  0x53   : > { %931 = vst [vmem:[%s1052_s9 + $0x78] sm:$0xff] %v915_v1  }
  0x54 PF: > { %s14_s15 = sadd.s32 1, %s946_s15  }
  0x55   : > { %p11_p4 = scmp.ge.s32.totalorder %s14_s15, 4  }
  0x57   :  { %13 = sbr.rel (!%p11_p4) target bundleno = 1 (0x1), region = 69 }

// kernel: resblock_forward.4
= control target key start
LH: loop header
LB: loop body
LE: loop exit
PB: predicated region body
PF: predicated region fallthrough
CT: control target
= control target key end

     0   :  { %s4008_s15 = smov 0   ;;  %s5304_s0 = inlined_call_operand.vmem [shape: f32[2,16,16,128], index: 0, kind: input, shape index: {}]   ;;  %s5305_s1 = inlined_call_operand.vmem [shape: f32[2,128], index: 1, kind: input, shape index: {}]   ;;  %s5306_s2 = inlined_call_operand.vmem [shape: bf16[1152,128], index: 2, kind: input, shape index: {}]   ;;  %s5307_s3 = inlined_call_operand.vmem [shape: f32[2,16,16,128], index: 3, kind: output, shape index: {0}]   ;;  %s5308_s4 = inlined_call_operand.vmem [shape: f32[2,2,128], index: 4, kind: output, shape index: {1}]  }
   0x1 LB: > { %s3120_s16 = sadd.s32 4294967295, %s3980_s15   ;;  %p3124_p0 = scmp.ge.s32.totalorder %s3980_s15, 1  ;;  %s3980_s15 = sphi %s4008_s15, %s15_s15  }
   0x2   : > { %p165_p1 = scmp.lt.s32.totalorder %s3980_s15, 3 }
   0x4   : > { %p166_p2 = pnand %p3124_p0, %p165_p1 }
   0x5   : > { %v3853_v0 = vld [vmem:[%s5306_s2 + $0x40] sm:$0xff] (!%p166_p2)   ;;  %v3982_v2 = vmov (!%p166_p2), 0   ;;  %v3855_v3 = vld [vmem:[%s5306_s2 + $0x48] sm:$0xff] (!%p166_p2)   ;;  %v3857_v5 = vld [vmem:[%s5306_s2 + $0x50] sm:$0xff] (!%p166_p2)   ;;  %p195_p3 = scmp.lt.s32.totalorder (!%p166_p2), %s3120_s16, 1  ;;  %vm372_vm0 = vcmask (!%p166_p2), 1040384  }
   0x6   : > { %169 = sbr.rel (%p166_p2) target bundleno = 596 (0x254), region = 32  ;;  %v3854_v1 = vld [vmem:[%s5306_s2] sm:$0xff] (!%p166_p2)   ;;  %364 = vst [vmem:[#allocation2] sm:$0xf] (!%p166_p2), %v3982_v2  ;;  %365 = vst [vmem:[#allocation2 + $0x4] sm:$0xf] (!%p166_p2), %v3982_v2  ;;  %3308 = vmatprep.subr.bf16.mxu0 (!%p166_p2), %v3853_v0  ;;  %3828 = vmatprep.subr.bf16.mxu1 (!%p166_p2), %v3853_v0 }
   0x7   : > { %366 = vst [vmem:[#allocation2 + $0x8] sm:$0x1] (!%p166_p2), %v3982_v2  ;;  %368 = vst [vmem:[#allocation2 + $0xcc] sm:$0xf] (!%p166_p2), %v3982_v2  ;;  %3309 = vmatpush3.bf16.msra.mxu0 (!%p166_p2), %v3854_v1  ;;  %3836 = vmatpush3.bf16.msra.mxu1 (!%p166_p2), %v3854_v1  ;;  %v3856_v4 = vld [vmem:[%s5306_s2 + $0x8] sm:$0xff] (!%p166_p2)   ;;  %v3858_v6 = vld [vmem:[%s5306_s2 + $0x10] sm:$0xff] (!%p166_p2)  }
   0x8   : > { %369 = vst [vmem:[#allocation2 + $0xd0] sm:$0xf] (!%p166_p2), %v3982_v2  ;;  %370 = vst [vmem:[#allocation2 + $0xd4] sm:$0x1] (!%p166_p2), %v3982_v2  ;;  %3310 = vmatprep.subr.bf16.mxu0 (!%p166_p2), %v3855_v3  ;;  %3829 = vmatprep.subr.bf16.mxu1 (!%p166_p2), %v3855_v3  ;;  %v3859_v7 = vld [vmem:[%s5306_s2 + $0x58] sm:$0xff] (!%p166_p2)   ;;  %v3861_v9 = vld [vmem:[%s5306_s2 + $0x60] sm:$0xff] (!%p166_p2)  }
   0x9   : > { %v3860_v8 = vld [vmem:[%s5306_s2 + $0x18] sm:$0xff] (!%p166_p2)   ;;  %v3862_v10 = vld [vmem:[%s5306_s2 + $0x20] sm:$0xff] (!%p166_p2)   ;;  %v3863_v11 = vld [vmem:[%s5306_s2 + $0x68] sm:$0xff] (!%p166_p2)   ;;  %vm1396_vm1 = vcmask (!%p166_p2), 1046528   ;;  %vm373_vm2 = vsmask.f32 (!%p166_p2), 256 }
   0xa   : > { %v3864_v12 = vld [vmem:[%s5306_s2 + $0x28] sm:$0xff] (!%p166_p2)   ;;  %v4071_v15 = vld [vmem:[%s5305_s1] ss:$0 sm:$0xff] (!%p166_p2)  ;;  %v4076_v16 = vld [vmem:[%s5305_s1 + $0x1] ss:$0 sm:$0xff] (!%p166_p2)  ;;  %vm875_vm8 = vcmask (!%p166_p2), 1043456  }
   0xb   : > { %3311 = vmatpush3.bf16.msra.mxu0 (!%p166_p2), %v3856_v4  ;;  %3837 = vmatpush3.bf16.msra.mxu1 (!%p166_p2), %v3856_v4  ;;  %v3865_v18 = vld [vmem:[%s5306_s2 + $0x70] sm:$0xff] (!%p166_p2)   ;;  %vm423_vm3 = vsmask.f32 (!%p166_p2), 7938  ;;  %vm1187_vm4 = vsmask.f32 (!%p166_p2), 7424  ;;  %vm4089_vm5 = vmand (!%p166_p2), %vm372_vm0, %vm373_vm2  ;;  %v3867_v39 = vld [vmem:[%s5306_s2 + $0x78] sm:$0xff] (!%p166_p2)  }
   0xc   : > { %3312 = vmatprep.subr.bf16.mxu0 (!%p166_p2), %v3857_v5  ;;  %3830 = vmatprep.subr.bf16.mxu1 (!%p166_p2), %v3857_v5  ;;  %v408_v26 = vld [vmem:[#allocation2 + $0x90] sm:$0x1] (!%p166_p2)  ;;  %v458_v30 = vld [vmem:[#allocation2 + $0x98] sm:$0x1] (!%p166_p2)  ;;  %vm4099_vm6 = vmand (!%p166_p2), %vm372_vm0, %vm423_vm3  ;;  %vm553_vm7 = vsmask.f32 (!%p166_p2), 4368 }
   0xd   : > { %s5318_s16 = smov (!%p195_p3, %s3120_s16), 1  ;;  %v4066_v13 = vld [vmem:[#allocation2] sm:$0xff]   ;;  %v409_v33 = vsel %vm4089_vm5, 0, %v408_v26  ;;  %v3866_v36 = vld [vmem:[%s5306_s2 + $0x30] sm:$0xff]   ;;  %v459_v38 = vsel %vm4099_vm6, 0, %v458_v30  ;;  %v3868_v43 = vld [vmem:[%s5306_s2 + $0x38] sm:$0xff]  }
   0xe   : > { %s3274_s9 = sshll.u32 %s5318_s16, 8  ;;  %v3870_v14 = vld [vmem:[#allocation2 + $0x8] ss:$0 sps:$4 sm:$0x11]   ;;  %v1189_v19 = vshrl.u32 %v4066_v13, 16  ;;  %v1191_v20 = vshll.u32 %v4066_v13, 16  ;;  %vm4130_vm9 = vmor %vm373_vm2, %vm553_vm7 }
   0xf   : > { %3313 = vmatpush3.bf16.msra.mxu0 %v3858_v6  ;;  %3838 = vmatpush3.bf16.msra.mxu1 %v3858_v6  ;;  %s4061_s18 = scalar_lea.vmem %s5304_s0, %s3274_s9  ;;  %v1196_v21 = vshll.u32 %v3870_v14, 16  ;;  %v1398_v22 = vrot.slane %v3870_v14, 1  ;;  %v1397_v35 = vrot.slane %v4066_v13, 1  ;;  %410 = vst [vmem:[#allocation2 + $0x90] sm:$0x1] %v409_v33  ;;  %v3873_v47 = vld [vmem:[%s5306_s2 + $0xc0] sm:$0xff]   ;;  %vm4145_vm10 = vmand %vm875_vm8, %vm423_vm3  ;;  %s5207_s17 = scalar_lea.vmem %s5307_s3, %s3274_s9 }
  0x10   : > { %3314 = vmatprep.subr.bf16.mxu0 %v3859_v7  ;;  %3831 = vmatprep.subr.bf16.mxu1 %v3859_v7  ;;  %v234_v17 = vld [vmem:[%s4061_s18 + $0xb0] sm:$0xff]  ;;  %v235_v23 = vld [vmem:[%s4061_s18 + $0xb8] sm:$0xff]  ;;  %v1193_v27 = vrot.slane %v1191_v20, 1  ;;  %460 = vst [vmem:[#allocation2 + $0x98] sm:$0x1] %v459_v38  ;;  %v3874_v48 = vld [vmem:[%s5306_s2 + $0x140] sm:$0xff]  }
  0x11   : > { %v270_v24 = vmul.f32 %v4071_v15, %v234_v17  ;;  %v271_v25 = vmul.f32 %v4071_v15, %v235_v23  ;;  %v1198_v28 = vrot.slane %v1196_v21, 1  ;;  %v4113_v42 = vsel %vm1396_vm1, %v1397_v35, %v1398_v22  ;;  %v212_v49 = vld [vmem:[%s4061_s18] sm:$0xff]  ;;  %v213_v50 = vld [vmem:[%s4061_s18 + $0x8] sm:$0xff]  ;;  %v425_v53 = vld [vmem:[#allocation2 + $0x14] sm:$0x1]  ;;  %s3129_s9 = sshll.u32 %s5318_s16, 1 }
  0x12   : > { %v1194_v37 = vor.u32 %v1193_v27, %v1189_v19  ;;  %v248_v51 = vmul.f32 %v4071_v15, %v212_v49  ;;  %v375_v52 = vld [vmem:[#allocation2 + $0xc] sm:$0x1]  ;;  %v3876_v59 = vld [vmem:[%s5306_s2 + $0x100] sm:$0xff]   ;;  %v249_v60 = vmul.f32 %v4071_v15, %v213_v50  ;;  %v426_v63 = vsel %vm4099_vm6, 0, %v425_v53  ;;  %v411_v14 = vld [vmem:[#allocation2 + $0x9c] sm:$0x1]  ;;  %s208_s21 = scalar_lea.vmem %s5308_s4, %s3129_s9 }
  0x13   : > { %3315 = vmatpush3.bf16.msra.mxu0 %v3860_v8  ;;  %3839 = vmatpush3.bf16.msra.mxu1 %v3860_v8  ;;  %v306_v31 = vadd.f32 %v4076_v16, %v270_v24  ;;  %v307_v32 = vadd.f32 %v4076_v16, %v271_v25  ;;  %v376_v62 = vsel %vm4089_vm5, 0, %v375_v52  ;;  %427 = vst [vmem:[#allocation2 + $0x14] sm:$0x1] %v426_v63  ;;  %v236_v7 = vld [vmem:[%s4061_s18 + $0xc0] sm:$0xff]  ;;  %v412_v25 = vsel %vm4089_vm5, 0, %v411_v14  ;;  %v214_v26 = vld [vmem:[%s4061_s18 + $0x10] sm:$0xff] }
  0x14   : > { %3316 = vmatprep.subr.bf16.mxu0 %v3861_v9  ;;  %3832 = vmatprep.subr.bf16.mxu1 %v3861_v9  ;;  %v1199_v44 = vsel %vm1187_vm4, %v1194_v37, %v1198_v28  ;;  %v284_v61 = vadd.f32 %v4076_v16, %v248_v51  ;;  %377 = vst [vmem:[#allocation2 + $0xc] sm:$0x1] %v376_v62  ;;  %v461_v21 = vld [vmem:[#allocation2 + $0xa4] sm:$0x1]  ;;  %413 = vst [vmem:[#allocation2 + $0x9c] sm:$0x1] %v412_v25 }
  0x15   : > { %v338_v40 = vmax.f32 %v306_v31, 0.0  ;;  %v339_v41 = vmax.f32 %v307_v32, 0.0  ;;  %2121 = vmatprep.mubr.bf16.mxu0 %v1199_v44  ;;  %v285_v5 = vadd.f32 %v4076_v16, %v249_v60  ;;  %v272_v19 = vmul.f32 %v4071_v15, %v236_v7  ;;  %v215_v31 = vld [vmem:[%s4061_s18 + $0x18] sm:$0xff]  ;;  %v428_v38 = vld [vmem:[#allocation2 + $0x20] sm:$0x1]  ;;  %v3948_v29 = vld [vmem:[%s5306_s2 + $0x210] sm:$0xff]  }
  0x16   : > { %v954_v3 = vld [vmem:[#allocation2 + $0x90] sm:$0xf]  ;;  %v316_v6 = vmax.f32 %v284_v61, 0.0  ;;  %v462_v33 = vsel %vm4099_vm6, 0, %v461_v21  ;;  %v250_v35 = vmul.f32 %v4071_v15, %v214_v26  ;;  %v378_v37 = vld [vmem:[#allocation2 + $0x18] sm:$0x1] }
  0x17   : > { %3317 = vmatpush3.bf16.msra.mxu0 %v3862_v10  ;;  %3840 = vmatpush3.bf16.msra.mxu1 %v3862_v10  ;;  %v3298_v45 = vpack.c.bf16 %v338_v40, %v338_v40  ;;  %v3299_v46 = vpack.c.bf16 %v339_v41, %v339_v41  ;;  %v958_v4 = vld [vmem:[#allocation2 + $0x98] sm:$0x1]  ;;  %v317_v17 = vmax.f32 %v285_v5, 0.0  ;;  %v308_v30 = vadd.f32 %v4076_v16, %v272_v19  ;;  %v3890_v19 = vld [vmem:[%s5306_s2 + $0x108] sm:$0xff]  }
  0x18   : > { %3318 = vmatprep.subr.bf16.mxu0 %v3863_v11  ;;  %3833 = vmatprep.subr.bf16.mxu1 %v3863_v11  ;;  %463 = vst [vmem:[#allocation2 + $0xa4] sm:$0x1] %v462_v33  ;;  %v379_v50 = vsel %vm4089_vm5, 0, %v378_v37  ;;  %v239_v37 = vld [vmem:[%s4061_s18 + $0xd8] sm:$0xff] }
  0x19   : > { %v743_v54 = vshrl.u32 %v3298_v45, 16  ;;  %v746_v55 = vshll.u32 %v3298_v45, 16  ;;  %v751_v56 = vshrl.u32 %v3299_v46, 16  ;;  %v754_v57 = vshll.u32 %v3299_v46, 16  ;;  %380 = vst [vmem:[#allocation2 + $0x18] sm:$0x1] %v379_v50 }
  0x1a   : > { %v3277_v27 = vpack.c.bf16 %v317_v17, %v317_v17  ;;  %v340_v45 = vmax.f32 %v308_v30, 0.0  ;;  %v881_v46 = vld [vmem:[#allocation2 + $0x14] sm:$0x1]  ;;  %v464_v50 = vld [vmem:[#allocation2 + $0xb0] sm:$0x1] }
  0x1b   : > { %3319 = vmatpush3.bf16.msra.mxu0 %v3864_v12  ;;  %3841 = vmatpush3.bf16.msra.mxu1 %v3864_v12  ;;  %v745_v0 = vrot.slane %v743_v54, 7  ;;  %v753_v1 = vrot.slane %v751_v56, 7  ;;  %v237_v12 = vld [vmem:[%s4061_s18 + $0xc8] sm:$0xff]  ;;  %v238_v30 = vld [vmem:[%s4061_s18 + $0xd0] sm:$0xff] }
  0x1c   : > { %3320 = vmatprep.subr.bf16.mxu0 %v3865_v18  ;;  %3834 = vmatprep.subr.bf16.mxu1 %v3865_v18  ;;  %v3276_v18 = vpack.c.bf16 %v316_v6, %v316_v6  ;;  %v273_v20 = vmul.f32 %v4071_v15, %v237_v12  ;;  %v564_v41 = vshrl.u32 %v3277_v27, 16  ;;  %v877_v44 = vld [vmem:[#allocation2 + $0xc] sm:$0xf]  ;;  %v3300_v54 = vpack.c.bf16 %v340_v45, %v340_v45 }
  0x1d   : > { %v748_v8 = vor.u32 %v746_v55, %v745_v0  ;;  %v749_v9 = vrot.slane %v745_v0, 4  ;;  %v756_v10 = vor.u32 %v754_v57, %v753_v1  ;;  %v758_v11 = vrot.slane %v753_v1, 4  ;;  %v3879_v45 = vld [vmem:[%s5306_s2 + $0xc8] sm:$0xff]  }
  0x1e   : > { %v556_v28 = vshrl.u32 %v3276_v18, 16  ;;  %v309_v32 = vadd.f32 %v4076_v16, %v273_v20  ;;  %v566_v53 = vrot.slane %v564_v41, 7  ;;  %v760_v63 = vshrl.u32 %v3300_v54, 16 }
  0x1f   : > { %3321 = vmatpush3.bf16.msra.mxu0 %v3866_v36  ;;  %3842 = vmatpush3.bf16.msra.mxu1 %v3866_v36  ;;  %v757_v22 = vsel %vm4130_vm9, %v749_v9, %v756_v10  ;;  %v955_v23 = vsel %vm4145_vm10, %v748_v8, %v954_v3  ;;  %v959_v24 = vsel %vm4089_vm5, %v758_v11, %v958_v4  ;;  %v763_v8 = vshll.u32 %v3300_v54, 16  ;;  %v961_v11 = vld [vmem:[#allocation2 + $0x9c] sm:$0xf] }
  0x20   : > { %3322 = vmatprep.subr.bf16.mxu0 %v3867_v39  ;;  %3835 = vmatprep.subr.bf16.mxu1 %v3867_v39  ;;  %956 = vst [vmem:[#allocation2 + $0x90] sm:$0xf] %v955_v23  ;;  %957 = vst [vmem:[#allocation2 + $0x94] sm:$0xf] %v757_v22  ;;  %v251_v36 = vmul.f32 %v4071_v15, %v215_v31  ;;  %v3888_v39 = vld [vmem:[%s5306_s2 + $0x148] sm:$0xff]   ;;  %v558_v40 = vrot.slane %v556_v28, 7  ;;  %v274_v41 = vmul.f32 %v4071_v15, %v238_v30 }
  0x21   : > { %960 = vst [vmem:[#allocation2 + $0x98] sm:$0x1] %v959_v24  ;;  %v571_v61 = vrot.slane %v566_v53, 4  ;;  %v762_v7 = vrot.slane %v760_v63, 7  ;;  %v965_v22 = vld [vmem:[#allocation2 + $0xa4] sm:$0x1] }
  0x22   : > { %v287_v49 = vadd.f32 %v4076_v16, %v251_v36  ;;  %v562_v52 = vrot.slane %v558_v40, 4  ;;  %v216_v63 = vld [vmem:[%s4061_s18 + $0x20] sm:$0xff] }
  0x23   : > { %3323 = vmatpush3.bf16.msra.mxu0 %v3868_v43  ;;  %3843 = vmatpush3.bf16.msra.mxu1 %v3868_v43  ;;  %v567_v43 = vshll.u32 %v3277_v27, 16  ;;  %v882_v6 = vsel %vm4089_vm5, %v571_v61, %v881_v46  ;;  %v766_v20 = vrot.slane %v762_v7, 4 }
  0x24   : > { %3420 = vmatprep.subr.bf16.mxu1 %v3873_v47  ;;  %3532 = vmatprep.subr.bf16.mxu0 %v3874_v48  ;;  %v341_v47 = vmax.f32 %v309_v32, 0.0  ;;  %v286_v48 = vadd.f32 %v4076_v16, %v250_v35  ;;  %v319_v57 = vmax.f32 %v287_v49, 0.0  ;;  %883 = vst [vmem:[#allocation2 + $0x14] sm:$0x1] %v882_v6 }
  0x25   : > { %v569_v60 = vor.u32 %v567_v43, %v566_v53  ;;  %v275_v43 = vmul.f32 %v4071_v15, %v239_v37 }
  0x26   : > { %2122 = vmatmul.mubr.bf16.vlgmr.msra.gmra.mrb[0].mxu0 %v4066_v13  ;;  %v559_v13 = vshll.u32 %v3276_v18, 16  ;;  %v3301_v55 = vpack.c.bf16 %v341_v47, %v341_v47  ;;  %v318_v56 = vmax.f32 %v286_v48, 0.0  ;;  %v3279_v1 = vpack.c.bf16 %v319_v57, %v319_v57  ;;  %v3880_v57 = vld [vmem:[%s5306_s2 + $0x88] sm:$0xff]  }
  0x27   : > { %3533 = vmatpush3.bf16.msra.mxu0 %v3876_v59  ;;  %v429_v59 = vsel %vm4099_vm6, 0, %v428_v38  ;;  %v3871_v3 = vld [vmem:[#allocation2 + $0x90] sm:$0xff]   ;;  %v570_v5 = vsel %vm4130_vm9, %v562_v52, %v569_v60  ;;  %v765_v18 = vor.u32 %v763_v8, %v762_v7  ;;  %v311_v60 = vadd.f32 %v4076_v16, %v275_v43  ;;  %v217_v8 = vld [vmem:[%s4061_s18 + $0x28] sm:$0xff] }
  0x28   : > { %3534 = vmatprep.subr.bf16.mxu0 %v3888_v39  ;;  %v561_v51 = vor.u32 %v559_v13, %v558_v40  ;;  %430 = vst [vmem:[#allocation2 + $0x20] sm:$0x1] %v429_v59  ;;  %v3278_v0 = vpack.c.bf16 %v318_v56, %v318_v56  ;;  %v3872_v4 = vld [vmem:[#allocation2 + $0x98] ss:$0 sps:$4 sm:$0x11]   ;;  %v768_v9 = vshrl.u32 %v3301_v55, 16 }
  0x29   : > { %880 = vst [vmem:[#allocation2 + $0x10] sm:$0xf] %v570_v5  ;;  %v771_v10 = vshll.u32 %v3301_v55, 16  ;;  %v1333_v12 = vshrl.u32 %v3871_v3, 16  ;;  %v1335_v14 = vshll.u32 %v3871_v3, 16  ;;  %v1340_v17 = vshll.u32 %v3872_v4, 16 }
  0x2a   : > { %v878_v62 = vsel %vm4145_vm10, %v561_v51, %v877_v44  ;;  %v770_v21 = vrot.slane %v768_v9, 7  ;;  %v573_v23 = vshrl.u32 %v3278_v0, 16  ;;  %v576_v24 = vshll.u32 %v3278_v0, 16  ;;  %v884_v13 = vld [vmem:[#allocation2 + $0x18] sm:$0xf]  ;;  %v3875_v39 = vld [vmem:[%s5306_s2 + $0x80] sm:$0xff]  }
  0x2b   : > { %879 = vst [vmem:[#allocation2 + $0xc] sm:$0xf] %v878_v62  ;;  %v1337_v25 = vrot.slane %v1335_v14, 1  ;;  %v1342_v26 = vrot.slane %v1340_v17, 1  ;;  %v962_v27 = vsel %vm4145_vm10, %v765_v18, %v961_v11  ;;  %v581_v28 = vshrl.u32 %v3279_v1, 16  ;;  %3535 = vmatpush3.bf16.msra.mxu0 %v3890_v19  ;;  %v3883_v11 = vld [vmem:[%s5306_s2 + $0xd0] sm:$0xff]  }
  0x2c   : > { %v773_v31 = vor.u32 %v771_v10, %v770_v21  ;;  %v775_v32 = vrot.slane %v770_v21, 4  ;;  %963 = vst [vmem:[#allocation2 + $0x9c] sm:$0xf] %v962_v27  ;;  %v575_v33 = vrot.slane %v573_v23, 7  ;;  %v584_v35 = vshll.u32 %v3279_v1, 16  ;;  %v3884_v18 = vld [vmem:[%s5306_s2 + $0x90] sm:$0xff]  }
  0x2d   : > { %v1338_v38 = vor.u32 %v1337_v25, %v1333_v12  ;;  %v583_v40 = vrot.slane %v581_v28, 7  ;;  %v414_v44 = vld [vmem:[#allocation2 + $0xa8] sm:$0x1]  ;;  %v310_v55 = vadd.f32 %v4076_v16, %v274_v41  ;;  %v4212_v56 = vld [vmem:[#allocation2 + $0x14] ss:$0 sps:$4 sm:$0x11]   ;;  %v252_v9 = vmul.f32 %v4071_v15, %v216_v63 }
  0x2e   : > { %v774_v46 = vsel %vm4130_vm9, %v766_v20, %v773_v31  ;;  %v966_v47 = vsel %vm4089_vm5, %v775_v32, %v965_v22  ;;  %v578_v48 = vor.u32 %v576_v24, %v575_v33  ;;  %v579_v49 = vrot.slane %v575_v33, 4  ;;  %v381_v14 = vld [vmem:[#allocation2 + $0x24] sm:$0x1]  ;;  %v431_v22 = vld [vmem:[#allocation2 + $0x2c] sm:$0x1]  ;;  %v3887_v24 = vld [vmem:[%s5306_s2 + $0xd8] sm:$0xff]  }
  0x2f   : > { %v888_v36 = vld [vmem:[#allocation2 + $0x20] sm:$0x1]  ;;  %v4206_v51 = vsel %vm1187_vm4, %v1338_v38, %v1342_v26  ;;  %964 = vst [vmem:[#allocation2 + $0xa0] sm:$0xf] %v774_v46  ;;  %967 = vst [vmem:[#allocation2 + $0xa4] sm:$0x1] %v966_v47  ;;  %v586_v53 = vor.u32 %v584_v35, %v583_v40  ;;  %v253_v12 = vmul.f32 %v4071_v15, %v217_v8 }
  0x30   : > { %v588_v54 = vrot.slane %v583_v40, 4  ;;  %2217 = vmatprep.mubr.bf16.mxu1 %v4206_v51  ;;  %v885_v59 = vsel %vm4145_vm10, %v578_v48, %v884_v13  ;;  %v415_v61 = vsel %vm4089_vm5, 0, %v414_v44  ;;  %v465_v62 = vsel %vm4099_vm6, 0, %v464_v50  ;;  %v3889_v38 = vld [vmem:[%s5306_s2 + $0x98] sm:$0xff]   ;;  %v3893_v44 = vld [vmem:[%s5306_s2 + $0xe0] sm:$0xff]  }
  0x31   : > { %2218 = vmatmul.mubr.bf16.vlgmr.msra.gmra.mrb[0].mxu1 %v3871_v3  ;;  %v587_v4 = vsel %vm4130_vm9, %v579_v49, %v586_v53  ;;  %886 = vst [vmem:[#allocation2 + $0x18] sm:$0xf] %v885_v59  ;;  %416 = vst [vmem:[#allocation2 + $0xa8] sm:$0x1] %v415_v61  ;;  %v1208_v6 = vshll.u32 %v4212_v56, 16  ;;  %v342_v7 = vmax.f32 %v310_v55, 0.0  ;;  %v288_v21 = vadd.f32 %v4076_v16, %v252_v9 }
  0x32   : > { %v4208_v52 = vld [vmem:[#allocation2 + $0xc] sm:$0xff]   ;;  %v889_v5 = vsel %vm4089_vm5, %v588_v54, %v888_v36  ;;  %466 = vst [vmem:[#allocation2 + $0xb0] sm:$0x1] %v465_v62  ;;  %3421 = vmatpush3.bf16.msra.mxu1 %v3875_v39  ;;  %887 = vst [vmem:[#allocation2 + $0x1c] sm:$0xf] %v587_v4  ;;  %v343_v3 = vmax.f32 %v311_v60, 0.0  ;;  %v289_v13 = vadd.f32 %v4076_v16, %v253_v12 }
  0x33   : > { %v1201_v0 = vshrl.u32 %v4208_v52, 16  ;;  %v1203_v1 = vshll.u32 %v4208_v52, 16  ;;  %890 = vst [vmem:[#allocation2 + $0x20] sm:$0x1] %v889_v5  ;;  %3422 = vmatprep.subr.bf16.mxu1 %v3879_v45  ;;  %v1210_v17 = vrot.slane %v1208_v6, 1  ;;  %v3302_v19 = vpack.c.bf16 %v342_v7, %v342_v7  ;;  %v3894_v4 = vld [vmem:[%s5306_s2 + $0xa0] sm:$0xff]  }
  0x34   : > { %v3303_v20 = vpack.c.bf16 %v343_v3, %v343_v3  ;;  %v382_v25 = vsel %vm4089_vm5, 0, %v381_v14  ;;  %v432_v26 = vsel %vm4099_vm6, 0, %v431_v22  ;;  %v320_v40 = vmax.f32 %v288_v21, 0.0  ;;  %v240_v7 = vld [vmem:[%s4061_s18 + $0xe0] sm:$0xff]  ;;  %v417_v12 = vld [vmem:[#allocation2 + $0xb4] sm:$0x1] }
  0x35   : > { %v1205_v10 = vrot.slane %v1203_v1, 1  ;;  %v777_v28 = vshrl.u32 %v3302_v19, 16  ;;  %383 = vst [vmem:[#allocation2 + $0x24] sm:$0x1] %v382_v25  ;;  %433 = vst [vmem:[#allocation2 + $0x2c] sm:$0x1] %v432_v26  ;;  %v276_v26 = vmul.f32 %v4071_v15, %v240_v7 }
  0x36   : > { %3423 = vmatpush3.bf16.msra.mxu1 %v3880_v57  ;;  %v3881_v27 = vld [vmem:[#allocation2 + $0x9c] sm:$0xff]   ;;  %v3882_v31 = vld [vmem:[#allocation2 + $0xa4] ss:$0 sps:$4 sm:$0x11]   ;;  %v780_v32 = vshll.u32 %v3302_v19, 16  ;;  %v785_v33 = vshrl.u32 %v3303_v20, 16  ;;  %v3280_v5 = vpack.c.bf16 %v320_v40, %v320_v40 }
  0x37   : > { %v1206_v23 = vor.u32 %v1205_v10, %v1201_v0  ;;  %3424 = vmatprep.subr.bf16.mxu1 %v3883_v11  ;;  %v788_v35 = vshll.u32 %v3303_v20, 16  ;;  %v1345_v36 = vshrl.u32 %v3881_v27, 16  ;;  %v1347_v37 = vshll.u32 %v3881_v27, 16  ;;  %v241_v11 = vld [vmem:[%s4061_s18 + $0xe8] sm:$0xff]  ;;  %v467_v14 = vld [vmem:[#allocation2 + $0xbc] sm:$0x1] }
  0x38   : > { %v779_v39 = vrot.slane %v777_v28, 7  ;;  %v1352_v41 = vshll.u32 %v3882_v31, 16  ;;  %v787_v49 = vrot.slane %v785_v33, 7  ;;  %v968_v55 = vld [vmem:[#allocation2 + $0xa8] sm:$0xf]  ;;  %v321_v57 = vmax.f32 %v289_v13, 0.0 }
  0x39   : > { %v4251_v30 = vsel %vm1187_vm4, %v1206_v23, %v1210_v17  ;;  %v4258_v43 = vld [vmem:[#allocation2 + $0x18] sm:$0xff]   ;;  %v1349_v45 = vrot.slane %v1347_v37, 1  ;;  %v972_v63 = vld [vmem:[#allocation2 + $0xb0] sm:$0x1]  ;;  %v593_v19 = vshll.u32 %v3280_v5, 16  ;;  %v3897_v21 = vld [vmem:[%s5306_s2 + $0xe8] sm:$0xff]   ;;  %v277_v28 = vmul.f32 %v4071_v15, %v241_v11 }
  0x3a   : > { %2129 = vmatprep.mubr.bf16.mxu0 %v4251_v30  ;;  %3425 = vmatpush3.bf16.msra.mxu1 %v3884_v18  ;;  %v4263_v46 = vld [vmem:[#allocation2 + $0x20] ss:$0 sps:$4 sm:$0x11]   ;;  %v782_v47 = vor.u32 %v780_v32, %v779_v39  ;;  %v783_v48 = vrot.slane %v779_v39, 4  ;;  %v1354_v50 = vrot.slane %v1352_v41, 1  ;;  %v1213_v53 = vshrl.u32 %v4258_v43, 16 }
  0x3b   : > { %2130 = vmatmul.mubr.bf16.gmra.mrb[4].mxu0 %v4208_v52  ;;  %v1215_v54 = vshll.u32 %v4258_v43, 16  ;;  %3426 = vmatprep.subr.bf16.mxu1 %v3887_v24  ;;  %v1350_v59 = vor.u32 %v1349_v45, %v1345_v36  ;;  %v1220_v60 = vshll.u32 %v4263_v46, 16  ;;  %v790_v61 = vor.u32 %v788_v35, %v787_v49  ;;  %v3898_v25 = vld [vmem:[%s5306_s2 + $0xa8] sm:$0xff]   ;;  %v3902_v35 = vld [vmem:[%s5306_s2 + $0x150] sm:$0xff]  }
  0x3c   : > { %v792_v62 = vrot.slane %v787_v49, 4  ;;  %v969_v1 = vsel %vm4145_vm10, %v782_v47, %v968_v55  ;;  %v3281_v6 = vpack.c.bf16 %v321_v57, %v321_v57  ;;  %v590_v18 = vshrl.u32 %v3280_v5, 16  ;;  %v891_v23 = vld [vmem:[#allocation2 + $0x24] sm:$0xf]  ;;  %v895_v24 = vld [vmem:[#allocation2 + $0x2c] sm:$0x1]  ;;  %3536 = vmatprep.subr.bf16.mxu0 %v3902_v35 }
  0x3d   : > { %v1217_v0 = vrot.slane %v1215_v54, 1  ;;  %v4275_v3 = vsel %vm1187_vm4, %v1350_v59, %v1354_v50  ;;  %v1222_v8 = vrot.slane %v1220_v60, 1  ;;  %v791_v9 = vsel %vm4130_vm9, %v783_v48, %v790_v61  ;;  %970 = vst [vmem:[#allocation2 + $0xa8] sm:$0xf] %v969_v1  ;;  %v3903_v48 = vld [vmem:[%s5306_s2 + $0xb0] sm:$0xff]  }
  0x3e   : > { %3427 = vmatpush3.bf16.msra.mxu1 %v3889_v38  ;;  %v973_v10 = vsel %vm4089_vm5, %v792_v62, %v972_v63  ;;  %2225 = vmatprep.mubr.bf16.mxu1 %v4275_v3  ;;  %971 = vst [vmem:[#allocation2 + $0xac] sm:$0xf] %v791_v9  ;;  %v598_v20 = vshrl.u32 %v3281_v6, 16  ;;  %v601_v22 = vshll.u32 %v3281_v6, 16  ;;  %v418_v13 = vsel %vm4089_vm5, 0, %v417_v12  ;;  %v3901_v38 = vld [vmem:[%s5306_s2 + $0xf0] sm:$0xff]  }
  0x3f   : > { %v1218_v17 = vor.u32 %v1217_v0, %v1213_v53  ;;  %974 = vst [vmem:[#allocation2 + $0xb0] sm:$0x1] %v973_v10  ;;  %3428 = vmatprep.subr.bf16.mxu1 %v3893_v44  ;;  %2226 = vmatmul.mubr.bf16.gmra.mrb[4].mxu1 %v3881_v27  ;;  %v592_v32 = vrot.slane %v590_v18, 7  ;;  %419 = vst [vmem:[#allocation2 + $0xb4] sm:$0x1] %v418_v13  ;;  %v468_v27 = vsel %vm4099_vm6, 0, %v467_v14 }
  0x40   : > { %v600_v33 = vrot.slane %v598_v20, 7  ;;  %v312_v36 = vadd.f32 %v4076_v16, %v276_v26  ;;  %v313_v37 = vadd.f32 %v4076_v16, %v277_v28  ;;  %469 = vst [vmem:[#allocation2 + $0xbc] sm:$0x1] %v468_v27  ;;  %v3904_v49 = vld [vmem:[%s5306_s2 + $0x110] sm:$0xff]   ;;  %v219_v53 = vld [vmem:[%s4061_s18 + $0x38] sm:$0xff] }
  0x41   : > { %v4294_v31 = vsel %vm1187_vm4, %v1218_v17, %v1222_v8  ;;  %v595_v39 = vor.u32 %v593_v19, %v592_v32  ;;  %v596_v40 = vrot.slane %v592_v32, 4  ;;  %v218_v50 = vld [vmem:[%s4061_s18 + $0x30] sm:$0xff]  ;;  %v434_v61 = vld [vmem:[#allocation2 + $0x38] sm:$0x1]  ;;  %3537 = vmatpush3.bf16.msra.mxu0 %v3904_v49  ;;  %v255_v1 = vmul.f32 %v4071_v15, %v219_v53  ;;  %v3909_v32 = vld [vmem:[%s5306_s2 + $0x1c0] sm:$0xff]  }
  0x42   : > { %2137 = vmatprep.mubr.bf16.mxu0 %v4294_v31  ;;  %3429 = vmatpush3.bf16.msra.mxu1 %v3894_v4  ;;  %v603_v41 = vor.u32 %v601_v22, %v600_v33  ;;  %v605_v44 = vrot.slane %v600_v33, 4  ;;  %v344_v45 = vmax.f32 %v312_v36, 0.0  ;;  %v345_v47 = vmax.f32 %v313_v37, 0.0  ;;  %v384_v60 = vld [vmem:[#allocation2 + $0x30] sm:$0x1]  ;;  %v3907_v20 = vld [vmem:[%s5306_s2 + $0xf8] sm:$0xff]  }
  0x43   : > { %2138 = vmatmul.mubr.bf16.gmra.mrb[8].mxu0 %v4258_v43  ;;  %3430 = vmatprep.subr.bf16.mxu1 %v3897_v21  ;;  %v892_v55 = vsel %vm4145_vm10, %v595_v39, %v891_v23  ;;  %v254_v59 = vmul.f32 %v4071_v15, %v218_v50  ;;  %v385_v4 = vsel %vm4089_vm5, 0, %v384_v60  ;;  %v435_v7 = vsel %vm4099_vm6, 0, %v434_v61 }
  0x44   : > { %v604_v54 = vsel %vm4130_vm9, %v596_v40, %v603_v41  ;;  %v896_v57 = vsel %vm4089_vm5, %v605_v44, %v895_v24  ;;  %893 = vst [vmem:[#allocation2 + $0x24] sm:$0xf] %v892_v55  ;;  %v3304_v63 = vpack.c.bf16 %v344_v45, %v344_v45  ;;  %v3305_v0 = vpack.c.bf16 %v345_v47, %v345_v47  ;;  %v3908_v24 = vld [vmem:[%s5306_s2 + $0xb8] sm:$0xff]  }
  0x45   : > { %v3891_v62 = vld [vmem:[#allocation2 + $0xa8] sm:$0xff]   ;;  %894 = vst [vmem:[#allocation2 + $0x28] sm:$0xf] %v604_v54  ;;  %897 = vst [vmem:[#allocation2 + $0x2c] sm:$0x1] %v896_v57  ;;  %v290_v6 = vadd.f32 %v4076_v16, %v254_v59  ;;  %v291_v19 = vadd.f32 %v4076_v16, %v255_v1  ;;  %v220_v54 = vld [vmem:[%s4061_s18 + $0x40] sm:$0xff] }
  0x46   : > { %3431 = vmatpush3.bf16.msra.mxu1 %v3898_v25  ;;  %v3892_v5 = vld [vmem:[#allocation2 + $0xb0] ss:$0 sps:$4 sm:$0x11]   ;;  %386 = vst [vmem:[#allocation2 + $0x30] sm:$0x1] %v385_v4  ;;  %v1357_v8 = vshrl.u32 %v3891_v62, 16 }
  0x47   : > { %3432 = vmatprep.subr.bf16.mxu1 %v3901_v38  ;;  %v1359_v9 = vshll.u32 %v3891_v62, 16  ;;  %v794_v10 = vshrl.u32 %v3304_v63, 16  ;;  %v797_v11 = vshll.u32 %v3304_v63, 16  ;;  %436 = vst [vmem:[#allocation2 + $0x38] sm:$0x1] %v435_v7  ;;  %v1364_v12 = vshll.u32 %v3892_v5, 16 }
  0x48   : > { %v802_v14 = vshrl.u32 %v3305_v0, 16  ;;  %v805_v17 = vshll.u32 %v3305_v0, 16  ;;  %v975_v18 = vld [vmem:[#allocation2 + $0xb4] sm:$0xf]  ;;  %v322_v23 = vmax.f32 %v290_v6, 0.0  ;;  %v323_v13 = vmax.f32 %v291_v19, 0.0 }
  0x49   : > { %v1361_v21 = vrot.slane %v1359_v9, 1  ;;  %v796_v22 = vrot.slane %v794_v10, 7  ;;  %v1366_v25 = vrot.slane %v1364_v12, 1  ;;  %v979_v28 = vld [vmem:[#allocation2 + $0xbc] sm:$0x1]  ;;  %v221_v0 = vld [vmem:[%s4061_s18 + $0x48] sm:$0xff]  ;;  %v256_v5 = vmul.f32 %v4071_v15, %v220_v54 }
  0x4a   : > { %3433 = vmatpush3.bf16.msra.mxu1 %v3903_v48  ;;  %v804_v26 = vrot.slane %v802_v14, 7  ;;  %v3282_v36 = vpack.c.bf16 %v322_v23, %v322_v23  ;;  %v3283_v38 = vpack.c.bf16 %v323_v13, %v323_v13  ;;  %v437_v14 = vld [vmem:[#allocation2 + $0x44] sm:$0x1] }
  0x4b   : > { %3434 = vmatprep.subr.bf16.mxu1 %v3907_v20  ;;  %v1362_v33 = vor.u32 %v1361_v21, %v1357_v8  ;;  %v799_v27 = vor.u32 %v797_v11, %v796_v22  ;;  %v800_v35 = vrot.slane %v796_v22, 4  ;;  %v387_v8 = vld [vmem:[#allocation2 + $0x3c] sm:$0x1] }
  0x4c   : > { %v807_v37 = vor.u32 %v805_v17, %v804_v26  ;;  %v4342_v40 = vld [vmem:[#allocation2 + $0x24] sm:$0xff]   ;;  %v4344_v41 = vld [vmem:[#allocation2 + $0x2c] ss:$0 sps:$4 sm:$0x11]   ;;  %v809_v44 = vrot.slane %v804_v26, 4  ;;  %v607_v47 = vshrl.u32 %v3282_v36, 16 }
  0x4d   : > { %v4340_v39 = vsel %vm1187_vm4, %v1362_v33, %v1366_v25  ;;  %v976_v45 = vsel %vm4145_vm10, %v799_v27, %v975_v18  ;;  %v610_v49 = vshll.u32 %v3282_v36, 16  ;;  %v615_v50 = vshrl.u32 %v3283_v38, 16  ;;  %v898_v61 = vld [vmem:[#allocation2 + $0x30] sm:$0xf]  ;;  %v4386_v33 = vld [vmem:[%s5305_s1] ss:$0 sm:$0xff] }
  0x4e   : > { %3435 = vmatpush3.bf16.msra.mxu1 %v3908_v24  ;;  %2233 = vmatprep.mubr.bf16.mxu1 %v4340_v39  ;;  %v808_v48 = vsel %vm4130_vm9, %v800_v35, %v807_v37  ;;  %977 = vst [vmem:[#allocation2 + $0xb4] sm:$0xf] %v976_v45  ;;  %v618_v53 = vshll.u32 %v3283_v38, 16  ;;  %v1225_v55 = vshrl.u32 %v4342_v40, 16  ;;  %v1227_v57 = vshll.u32 %v4342_v40, 16  ;;  %v3914_v24 = vld [vmem:[%s5306_s2 + $0x118] sm:$0xff]  }
  0x4f   : > { %3644 = vmatprep.subr.bf16.mxu1 %v3909_v32  ;;  %2234 = vmatmul.mubr.bf16.gmra.mrb[8].mxu1 %v3891_v62  ;;  %v1232_v59 = vshll.u32 %v4344_v41, 16  ;;  %978 = vst [vmem:[#allocation2 + $0xb8] sm:$0xf] %v808_v48  ;;  %v980_v60 = vsel %vm4089_vm5, %v809_v44, %v979_v28  ;;  %v902_v63 = vld [vmem:[#allocation2 + $0x38] sm:$0x1]  ;;  %v609_v1 = vrot.slane %v607_v47, 7  ;;  %v257_v62 = vmul.f32 %v4071_v15, %v221_v0 }
  0x50   : > { %981 = vst [vmem:[#allocation2 + $0xbc] sm:$0x1] %v980_v60  ;;  %v617_v4 = vrot.slane %v615_v50, 7  ;;  %v1229_v6 = vrot.slane %v1227_v57, 1  ;;  %v292_v18 = vadd.f32 %v4076_v16, %v256_v5  ;;  %v388_v20 = vsel %vm4089_vm5, 0, %v387_v8  ;;  %v3913_v15 = vld [vmem:[%s5306_s2 + $0x158] sm:$0xff]  }
  0x51   : > { %v1234_v7 = vrot.slane %v1232_v59, 1  ;;  %v612_v9 = vor.u32 %v610_v49, %v609_v1  ;;  %v613_v10 = vrot.slane %v609_v1, 4  ;;  %v293_v19 = vadd.f32 %v4076_v16, %v257_v62  ;;  %389 = vst [vmem:[#allocation2 + $0x3c] sm:$0x1] %v388_v20  ;;  %v222_v25 = vld [vmem:[%s4061_s18 + $0x50] sm:$0xff]  ;;  %3538 = vmatprep.subr.bf16.mxu0 %v3913_v15  ;;  %v223_v32 = vld [vmem:[%s4061_s18 + $0x58] sm:$0xff] }
  0x52   : > { %v620_v11 = vor.u32 %v618_v53, %v617_v4  ;;  %v622_v12 = vrot.slane %v617_v4, 4  ;;  %v1230_v17 = vor.u32 %v1229_v6, %v1225_v55  ;;  %v438_v16 = vsel %vm4099_vm6, 0, %v437_v14  ;;  %v3917_v35 = vld [vmem:[%s5306_s2 + $0x160] sm:$0xff]   ;;  %3539 = vmatpush3.bf16.msra.mxu0 %v3914_v24  ;;  %v390_v38 = vld [vmem:[#allocation2 + $0x48] sm:$0x1] }
  0x53   : > { %v899_v22 = vsel %vm4145_vm10, %v612_v9, %v898_v61  ;;  %v324_v28 = vmax.f32 %v292_v18, 0.0  ;;  %v325_v13 = vmax.f32 %v293_v19, 0.0  ;;  %439 = vst [vmem:[#allocation2 + $0x44] sm:$0x1] %v438_v16  ;;  %v258_v27 = vmul.f32 %v4386_v33, %v222_v25  ;;  %v4398_v48 = vld [vmem:[%s5305_s1 + $0x1] ss:$0 sm:$0xff]  ;;  %3540 = vmatprep.subr.bf16.mxu0 %v3917_v35 }
  0x54   : > { %v621_v21 = vsel %vm4130_vm9, %v613_v10, %v620_v11  ;;  %v903_v23 = vsel %vm4089_vm5, %v622_v12, %v902_v63  ;;  %v4380_v26 = vsel %vm1187_vm4, %v1230_v17, %v1234_v7  ;;  %900 = vst [vmem:[#allocation2 + $0x30] sm:$0xf] %v899_v22  ;;  %v259_v37 = vmul.f32 %v4386_v33, %v223_v32  ;;  %v440_v57 = vld [vmem:[#allocation2 + $0x50] sm:$0x1]  ;;  %v3919_v35 = vld [vmem:[%s5306_s2 + $0x120] sm:$0xff]  }
  0x55   : > { %901 = vst [vmem:[#allocation2 + $0x34] sm:$0xf] %v621_v21  ;;  %904 = vst [vmem:[#allocation2 + $0x38] sm:$0x1] %v903_v23  ;;  %2145 = vmatprep.mubr.bf16.mxu0 %v4380_v26  ;;  %v3284_v45 = vpack.c.bf16 %v324_v28, %v324_v28  ;;  %v3285_v47 = vpack.c.bf16 %v325_v13, %v325_v13  ;;  %v294_v49 = vadd.f32 %v4398_v48, %v258_v27 }
  0x56   : > { %v3899_v36 = vld [vmem:[#allocation2 + $0xb4] sm:$0xff]   ;;  %2146 = vmatmul.mubr.bf16.gmra.mrb[12].mxu0 %v4342_v40  ;;  %v391_v50 = vsel %vm4089_vm5, 0, %v390_v38  ;;  %v295_v55 = vadd.f32 %v4398_v48, %v259_v37  ;;  %v441_v9 = vsel %vm4099_vm6, 0, %v440_v57 }
  0x57   : > { %v3900_v44 = vld [vmem:[#allocation2 + $0xbc] ss:$0 sps:$4 sm:$0x11]   ;;  %v1369_v53 = vshrl.u32 %v3899_v36, 16  ;;  %v1371_v54 = vshll.u32 %v3899_v36, 16  ;;  %v624_v60 = vshrl.u32 %v3284_v45, 16  ;;  %3541 = vmatpush3.bf16.msra.mxu0 %v3919_v35 }
  0x58   : > { %392 = vst [vmem:[#allocation2 + $0x48] sm:$0x1] %v391_v50  ;;  %v1376_v59 = vshll.u32 %v3900_v44, 16  ;;  %v627_v61 = vshll.u32 %v3284_v45, 16  ;;  %v632_v63 = vshrl.u32 %v3285_v47, 16  ;;  %v635_v1 = vshll.u32 %v3285_v47, 16 }
  0x59   : > { %v1373_v0 = vrot.slane %v1371_v54, 1  ;;  %v326_v4 = vmax.f32 %v294_v49, 0.0  ;;  %v327_v5 = vmax.f32 %v295_v55, 0.0  ;;  %v626_v6 = vrot.slane %v624_v60, 7  ;;  %v905_v8 = vld [vmem:[#allocation2 + $0x3c] sm:$0xf] }
  0x5a   : > { %v1378_v62 = vrot.slane %v1376_v59, 1  ;;  %v634_v7 = vrot.slane %v632_v63, 7  ;;  %442 = vst [vmem:[#allocation2 + $0x50] sm:$0x1] %v441_v9  ;;  %v909_v22 = vld [vmem:[#allocation2 + $0x44] sm:$0x1] }
  0x5b   : > { %v1374_v10 = vor.u32 %v1373_v0, %v1369_v53  ;;  %v3286_v11 = vpack.c.bf16 %v326_v4, %v326_v4  ;;  %v3287_v12 = vpack.c.bf16 %v327_v5, %v327_v5  ;;  %v629_v18 = vor.u32 %v627_v61, %v626_v6  ;;  %v3910_v59 = vld [vmem:[%s5306_s2 + $0x180] sm:$0xff]   ;;  %v443_v9 = vld [vmem:[#allocation2 + $0x5c] sm:$0x1] }
  0x5c   : > { %v4406_v14 = vld [vmem:[#allocation2 + $0x30] sm:$0xff]   ;;  %v4408_v17 = vld [vmem:[#allocation2 + $0x38] ss:$0 sps:$4 sm:$0x11]   ;;  %v630_v19 = vrot.slane %v626_v6, 4  ;;  %v637_v20 = vor.u32 %v635_v1, %v634_v7  ;;  %v639_v15 = vrot.slane %v634_v7, 4 }
  0x5d   : > { %v4411_v21 = vsel %vm1187_vm4, %v1374_v10, %v1378_v62  ;;  %v641_v23 = vshrl.u32 %v3286_v11, 16  ;;  %v644_v16 = vshll.u32 %v3286_v11, 16  ;;  %v649_v24 = vshrl.u32 %v3287_v12, 16  ;;  %v224_v1 = vld [vmem:[%s4061_s18 + $0x60] sm:$0xff]  ;;  %v3918_v62 = vld [vmem:[%s5306_s2 + $0x1c8] sm:$0xff]  }
  0x5e   : > { %2241 = vmatprep.mubr.bf16.mxu1 %v4411_v21  ;;  %v1237_v25 = vshrl.u32 %v4406_v14, 16  ;;  %v1239_v28 = vshll.u32 %v4406_v14, 16  ;;  %v1244_v13 = vshll.u32 %v4408_v17, 16  ;;  %v638_v32 = vsel %vm4130_vm9, %v630_v19, %v637_v20  ;;  %v226_v19 = vld [vmem:[%s4061_s18 + $0x70] sm:$0xff]  ;;  %v227_v20 = vld [vmem:[%s4061_s18 + $0x78] sm:$0xff] }
  0x5f   : > { %v912_v27 = vld [vmem:[#allocation2 + $0x48] sm:$0xf]  ;;  %2242 = vmatmul.mubr.bf16.gmra.mrb[12].mxu1 %v3899_v36  ;;  %v906_v37 = vsel %vm4145_vm10, %v629_v18, %v905_v8  ;;  %908 = vst [vmem:[#allocation2 + $0x40] sm:$0xf] %v638_v32  ;;  %v910_v38 = vsel %vm4089_vm5, %v639_v15, %v909_v22  ;;  %v643_v44 = vrot.slane %v641_v23, 7  ;;  %v651_v45 = vrot.slane %v649_v24, 7 }
  0x60   : > { %v1241_v47 = vrot.slane %v1239_v28, 1  ;;  %v1246_v49 = vrot.slane %v1244_v13, 1  ;;  %2282 = vmatprep.mubr.bf16.mxu1 %v4208_v52  ;;  %907 = vst [vmem:[#allocation2 + $0x3c] sm:$0xf] %v906_v37  ;;  %911 = vst [vmem:[#allocation2 + $0x44] sm:$0x1] %v910_v38  ;;  %v260_v7 = vmul.f32 %v4386_v33, %v224_v1  ;;  %v263_v32 = vmul.f32 %v4386_v33, %v227_v20 }
  0x61   : > { %v1400_v50 = vrot.slane %v4208_v52, 1  ;;  %v652_v53 = vshll.u32 %v3287_v12, 16  ;;  %v646_v36 = vor.u32 %v644_v16, %v643_v44  ;;  %v647_v54 = vrot.slane %v643_v44, 4  ;;  %v916_v63 = vld [vmem:[#allocation2 + $0x50] sm:$0x1]  ;;  %v3920_v28 = vld [vmem:[%s5306_s2 + $0x188] sm:$0xff]  }
  0x62   : > { %v656_v55 = vrot.slane %v651_v45, 4  ;;  %v1242_v57 = vor.u32 %v1241_v47, %v1237_v25  ;;  %v1401_v60 = vrot.slane %v4212_v56, 1  ;;  %v1403_v0 = vrot.slane %v4258_v43, 1  ;;  %v225_v56 = vld [vmem:[%s4061_s18 + $0x68] sm:$0xff]  ;;  %v393_v8 = vld [vmem:[#allocation2 + $0x54] sm:$0x1] }
  0x63   : > { %v654_v61 = vor.u32 %v652_v53, %v651_v45  ;;  %v913_v4 = vsel %vm4145_vm10, %v646_v36, %v912_v27  ;;  %v1404_v6 = vrot.slane %v4263_v46, 1  ;;  %v261_v12 = vmul.f32 %v4386_v33, %v225_v56  ;;  %v396_v15 = vld [vmem:[#allocation2 + $0x60] sm:$0x1]  ;;  %v446_v24 = vld [vmem:[#allocation2 + $0x68] sm:$0x1] }
  0x64   : > { %v917_v5 = vsel %vm4089_vm5, %v656_v55, %v916_v63  ;;  %v4445_v10 = vsel %vm1187_vm4, %v1242_v57, %v1246_v49  ;;  %914 = vst [vmem:[#allocation2 + $0x48] sm:$0xf] %v913_v4  ;;  %v394_v18 = vsel %vm4089_vm5, 0, %v393_v8  ;;  %v296_v22 = vadd.f32 %v4398_v48, %v260_v7  ;;  %v3925_v25 = vld [vmem:[%s5306_s2 + $0x168] sm:$0xff]  }
  0x65   : > { %v655_v11 = vsel %vm4130_vm9, %v647_v54, %v654_v61  ;;  %918 = vst [vmem:[#allocation2 + $0x50] sm:$0x1] %v917_v5  ;;  %2153 = vmatprep.mubr.bf16.mxu0 %v4445_v10  ;;  %395 = vst [vmem:[#allocation2 + $0x54] sm:$0x1] %v394_v18  ;;  %v444_v23 = vsel %vm4099_vm6, 0, %v443_v9  ;;  %v262_v16 = vmul.f32 %v4386_v33, %v226_v19  ;;  %v397_v27 = vsel %vm4089_vm5, 0, %v396_v15 }
  0x66   : > { %915 = vst [vmem:[#allocation2 + $0x4c] sm:$0xf] %v655_v11  ;;  %2154 = vmatmul.mubr.bf16.gmra.mrb[16].mxu0 %v4406_v14  ;;  %v297_v13 = vadd.f32 %v4398_v48, %v261_v12  ;;  %445 = vst [vmem:[#allocation2 + $0x5c] sm:$0x1] %v444_v23  ;;  %v447_v35 = vsel %vm4099_vm6, 0, %v446_v24  ;;  %v328_v38 = vmax.f32 %v296_v22, 0.0  ;;  %3542 = vmatprep.subr.bf16.mxu0 %v3925_v25 }
  0x67   : > { %2283 = vmatmul.mubr.bf16.vlgmr.msra.gmra.mrb[16].mxu1 %v4113_v42  ;;  %v4473_v37 = vld [vmem:[#allocation2 + $0x3c] sm:$0xff]   ;;  %v298_v44 = vadd.f32 %v4398_v48, %v262_v16  ;;  %398 = vst [vmem:[#allocation2 + $0x60] sm:$0x1] %v397_v27  ;;  %448 = vst [vmem:[#allocation2 + $0x68] sm:$0x1] %v447_v35  ;;  %v299_v49 = vadd.f32 %v4398_v48, %v263_v32  ;;  %v3926_v55 = vld [vmem:[%s5306_s2 + $0x128] sm:$0xff]   ;;  %v4489_v1 = vsel %vm1396_vm1, %v1400_v50, %v1401_v60 }
  0x68   : > { %3645 = vmatpush3.bf16.msra.mxu1 %v3910_v59  ;;  %v4476_v45 = vld [vmem:[#allocation2 + $0x44] ss:$0 sps:$4 sm:$0x11]   ;;  %2290 = vmatprep.mubr.bf16.mxu1 %v4258_v43  ;;  %v329_v47 = vmax.f32 %v297_v13, 0.0  ;;  %v1249_v53 = vshrl.u32 %v4473_v37, 16  ;;  %v1251_v42 = vshll.u32 %v4473_v37, 16  ;;  %v3288_v36 = vpack.c.bf16 %v328_v38, %v328_v38 }
  0x69   : > { %3646 = vmatprep.subr.bf16.mxu1 %v3918_v62  ;;  %v330_v54 = vmax.f32 %v298_v44, 0.0  ;;  %v1256_v57 = vshll.u32 %v4476_v45, 16  ;;  %v331_v61 = vmax.f32 %v299_v49, 0.0  ;;  %3543 = vmatpush3.bf16.msra.mxu0 %v3926_v55  ;;  %v3927_v44 = vld [vmem:[%s5306_s2 + $0x1d0] sm:$0xff]  }
  0x6a   : > { %v3289_v59 = vpack.c.bf16 %v329_v47, %v329_v47  ;;  %v1253_v63 = vrot.slane %v1251_v42, 1  ;;  %v658_v4 = vshrl.u32 %v3288_v36, 16  ;;  %v661_v7 = vshll.u32 %v3288_v36, 16  ;;  %v3928_v36 = vld [vmem:[%s5306_s2 + $0x190] sm:$0xff]  }
  0x6b   : > { %v3290_v5 = vpack.c.bf16 %v330_v54, %v330_v54  ;;  %v1258_v62 = vrot.slane %v1256_v57, 1  ;;  %v3291_v9 = vpack.c.bf16 %v331_v61, %v331_v61  ;;  %v228_v61 = vld [vmem:[%s4061_s18 + $0x80] sm:$0xff] }
  0x6c   : > { %3647 = vmatpush3.bf16.msra.mxu1 %v3920_v28  ;;  %v666_v8 = vshrl.u32 %v3289_v59, 16  ;;  %v1254_v11 = vor.u32 %v1253_v63, %v1249_v53  ;;  %v4493_v12 = vld [vmem:[#allocation2 + $0x50] ss:$0 sps:$4 sm:$0x11]   ;;  %v660_v18 = vrot.slane %v658_v4, 7  ;;  %v669_v19 = vshll.u32 %v3289_v59, 16 }
  0x6d   : > { %v4491_v56 = vld [vmem:[#allocation2 + $0x48] sm:$0xff]   ;;  %v675_v20 = vshrl.u32 %v3290_v5, 16  ;;  %v919_v15 = vld [vmem:[#allocation2 + $0x54] sm:$0xf]  ;;  %v678_v22 = vshll.u32 %v3290_v5, 16  ;;  %v1268_v16 = vshll.u32 %v4493_v12, 16  ;;  %3648 = vmatprep.subr.bf16.mxu1 %v3927_v44  ;;  %v4524_v4 = vsel %vm1396_vm1, %v1403_v0, %v1404_v6 }
  0x6e   : > { %v1261_v52 = vshrl.u32 %v4491_v56, 16  ;;  %v1263_v50 = vshll.u32 %v4491_v56, 16  ;;  %v668_v60 = vrot.slane %v666_v8, 7  ;;  %v4498_v23 = vsel %vm1187_vm4, %v1254_v11, %v1258_v62  ;;  %v923_v28 = vld [vmem:[#allocation2 + $0x5c] sm:$0x1]  ;;  %v229_v63 = vld [vmem:[%s4061_s18 + $0x88] sm:$0xff] }
  0x6f   : > { %2291 = vmatmul.mubr.bf16.gmra.mrb[20].mxu1 %v4489_v1  ;;  %v663_v24 = vor.u32 %v661_v7, %v660_v18  ;;  %v664_v25 = vrot.slane %v660_v18, 4  ;;  %2161 = vmatprep.mubr.bf16.mxu0 %v4498_v23  ;;  %v677_v35 = vrot.slane %v675_v20, 7  ;;  %v926_v38 = vld [vmem:[#allocation2 + $0x60] sm:$0xf]  ;;  %v1270_v47 = vrot.slane %v1268_v16, 1  ;;  %v3931_v20 = vld [vmem:[%s5306_s2 + $0x170] sm:$0xff]  }
  0x70   : > { %v1265_v13 = vrot.slane %v1263_v50, 1  ;;  %2298 = vmatprep.mubr.bf16.mxu1 %v4342_v40  ;;  %v671_v32 = vor.u32 %v669_v19, %v668_v60  ;;  %v673_v27 = vrot.slane %v668_v60, 4  ;;  %2162 = vmatmul.mubr.bf16.gmra.mrb[20].mxu0 %v4473_v37  ;;  %v683_v53 = vshrl.u32 %v3291_v9, 16  ;;  %v930_v7 = vld [vmem:[#allocation2 + $0x68] sm:$0x1]  ;;  %v230_v16 = vld [vmem:[%s4061_s18 + $0x90] sm:$0xff] }
  0x71   : > { %v920_v49 = vsel %vm4145_vm10, %v663_v24, %v919_v15  ;;  %v686_v42 = vshll.u32 %v3291_v9, 16  ;;  %v680_v59 = vor.u32 %v678_v22, %v677_v35  ;;  %v681_v5 = vrot.slane %v677_v35, 4  ;;  %3649 = vmatpush3.bf16.msra.mxu1 %v3928_v36  ;;  %v399_v8 = vld [vmem:[#allocation2 + $0x6c] sm:$0x1]  ;;  %v449_v0 = vld [vmem:[#allocation2 + $0x74] sm:$0x1]  ;;  %3544 = vmatprep.subr.bf16.mxu0 %v3931_v20 }
  0x72   : > { %v1266_v54 = vor.u32 %v1265_v13, %v1261_v52  ;;  %v672_v55 = vsel %vm4130_vm9, %v664_v25, %v671_v32  ;;  %921 = vst [vmem:[#allocation2 + $0x54] sm:$0xf] %v920_v49  ;;  %v924_v57 = vsel %vm4089_vm5, %v673_v27, %v923_v28  ;;  %v685_v62 = vrot.slane %v683_v53, 7  ;;  %v3932_v52 = vld [vmem:[%s5306_s2 + $0x130] sm:$0xff]   ;;  %v231_v24 = vld [vmem:[%s4061_s18 + $0x98] sm:$0xff] }
  0x73   : > { %922 = vst [vmem:[#allocation2 + $0x58] sm:$0xf] %v672_v55  ;;  %925 = vst [vmem:[#allocation2 + $0x5c] sm:$0x1] %v924_v57  ;;  %v927_v11 = vsel %vm4145_vm10, %v680_v59, %v926_v38  ;;  %v264_v46 = vmul.f32 %v4386_v33, %v228_v61  ;;  %v265_v43 = vmul.f32 %v4386_v33, %v229_v63  ;;  %v400_v19 = vsel %vm4089_vm5, 0, %v399_v8  ;;  %v3935_v35 = vld [vmem:[%s5306_s2 + $0x1d8] sm:$0xff]  }
  0x74   : > { %v4527_v9 = vsel %vm1187_vm4, %v1266_v54, %v1270_v47  ;;  %v688_v6 = vor.u32 %v686_v42, %v685_v62  ;;  %v690_v18 = vrot.slane %v685_v62, 4  ;;  %928 = vst [vmem:[#allocation2 + $0x60] sm:$0xf] %v927_v11  ;;  %v1406_v50 = vrot.slane %v4342_v40, 1  ;;  %401 = vst [vmem:[#allocation2 + $0x6c] sm:$0x1] %v400_v19  ;;  %3545 = vmatpush3.bf16.msra.mxu0 %v3932_v52 }
  0x75   : > { %2169 = vmatprep.mubr.bf16.mxu0 %v4527_v9  ;;  %v300_v60 = vadd.f32 %v4398_v48, %v264_v46  ;;  %v301_v15 = vadd.f32 %v4398_v48, %v265_v43  ;;  %v450_v22 = vsel %vm4099_vm6, 0, %v449_v0  ;;  %v1407_v25 = vrot.slane %v4344_v41, 1  ;;  %v402_v32 = vld [vmem:[#allocation2 + $0x78] sm:$0x1]  ;;  %v452_v27 = vld [vmem:[#allocation2 + $0x80] sm:$0x1]  ;;  %3650 = vmatprep.subr.bf16.mxu1 %v3935_v35 }
  0x76   : > { %v689_v28 = vsel %vm4130_vm9, %v681_v5, %v688_v6  ;;  %v931_v40 = vsel %vm4089_vm5, %v690_v18, %v930_v7  ;;  %451 = vst [vmem:[#allocation2 + $0x74] sm:$0x1] %v450_v22  ;;  %v266_v13 = vmul.f32 %v4386_v33, %v230_v16  ;;  %v267_v44 = vmul.f32 %v4386_v33, %v231_v24  ;;  %v3936_v49 = vld [vmem:[%s5306_s2 + $0x198] sm:$0xff]  }
  0x77   : > { %2299 = vmatmul.mubr.bf16.gmra.mrb[24].mxu1 %v4524_v4  ;;  %929 = vst [vmem:[#allocation2 + $0x64] sm:$0xf] %v689_v28  ;;  %932 = vst [vmem:[#allocation2 + $0x68] sm:$0x1] %v931_v40  ;;  %v332_v41 = vmax.f32 %v300_v60, 0.0  ;;  %v333_v38 = vmax.f32 %v301_v15, 0.0 }
  0x78   : > { %2306 = vmatprep.mubr.bf16.mxu1 %v4406_v14  ;;  %v403_v47 = vsel %vm4089_vm5, 0, %v402_v32  ;;  %2170 = vmatmul.mubr.bf16.gmra.mrb[24].mxu0 %v4491_v56  ;;  %v1409_v53 = vrot.slane %v4406_v14, 1  ;;  %v302_v42 = vadd.f32 %v4398_v48, %v266_v13  ;;  %v453_v36 = vsel %vm4099_vm6, 0, %v452_v27 }
  0x79   : > { %404 = vst [vmem:[#allocation2 + $0x78] sm:$0x1] %v403_v47  ;;  %v1410_v55 = vrot.slane %v4408_v17, 1  ;;  %v3292_v57 = vpack.c.bf16 %v332_v41, %v332_v41  ;;  %v3293_v59 = vpack.c.bf16 %v333_v38, %v333_v38  ;;  %v303_v61 = vadd.f32 %v4398_v48, %v267_v44  ;;  %454 = vst [vmem:[#allocation2 + $0x80] sm:$0x1] %v453_v36  ;;  %v232_v41 = vld [vmem:[%s4061_s18 + $0xa0] sm:$0xff] }
  0x7a   : > { %v4571_v54 = vld [vmem:[#allocation2 + $0x54] sm:$0xff]   ;;  %3651 = vmatpush3.bf16.msra.mxu1 %v3936_v49  ;;  %v4575_v63 = vld [vmem:[#allocation2 + $0x5c] ss:$0 sps:$4 sm:$0x11]   ;;  %v4578_v14 = vsel %vm1396_vm1, %v1406_v50, %v1407_v25  ;;  %v334_v5 = vmax.f32 %v302_v42, 0.0  ;;  %v233_v42 = vld [vmem:[%s4061_s18 + $0xa8] sm:$0xff] }
  0x7b   : > { %v1273_v62 = vshrl.u32 %v4571_v54, 16  ;;  %v1275_v7 = vshll.u32 %v4571_v54, 16  ;;  %v692_v8 = vshrl.u32 %v3292_v57, 16  ;;  %v695_v11 = vshll.u32 %v3292_v57, 16  ;;  %v933_v19 = vld [vmem:[#allocation2 + $0x6c] sm:$0xf] }
  0x7c   : > { %v1280_v17 = vshll.u32 %v4575_v63, 16  ;;  %v700_v46 = vshrl.u32 %v3293_v59, 16  ;;  %v703_v43 = vshll.u32 %v3293_v59, 16  ;;  %v335_v0 = vmax.f32 %v303_v61, 0.0  ;;  %v3939_v36 = vld [vmem:[%s5306_s2 + $0x178] sm:$0xff]  }
  0x7d   : > { %v1277_v6 = vrot.slane %v1275_v7, 1  ;;  %v694_v18 = vrot.slane %v692_v8, 7  ;;  %v3294_v20 = vpack.c.bf16 %v334_v5, %v334_v5  ;;  %v4587_v60 = vsel %vm1396_vm1, %v1409_v53, %v1410_v55  ;;  %v937_v15 = vld [vmem:[#allocation2 + $0x74] sm:$0x1]  ;;  %v405_v5 = vld [vmem:[#allocation2 + $0x84] sm:$0x1]  ;;  %3546 = vmatprep.subr.bf16.mxu0 %v3939_v36 }
  0x7e   : > { %v1282_v52 = vrot.slane %v1280_v17, 1  ;;  %v4584_v50 = vld [vmem:[#allocation2 + $0x60] sm:$0xff]   ;;  %v3295_v22 = vpack.c.bf16 %v335_v0, %v335_v0  ;;  %v4589_v24 = vld [vmem:[#allocation2 + $0x68] ss:$0 sps:$4 sm:$0x11]   ;;  %v702_v40 = vrot.slane %v700_v46, 7 }
  0x7f   : > { %2307 = vmatmul.mubr.bf16.gmra.mrb[28].mxu1 %v4578_v14  ;;  %v1278_v16 = vor.u32 %v1277_v6, %v1273_v62  ;;  %v697_v25 = vor.u32 %v695_v11, %v694_v18  ;;  %v698_v28 = vrot.slane %v694_v18, 4  ;;  %v1285_v13 = vshrl.u32 %v4584_v50, 16  ;;  %v3940_v62 = vld [vmem:[%s5306_s2 + $0x138] sm:$0xff]   ;;  %v3944_v36 = vld [vmem:[%s5306_s2 + $0x1e8] sm:$0xff]  }
  0x80   : > { %2314 = vmatprep.mubr.bf16.mxu1 %v4473_v37  ;;  %v1287_v32 = vshll.u32 %v4584_v50, 16  ;;  %v709_v27 = vshrl.u32 %v3294_v20, 16  ;;  %v712_v35 = vshll.u32 %v3294_v20, 16  ;;  %v1292_v44 = vshll.u32 %v4589_v24, 16  ;;  %v940_v53 = vld [vmem:[#allocation2 + $0x78] sm:$0xf]  ;;  %3547 = vmatpush3.bf16.msra.mxu0 %v3940_v62 }
  0x81   : > { %v4596_v38 = vsel %vm1187_vm4, %v1278_v16, %v1282_v52  ;;  %v705_v47 = vor.u32 %v703_v43, %v702_v40  ;;  %v707_v49 = vrot.slane %v702_v40, 4  ;;  %v934_v57 = vsel %vm4145_vm10, %v697_v25, %v933_v19  ;;  %v944_v46 = vld [vmem:[#allocation2 + $0x80] sm:$0x1]  ;;  %v455_v43 = vld [vmem:[#allocation2 + $0x8c] sm:$0x1] }
  0x82   : > { %2177 = vmatprep.mubr.bf16.mxu0 %v4596_v38  ;;  %v1289_v55 = vrot.slane %v1287_v32, 1  ;;  %v711_v59 = vrot.slane %v709_v27, 7  ;;  %v717_v61 = vshrl.u32 %v3295_v22, 16  ;;  %v1294_v7 = vrot.slane %v1292_v44, 1  ;;  %935 = vst [vmem:[#allocation2 + $0x6c] sm:$0xf] %v934_v57 }
  0x83   : > { %2178 = vmatmul.mubr.bf16.gmra.mrb[28].mxu0 %v4571_v54  ;;  %v706_v8 = vsel %vm4130_vm9, %v698_v28, %v705_v47  ;;  %v938_v11 = vsel %vm4089_vm5, %v707_v49, %v937_v15  ;;  %v720_v17 = vshll.u32 %v3295_v22, 16  ;;  %v268_v20 = vmul.f32 %v4386_v33, %v232_v41  ;;  %v4638_v44 = vld [vmem:[%s5306_s2 + $0x200] sm:$0xff]  }
  0x84   : > { %v1290_v0 = vor.u32 %v1289_v55, %v1285_v13  ;;  %936 = vst [vmem:[#allocation2 + $0x70] sm:$0xf] %v706_v8  ;;  %939 = vst [vmem:[#allocation2 + $0x74] sm:$0x1] %v938_v11  ;;  %v714_v6 = vor.u32 %v712_v35, %v711_v59  ;;  %v715_v18 = vrot.slane %v711_v59, 4  ;;  %v719_v19 = vrot.slane %v717_v61, 7  ;;  %3780 = vmatprep.subr.bf16.mxu0 %v4638_v44 }
  0x85   : > { %v269_v52 = vmul.f32 %v4386_v33, %v233_v42  ;;  %v406_v16 = vsel %vm4089_vm5, 0, %v405_v5  ;;  %v456_v15 = vsel %vm4099_vm6, 0, %v455_v43  ;;  %v3941_v13 = vld [vmem:[%s5306_s2 + $0x1e0] sm:$0xff]   ;;  %v1412_v32 = vrot.slane %v4473_v37, 1 }
  0x86   : > { %v4621_v22 = vsel %vm1187_vm4, %v1290_v0, %v1294_v7  ;;  %v722_v25 = vor.u32 %v720_v17, %v719_v19  ;;  %v724_v28 = vrot.slane %v719_v19, 4  ;;  %v941_v40 = vsel %vm4145_vm10, %v714_v6, %v940_v53  ;;  %407 = vst [vmem:[#allocation2 + $0x84] sm:$0x1] %v406_v16  ;;  %457 = vst [vmem:[#allocation2 + $0x8c] sm:$0x1] %v456_v15  ;;  %v3943_v47 = vld [vmem:[%s5306_s2 + $0x1a0] sm:$0xff]  }
  0x87   : > { %2315 = vmatmul.mubr.bf16.gmra.mrb[32].mxu1 %v4587_v60  ;;  %2185 = vmatprep.mubr.bf16.mxu0 %v4621_v22  ;;  %v1413_v27 = vrot.slane %v4476_v45, 1  ;;  %942 = vst [vmem:[#allocation2 + $0x78] sm:$0xf] %v941_v40  ;;  %v304_v35 = vadd.f32 %v4398_v48, %v268_v20  ;;  %v305_v41 = vadd.f32 %v4398_v48, %v269_v52  ;;  %v1416_v43 = vrot.slane %v4493_v12, 1  ;;  %v3946_v52 = vld [vmem:[%s5306_s2 + $0x1a8] sm:$0xff]  }
  0x88   : > { %2322 = vmatprep.mubr.bf16.mxu1 %v4491_v56  ;;  %v723_v49 = vsel %vm4130_vm9, %v715_v18, %v722_v25  ;;  %v945_v45 = vsel %vm4089_vm5, %v724_v28, %v944_v46  ;;  %3652 = vmatprep.subr.bf16.mxu1 %v3941_v13  ;;  %v1415_v46 = vrot.slane %v4491_v56, 1 }
  0x89   : > { %943 = vst [vmem:[#allocation2 + $0x7c] sm:$0xf] %v723_v49  ;;  %946 = vst [vmem:[#allocation2 + $0x80] sm:$0x1] %v945_v45  ;;  %v336_v53 = vmax.f32 %v304_v35, 0.0  ;;  %v337_v42 = vmax.f32 %v305_v41, 0.0  ;;  %3653 = vmatpush3.bf16.msra.mxu1 %v3943_v47  ;;  %v4655_v57 = vsel %vm1396_vm1, %v1412_v32, %v1413_v27 }
  0x8a   : > { %3654 = vmatprep.subr.bf16.mxu1 %v3944_v36  ;;  %v3947_v32 = vld [vmem:[%s5306_s2 + $0x1f0] sm:$0xff]   ;;  %v4679_v41 = vsel %vm1396_vm1, %v1415_v46, %v1416_v43  ;;  %v1419_v46 = vrot.slane %v4575_v63, 1  ;;  %v3950_v43 = vld [vmem:[%s5306_s2 + $0x1f8] sm:$0xff]   ;;  %v420_v63 = vld [vmem:[#allocation2 + $0xc0] sm:$0x1] }
  0x8b   : > { %2186 = vmatmul.mubr.bf16.gmra.mrb[32].mxu0 %v4584_v50  ;;  %v4652_v55 = vld [vmem:[#allocation2 + $0x6c] sm:$0xff]   ;;  %v3296_v59 = vpack.c.bf16 %v336_v53, %v336_v53  ;;  %v3297_v61 = vpack.c.bf16 %v337_v42, %v337_v42  ;;  %v4657_v5 = vld [vmem:[#allocation2 + $0x74] ss:$0 sps:$4 sm:$0x11]  }
  0x8c   : > { %v1297_v62 = vshrl.u32 %v4652_v55, 16  ;;  %v1299_v7 = vshll.u32 %v4652_v55, 16  ;;  %v1304_v17 = vshll.u32 %v4657_v5, 16  ;;  %v1424_v34 = vrot.slane %v4652_v55, 1 }
  0x8d   : > { %v726_v8 = vshrl.u32 %v3296_v59, 16  ;;  %v729_v11 = vshll.u32 %v3296_v59, 16  ;;  %v734_v0 = vshrl.u32 %v3297_v61, 16  ;;  %v737_v19 = vshll.u32 %v3297_v61, 16  ;;  %v947_v20 = vld [vmem:[#allocation2 + $0x84] sm:$0xf]  ;;  %3655 = vmatpush3.bf16.msra.mxu1 %v3946_v52 }
  0x8e   : > { %v1301_v6 = vrot.slane %v1299_v7, 1  ;;  %v1306_v16 = vrot.slane %v1304_v17, 1  ;;  %v951_v47 = vld [vmem:[#allocation2 + $0x8c] sm:$0x1]  ;;  %3656 = vmatprep.subr.bf16.mxu1 %v3947_v32  ;;  %v1418_v17 = vrot.slane %v4571_v54, 1  ;;  %v1422_v32 = vrot.slane %v4589_v24, 1 }
  0x8f   : > { %2323 = vmatmul.mubr.bf16.gmra.mrb[36].mxu1 %v4655_v57  ;;  %v728_v18 = vrot.slane %v726_v8, 7  ;;  %v736_v12 = vrot.slane %v734_v0, 7  ;;  %v3949_v8 = vld [vmem:[%s5306_s2 + $0x1b0] sm:$0xff]   ;;  %v470_v24 = vld [vmem:[#allocation2 + $0xc8] sm:$0x1] }
  0x90   : > { %2330 = vmatprep.mubr.bf16.mxu1 %v4571_v54  ;;  %v4669_v15 = vld [vmem:[#allocation2 + $0x78] sm:$0xff]   ;;  %v1302_v25 = vor.u32 %v1301_v6, %v1297_v62  ;;  %v4671_v28 = vld [vmem:[#allocation2 + $0x80] ss:$0 sps:$4 sm:$0x11]   ;;  %v4714_v52 = vsel %vm1396_vm1, %v1418_v17, %v1419_v46 }
  0x91   : > { %v731_v40 = vor.u32 %v729_v11, %v728_v18  ;;  %v732_v13 = vrot.slane %v728_v18, 4  ;;  %v1309_v27 = vshrl.u32 %v4669_v15, 16  ;;  %v1311_v35 = vshll.u32 %v4669_v15, 16  ;;  %3657 = vmatpush3.bf16.msra.mxu1 %v3949_v8  ;;  %v3952_v6 = vld [vmem:[%s5306_s2 + $0x1b8] sm:$0xff]   ;;  %v242_v18 = vld [vmem:[%s4061_s18 + $0xf0] sm:$0xff] }
  0x92   : > { %v4682_v49 = vsel %vm1187_vm4, %v1302_v25, %v1306_v16  ;;  %v1316_v45 = vshll.u32 %v4671_v28, 16  ;;  %v739_v53 = vor.u32 %v737_v19, %v736_v12  ;;  %v741_v42 = vrot.slane %v736_v12, 4  ;;  %3658 = vmatprep.subr.bf16.mxu1 %v3950_v43  ;;  %v243_v19 = vld [vmem:[%s4061_s18 + $0xf8] sm:$0xff] }
  0x93   : > { %2193 = vmatprep.mubr.bf16.mxu0 %v4682_v49  ;;  %v1313_v36 = vrot.slane %v1311_v35, 1  ;;  %v948_v59 = vsel %vm4145_vm10, %v731_v40, %v947_v20  ;;  %v278_v20 = vmul.f32 %v4386_v33, %v242_v18  ;;  %v279_v16 = vmul.f32 %v4386_v33, %v243_v19 }
  0x94   : > { %2194 = vmatmul.mubr.bf16.gmra.mrb[36].mxu0 %v4652_v55  ;;  %v1318_v61 = vrot.slane %v1316_v45, 1  ;;  %v740_v62 = vsel %vm4130_vm9, %v732_v13, %v739_v53  ;;  %949 = vst [vmem:[#allocation2 + $0x84] sm:$0xf] %v948_v59  ;;  %v952_v7 = vsel %vm4089_vm5, %v741_v42, %v951_v47  ;;  %v421_v25 = vsel %vm4089_vm5, 0, %v420_v63 }
  0x95   : > { %v1314_v11 = vor.u32 %v1313_v36, %v1309_v27  ;;  %950 = vst [vmem:[#allocation2 + $0x88] sm:$0xf] %v740_v62  ;;  %953 = vst [vmem:[#allocation2 + $0x8c] sm:$0x1] %v952_v7  ;;  %3659 = vmatpush3.bf16.msra.mxu1 %v3952_v6  ;;  %v1421_v40 = vrot.slane %v4584_v50, 1  ;;  %v314_v13 = vadd.f32 %v4398_v48, %v278_v20  ;;  %v471_v43 = vsel %vm4099_vm6, 0, %v470_v24 }
  0x96   : > { %422 = vst [vmem:[#allocation2 + $0xc0] sm:$0x1] %v421_v25  ;;  %v315_v27 = vadd.f32 %v4398_v48, %v279_v16  ;;  %472 = vst [vmem:[#allocation2 + $0xc8] sm:$0x1] %v471_v43  ;;  %v1425_v25 = vrot.slane %v4657_v5, 1  ;;  %v1427_v58 = vrot.slane %v4669_v15, 1 }
  0x97   : > { %2331 = vmatmul.mubr.bf16.gmra.mrb[40].mxu1 %v4679_v41  ;;  %v4704_v0 = vsel %vm1187_vm4, %v1314_v11, %v1318_v61  ;;  %v346_v33 = vmax.f32 %v314_v13, 0.0  ;;  %v4734_v48 = vsel %vm1396_vm1, %v1421_v40, %v1422_v32  ;;  %v1428_v2 = vrot.slane %v4671_v28, 1  ;;  %v3965_v24 = vld [vmem:[#allocation2 + $0x98] ss:$0 sps:$4 sm:$0x11]  }
  0x98   : > { %2338 = vmatprep.mubr.bf16.mxu1 %v4584_v50  ;;  %2201 = vmatprep.mubr.bf16.mxu0 %v4704_v0  ;;  %v347_v53 = vmax.f32 %v315_v27, 0.0  ;;  %v3967_v43 = vld [vmem:[#allocation2 + $0xa4] ss:$0 sps:$4 sm:$0x11]  }
  0x99   : > { %v3306_v36 = vpack.c.bf16 %v346_v33, %v346_v33  ;;  %v4753_v33 = vsel %vm1396_vm1, %v1424_v34, %v1425_v25  ;;  %v4771_v5 = vsel %vm1396_vm1, %v1427_v58, %v1428_v2 }
  0x9a   : > { %v3307_v61 = vpack.c.bf16 %v347_v53, %v347_v53 }
  0x9b   : > { %v811_v7 = vshrl.u32 %v3306_v36, 16  ;;  %v814_v8 = vshll.u32 %v3306_v36, 16 }
  0x9c   : > { %2202 = vmatmul.mubr.bf16.gmra.mrb[40].mxu0 %v4669_v15  ;;  %v4722_v12 = vld [vmem:[#allocation2 + $0x84] sm:$0xff]   ;;  %v4726_v35 = vld [vmem:[#allocation2 + $0x8c] ss:$0 sps:$4 sm:$0x11]   ;;  %v819_v17 = vshrl.u32 %v3307_v61, 16  ;;  %v822_v46 = vshll.u32 %v3307_v61, 16 }
  0x9d   : > { %v1321_v47 = vshrl.u32 %v4722_v12, 16  ;;  %v1323_v45 = vshll.u32 %v4722_v12, 16  ;;  %v1328_v42 = vshll.u32 %v4726_v35, 16  ;;  %v813_v6 = vrot.slane %v811_v7, 7  ;;  %v982_v20 = vld [vmem:[#allocation2 + $0xc0] sm:$0xf] }
  0x9e   : > { %v821_v19 = vrot.slane %v819_v17, 7  ;;  %v1430_v28 = vrot.slane %v4722_v12, 1  ;;  %v1431_v53 = vrot.slane %v4726_v35, 1  ;;  %v4795_v35 = vld [vmem:[#allocation2 + $0x9c] sm:$0xff]   ;;  %v3956_v7 = vld [vmem:[%s5306_s2 + $0x230] sm:$0xff]   ;;  %v4811_v17 = vld [vmem:[#allocation2 + $0xa8] sm:$0xff]  }
  0x9f   : > { %2339 = vmatmul.mubr.bf16.gmra.mrb[44].mxu1 %v4714_v52  ;;  %v1325_v59 = vrot.slane %v1323_v45, 1  ;;  %v1330_v62 = vrot.slane %v1328_v42, 1  ;;  %v816_v63 = vor.u32 %v814_v8, %v813_v6  ;;  %v817_v16 = vrot.slane %v813_v6, 4  ;;  %v3954_v42 = vld [vmem:[%s5306_s2 + $0x220] sm:$0xff]  }
  0xa0   : > { %2346 = vmatprep.mubr.bf16.mxu1 %v4652_v55  ;;  %v824_v40 = vor.u32 %v822_v46, %v821_v19  ;;  %v826_v32 = vrot.slane %v821_v19, 4  ;;  %v4788_v36 = vsel %vm1396_vm1, %v1430_v28, %v1431_v53  ;;  %v1436_v46 = vrot.slane %v4795_v35, 1  ;;  %v3973_v53 = vld [vmem:[#allocation2 + $0x30] sm:$0xff]  }
  0xa1   : > { %v1326_v11 = vor.u32 %v1325_v59, %v1321_v47  ;;  %v983_v13 = vsel %vm4145_vm10, %v816_v63, %v982_v20  ;;  %v986_v47 = vld [vmem:[#allocation2 + $0xc8] sm:$0x1]  ;;  %v1437_v6 = vrot.slane %v3967_v43, 1  ;;  %v4821_v20 = vld [vmem:[#allocation2 + $0xb4] sm:$0xff]   ;;  %v1439_v63 = vrot.slane %v4811_v17, 1 }
  0xa2   : > { %v825_v27 = vsel %vm4130_vm9, %v817_v16, %v824_v40  ;;  %984 = vst [vmem:[#allocation2 + $0xc0] sm:$0xf] %v983_v13  ;;  %v987_v45 = vsel %vm4089_vm5, %v826_v32, %v986_v47  ;;  %v3955_v59 = vld [vmem:[%s5306_s2 + $0x228] sm:$0xff]   ;;  %v3969_v16 = vld [vmem:[#allocation2 + $0xb0] ss:$0 sps:$4 sm:$0x11]  }
  0xa3   : > { %v4739_v18 = vsel %vm1187_vm4, %v1326_v11, %v1330_v62  ;;  %985 = vst [vmem:[#allocation2 + $0xc4] sm:$0xf] %v825_v27  ;;  %988 = vst [vmem:[#allocation2 + $0xc8] sm:$0x1] %v987_v45  ;;  %v1434_v62 = vrot.slane %v3965_v24, 1  ;;  %v3957_v11 = vld [vmem:[%s5306_s2 + $0x238] sm:$0xff]   ;;  %v4817_v19 = vsel %vm1396_vm1, %v1436_v46, %v1437_v6 }
  0xa4   : > { %2209 = vmatprep.mubr.bf16.mxu0 %v4739_v18  ;;  %v1440_v34 = vrot.slane %v3969_v16, 1  ;;  %v1442_v13 = vrot.slane %v4821_v20, 1  ;;  %v3970_v32 = vld [vmem:[#allocation2 + $0xbc] ss:$0 sps:$4 sm:$0x11]  }
  0xa5   : > { %2210 = vmatmul.mubr.bf16.gmra.mrb[44].mxu0 %v4722_v12  ;;  %v1443_v27 = vrot.slane %v3970_v32, 1  ;;  %v3971_v45 = vld [vmem:[#allocation2 + $0x18] sm:$0xff]  }
  0xa6   : > { %2443 = vmatprep.mubr.bf16.mxu0 %v4489_v1  ;;  %v3945_v1 = vld [vmem:[%s5306_s2 + $0x208] sm:$0xff]   ;;  %v4827_v25 = vsel %vm1396_vm1, %v1439_v63, %v1440_v34 }
  0xa7   : > { %2347 = vmatmul.mubr.bf16.gmra.mrb[48].mxu1 %v4734_v48  ;;  %v4837_v47 = vsel %vm1396_vm1, %v1442_v13, %v1443_v27 }
  0xa8   : > { %2354 = vmatprep.mubr.bf16.mxu1 %v4669_v15 }
  0xaa   : > { %v4829_v40 = vld [vmem:[#allocation2 + $0xc0] sm:$0xff]   ;;  %v3958_v13 = vld [vmem:[#allocation2 + $0xc8] ss:$0 sps:$4 sm:$0x11]  }
  0xad   : > { %2444 = vmatmul.mubr.bf16.vlgmr.msra.gmra.mrb[48].mxu0 %v4251_v30  ;;  %v3951_v30 = vld [vmem:[%s5306_s2 + $0x218] sm:$0xff]  }
  0xae   : > { %3781 = vmatpush3.bf16.msra.mxu0 %v4638_v44  ;;  %2451 = vmatprep.mubr.bf16.mxu0 %v4524_v4  ;;  %v4778_v44 = vld [vmem:[#allocation2 + $0x90] sm:$0xff]  }
  0xaf   : > { %2355 = vmatmul.mubr.bf16.gmra.mrb[52].mxu1 %v4753_v33  ;;  %3782 = vmatprep.subr.bf16.mxu0 %v3945_v1  ;;  %v1433_v61 = vrot.slane %v4778_v44, 1 }
  0xb0   : > { %2362 = vmatprep.mubr.bf16.mxu1 %v4722_v12 }
  0xb1   : > { %v4804_v8 = vsel %vm1396_vm1, %v1433_v61, %v1434_v62 }
  0xb2   : > { %3783 = vmatpush3.bf16.msra.mxu0 %v3945_v1  ;;  %v3972_v1 = vld [vmem:[#allocation2 + $0x24] sm:$0xff]  }
  0xb3   : > { %3784 = vmatprep.subr.bf16.mxu0 %v3948_v29 }
  0xb5   : > { %2452 = vmatmul.mubr.bf16.gmra.mrb[52].mxu0 %v4294_v31 }
  0xb6   : > { %2459 = vmatprep.mubr.bf16.mxu0 %v4578_v14  ;;  %3785 = vmatpush3.bf16.msra.mxu0 %v3948_v29 }
  0xb7   : > { %2363 = vmatmul.mubr.bf16.gmra.mrb[56].mxu1 %v4771_v5  ;;  %3786 = vmatprep.subr.bf16.mxu0 %v3951_v30 }
  0xb8   : > { %2370 = vmatprep.mubr.bf16.mxu1 %v4778_v44 }
  0xba   : > { %3787 = vmatpush3.bf16.msra.mxu0 %v3951_v30 }
  0xbb   : > { %3788 = vmatprep.subr.bf16.mxu0 %v3954_v42 }
  0xbd   : > { %2460 = vmatmul.mubr.bf16.gmra.mrb[56].mxu0 %v4380_v26 }
  0xbe   : > { %2467 = vmatprep.mubr.bf16.mxu0 %v4587_v60  ;;  %3789 = vmatpush3.bf16.msra.mxu0 %v3954_v42 }
  0xbf   : > { %2371 = vmatmul.mubr.bf16.gmra.mrb[60].mxu1 %v4788_v36  ;;  %3790 = vmatprep.subr.bf16.mxu0 %v3955_v59 }
  0xc0   : > { %2378 = vmatprep.mubr.bf16.mxu1 %v4795_v35 }
  0xc2   : > { %3791 = vmatpush3.bf16.msra.mxu0 %v3955_v59 }
  0xc3   : > { %3792 = vmatprep.subr.bf16.mxu0 %v3956_v7 }
  0xc5   : > { %2468 = vmatmul.mubr.bf16.gmra.mrb[60].mxu0 %v4445_v10 }
  0xc6   : > { %2475 = vmatprep.mubr.bf16.mxu0 %v4655_v57  ;;  %3793 = vmatpush3.bf16.msra.mxu0 %v3956_v7 }
  0xc7   : > { %2379 = vmatmul.mubr.bf16.gmra.mrb[64].mxu1 %v4804_v8  ;;  %3794 = vmatprep.subr.bf16.mxu0 %v3957_v11 }
  0xc8   : > { %2386 = vmatprep.mubr.bf16.mxu1 %v4811_v17 }
  0xca   : > { %3795 = vmatpush3.bf16.msra.mxu0 %v3957_v11 }
  0xcd   : > { %2476 = vmatmul.mubr.bf16.gmra.mrb[64].mxu0 %v4498_v23 }
  0xce   : > { %2483 = vmatprep.mubr.bf16.mxu0 %v4679_v41 }
  0xcf   : > { %2387 = vmatmul.mubr.bf16.gmra.mrb[68].mxu1 %v4817_v19 }
  0xd0   : > { %2394 = vmatprep.mubr.bf16.mxu1 %v4821_v20 }
  0xd5   : > { %2484 = vmatmul.mubr.bf16.gmra.mrb[68].mxu0 %v4527_v9 }
  0xd6   : > { %2491 = vmatprep.mubr.bf16.mxu0 %v4714_v52 }
  0xd7   : > { %2395 = vmatmul.mubr.bf16.gmra.mrb[72].mxu1 %v4827_v25 }
  0xd8   : > { %2402 = vmatprep.mubr.bf16.mxu1 %v4829_v40 }
  0xdd   : > { %2492 = vmatmul.mubr.bf16.gmra.mrb[72].mxu0 %v4596_v38 }
  0xde   : > { %2499 = vmatprep.mubr.bf16.mxu0 %v4734_v48 }
  0xdf   : > { %2403 = vmatmul.mubr.bf16.gmra.mrb[76].mxu1 %v4837_v47 }
  0xe0   : > { %2604 = vmatprep.mubr.bf16.mxu1 %v4294_v31 }
  0xe5   : > { %2500 = vmatmul.mubr.bf16.gmra.mrb[76].mxu0 %v4621_v22 }
  0xe6   : > { %2507 = vmatprep.mubr.bf16.mxu0 %v4753_v33 }
  0xe7   : > { %2605 = vmatmul.mubr.bf16.vlgmr.msra.gmra.mrb[80].mxu1 %v3971_v45  ;;  %v1473_v45 = vshll.u32 %v4829_v40, 16 }
  0xe8   : > { %2612 = vmatprep.mubr.bf16.mxu1 %v4380_v26 }
  0xed   : > { %2508 = vmatmul.mubr.bf16.gmra.mrb[80].mxu0 %v4682_v49 }
  0xee   : > { %2515 = vmatprep.mubr.bf16.mxu0 %v4771_v5 }
  0xef   : > { %2613 = vmatmul.mubr.bf16.gmra.mrb[84].mxu1 %v3972_v1  ;;  %v1483_v1 = vrot.slane %v4829_v40, 1 }
  0xf0   : > { %2620 = vmatprep.mubr.bf16.mxu1 %v4445_v10 }
  0xf5   : > { %2516 = vmatmul.mubr.bf16.gmra.mrb[84].mxu0 %v4704_v0 }
  0xf6   : > { %2523 = vmatprep.mubr.bf16.mxu0 %v4788_v36 }
  0xf7   : > { %2621 = vmatmul.mubr.bf16.gmra.mrb[88].mxu1 %v3973_v53 }
  0xf8   : > { %2628 = vmatprep.mubr.bf16.mxu1 %v4498_v23 }
  0xf9   : > { %v3324_v58 = vpop.f32.mrb[0].mxu0 }
  0xfa   : > { %v3325_v2 = vpop.f32.mrb[1].mxu0 }
  0xfb   : > { %v4849_v31 = vadd.f32 %v3325_v2, %v3324_v58  ;;  %v3327_v29 = vpop.f32.mrb[2].mxu0  ;;  %v1484_v58 = vrot.slane %v3958_v13, 1  ;;  %v1471_v2 = vshrl.u32 %v4829_v40, 16 }
  0xfc   : > { %v3328_v30 = vpop.f32.mrb[3].mxu0 }
  0xfd   : > { %v4851_v28 = vadd.f32 %v3328_v30, %v3327_v29  ;;  %2524 = vmatmul.mubr.bf16.gmra.mrb[88].mxu0 %v4739_v18  ;;  %v1475_v29 = vrot.slane %v1473_v45, 1  ;;  %v1478_v30 = vshll.u32 %v3958_v13, 16 }
  0xfe   : > { %2531 = vmatprep.mubr.bf16.mxu0 %v4804_v8 }
  0xff   : > { %2629 = vmatmul.mubr.bf16.gmra.mrb[92].mxu1 %v4473_v37  ;;  %v1480_v53 = vrot.slane %v1478_v30, 1 }
 0x100   : > { %2636 = vmatprep.mubr.bf16.mxu1 %v4527_v9 }
 0x104   : > { %v3396_v26 = vpop.f32.mrb[0].mxu1 }
 0x105   : > { %v3397_v10 = vpop.f32.mrb[1].mxu1  ;;  %2532 = vmatmul.mubr.bf16.gmra.mrb[92].mxu0 %v4206_v51 }
 0x106   : > { %v4860_v42 = vadd.f32 %v3397_v10, %v3396_v26  ;;  %v3399_v59 = vpop.f32.mrb[2].mxu1  ;;  %2539 = vmatprep.mubr.bf16.mxu0 %v4817_v19 }
 0x107   : > { %v3400_v61 = vpop.f32.mrb[3].mxu1  ;;  %2637 = vmatmul.mubr.bf16.gmra.mrb[96].mxu1 %v4491_v56 }
 0x108   : > { %v4862_v24 = vadd.f32 %v3400_v61, %v3399_v59  ;;  %2644 = vmatprep.mubr.bf16.mxu1 %v4596_v38 }
 0x10d   : > { %2540 = vmatmul.mubr.bf16.gmra.mrb[96].mxu0 %v4275_v3 }
 0x10e   : > { %v3330_v37 = vpop.f32.mrb[4].mxu0  ;;  %2547 = vmatprep.mubr.bf16.mxu0 %v4827_v25 }
 0x10f   : > { %v3331_v23 = vpop.f32.mrb[5].mxu0  ;;  %2645 = vmatmul.mubr.bf16.gmra.mrb[100].mxu1 %v4571_v54 }
 0x110   : > { %v4868_v9 = vadd.f32 %v3331_v23, %v3330_v37  ;;  %v3333_v62 = vpop.f32.mrb[6].mxu0  ;;  %2652 = vmatprep.mubr.bf16.mxu1 %v4621_v22 }
 0x111   : > { %v3334_v7 = vpop.f32.mrb[7].mxu0 }
 0x112   : > { %v4870_v11 = vadd.f32 %v3334_v7, %v3333_v62  ;;  %v3402_v56 = vpop.f32.mrb[4].mxu1 }
 0x113   : > { %v3403_v38 = vpop.f32.mrb[5].mxu1 }
 0x114   : > { %v4876_v46 = vadd.f32 %v3403_v38, %v3402_v56  ;;  %v3405_v43 = vpop.f32.mrb[6].mxu1 }
 0x115   : > { %v3406_v6 = vpop.f32.mrb[7].mxu1  ;;  %2548 = vmatmul.mubr.bf16.gmra.mrb[100].mxu0 %v4340_v39 }
 0x116   : > { %v3336_v63 = vpop.f32.mrb[8].mxu0  ;;  %v4878_v16 = vadd.f32 %v3406_v6, %v3405_v43  ;;  %2555 = vmatprep.mubr.bf16.mxu0 %v4837_v47 }
 0x117   : > { %v3337_v34 = vpop.f32.mrb[9].mxu0  ;;  %2653 = vmatmul.mubr.bf16.gmra.mrb[104].mxu1 %v4584_v50  ;;  %v4892_v50 = vsel %vm1396_vm1, %v1483_v1, %v1484_v58 }
 0x118   : > { %v4880_v32 = vadd.f32 %v3337_v34, %v3336_v63  ;;  %v3339_v54 = vpop.f32.mrb[10].mxu0  ;;  %2660 = vmatprep.mubr.bf16.mxu1 %v4682_v49  ;;  %v1476_v49 = vor.u32 %v1475_v29, %v1471_v2 }
 0x119   : > { %v3340_v27 = vpop.f32.mrb[11].mxu0 }
 0x11a   : > { %v4885_v22 = vadd.f32 %v3340_v27, %v3339_v54  ;;  %v4901_v23 = vsel %vm1187_vm4, %v1476_v49, %v1480_v53 }
 0x11d   : > { %2556 = vmatmul.mubr.bf16.gmra.mrb[104].mxu0 %v4411_v21 }
 0x11e   : > { %2563 = vmatprep.mubr.bf16.mxu0 %v4892_v50 }
 0x11f   : > { %2661 = vmatmul.mubr.bf16.gmra.mrb[108].mxu1 %v4652_v55 }
 0x120   : > { %2668 = vmatprep.mubr.bf16.mxu1 %v4704_v0 }
 0x122   : > { %v3408_v26 = vpop.f32.mrb[8].mxu1 }
 0x123   : > { %v3409_v10 = vpop.f32.mrb[9].mxu1 }
 0x124   : > { %v4898_v59 = vadd.f32 %v3409_v10, %v3408_v26  ;;  %v3411_v61 = vpop.f32.mrb[10].mxu1  ;;  %v4939_v10 = vld [vmem:[#allocation2 + $0xcc] sm:$0xff]  }
 0x125   : > { %v3412_v37 = vpop.f32.mrb[11].mxu1  ;;  %2564 = vmatmul.mubr.bf16.gmra.mrb[108].mxu0 %v4901_v23 }
 0x126   : > { %v4903_v62 = vadd.f32 %v3412_v37, %v3411_v61  ;;  %3796 = vmatprep.mubr.bf16.mxu0 %v4524_v4 }
 0x127   : > { %2669 = vmatmul.mubr.bf16.gmra.mrb[112].mxu1 %v4669_v15 }
 0x128   : > { %2676 = vmatprep.mubr.bf16.mxu1 %v4739_v18 }
 0x129   : > { %v3342_v55 = vpop.f32.mrb[12].mxu0 }
 0x12a   : > { %v3343_v0 = vpop.f32.mrb[13].mxu0 }
 0x12b   : > { %v4909_v7 = vadd.f32 %v3343_v0, %v3342_v55  ;;  %v3345_v56 = vpop.f32.mrb[14].mxu0  ;;  %v4955_v55 = vld [vmem:[#allocation2 + $0xd4] ss:$0 sps:$4 sm:$0x11]  }
 0x12c   : > { %v3346_v38 = vpop.f32.mrb[15].mxu0 }
 0x12d   : > { %v4911_v43 = vadd.f32 %v3346_v38, %v3345_v56  ;;  %3797 = vmatmul.mubr.bf16.vlgmr.msra.gmra.mrb[112].mxu0 %v4578_v14 }
 0x12e   : > { %3800 = vmatprep.mubr.bf16.mxu0 %v4587_v60 }
 0x12f   : > { %2677 = vmatmul.mubr.bf16.gmra.mrb[116].mxu1 %v4722_v12 }
 0x130   : > { %2684 = vmatprep.mubr.bf16.mxu1 %v4206_v51 }
 0x132   : > { %v3414_v15 = vpop.f32.mrb[12].mxu1 }
 0x133   : > { %v3415_v18 = vpop.f32.mrb[13].mxu1 }
 0x134   : > { %v4917_v6 = vadd.f32 %v3415_v18, %v3414_v15  ;;  %v3417_v4 = vpop.f32.mrb[14].mxu1 }
 0x135   : > { %v3418_v63 = vpop.f32.mrb[15].mxu1  ;;  %3801 = vmatmul.mubr.bf16.gmra.mrb[116].mxu0 %v4655_v57 }
 0x136   : > { %v4919_v34 = vadd.f32 %v3418_v63, %v3417_v4  ;;  %3804 = vmatprep.mubr.bf16.mxu0 %v4679_v41  ;;  %v1497_v4 = vshrl.u32 %v4939_v10, 16 }
 0x137   : > { %2685 = vmatmul.mubr.bf16.gmra.mrb[120].mxu1 %v4778_v44 }
 0x138   : > { %2692 = vmatprep.mubr.bf16.mxu1 %v4275_v3 }
 0x139   : > { %v3348_v14 = vpop.f32.mrb[16].mxu0 }
 0x13a   : > { %v3349_v51 = vpop.f32.mrb[17].mxu0  ;;  %v3436_v12 = vpop.f32.mrb[16].mxu1 }
 0x13b   : > { %v4925_v60 = vadd.f32 %v3349_v51, %v3348_v14  ;;  %v3351_v13 = vpop.f32.mrb[18].mxu0  ;;  %v3437_v54 = vpop.f32.mrb[17].mxu1 }
 0x13c   : > { %v3352_v27 = vpop.f32.mrb[19].mxu0  ;;  %v3438_v45 = vadd.f32 %v3437_v54, %v3436_v12  ;;  %v3439_v1 = vpop.f32.mrb[18].mxu1 }
 0x13d   : > { %v4927_v58 = vadd.f32 %v3352_v27, %v3351_v13  ;;  %v3440_v2 = vpop.f32.mrb[19].mxu1  ;;  %3805 = vmatmul.mubr.bf16.gmra.mrb[120].mxu0 %v4714_v52 }
 0x13e   : > { %v4930_v44 = vadd.f32 %v3438_v45, %v4849_v31  ;;  %v3441_v57 = vadd.f32 %v3440_v2, %v3439_v1  ;;  %3808 = vmatprep.mubr.bf16.mxu0 %v4734_v48 }
 0x13f   : > { %2693 = vmatmul.mubr.bf16.gmra.mrb[124].mxu1 %v4795_v35 }
 0x140   : > { %v4935_v3 = vadd.f32 %v3441_v57, %v4851_v28  ;;  %2700 = vmatprep.mubr.bf16.mxu1 %v4340_v39 }
 0x142   : > { %v3442_v41 = vpop.f32.mrb[20].mxu1 }
 0x143   : > { %v3443_v29 = vpop.f32.mrb[21].mxu1  ;;  %v3354_v30 = vpop.f32.mrb[20].mxu0 }
 0x144   : > { %v3444_v49 = vadd.f32 %v3443_v29, %v3442_v41  ;;  %v3445_v53 = vpop.f32.mrb[22].mxu1  ;;  %v3355_v26 = vpop.f32.mrb[21].mxu0 }
 0x145   : > { %v3446_v31 = vpop.f32.mrb[23].mxu1  ;;  %v4941_v61 = vadd.f32 %v3355_v26, %v3354_v30  ;;  %v3357_v35 = vpop.f32.mrb[22].mxu0  ;;  %3809 = vmatmul.mubr.bf16.gmra.mrb[124].mxu0 %v4753_v33 }
 0x146   : > { %v4944_v52 = vadd.f32 %v3444_v49, %v4868_v9  ;;  %v3447_v28 = vadd.f32 %v3446_v31, %v3445_v53  ;;  %v3358_v37 = vpop.f32.mrb[23].mxu0  ;;  %3812 = vmatprep.mubr.bf16.mxu0 %v4771_v5  ;;  %v1499_v9 = vshll.u32 %v4939_v10, 16 }
 0x147   : > { %2701 = vmatmul.mubr.bf16.gmra.mrb[128].mxu1 %v4811_v17  ;;  %v4948_v39 = vadd.f32 %v3358_v37, %v3357_v35 }
 0x148   : > { %v4951_v48 = vadd.f32 %v3447_v28, %v4870_v11  ;;  %2708 = vmatprep.mubr.bf16.mxu1 %v4411_v21  ;;  %v1501_v63 = vrot.slane %v1499_v9, 1  ;;  %v1504_v11 = vshll.u32 %v4955_v55, 16 }
 0x14a   : > { %v3448_v0 = vpop.f32.mrb[24].mxu1  ;;  %v1502_v27 = vor.u32 %v1501_v63, %v1497_v4  ;;  %v1506_v45 = vrot.slane %v1504_v11, 1 }
 0x14b   : > { %v3449_v56 = vpop.f32.mrb[25].mxu1  ;;  %v3360_v38 = vpop.f32.mrb[24].mxu0 }
 0x14c   : > { %v3450_v15 = vadd.f32 %v3449_v56, %v3448_v0  ;;  %v3451_v17 = vpop.f32.mrb[26].mxu1  ;;  %v3361_v18 = vpop.f32.mrb[25].mxu0 }
 0x14d   : > { %v3452_v33 = vpop.f32.mrb[27].mxu1  ;;  %v4960_v14 = vadd.f32 %v3361_v18, %v3360_v38  ;;  %v3363_v21 = vpop.f32.mrb[26].mxu0  ;;  %3813 = vmatmul.mubr.bf16.gmra.mrb[128].mxu0 %v4788_v36  ;;  %v1509_v38 = vrot.slane %v4939_v10, 1 }
 0x14e   : > { %v4963_v5 = vadd.f32 %v3450_v15, %v4880_v32  ;;  %v3453_v51 = vadd.f32 %v3452_v33, %v3451_v17  ;;  %v3364_v12 = vpop.f32.mrb[27].mxu0  ;;  %3816 = vmatprep.mubr.bf16.mxu0 %v4804_v8  ;;  %v1510_v15 = vrot.slane %v4955_v55, 1 }
 0x14f   : > { %2709 = vmatmul.mubr.bf16.gmra.mrb[132].mxu1 %v4821_v20  ;;  %v4967_v13 = vadd.f32 %v3364_v12, %v3363_v21  ;;  %v1507_v20 = vsel %vm1187_vm4, %v1502_v27, %v1506_v45 }
 0x150   : > { %v4970_v54 = vadd.f32 %v3453_v51, %v4885_v22  ;;  %2716 = vmatprep.mubr.bf16.mxu1 %v4901_v23 }
 0x152   : > { %v3454_v1 = vpop.f32.mrb[28].mxu1 }
 0x153   : > { %v3455_v32 = vpop.f32.mrb[29].mxu1 }
 0x154   : > { %v3456_v2 = vadd.f32 %v3455_v32, %v3454_v1  ;;  %v3457_v57 = vpop.f32.mrb[30].mxu1 }
 0x155   : > { %v3458_v41 = vpop.f32.mrb[31].mxu1  ;;  %3817 = vmatmul.mubr.bf16.gmra.mrb[132].mxu0 %v4817_v19 }
 0x156   : > { %v4976_v36 = vadd.f32 %v3456_v2, %v4909_v7  ;;  %v3459_v29 = vadd.f32 %v3458_v41, %v3457_v57  ;;  %v3366_v30 = vpop.f32.mrb[28].mxu0  ;;  %3820 = vmatprep.mubr.bf16.mxu0 %v4827_v25 }
 0x157   : > { %2717 = vmatmul.mubr.bf16.gmra.mrb[136].mxu1 %v4829_v40  ;;  %v3367_v22 = vpop.f32.mrb[29].mxu0 }
 0x158   : > { %v4981_v8 = vadd.f32 %v3459_v29, %v4911_v43  ;;  %2724 = vmatprep.mubr.bf16.mxu1 %v1507_v20  ;;  %v3368_v23 = vadd.f32 %v3367_v22, %v3366_v30  ;;  %v3369_v49 = vpop.f32.mrb[30].mxu0 }
 0x159   : > { %v3370_v53 = vpop.f32.mrb[31].mxu0 }
 0x15a   : > { %v3460_v26 = vpop.f32.mrb[32].mxu1  ;;  %v3371_v31 = vadd.f32 %v3370_v53, %v3369_v49 }
 0x15b   : > { %v3461_v7 = vpop.f32.mrb[33].mxu1 }
 0x15c   : > { %v3462_v35 = vadd.f32 %v3461_v7, %v3460_v26  ;;  %v3463_v28 = vpop.f32.mrb[34].mxu1 }
 0x15d   : > { %v3464_v37 = vpop.f32.mrb[35].mxu1  ;;  %3821 = vmatmul.mubr.bf16.gmra.mrb[136].mxu0 %v4837_v47  ;;  %v1511_v47 = vsel %vm1396_vm1, %v1509_v38, %v1510_v15 }
 0x15e   : > { %v4985_v40 = vadd.f32 %v3462_v35, %v4925_v60  ;;  %v3465_v19 = vadd.f32 %v3464_v37, %v3463_v28  ;;  %v3372_v9 = vpop.f32.mrb[32].mxu0  ;;  %3824 = vmatprep.mubr.bf16.mxu0 %v4892_v50 }
 0x15f   : > { %2725 = vmatmul.mubr.bf16.gmra.mrb[140].mxu1 %v4939_v10  ;;  %v3373_v43 = vpop.f32.mrb[33].mxu0 }
 0x160   : > { %v4990_v0 = vadd.f32 %v3465_v19, %v4927_v58  ;;  %v3374_v25 = vadd.f32 %v3373_v43, %v3372_v9  ;;  %v3375_v56 = vpop.f32.mrb[34].mxu0 }
 0x161   : > { %v3376_v60 = vpop.f32.mrb[35].mxu0 }
 0x162   : > { %v3466_v17 = vpop.f32.mrb[36].mxu1  ;;  %v3377_v18 = vadd.f32 %v3376_v60, %v3375_v56 }
 0x163   : > { %v3467_v33 = vpop.f32.mrb[37].mxu1 }
 0x164   : > { %v3468_v4 = vadd.f32 %v3467_v33, %v3466_v17  ;;  %v3469_v63 = vpop.f32.mrb[38].mxu1 }
 0x165   : > { %v3470_v11 = vpop.f32.mrb[39].mxu1  ;;  %3825 = vmatmul.mubr.bf16.gmra.mrb[140].mxu0 %v1511_v47 }
 0x166   : > { %v4997_v58 = vadd.f32 %v3468_v4, %v4941_v61  ;;  %v3471_v21 = vadd.f32 %v3470_v11, %v3469_v63 }
 0x167   : > { %v3378_v10 = vpop.f32.mrb[36].mxu0 }
 0x168   : > { %v5000_v50 = vadd.f32 %v3471_v21, %v4948_v39  ;;  %v3379_v51 = vpop.f32.mrb[37].mxu0 }
 0x169   : > { %v3380_v12 = vadd.f32 %v3379_v51, %v3378_v10  ;;  %v3381_v27 = vpop.f32.mrb[38].mxu0 }
 0x16a   : > { %v3472_v55 = vpop.f32.mrb[40].mxu1  ;;  %v3382_v1 = vpop.f32.mrb[39].mxu0 }
 0x16b   : > { %v3473_v45 = vpop.f32.mrb[41].mxu1  ;;  %v3383_v57 = vadd.f32 %v3382_v1, %v3381_v27 }
 0x16c   : > { %v3474_v32 = vadd.f32 %v3473_v45, %v3472_v55  ;;  %v3475_v2 = vpop.f32.mrb[42].mxu1 }
 0x16d   : > { %v3476_v41 = vpop.f32.mrb[43].mxu1 }
 0x16e   : > { %v5003_v20 = vadd.f32 %v3474_v32, %v4960_v14  ;;  %v3477_v61 = vadd.f32 %v3476_v41, %v3475_v2 }
 0x16f   : > { %v3384_v39 = vpop.f32.mrb[40].mxu0 }
 0x170   : > { %v5006_v29 = vadd.f32 %v3477_v61, %v4967_v13  ;;  %v3385_v30 = vpop.f32.mrb[41].mxu0 }
 0x171   : > { %v3386_v49 = vadd.f32 %v3385_v30, %v3384_v39  ;;  %v3387_v53 = vpop.f32.mrb[42].mxu0 }
 0x172   : > { %v3478_v22 = vpop.f32.mrb[44].mxu1  ;;  %v3388_v7 = vpop.f32.mrb[43].mxu0 }
 0x173   : > { %v3479_v26 = vpop.f32.mrb[45].mxu1  ;;  %v3389_v37 = vadd.f32 %v3388_v7, %v3387_v53 }
 0x174   : > { %v3480_v35 = vadd.f32 %v3479_v26, %v3478_v22  ;;  %v3481_v28 = vpop.f32.mrb[46].mxu1 }
 0x175   : > { %v3482_v19 = vpop.f32.mrb[47].mxu1 }
 0x176   : > { %v5008_v9 = vadd.f32 %v3480_v35, %v3368_v23  ;;  %v3483_v43 = vadd.f32 %v3482_v19, %v3481_v28 }
 0x178   : > { %v5010_v14 = vadd.f32 %v3483_v43, %v3371_v31  ;;  %v3390_v38 = vpop.f32.mrb[44].mxu0 }
 0x179   : > { %v3391_v15 = vpop.f32.mrb[45].mxu0 }
 0x17a   : > { %v3484_v56 = vpop.f32.mrb[48].mxu1  ;;  %v3392_v33 = vadd.f32 %v3391_v15, %v3390_v38  ;;  %v3393_v4 = vpop.f32.mrb[46].mxu0 }
 0x17b   : > { %v3485_v13 = vpop.f32.mrb[49].mxu1  ;;  %v3394_v47 = vpop.f32.mrb[47].mxu0 }
 0x17c   : > { %v3486_v60 = vadd.f32 %v3485_v13, %v3484_v56  ;;  %v3487_v17 = vpop.f32.mrb[50].mxu1  ;;  %v3395_v10 = vadd.f32 %v3394_v47, %v3393_v4 }
 0x17d   : > { %v3488_v63 = vpop.f32.mrb[51].mxu1 }
 0x17e   : > { %v5012_v11 = vadd.f32 %v3486_v60, %v3374_v25  ;;  %v3489_v21 = vadd.f32 %v3488_v63, %v3487_v17 }
 0x180   : > { %v5014_v51 = vadd.f32 %v3489_v21, %v3377_v18  ;;  %v3548_v55 = vpop.f32.mrb[48].mxu0 }
 0x181   : > { %v3549_v27 = vpop.f32.mrb[49].mxu0 }
 0x182   : > { %v3490_v23 = vpop.f32.mrb[52].mxu1  ;;  %v3550_v32 = vadd.f32 %v3549_v27, %v3548_v55  ;;  %v3551_v2 = vpop.f32.mrb[50].mxu0 }
 0x183   : > { %v3491_v31 = vpop.f32.mrb[53].mxu1  ;;  %v3552_v61 = vpop.f32.mrb[51].mxu0 }
 0x184   : > { %v3492_v45 = vadd.f32 %v3491_v31, %v3490_v23  ;;  %v3493_v1 = vpop.f32.mrb[54].mxu1  ;;  %v5019_v25 = vadd.f32 %v3550_v32, %v4930_v44  ;;  %v3553_v22 = vadd.f32 %v3552_v61, %v3551_v2 }
 0x185   : > { %v3494_v41 = vpop.f32.mrb[55].mxu1 }
 0x186   : > { %v5016_v39 = vadd.f32 %v3492_v45, %v3380_v12  ;;  %v3495_v30 = vadd.f32 %v3494_v41, %v3493_v1  ;;  %v5024_v18 = vadd.f32 %v3553_v22, %v4935_v3 }
 0x188   : > { %v5021_v53 = vadd.f32 %v3495_v30, %v3383_v57  ;;  %v3554_v7 = vpop.f32.mrb[52].mxu0 }
 0x189   : > { %v3555_v28 = vpop.f32.mrb[53].mxu0 }
 0x18a   : > { %v3496_v26 = vpop.f32.mrb[56].mxu1  ;;  %v3556_v56 = vadd.f32 %v3555_v28, %v3554_v7  ;;  %v3557_v38 = vpop.f32.mrb[54].mxu0 }
 0x18b   : > { %v3497_v35 = vpop.f32.mrb[57].mxu1  ;;  %v3558_v13 = vpop.f32.mrb[55].mxu0 }
 0x18c   : > { %v3498_v19 = vadd.f32 %v3497_v35, %v3496_v26  ;;  %v3499_v43 = vpop.f32.mrb[58].mxu1  ;;  %v5029_v60 = vadd.f32 %v3556_v56, %v4944_v52  ;;  %v3559_v57 = vadd.f32 %v3558_v13, %v3557_v38 }
 0x18d   : > { %v3500_v12 = vpop.f32.mrb[59].mxu1 }
 0x18e   : > { %v5026_v15 = vadd.f32 %v3498_v19, %v3386_v49  ;;  %v3501_v44 = vadd.f32 %v3500_v12, %v3499_v43  ;;  %v5034_v3 = vadd.f32 %v3559_v57, %v4951_v48 }
 0x190   : > { %v5031_v17 = vadd.f32 %v3501_v44, %v3389_v37  ;;  %v3560_v63 = vpop.f32.mrb[56].mxu0 }
 0x191   : > { %v3561_v21 = vpop.f32.mrb[57].mxu0 }
 0x192   : > { %v3502_v4 = vpop.f32.mrb[60].mxu1  ;;  %v3562_v31 = vadd.f32 %v3561_v21, %v3560_v63  ;;  %v3563_v27 = vpop.f32.mrb[58].mxu0 }
 0x193   : > { %v3503_v47 = vpop.f32.mrb[61].mxu1  ;;  %v3564_v45 = vpop.f32.mrb[59].mxu0 }
 0x194   : > { %v3504_v23 = vadd.f32 %v3503_v47, %v3502_v4  ;;  %v3505_v55 = vpop.f32.mrb[62].mxu1  ;;  %v5039_v32 = vadd.f32 %v3562_v31, %v4963_v5  ;;  %v3565_v37 = vadd.f32 %v3564_v45, %v3563_v27 }
 0x195   : > { %v3506_v49 = vpop.f32.mrb[63].mxu1 }
 0x196   : > { %v5036_v1 = vadd.f32 %v3504_v23, %v3392_v33  ;;  %v3507_v52 = vadd.f32 %v3506_v49, %v3505_v55  ;;  %v5044_v48 = vadd.f32 %v3565_v37, %v4970_v54 }
 0x198   : > { %v5041_v2 = vadd.f32 %v3507_v52, %v3395_v10  ;;  %v3566_v61 = vpop.f32.mrb[60].mxu0 }
 0x199   : > { %v3567_v22 = vpop.f32.mrb[61].mxu0 }
 0x19a   : > { %v3508_v41 = vpop.f32.mrb[64].mxu1  ;;  %v3568_v35 = vadd.f32 %v3567_v22, %v3566_v61  ;;  %v3569_v28 = vpop.f32.mrb[62].mxu0 }
 0x19b   : > { %v3509_v30 = vpop.f32.mrb[65].mxu1  ;;  %v3570_v19 = vpop.f32.mrb[63].mxu0 }
 0x19c   : > { %v3510_v26 = vadd.f32 %v3509_v30, %v3508_v41  ;;  %v3511_v7 = vpop.f32.mrb[66].mxu1  ;;  %v5050_v10 = vadd.f32 %v3568_v35, %v4976_v36  ;;  %v3571_v56 = vadd.f32 %v3570_v19, %v3569_v28 }
 0x19d   : > { %v3512_v33 = vpop.f32.mrb[67].mxu1 }
 0x19e   : > { %v5047_v43 = vadd.f32 %v3510_v26, %v4860_v42  ;;  %v3513_v5 = vadd.f32 %v3512_v33, %v3511_v7  ;;  %v5056_v38 = vadd.f32 %v3571_v56, %v4981_v8 }
 0x1a0   : > { %v5053_v54 = vadd.f32 %v3513_v5, %v4862_v24  ;;  %v3572_v13 = vpop.f32.mrb[64].mxu0 }
 0x1a1   : > { %v3573_v57 = vpop.f32.mrb[65].mxu0 }
 0x1a2   : > { %v3514_v12 = vpop.f32.mrb[68].mxu1  ;;  %v3574_v47 = vadd.f32 %v3573_v57, %v3572_v13  ;;  %v3575_v42 = vpop.f32.mrb[66].mxu0 }
 0x1a3   : > { %v3515_v44 = vpop.f32.mrb[69].mxu1  ;;  %v3576_v23 = vpop.f32.mrb[67].mxu0 }
 0x1a4   : > { %v3516_v4 = vadd.f32 %v3515_v44, %v3514_v12  ;;  %v3517_v63 = vpop.f32.mrb[70].mxu1  ;;  %v5062_v24 = vadd.f32 %v3574_v47, %v4985_v40  ;;  %v3577_v31 = vadd.f32 %v3576_v23, %v3575_v42 }
 0x1a5   : > { %v3518_v21 = vpop.f32.mrb[71].mxu1 }
 0x1a6   : > { %v5059_v36 = vadd.f32 %v3516_v4, %v4876_v46  ;;  %v3519_v55 = vadd.f32 %v3518_v21, %v3517_v63  ;;  %v5068_v27 = vadd.f32 %v3577_v31, %v4990_v0 }
 0x1a8   : > { %v5065_v8 = vadd.f32 %v3519_v55, %v4878_v16  ;;  %v3578_v45 = vpop.f32.mrb[68].mxu0 }
 0x1a9   : > { %v3579_v37 = vpop.f32.mrb[69].mxu0 }
 0x1aa   : > { %v3520_v49 = vpop.f32.mrb[72].mxu1  ;;  %v3580_v30 = vadd.f32 %v3579_v37, %v3578_v45  ;;  %v3581_v46 = vpop.f32.mrb[70].mxu0 }
 0x1ab   : > { %v3521_v52 = vpop.f32.mrb[73].mxu1  ;;  %v3582_v26 = vpop.f32.mrb[71].mxu0 }
 0x1ac   : > { %v3522_v41 = vadd.f32 %v3521_v52, %v3520_v49  ;;  %v3523_v61 = vpop.f32.mrb[74].mxu1  ;;  %v5074_v16 = vadd.f32 %v3580_v30, %v4997_v58  ;;  %v3583_v35 = vadd.f32 %v3582_v26, %v3581_v46 }
 0x1ad   : > { %v3524_v22 = vpop.f32.mrb[75].mxu1 }
 0x1ae   : > { %v5071_v40 = vadd.f32 %v3522_v41, %v4898_v59  ;;  %v3525_v7 = vadd.f32 %v3524_v22, %v3523_v61  ;;  %v5080_v28 = vadd.f32 %v3583_v35, %v5000_v50 }
 0x1b0   : > { %v5077_v0 = vadd.f32 %v3525_v7, %v4903_v62  ;;  %v3584_v19 = vpop.f32.mrb[72].mxu0 }
 0x1b1   : > { %v3585_v56 = vpop.f32.mrb[73].mxu0 }
 0x1b2   : > { %v3526_v33 = vpop.f32.mrb[76].mxu1  ;;  %v3586_v44 = vadd.f32 %v3585_v56, %v3584_v19  ;;  %v3587_v59 = vpop.f32.mrb[74].mxu0 }
 0x1b3   : > { %v3527_v5 = vpop.f32.mrb[77].mxu1  ;;  %v3588_v4 = vpop.f32.mrb[75].mxu0 }
 0x1b4   : > { %v3528_v12 = vadd.f32 %v3527_v5, %v3526_v33  ;;  %v3529_v13 = vpop.f32.mrb[78].mxu1  ;;  %v5086_v62 = vadd.f32 %v3586_v44, %v5003_v20  ;;  %v3589_v47 = vadd.f32 %v3588_v4, %v3587_v59 }
 0x1b5   : > { %v3530_v57 = vpop.f32.mrb[79].mxu1 }
 0x1b6   : > { %v5083_v58 = vadd.f32 %v3528_v12, %v4917_v6  ;;  %v3531_v63 = vadd.f32 %v3530_v57, %v3529_v13  ;;  %v5092_v42 = vadd.f32 %v3589_v47, %v5006_v29 }
 0x1b8   : > { %v5089_v50 = vadd.f32 %v3531_v63, %v4919_v34  ;;  %v3590_v23 = vpop.f32.mrb[76].mxu0 }
 0x1b9   : > { %v3591_v31 = vpop.f32.mrb[77].mxu0 }
 0x1ba   : > { %v3660_v21 = vpop.f32.mrb[80].mxu1  ;;  %v3592_v52 = vadd.f32 %v3591_v31, %v3590_v23  ;;  %v3593_v6 = vpop.f32.mrb[78].mxu0 }
 0x1bb   : > { %v3661_v55 = vpop.f32.mrb[81].mxu1  ;;  %v3594_v41 = vpop.f32.mrb[79].mxu0 }
 0x1bc   : > { %v3662_v49 = vadd.f32 %v3661_v55, %v3660_v21  ;;  %v3663_v45 = vpop.f32.mrb[82].mxu1  ;;  %v5098_v34 = vadd.f32 %v3592_v52, %v5008_v9  ;;  %v3595_v30 = vadd.f32 %v3594_v41, %v3593_v6 }
 0x1bd   : > { %v3664_v37 = vpop.f32.mrb[83].mxu1 }
 0x1be   : > { %v3665_v61 = vadd.f32 %v3664_v37, %v3663_v45  ;;  %v5095_v20 = vadd.f32 %v3662_v49, %v5019_v25  ;;  %v5104_v46 = vadd.f32 %v3595_v30, %v5010_v14 }
 0x1c0   : > { %v5101_v29 = vadd.f32 %v3665_v61, %v5024_v18  ;;  %v3596_v26 = vpop.f32.mrb[80].mxu0 }
 0x1c1   : > { %v3597_v35 = vpop.f32.mrb[81].mxu0 }
 0x1c2   : > { %v3666_v22 = vpop.f32.mrb[84].mxu1  ;;  %v3598_v5 = vadd.f32 %v3597_v35, %v3596_v26  ;;  %v3599_v56 = vpop.f32.mrb[82].mxu0 }
 0x1c3   : > { %v3667_v7 = vpop.f32.mrb[85].mxu1  ;;  %v3600_v12 = vpop.f32.mrb[83].mxu0 }
 0x1c4   : > { %v3668_v33 = vadd.f32 %v3667_v7, %v3666_v22  ;;  %v3669_v19 = vpop.f32.mrb[86].mxu1  ;;  %v5110_v18 = vadd.f32 %v3598_v5, %v5012_v11  ;;  %v3601_v44 = vadd.f32 %v3600_v12, %v3599_v56 }
 0x1c5   : > { %v3670_v25 = vpop.f32.mrb[87].mxu1 }
 0x1c6   : > { %v3671_v13 = vadd.f32 %v3670_v25, %v3669_v19  ;;  %v5107_v9 = vadd.f32 %v3668_v33, %v5029_v60  ;;  %v5116_v59 = vadd.f32 %v3601_v44, %v5014_v51 }
 0x1c8   : > { %v5113_v14 = vadd.f32 %v3671_v13, %v5034_v3  ;;  %v3602_v4 = vpop.f32.mrb[84].mxu0 }
 0x1c9   : > { %v3603_v47 = vpop.f32.mrb[85].mxu0 }
 0x1ca   : > { %v3672_v57 = vpop.f32.mrb[88].mxu1  ;;  %v3604_v55 = vadd.f32 %v3603_v47, %v3602_v4  ;;  %v3605_v31 = vpop.f32.mrb[86].mxu0 }
 0x1cb   : > { %v3673_v63 = vpop.f32.mrb[89].mxu1  ;;  %v3606_v49 = vpop.f32.mrb[87].mxu0 }
 0x1cc   : > { %v3674_v21 = vadd.f32 %v3673_v63, %v3672_v57  ;;  %v3675_v23 = vpop.f32.mrb[90].mxu1  ;;  %v5122_v3 = vadd.f32 %v3604_v55, %v5016_v39  ;;  %v3607_v52 = vadd.f32 %v3606_v49, %v3605_v31 }
 0x1cd   : > { %v3676_v60 = vpop.f32.mrb[91].mxu1 }
 0x1ce   : > { %v3677_v45 = vadd.f32 %v3676_v60, %v3675_v23  ;;  %v5119_v11 = vadd.f32 %v3674_v21, %v5039_v32  ;;  %v5128_v6 = vadd.f32 %v3607_v52, %v5021_v53 }
 0x1d0   : > { %v5125_v51 = vadd.f32 %v3677_v45, %v5044_v48  ;;  %v3608_v41 = vpop.f32.mrb[88].mxu0 }
 0x1d1   : > { %v3609_v30 = vpop.f32.mrb[89].mxu0 }
 0x1d2   : > { %v3678_v37 = vpop.f32.mrb[92].mxu1  ;;  %v3610_v7 = vadd.f32 %v3609_v30, %v3608_v41  ;;  %v3611_v35 = vpop.f32.mrb[90].mxu0 }
 0x1d3   : > { %v3679_v61 = vpop.f32.mrb[93].mxu1  ;;  %v3612_v33 = vpop.f32.mrb[91].mxu0 }
 0x1d4   : > { %v3680_v22 = vadd.f32 %v3679_v61, %v3678_v37  ;;  %v3681_v26 = vpop.f32.mrb[94].mxu1  ;;  %v5134_v48 = vadd.f32 %v3610_v7, %v5026_v15  ;;  %v3613_v5 = vadd.f32 %v3612_v33, %v3611_v35 }
 0x1d5   : > { %v3682_v32 = vpop.f32.mrb[95].mxu1 }
 0x1d6   : > { %v3683_v19 = vadd.f32 %v3682_v32, %v3681_v26  ;;  %v5131_v39 = vadd.f32 %v3680_v22, %v5050_v10  ;;  %v5140_v56 = vadd.f32 %v3613_v5, %v5031_v17 }
 0x1d8   : > { %v5137_v53 = vadd.f32 %v3683_v19, %v5056_v38  ;;  %v3614_v12 = vpop.f32.mrb[92].mxu0 }
 0x1d9   : > { %v3615_v44 = vpop.f32.mrb[93].mxu0 }
 0x1da   : > { %v3684_v25 = vpop.f32.mrb[96].mxu1  ;;  %v3616_v63 = vadd.f32 %v3615_v44, %v3614_v12  ;;  %v3617_v47 = vpop.f32.mrb[94].mxu0 }
 0x1db   : > { %v3685_v13 = vpop.f32.mrb[97].mxu1  ;;  %v3618_v21 = vpop.f32.mrb[95].mxu0 }
 0x1dc   : > { %v3686_v57 = vadd.f32 %v3685_v13, %v3684_v25  ;;  %v3687_v4 = vpop.f32.mrb[98].mxu1  ;;  %v5146_v38 = vadd.f32 %v3616_v63, %v5036_v1  ;;  %v3619_v55 = vadd.f32 %v3618_v21, %v3617_v47 }
 0x1dd   : > { %v3688_v10 = vpop.f32.mrb[99].mxu1 }
 0x1de   : > { %v3689_v23 = vadd.f32 %v3688_v10, %v3687_v4  ;;  %v5143_v15 = vadd.f32 %v3686_v57, %v5062_v24  ;;  %v5152_v31 = vadd.f32 %v3619_v55, %v5041_v2 }
 0x1e0   : > { %v5149_v17 = vadd.f32 %v3689_v23, %v5068_v27  ;;  %v3620_v49 = vpop.f32.mrb[96].mxu0 }
 0x1e1   : > { %v3621_v52 = vpop.f32.mrb[97].mxu0 }
 0x1e2   : > { %v3690_v60 = vpop.f32.mrb[100].mxu1  ;;  %v3622_v61 = vadd.f32 %v3621_v52, %v3620_v49  ;;  %v3623_v30 = vpop.f32.mrb[98].mxu0 }
 0x1e3   : > { %v3691_v45 = vpop.f32.mrb[101].mxu1  ;;  %v3624_v22 = vpop.f32.mrb[99].mxu0 }
 0x1e4   : > { %v3692_v37 = vadd.f32 %v3691_v45, %v3690_v60  ;;  %v3693_v41 = vpop.f32.mrb[102].mxu1  ;;  %v5158_v27 = vadd.f32 %v3622_v61, %v5047_v43  ;;  %v3625_v7 = vadd.f32 %v3624_v22, %v3623_v30 }
 0x1e5   : > { %v3694_v24 = vpop.f32.mrb[103].mxu1 }
 0x1e6   : > { %v3695_v26 = vadd.f32 %v3694_v24, %v3693_v41  ;;  %v5155_v1 = vadd.f32 %v3692_v37, %v5074_v16  ;;  %v5164_v35 = vadd.f32 %v3625_v7, %v5053_v54 }
 0x1e8   : > { %v5161_v2 = vadd.f32 %v3695_v26, %v5080_v28  ;;  %v3626_v33 = vpop.f32.mrb[100].mxu0 }
 0x1e9   : > { %v3627_v5 = vpop.f32.mrb[101].mxu0 }
 0x1ea   : > { %v3696_v32 = vpop.f32.mrb[104].mxu1  ;;  %v3628_v13 = vadd.f32 %v3627_v5, %v3626_v33  ;;  %v3629_v44 = vpop.f32.mrb[102].mxu0 }
 0x1eb   : > { %v3697_v19 = vpop.f32.mrb[105].mxu1  ;;  %v3630_v57 = vpop.f32.mrb[103].mxu0 }
 0x1ec   : > { %v3698_v25 = vadd.f32 %v3697_v19, %v3696_v32  ;;  %v3699_v12 = vpop.f32.mrb[106].mxu1  ;;  %v5170_v28 = vadd.f32 %v3628_v13, %v5059_v36  ;;  %v3631_v63 = vadd.f32 %v3630_v57, %v3629_v44 }
 0x1ed   : > { %v3700_v16 = vpop.f32.mrb[107].mxu1 }
 0x1ee   : > { %v3701_v4 = vadd.f32 %v3700_v16, %v3699_v12  ;;  %v5167_v43 = vadd.f32 %v3698_v25, %v5086_v62  ;;  %v5176_v47 = vadd.f32 %v3631_v63, %v5065_v8 }
 0x1f0   : > { %v5173_v54 = vadd.f32 %v3701_v4, %v5092_v42  ;;  %v3632_v21 = vpop.f32.mrb[104].mxu0 }
 0x1f1   : > { %v3633_v55 = vpop.f32.mrb[105].mxu0 }
 0x1f2   : > { %v3702_v10 = vpop.f32.mrb[108].mxu1  ;;  %v3634_v45 = vadd.f32 %v3633_v55, %v3632_v21  ;;  %v3635_v52 = vpop.f32.mrb[106].mxu0 }
 0x1f3   : > { %v3703_v23 = vpop.f32.mrb[109].mxu1  ;;  %v3636_v37 = vpop.f32.mrb[107].mxu0 }
 0x1f4   : > { %v3704_v60 = vadd.f32 %v3703_v23, %v3702_v10  ;;  %v3705_v49 = vpop.f32.mrb[110].mxu1  ;;  %v5182_v42 = vadd.f32 %v3634_v45, %v5071_v40  ;;  %v3637_v61 = vadd.f32 %v3636_v37, %v3635_v52 }
 0x1f5   : > { %v3706_v62 = vpop.f32.mrb[111].mxu1 }
 0x1f6   : > { %v3707_v41 = vadd.f32 %v3706_v62, %v3705_v49  ;;  %v5179_v36 = vadd.f32 %v3704_v60, %v5098_v34  ;;  %v5188_v30 = vadd.f32 %v3637_v61, %v5077_v0 }
 0x1f8   : > { %v5185_v8 = vadd.f32 %v3707_v41, %v5104_v46  ;;  %v3638_v22 = vpop.f32.mrb[108].mxu0 }
 0x1f9   : > { %v3639_v7 = vpop.f32.mrb[109].mxu0 }
 0x1fa   : > { %v3708_v24 = vpop.f32.mrb[112].mxu1  ;;  %v3640_v19 = vadd.f32 %v3639_v7, %v3638_v22  ;;  %v3641_v34 = vpop.f32.mrb[110].mxu0 }
 0x1fb   : > { %v3709_v26 = vpop.f32.mrb[113].mxu1  ;;  %v3642_v25 = vpop.f32.mrb[111].mxu0 }
 0x1fc   : > { %v3710_v32 = vadd.f32 %v3709_v26, %v3708_v24  ;;  %v3711_v33 = vpop.f32.mrb[114].mxu1  ;;  %v5194_v46 = vadd.f32 %v3640_v19, %v5083_v58  ;;  %v3643_v0 = vadd.f32 %v3642_v25, %v3641_v34 }
 0x1fd   : > { %v3712_v5 = vpop.f32.mrb[115].mxu1 }
 0x1fe   : > { %v3713_v40 = vadd.f32 %v3712_v5, %v3711_v33  ;;  %v5191_v12 = vadd.f32 %v3710_v32, %v5110_v18  ;;  %v5200_v44 = vadd.f32 %v3643_v0, %v5089_v50 }
 0x200   : > { %v5197_v13 = vadd.f32 %v3713_v40, %v5116_v59  ;;  %v3798_v18 = vpop.f32.mrb[112].mxu0 }
 0x201   : > { %v2776_v57 = vadd.f32 %v3798_v18, %v5107_v9  ;;  %v2767_v4 = vpop.f32.mrb[113].mxu0 }
 0x202   : > { %v3714_v16 = vpop.f32.mrb[116].mxu1  ;;  %v2768_v50 = vadd.f32 %v2767_v4, %v5095_v20  ;;  %v3799_v10 = vpop.f32.mrb[114].mxu0 }
 0x203   : > { %v3715_v58 = vpop.f32.mrb[117].mxu1  ;;  %2896 = vst [vmem:[%s5207_s17 + $0x10] sm:$0xff] %v2776_v57  ;;  %v2779_v23 = vadd.f32 %v3799_v10, %v5113_v14  ;;  %v2770_v55 = vpop.f32.mrb[115].mxu0  ;;  %v2966_v41 = vmul.f32 %v2776_v57, %v2776_v57 }
 0x204   : > { %v3716_v59 = vadd.f32 %v3715_v58, %v3714_v16  ;;  %v3717_v63 = vpop.f32.mrb[118].mxu1  ;;  %2894 = vst [vmem:[%s5207_s17] sm:$0xff] %v2768_v50  ;;  %v2771_v45 = vadd.f32 %v2770_v55, %v5101_v29  ;;  %v2964_v52 = vmul.f32 %v2768_v50, %v2768_v50 }
 0x205   : > { %v3718_v21 = vpop.f32.mrb[119].mxu1  ;;  %2897 = vst [vmem:[%s5207_s17 + $0x18] sm:$0xff] %v2779_v23  ;;  %v2967_v32 = vmul.f32 %v2779_v23, %v2779_v23 }
 0x206   : > { %v3719_v60 = vadd.f32 %v3718_v21, %v3717_v63  ;;  %v5214_v49 = vadd.f32 %v3716_v59, %v5122_v3  ;;  %2895 = vst [vmem:[%s5207_s17 + $0x8] sm:$0xff] %v2771_v45  ;;  %v2926_v20 = vadd.f32 %v2771_v45, %v2768_v50  ;;  %v2965_v62 = vmul.f32 %v2771_v45, %v2771_v45 }
 0x208   : > { %v5220_v9 = vadd.f32 %v3719_v60, %v5128_v6  ;;  %v2927_v14 = vadd.f32 %v2926_v20, %v2776_v57  ;;  %v2996_v61 = vadd.f32 %v2965_v62, %v2964_v52  ;;  %v3802_v24 = vpop.f32.mrb[116].mxu0 }
 0x209   : > { %v2792_v3 = vadd.f32 %v3802_v24, %v5131_v39  ;;  %v2783_v26 = vpop.f32.mrb[117].mxu0 }
 0x20a   : > { %v3720_v37 = vpop.f32.mrb[120].mxu1  ;;  %v2997_v6 = vadd.f32 %v2996_v61, %v2966_v41  ;;  %v2784_v33 = vadd.f32 %v2783_v26, %v5119_v11  ;;  %v2928_v19 = vadd.f32 %v2927_v14, %v2779_v23  ;;  %v3803_v34 = vpop.f32.mrb[118].mxu0 }
 0x20b   : > { %v3721_v22 = vpop.f32.mrb[121].mxu1  ;;  %2900 = vst [vmem:[%s5207_s17 + $0x30] sm:$0xff] %v2792_v3  ;;  %v2795_v25 = vadd.f32 %v3803_v34, %v5137_v53  ;;  %v2786_v40 = vpop.f32.mrb[119].mxu0  ;;  %v2970_v50 = vmul.f32 %v2792_v3, %v2792_v3 }
 0x20c   : > { %v3722_v29 = vadd.f32 %v3721_v22, %v3720_v37  ;;  %v3723_v7 = vpop.f32.mrb[122].mxu1  ;;  %2898 = vst [vmem:[%s5207_s17 + $0x20] sm:$0xff] %v2784_v33  ;;  %v2929_v39 = vadd.f32 %v2928_v19, %v2784_v33  ;;  %v2968_v18 = vmul.f32 %v2784_v33, %v2784_v33  ;;  %v2998_v58 = vadd.f32 %v2997_v6, %v2967_v32 }
 0x20d   : > { %v3724_v5 = vpop.f32.mrb[123].mxu1  ;;  %v2787_v57 = vadd.f32 %v2786_v40, %v5125_v51  ;;  %2901 = vst [vmem:[%s5207_s17 + $0x38] sm:$0xff] %v2795_v25  ;;  %v2971_v52 = vmul.f32 %v2795_v25, %v2795_v25 }
 0x20e   : > { %v3725_v0 = vadd.f32 %v3724_v5, %v3723_v7  ;;  %v5228_v16 = vadd.f32 %v3722_v29, %v5134_v48  ;;  %v2999_v4 = vadd.f32 %v2998_v58, %v2968_v18 }
 0x20f   : > { %2899 = vst [vmem:[%s5207_s17 + $0x28] sm:$0xff] %v2787_v57  ;;  %v2930_v59 = vadd.f32 %v2929_v39, %v2787_v57  ;;  %v2969_v63 = vmul.f32 %v2787_v57, %v2787_v57 }
 0x210   : > { %v5234_v11 = vadd.f32 %v3725_v0, %v5140_v56  ;;  %v3806_v21 = vpop.f32.mrb[120].mxu0 }
 0x211   : > { %v2931_v10 = vadd.f32 %v2930_v59, %v2792_v3  ;;  %v3000_v48 = vadd.f32 %v2999_v4, %v2969_v63  ;;  %v2808_v55 = vadd.f32 %v3806_v21, %v5155_v1  ;;  %v2799_v60 = vpop.f32.mrb[121].mxu0 }
 0x212   : > { %v3726_v53 = vpop.f32.mrb[124].mxu1  ;;  %v2800_v20 = vadd.f32 %v2799_v60, %v5143_v15  ;;  %v3807_v37 = vpop.f32.mrb[122].mxu0 }
 0x213   : > { %v3727_v23 = vpop.f32.mrb[125].mxu1  ;;  %v3001_v56 = vadd.f32 %v3000_v48, %v2970_v50  ;;  %v2932_v62 = vadd.f32 %v2931_v10, %v2795_v25  ;;  %2904 = vst [vmem:[%s5207_s17 + $0x50] sm:$0xff] %v2808_v55  ;;  %v2811_v14 = vadd.f32 %v3807_v37, %v5161_v2  ;;  %v2802_v61 = vpop.f32.mrb[123].mxu0  ;;  %v2974_v33 = vmul.f32 %v2808_v55, %v2808_v55 }
 0x214   : > { %v3728_v51 = vadd.f32 %v3727_v23, %v3726_v53  ;;  %v3729_v45 = vpop.f32.mrb[126].mxu1  ;;  %2902 = vst [vmem:[%s5207_s17 + $0x40] sm:$0xff] %v2800_v20  ;;  %v2972_v3 = vmul.f32 %v2800_v20, %v2800_v20  ;;  %v2803_v29 = vadd.f32 %v2802_v61, %v5149_v17 }
 0x215   : > { %v3730_v41 = vpop.f32.mrb[127].mxu1  ;;  %v2933_v1 = vadd.f32 %v2932_v62, %v2800_v20  ;;  %v3002_v26 = vadd.f32 %v3001_v56, %v2971_v52  ;;  %2905 = vst [vmem:[%s5207_s17 + $0x58] sm:$0xff] %v2811_v14  ;;  %v2975_v39 = vmul.f32 %v2811_v14, %v2811_v14 }
 0x216   : > { %v3731_v24 = vadd.f32 %v3730_v41, %v3729_v45  ;;  %v5242_v22 = vadd.f32 %v3728_v51, %v5146_v38  ;;  %2903 = vst [vmem:[%s5207_s17 + $0x48] sm:$0xff] %v2803_v29  ;;  %v2973_v6 = vmul.f32 %v2803_v29, %v2803_v29 }
 0x217   : > { %v3003_v7 = vadd.f32 %v3002_v26, %v2972_v3  ;;  %v2934_v32 = vadd.f32 %v2933_v1, %v2803_v29 }
 0x218   : > { %v5248_v15 = vadd.f32 %v3731_v24, %v5152_v31  ;;  %v3810_v34 = vpop.f32.mrb[124].mxu0 }
 0x219   : > { %v2935_v19 = vadd.f32 %v2934_v32, %v2808_v55  ;;  %v3004_v38 = vadd.f32 %v3003_v7, %v2973_v6  ;;  %v2824_v25 = vadd.f32 %v3810_v34, %v5179_v36  ;;  %v2815_v40 = vpop.f32.mrb[125].mxu0 }
 0x21a   : > { %v3732_v2 = vpop.f32.mrb[128].mxu1  ;;  %v2816_v18 = vadd.f32 %v2815_v40, %v5167_v43  ;;  %v3811_v57 = vpop.f32.mrb[126].mxu0 }
 0x21b   : > { %v3733_v5 = vpop.f32.mrb[129].mxu1  ;;  %v3005_v31 = vadd.f32 %v3004_v38, %v2974_v33  ;;  %v2936_v58 = vadd.f32 %v2935_v19, %v2811_v14  ;;  %2908 = vst [vmem:[%s5207_s17 + $0x70] sm:$0xff] %v2824_v25  ;;  %v2827_v59 = vadd.f32 %v3811_v57, %v5185_v8  ;;  %v2818_v63 = vpop.f32.mrb[127].mxu0  ;;  %v2978_v51 = vmul.f32 %v2824_v25, %v2824_v25 }
 0x21c   : > { %v3734_v17 = vadd.f32 %v3733_v5, %v3732_v2  ;;  %v3735_v0 = vpop.f32.mrb[130].mxu1  ;;  %2906 = vst [vmem:[%s5207_s17 + $0x60] sm:$0xff] %v2816_v18  ;;  %v2976_v10 = vmul.f32 %v2816_v18, %v2816_v18  ;;  %v2819_v21 = vadd.f32 %v2818_v63, %v5173_v54 }
 0x21d   : > { %v3736_v4 = vpop.f32.mrb[131].mxu1  ;;  %v2937_v36 = vadd.f32 %v2936_v58, %v2816_v18  ;;  %v3006_v48 = vadd.f32 %v3005_v31, %v2975_v39  ;;  %2909 = vst [vmem:[%s5207_s17 + $0x78] sm:$0xff] %v2827_v59  ;;  %v2979_v41 = vmul.f32 %v2827_v59, %v2827_v59 }
 0x21e   : > { %v3737_v53 = vadd.f32 %v3736_v4, %v3735_v0  ;;  %v5256_v50 = vadd.f32 %v3734_v17, %v5158_v27  ;;  %2907 = vst [vmem:[%s5207_s17 + $0x68] sm:$0xff] %v2819_v21  ;;  %v2977_v60 = vmul.f32 %v2819_v21, %v2819_v21 }
 0x21f   : > { %v3007_v23 = vadd.f32 %v3006_v48, %v2976_v10  ;;  %v2938_v55 = vadd.f32 %v2937_v36, %v2819_v21 }
 0x220   : > { %v5262_v43 = vadd.f32 %v3737_v53, %v5164_v35  ;;  %v3814_v52 = vpop.f32.mrb[128].mxu0 }
 0x221   : > { %v2939_v45 = vadd.f32 %v2938_v55, %v2824_v25  ;;  %v3008_v27 = vadd.f32 %v3007_v23, %v2977_v60  ;;  %v2840_v20 = vadd.f32 %v3814_v52, %v5214_v49  ;;  %v2831_v62 = vpop.f32.mrb[129].mxu0 }
 0x222   : > { %v3738_v8 = vpop.f32.mrb[132].mxu1  ;;  %v2832_v14 = vadd.f32 %v2831_v62, %v5191_v12  ;;  %v3815_v24 = vpop.f32.mrb[130].mxu0 }
 0x223   : > { %v3739_v56 = vpop.f32.mrb[133].mxu1  ;;  %v3009_v35 = vadd.f32 %v3008_v27, %v2978_v51  ;;  %v2940_v61 = vadd.f32 %v2939_v45, %v2827_v59  ;;  %2912 = vst [vmem:[%s5207_s17 + $0x90] sm:$0xff] %v2840_v20  ;;  %v2843_v3 = vadd.f32 %v3815_v24, %v5220_v9  ;;  %v2834_v26 = vpop.f32.mrb[131].mxu0  ;;  %v2982_v9 = vmul.f32 %v2840_v20, %v2840_v20 }
 0x224   : > { %v3740_v54 = vadd.f32 %v3739_v56, %v3738_v8  ;;  %v3741_v37 = vpop.f32.mrb[134].mxu1  ;;  %2910 = vst [vmem:[%s5207_s17 + $0x80] sm:$0xff] %v2832_v14  ;;  %v2980_v32 = vmul.f32 %v2832_v14, %v2832_v14  ;;  %v2835_v2 = vadd.f32 %v2834_v26, %v5197_v13 }
 0x225   : > { %v3742_v1 = vpop.f32.mrb[135].mxu1  ;;  %v2941_v49 = vadd.f32 %v2940_v61, %v2832_v14  ;;  %v3010_v6 = vadd.f32 %v3009_v35, %v2979_v41  ;;  %2913 = vst [vmem:[%s5207_s17 + $0x98] sm:$0xff] %v2843_v3  ;;  %v2983_v31 = vmul.f32 %v2843_v3, %v2843_v3 }
 0x226   : > { %v3743_v29 = vadd.f32 %v3742_v1, %v3741_v37  ;;  %v2711_v7 = vadd.f32 %v3740_v54, %v5170_v28  ;;  %2911 = vst [vmem:[%s5207_s17 + $0x88] sm:$0xff] %v2835_v2  ;;  %v2981_v38 = vmul.f32 %v2835_v2, %v2835_v2 }
 0x227   : > { %v3011_v33 = vadd.f32 %v3010_v6, %v2980_v32  ;;  %v2942_v19 = vadd.f32 %v2941_v49, %v2835_v2 }
 0x228   : > { %v2714_v12 = vadd.f32 %v3743_v29, %v5176_v47  ;;  %v3818_v40 = vpop.f32.mrb[132].mxu0 }
 0x229   : > { %v2943_v5 = vadd.f32 %v2942_v19, %v2840_v20  ;;  %v3012_v25 = vadd.f32 %v3011_v33, %v2981_v38  ;;  %v2856_v17 = vadd.f32 %v3818_v40, %v5242_v22  ;;  %v2847_v0 = vpop.f32.mrb[133].mxu0 }
 0x22a   : > { %v3744_v34 = vpop.f32.mrb[136].mxu1  ;;  %v2848_v18 = vadd.f32 %v2847_v0, %v5228_v16  ;;  %v3819_v57 = vpop.f32.mrb[134].mxu0 }
 0x22b   : > { %v3745_v28 = vpop.f32.mrb[137].mxu1  ;;  %v3013_v47 = vadd.f32 %v3012_v25, %v2982_v9  ;;  %v2944_v58 = vadd.f32 %v2943_v5, %v2843_v3  ;;  %2916 = vst [vmem:[%s5207_s17 + $0xb0] sm:$0xff] %v2856_v17  ;;  %v2859_v59 = vadd.f32 %v3819_v57, %v5248_v15  ;;  %v2850_v63 = vpop.f32.mrb[135].mxu0  ;;  %v2986_v15 = vmul.f32 %v2856_v17, %v2856_v17 }
 0x22c   : > { %v3746_v39 = vadd.f32 %v3745_v28, %v3744_v34  ;;  %v3747_v13 = vpop.f32.mrb[138].mxu1  ;;  %2914 = vst [vmem:[%s5207_s17 + $0xa0] sm:$0xff] %v2848_v18  ;;  %v2984_v10 = vmul.f32 %v2848_v18, %v2848_v18  ;;  %v2851_v21 = vadd.f32 %v2850_v63, %v5234_v11 }
 0x22d   : > { %v3748_v4 = vpop.f32.mrb[139].mxu1  ;;  %v2945_v22 = vadd.f32 %v2944_v58, %v2848_v18  ;;  %v3014_v48 = vadd.f32 %v3013_v47, %v2983_v31  ;;  %2917 = vst [vmem:[%s5207_s17 + $0xb8] sm:$0xff] %v2859_v59  ;;  %v2987_v11 = vmul.f32 %v2859_v59, %v2859_v59 }
 0x22e   : > { %v3749_v53 = vadd.f32 %v3748_v4, %v3747_v13  ;;  %v2719_v36 = vadd.f32 %v3746_v39, %v5182_v42  ;;  %2915 = vst [vmem:[%s5207_s17 + $0xa8] sm:$0xff] %v2851_v21  ;;  %v2985_v60 = vmul.f32 %v2851_v21, %v2851_v21 }
 0x22f   : > { %v3015_v23 = vadd.f32 %v3014_v48, %v2984_v10  ;;  %v2946_v55 = vadd.f32 %v2945_v22, %v2851_v21 }
 0x230   : > { %v2722_v16 = vadd.f32 %v3749_v53, %v5188_v30  ;;  %v3822_v27 = vpop.f32.mrb[136].mxu0 }
 0x231   : > { %v2947_v51 = vadd.f32 %v2946_v55, %v2856_v17  ;;  %v3016_v45 = vadd.f32 %v3015_v23, %v2985_v60  ;;  %v2872_v52 = vadd.f32 %v3822_v27, %v2711_v7  ;;  %v2863_v56 = vpop.f32.mrb[137].mxu0 }
 0x232   : > { %v3750_v8 = vpop.f32.mrb[140].mxu1  ;;  %v2864_v30 = vadd.f32 %v2863_v56, %v5256_v50  ;;  %v3823_v41 = vpop.f32.mrb[138].mxu0 }
 0x233   : > { %v3751_v42 = vpop.f32.mrb[141].mxu1  ;;  %v3017_v54 = vadd.f32 %v3016_v45, %v2986_v15  ;;  %v2948_v37 = vadd.f32 %v2947_v51, %v2859_v59  ;;  %2920 = vst [vmem:[%s5207_s17 + $0xd0] sm:$0xff] %v2872_v52  ;;  %v2875_v14 = vadd.f32 %v3823_v41, %v2714_v12  ;;  %v2866_v61 = vpop.f32.mrb[139].mxu0  ;;  %v2990_v2 = vmul.f32 %v2872_v52, %v2872_v52 }
 0x234   : > { %v3752_v20 = vadd.f32 %v3751_v42, %v3750_v8  ;;  %v3753_v62 = vpop.f32.mrb[142].mxu1  ;;  %2918 = vst [vmem:[%s5207_s17 + $0xc0] sm:$0xff] %v2864_v30  ;;  %v2988_v26 = vmul.f32 %v2864_v30, %v2864_v30  ;;  %v2867_v7 = vadd.f32 %v2866_v61, %v5262_v43 }
 0x235   : > { %v3754_v35 = vpop.f32.mrb[143].mxu1  ;;  %v2949_v3 = vadd.f32 %v2948_v37, %v2864_v30  ;;  %v3018_v29 = vadd.f32 %v3017_v54, %v2987_v11  ;;  %2921 = vst [vmem:[%s5207_s17 + $0xd8] sm:$0xff] %v2875_v14  ;;  %v2991_v34 = vmul.f32 %v2875_v14, %v2875_v14 }
 0x236   : > { %v2727_v24 = vadd.f32 %v3752_v20, %v5194_v46  ;;  %v3755_v1 = vadd.f32 %v3754_v35, %v3753_v62  ;;  %2919 = vst [vmem:[%s5207_s17 + $0xc8] sm:$0xff] %v2867_v7  ;;  %v2989_v6 = vmul.f32 %v2867_v7, %v2867_v7 }
 0x237   : > { %v3019_v50 = vadd.f32 %v3018_v29, %v2988_v26  ;;  %v2950_v32 = vadd.f32 %v2949_v3, %v2867_v7 }
 0x238   : > { %v2730_v49 = vadd.f32 %v3755_v1, %v5200_v44  ;;  %v3826_v46 = vpop.f32.mrb[140].mxu0 }
 0x239   : > { %v2951_v12 = vadd.f32 %v2950_v32, %v2872_v52  ;;  %v3020_v33 = vadd.f32 %v3019_v50, %v2989_v6  ;;  %v2879_v19 = vpop.f32.mrb[141].mxu0  ;;  %v2888_v38 = vadd.f32 %v3826_v46, %v2727_v24 }
 0x23a   : > { %v2880_v43 = vadd.f32 %v2879_v19, %v2719_v36  ;;  %v3827_v25 = vpop.f32.mrb[142].mxu0 }
 0x23b   : > { %v3021_v9 = vadd.f32 %v3020_v33, %v2990_v2  ;;  %v2952_v5 = vadd.f32 %v2951_v12, %v2875_v14  ;;  %v2882_v44 = vpop.f32.mrb[143].mxu0  ;;  %2924 = vst [vmem:[%s5207_s17 + $0xf0] sm:$0xff] %v2888_v38  ;;  %v2891_v40 = vadd.f32 %v3827_v25, %v2730_v49  ;;  %v2994_v18 = vmul.f32 %v2888_v38, %v2888_v38 }
 0x23c   : > { %2922 = vst [vmem:[%s5207_s17 + $0xe0] sm:$0xff] %v2880_v43  ;;  %v2992_v17 = vmul.f32 %v2880_v43, %v2880_v43  ;;  %v2883_v39 = vadd.f32 %v2882_v44, %v2722_v16 }
 0x23d   : > { %v2953_v28 = vadd.f32 %v2952_v5, %v2880_v43  ;;  %v3022_v0 = vadd.f32 %v3021_v9, %v2991_v34  ;;  %2925 = vst [vmem:[%s5207_s17 + $0xf8] sm:$0xff] %v2891_v40  ;;  %v2995_v4 = vmul.f32 %v2891_v40, %v2891_v40 }
 0x23e   : > { %2923 = vst [vmem:[%s5207_s17 + $0xe8] sm:$0xff] %v2883_v39  ;;  %v2993_v47 = vmul.f32 %v2883_v39, %v2883_v39 }
 0x23f   : > { %v3023_v13 = vadd.f32 %v3022_v0, %v2992_v17  ;;  %v2954_v31 = vadd.f32 %v2953_v28, %v2883_v39 }
 0x241   : > { %v3024_v58 = vadd.f32 %v3023_v13, %v2993_v47  ;;  %v2955_v57 = vadd.f32 %v2954_v31, %v2888_v38 }
 0x243   : > { %v3025_v59 = vadd.f32 %v3024_v58, %v2994_v18  ;;  %v2956_v63 = vadd.f32 %v2955_v57, %v2891_v40 }
 0x245   : > { %v2957_v53 = vrot.slane %v2956_v63, 4  ;;  %v3026_v36 = vadd.f32 %v3025_v59, %v2995_v4 }
 0x247   : > { %v2958_v22 = vadd.f32 %v2957_v53, %v2956_v63  ;;  %v3027_v10 = vrot.slane %v3026_v36, 4 }
 0x249   : > { %v2959_v48 = vrot.slane %v2958_v22, 2  ;;  %v3028_v21 = vadd.f32 %v3027_v10, %v3026_v36 }
 0x24b   : > { %v2960_v16 = vadd.f32 %v2959_v48, %v2958_v22  ;;  %v3029_v23 = vrot.slane %v3028_v21, 2 }
 0x24d   : > { %v2961_v55 = vrot.slane %v2960_v16, 1  ;;  %v3030_v60 = vadd.f32 %v3029_v23, %v3028_v21 }
 0x24f   : > { %v2962_v8 = vadd.f32 %v2961_v55, %v2960_v16  ;;  %v3031_v15 = vrot.slane %v3030_v60, 1 }
 0x251   : > { %2963 = vst [vmem:[%s208_s21] sm:$0x1] %v2962_v8  ;;  %v3032_v51 = vadd.f32 %v3031_v15, %v3030_v60 }
 0x253   : > { %3033 = vst [vmem:[%s208_s21 + $0x1] sm:$0x1] %v3032_v51 }
 0x254 PF: > { %s15_s15 = sadd.s32 1, %s3980_s15  }
 0x255   : > { %p12_p4 = scmp.ge.s32.totalorder %s15_s15, 4  }
 0x257   :  { %14 = sbr.rel (!%p12_p4) target bundleno = 1 (0x1), region = 76 }

// kernel: resblock_forward.3
= control target key start
LH: loop header
LB: loop body
LE: loop exit
PB: predicated region body
PF: predicated region fallthrough
CT: control target
= control target key end

     0   :  { %s4370_s15 = smov 0   ;;  %s5640_s0 = inlined_call_operand.vmem [shape: bf16[2,16,16,128], index: 0, kind: input, shape index: {}]   ;;  %s5641_s1 = inlined_call_operand.vmem [shape: bf16[1152,256], index: 1, kind: input, shape index: {}]   ;;  %s5642_s2 = inlined_call_operand.vmem [shape: f32[2,16,16,128], index: 2, kind: output, shape index: {0}]   ;;  %s5643_s3 = inlined_call_operand.vmem [shape: f32[2,16,16,128], index: 3, kind: output, shape index: {1}]   ;;  %s5644_s4 = inlined_call_operand.vmem [shape: f32[2,4,128], index: 4, kind: output, shape index: {2}]  }
   0x1 LB: > { %s3551_s16 = sadd.s32 4294967295, %s4342_s15   ;;  %p3555_p0 = scmp.ge.s32.totalorder %s4342_s15, 1  ;;  %s4342_s15 = sphi %s4370_s15, %s15_s15  }
   0x2   : > { %p167_p1 = scmp.lt.s32.totalorder %s4342_s15, 3 }
   0x4   : > { %p168_p2 = pnand %p3555_p0, %p167_p1 }
   0x5   : > { %v4045_v0 = vld [vmem:[%s5641_s1 + $0x4] ss:$8 sps:$4 sm:$0xff] (!%p168_p2)   ;;  %v4344_v2 = vmov (!%p168_p2), 0   ;;  %v4049_v3 = vld [vmem:[%s5641_s1] ss:$8 sps:$4 sm:$0xff] (!%p168_p2)   ;;  %p202_p3 = scmp.lt.s32.totalorder (!%p168_p2), %s3551_s16, 1 }
   0x6   : > { %171 = sbr.rel (%p168_p2) target bundleno = 623 (0x26f), region = 28  ;;  %v4047_v1 = vld [vmem:[%s5641_s1 + $0x204] ss:$8 sps:$4 sm:$0xff] (!%p168_p2)   ;;  %254 = vst [vmem:[#allocation2] sm:$0xf] (!%p168_p2), %v4344_v2  ;;  %2187 = vmatprep.subr.bf16.mxu1 (!%p168_p2), %v4045_v0  ;;  %vm262_vm0 = vcmask (!%p168_p2), 1040384  }
   0x7   : > { %255 = vst [vmem:[#allocation2 + $0x4] sm:$0xf] (!%p168_p2), %v4344_v2  ;;  %256 = vst [vmem:[#allocation2 + $0x8] sm:$0x1] (!%p168_p2), %v4344_v2  ;;  %v4050_v4 = vld [vmem:[%s5641_s1 + $0x200] ss:$8 sps:$4 sm:$0xff] (!%p168_p2)   ;;  %2573 = vmatprep.subr.bf16.mxu0 (!%p168_p2), %v4047_v1  ;;  %2188 = vmatpush1.bf16.msra.mxu1 (!%p168_p2), %v4049_v3 }
   0x8   : > { %258 = vst [vmem:[#allocation2 + $0xcc] sm:$0xf] (!%p168_p2), %v4344_v2  ;;  %259 = vst [vmem:[#allocation2 + $0xd0] sm:$0xf] (!%p168_p2), %v4344_v2  ;;  %v4051_v5 = vld [vmem:[%s5641_s1 + $0x14] ss:$8 sps:$4 sm:$0xff] (!%p168_p2)   ;;  %2574 = vmatpush1.bf16.msra.mxu0 (!%p168_p2), %v4050_v4 }
   0x9   : > { %260 = vst [vmem:[#allocation2 + $0xd4] sm:$0x1] (!%p168_p2), %v4344_v2  ;;  %v4053_v6 = vld [vmem:[%s5641_s1 + $0x214] ss:$8 sps:$4 sm:$0xff] (!%p168_p2)   ;;  %v4055_v7 = vld [vmem:[%s5641_s1 + $0x10] ss:$8 sps:$4 sm:$0xff] (!%p168_p2)   ;;  %2189 = vmatprep.subr.bf16.mxu1 (!%p168_p2), %v4051_v5 }
   0xa   : > { %v4056_v8 = vld [vmem:[%s5641_s1 + $0x210] ss:$8 sps:$4 sm:$0xff] (!%p168_p2)   ;;  %2575 = vmatprep.subr.bf16.mxu0 (!%p168_p2), %v4053_v6  ;;  %v4057_v9 = vld [vmem:[%s5641_s1 + $0x24] ss:$8 sps:$4 sm:$0xff] (!%p168_p2)   ;;  %v4061_v11 = vld [vmem:[%s5641_s1 + $0x20] ss:$8 sps:$4 sm:$0xff] (!%p168_p2)  }
   0xb   : > { %v4059_v10 = vld [vmem:[%s5641_s1 + $0x224] ss:$8 sps:$4 sm:$0xff] (!%p168_p2)   ;;  %v4062_v12 = vld [vmem:[%s5641_s1 + $0x220] ss:$8 sps:$4 sm:$0xff] (!%p168_p2)   ;;  %2190 = vmatpush1.bf16.msra.mxu1 (!%p168_p2), %v4055_v7  ;;  %v4063_v13 = vld [vmem:[%s5641_s1 + $0x34] ss:$8 sps:$4 sm:$0xff] (!%p168_p2)  }
   0xc   : > { %2576 = vmatpush1.bf16.msra.mxu0 (!%p168_p2), %v4056_v8  ;;  %2191 = vmatprep.subr.bf16.mxu1 (!%p168_p2), %v4057_v9  ;;  %v4065_v14 = vld [vmem:[%s5641_s1 + $0x234] ss:$8 sps:$4 sm:$0xff] (!%p168_p2)   ;;  %v4067_v15 = vld [vmem:[%s5641_s1 + $0x30] ss:$8 sps:$4 sm:$0xff] (!%p168_p2)   ;;  %v4069_v17 = vld [vmem:[%s5641_s1 + $0x44] ss:$8 sps:$4 sm:$0xff] (!%p168_p2)  }
   0xd   : > { %2577 = vmatprep.subr.bf16.mxu0 %v4059_v10  ;;  %v4068_v16 = vld [vmem:[%s5641_s1 + $0x230] ss:$8 sps:$4 sm:$0xff]   ;;  %v4071_v18 = vld [vmem:[%s5641_s1 + $0x244] ss:$8 sps:$4 sm:$0xff]   ;;  %v4073_v19 = vld [vmem:[%s5641_s1 + $0x40] ss:$8 sps:$4 sm:$0xff]  }
   0xe   : > { %v4074_v20 = vld [vmem:[%s5641_s1 + $0x240] ss:$8 sps:$4 sm:$0xff]   ;;  %v4075_v21 = vld [vmem:[%s5641_s1 + $0x54] ss:$8 sps:$4 sm:$0xff]   ;;  %v4079_v23 = vld [vmem:[%s5641_s1 + $0x50] ss:$8 sps:$4 sm:$0xff]  }
   0xf   : > { %2192 = vmatpush1.bf16.msra.mxu1 %v4061_v11  ;;  %v4077_v22 = vld [vmem:[%s5641_s1 + $0x254] ss:$8 sps:$4 sm:$0xff]   ;;  %v4080_v24 = vld [vmem:[%s5641_s1 + $0x250] ss:$8 sps:$4 sm:$0xff]   ;;  %v4081_v25 = vld [vmem:[%s5641_s1 + $0x64] ss:$8 sps:$4 sm:$0xff]  }
  0x10   : > { %2578 = vmatpush1.bf16.msra.mxu0 %v4062_v12  ;;  %2193 = vmatprep.subr.bf16.mxu1 %v4063_v13  ;;  %v4083_v26 = vld [vmem:[%s5641_s1 + $0x264] ss:$8 sps:$4 sm:$0xff]   ;;  %v4085_v27 = vld [vmem:[%s5641_s1 + $0x60] ss:$8 sps:$4 sm:$0xff]   ;;  %v4087_v29 = vld [vmem:[%s5641_s1 + $0x74] ss:$8 sps:$4 sm:$0xff]  }
  0x11   : > { %2579 = vmatprep.subr.bf16.mxu0 %v4065_v14  ;;  %v4086_v28 = vld [vmem:[%s5641_s1 + $0x260] ss:$8 sps:$4 sm:$0xff]   ;;  %v4089_v30 = vld [vmem:[%s5641_s1 + $0x274] ss:$8 sps:$4 sm:$0xff]   ;;  %v4091_v31 = vld [vmem:[%s5641_s1 + $0x70] ss:$8 sps:$4 sm:$0xff]  }
  0x12   : > { %v4092_v32 = vld [vmem:[%s5641_s1 + $0x270] ss:$8 sps:$4 sm:$0xff]   ;;  %v4093_v33 = vld [vmem:[%s5641_s1 + $0x84] ss:$8 sps:$4 sm:$0xff]   ;;  %v4097_v35 = vld [vmem:[%s5641_s1 + $0x80] ss:$8 sps:$4 sm:$0xff]  }
  0x13   : > { %2194 = vmatpush1.bf16.msra.mxu1 %v4067_v15  ;;  %v4095_v34 = vld [vmem:[%s5641_s1 + $0x284] ss:$8 sps:$4 sm:$0xff]   ;;  %v4098_v36 = vld [vmem:[%s5641_s1 + $0x280] ss:$8 sps:$4 sm:$0xff]   ;;  %v4099_v37 = vld [vmem:[%s5641_s1 + $0x94] ss:$8 sps:$4 sm:$0xff]  }
  0x14   : > { %2580 = vmatpush1.bf16.msra.mxu0 %v4068_v16  ;;  %2195 = vmatprep.subr.bf16.mxu1 %v4069_v17  ;;  %v4101_v38 = vld [vmem:[%s5641_s1 + $0x294] ss:$8 sps:$4 sm:$0xff]   ;;  %s5654_s16 = smov (!%p202_p3, %s3551_s16), 1  ;;  %v4103_v39 = vld [vmem:[%s5641_s1 + $0x90] ss:$8 sps:$4 sm:$0xff]   ;;  %v4546_v51 = vld [vmem:[#allocation2] sm:$0xff]  }
  0x15   : > { %2581 = vmatprep.subr.bf16.mxu0 %v4071_v18  ;;  %v4104_v40 = vld [vmem:[%s5641_s1 + $0x290] ss:$8 sps:$4 sm:$0xff]   ;;  %v4105_v41 = vld [vmem:[%s5641_s1 + $0xa4] ss:$8 sps:$4 sm:$0xff]   ;;  %s3745_s29 = sshll.u32 %s5654_s16, 7  ;;  %v999_v55 = vshrl.u32 %v4546_v51, 16 }
  0x16   : > { %v4107_v42 = vld [vmem:[%s5641_s1 + $0x2a4] ss:$8 sps:$4 sm:$0xff]   ;;  %v4109_v43 = vld [vmem:[%s5641_s1 + $0xa0] ss:$8 sps:$4 sm:$0xff]   ;;  %vm263_vm1 = vsmask.f32 256  ;;  %s4532_s14 = scalar_lea.vmem %s5640_s0, %s3745_s29 }
  0x17   : > { %2196 = vmatpush1.bf16.msra.mxu1 %v4073_v19  ;;  %v4110_v44 = vld [vmem:[%s5641_s1 + $0x2a0] ss:$8 sps:$4 sm:$0xff]   ;;  %v4111_v45 = vld [vmem:[%s5641_s1 + $0xb4] ss:$8 sps:$4 sm:$0xff]   ;;  %vm997_vm2 = vsmask.f32 7424  ;;  %vm4553_vm5 = vmand %vm262_vm0, %vm263_vm1 }
  0x18   : > { %2582 = vmatpush1.bf16.msra.mxu0 %v4074_v20  ;;  %2197 = vmatprep.subr.bf16.mxu1 %v4075_v21  ;;  %vm313_vm3 = vsmask.f32 7938  ;;  %v4113_v46 = vld [vmem:[%s5641_s1 + $0x2b4] ss:$8 sps:$4 sm:$0xff]   ;;  %vm363_vm4 = vsmask.f32 4368 }
  0x19   : > { %2583 = vmatprep.subr.bf16.mxu0 %v4077_v22  ;;  %v4115_v47 = vld [vmem:[%s5641_s1 + $0xb0] ss:$8 sps:$4 sm:$0xff]   ;;  %v4117_v49 = vld [vmem:[%s5641_s1 + $0xc4] ss:$8 sps:$4 sm:$0xff]   ;;  %v222_v53 = vld [vmem:[%s4532_s14] sm:$0xf] }
  0x1a   : > { %v4116_v48 = vld [vmem:[%s5641_s1 + $0x2b0] ss:$8 sps:$4 sm:$0xff]   ;;  %v4119_v50 = vld [vmem:[%s5641_s1 + $0x2c4] ss:$8 sps:$4 sm:$0xff]   ;;  %v1001_v56 = vshll.u32 %v4546_v51, 16  ;;  %vm4562_vm6 = vmand %vm262_vm0, %vm313_vm3  ;;  %v366_v0 = vshrl.u32 %v222_v53, 16 }
  0x1b   : > { %2198 = vmatpush1.bf16.msra.mxu1 %v4079_v23  ;;  %v4548_v52 = vld [vmem:[#allocation2 + $0x8] ss:$0 sps:$4 sm:$0x11]   ;;  %v223_v57 = vld [vmem:[%s4532_s14 + $0x4] sm:$0xf]  ;;  %vm685_vm7 = vcmask 1043456   ;;  %vm4591_vm8 = vmor %vm263_vm1, %vm363_vm4 }
  0x1c   : > { %2584 = vmatpush1.bf16.msra.mxu0 %v4080_v24  ;;  %2199 = vmatprep.subr.bf16.mxu1 %v4081_v25  ;;  %v265_v58 = vld [vmem:[#allocation2 + $0xc] sm:$0x1]  ;;  %v4121_v60 = vld [vmem:[%s5641_s1 + $0xc0] ss:$8 sps:$4 sm:$0xff]   ;;  %v1006_v61 = vshll.u32 %v4548_v52, 16  ;;  %v1003_v1 = vrot.slane %v1001_v56, 1  ;;  %vm4604_vm9 = vmand %vm685_vm7, %vm313_vm3 }
  0x1d   : > { %2585 = vmatprep.subr.bf16.mxu0 %v4083_v26  ;;  %v266_v62 = vsel %vm4553_vm5, 0, %v265_v58  ;;  %v315_v63 = vld [vmem:[#allocation2 + $0x14] sm:$0x1]  ;;  %v369_v4 = vshll.u32 %v222_v53, 16  ;;  %v374_v5 = vshrl.u32 %v223_v57, 16  ;;  %v368_v8 = vrot.slane %v366_v0, 7 }
  0x1e   : > { %267 = vst [vmem:[#allocation2 + $0xc] sm:$0x1] %v266_v62  ;;  %v316_v3 = vsel %vm4562_vm6, 0, %v315_v63  ;;  %v4122_v6 = vld [vmem:[%s5641_s1 + $0x2c0] ss:$8 sps:$4 sm:$0xff]   ;;  %v1008_v7 = vrot.slane %v1006_v61, 1  ;;  %v1004_v12 = vor.u32 %v1003_v1, %v999_v55 }
  0x1f   : > { %2200 = vmatpush1.bf16.msra.mxu1 %v4085_v27  ;;  %317 = vst [vmem:[#allocation2 + $0x14] sm:$0x1] %v316_v3  ;;  %v377_v9 = vshll.u32 %v223_v57, 16  ;;  %v4123_v10 = vld [vmem:[%s5641_s1 + $0xd4] ss:$8 sps:$4 sm:$0xff]   ;;  %v376_v13 = vrot.slane %v374_v5, 7  ;;  %v371_v21 = vor.u32 %v369_v4, %v368_v8 }
  0x20   : > { %2586 = vmatpush1.bf16.msra.mxu0 %v4086_v28  ;;  %2201 = vmatprep.subr.bf16.mxu1 %v4087_v29  ;;  %v4125_v11 = vld [vmem:[%s5641_s1 + $0x2d4] ss:$8 sps:$4 sm:$0xff]   ;;  %v4127_v14 = vld [vmem:[%s5641_s1 + $0xd0] ss:$8 sps:$4 sm:$0xff]   ;;  %v372_v17 = vrot.slane %v368_v8, 4  ;;  %v1009_v20 = vsel %vm997_vm2, %v1004_v12, %v1008_v7  ;;  %vm1206_vm10 = vcmask 1046528  }
  0x21   : > { %2587 = vmatprep.subr.bf16.mxu0 %v4089_v30  ;;  %v4128_v15 = vld [vmem:[%s5641_s1 + $0x2d0] ss:$8 sps:$4 sm:$0xff]   ;;  %v4129_v18 = vld [vmem:[%s5641_s1 + $0xe4] ss:$8 sps:$4 sm:$0xff]   ;;  %v379_v22 = vor.u32 %v377_v9, %v376_v13  ;;  %v381_v23 = vrot.slane %v376_v13, 4  ;;  %2219 = vmatprep.mubr.bf16.mxu1 %v1009_v20  ;;  %s3746_s21 = sshll.u32 %s5654_s16, 8 }
  0x22   : > { %v4131_v19 = vld [vmem:[%s5641_s1 + $0x2e4] ss:$8 sps:$4 sm:$0xff]   ;;  %v224_v25 = vld [vmem:[%s4532_s14 + $0x8] sm:$0xf]  ;;  %v268_v27 = vld [vmem:[#allocation2 + $0x18] sm:$0x1]  ;;  %s5538_s24 = scalar_lea.vmem %s5642_s2, %s3746_s21 }
  0x23   : > { %2202 = vmatpush1.bf16.msra.mxu1 %v4091_v31  ;;  %v225_v26 = vld [vmem:[%s4532_s14 + $0xc] sm:$0xf]  ;;  %v380_v28 = vsel %vm4591_vm8, %v372_v17, %v379_v22  ;;  %v269_v29 = vsel %vm4553_vm5, 0, %v268_v27  ;;  %v318_v30 = vld [vmem:[#allocation2 + $0x20] sm:$0x1]  ;;  %v383_v31 = vshrl.u32 %v224_v25, 16 }
  0x24   : > { %2588 = vmatpush1.bf16.msra.mxu0 %v4092_v32  ;;  %2203 = vmatprep.subr.bf16.mxu1 %v4093_v33  ;;  %v386_v32 = vshll.u32 %v224_v25, 16  ;;  %690 = vst [vmem:[#allocation2 + $0x10] sm:$0xf] %v380_v28  ;;  %270 = vst [vmem:[#allocation2 + $0x18] sm:$0x1] %v269_v29  ;;  %s3562_s27 = sshll.u32 %s5654_s16, 2 }
  0x25   : > { %2589 = vmatprep.subr.bf16.mxu0 %v4095_v34  ;;  %v687_v33 = vld [vmem:[#allocation2 + $0xc] sm:$0xf]  ;;  %v319_v34 = vsel %vm4562_vm6, 0, %v318_v30  ;;  %v226_v55 = vld [vmem:[%s4532_s14 + $0x10] sm:$0xf]  ;;  %s220_s30 = scalar_lea.vmem %s5644_s4, %s3562_s27 }
  0x26   : > { %320 = vst [vmem:[#allocation2 + $0x20] sm:$0x1] %v319_v34  ;;  %v4147_v56 = vld [vmem:[%s5641_s1 + $0x104] ss:$8 sps:$4 sm:$0xff]   ;;  %v227_v57 = vld [vmem:[%s4532_s14 + $0x14] sm:$0xf] }
  0x27   : > { %2204 = vmatpush1.bf16.msra.mxu1 %v4097_v35  ;;  %v391_v35 = vshrl.u32 %v225_v26, 16  ;;  %v271_v58 = vld [vmem:[#allocation2 + $0x24] sm:$0x1]  ;;  %v400_v1 = vshrl.u32 %v226_v55, 16  ;;  %v403_v4 = vshll.u32 %v226_v55, 16  ;;  %v408_v5 = vshrl.u32 %v227_v57, 16 }
  0x28   : > { %2590 = vmatpush1.bf16.msra.mxu0 %v4098_v36  ;;  %2205 = vmatprep.subr.bf16.mxu1 %v4099_v37  ;;  %v394_v36 = vshll.u32 %v225_v26, 16  ;;  %v688_v37 = vsel %vm4604_vm9, %v371_v21, %v687_v33  ;;  %v4150_v61 = vld [vmem:[%s5641_s1 + $0x304] ss:$8 sps:$4 sm:$0xff]   ;;  %v272_v63 = vsel %vm4553_vm5, 0, %v271_v58  ;;  %v4158_v21 = vld [vmem:[%s5641_s1 + $0x114] ss:$8 sps:$4 sm:$0xff]  }
  0x29   : > { %2591 = vmatprep.subr.bf16.mxu0 %v4101_v38  ;;  %v691_v38 = vld [vmem:[#allocation2 + $0x14] sm:$0x1]  ;;  %689 = vst [vmem:[#allocation2 + $0xc] sm:$0xf] %v688_v37  ;;  %273 = vst [vmem:[#allocation2 + $0x24] sm:$0x1] %v272_v63 }
  0x2a   : > { %v402_v9 = vrot.slane %v400_v1, 7  ;;  %v410_v13 = vrot.slane %v408_v5, 7  ;;  %v4148_v28 = vld [vmem:[%s5641_s1 + $0x300] ss:$8 sps:$4 sm:$0xff]   ;;  %v4156_v29 = vld [vmem:[%s5641_s1 + $0x110] ss:$8 sps:$4 sm:$0xff]  }
  0x2b   : > { %2206 = vmatpush1.bf16.msra.mxu1 %v4103_v39  ;;  %v385_v39 = vrot.slane %v383_v31, 7  ;;  %v694_v3 = vld [vmem:[#allocation2 + $0x18] sm:$0xf]  ;;  %v4153_v33 = vld [vmem:[%s5641_s1 + $0x314] ss:$8 sps:$4 sm:$0xff]   ;;  %v1208_v63 = vrot.slane %v4548_v52, 1 }
  0x2c   : > { %2592 = vmatpush1.bf16.msra.mxu0 %v4104_v40  ;;  %2207 = vmatprep.subr.bf16.mxu1 %v4105_v41  ;;  %v4133_v40 = vld [vmem:[%s5641_s1 + $0xe0] ss:$8 sps:$4 sm:$0xff]   ;;  %v406_v17 = vrot.slane %v402_v9, 4  ;;  %v415_v26 = vrot.slane %v410_v13, 4  ;;  %v4161_v1 = vld [vmem:[%s5641_s1 + $0x324] ss:$8 sps:$4 sm:$0xff]  }
  0x2d   : > { %2593 = vmatprep.subr.bf16.mxu0 %v4107_v42  ;;  %v4134_v41 = vld [vmem:[%s5641_s1 + $0x2e0] ss:$8 sps:$4 sm:$0xff]   ;;  %v692_v42 = vsel %vm4553_vm5, %v381_v23, %v691_v38 }
  0x2e   : > { %693 = vst [vmem:[#allocation2 + $0x14] sm:$0x1] %v692_v42  ;;  %v698_v8 = vld [vmem:[#allocation2 + $0x20] sm:$0x1] }
  0x2f   : > { %2208 = vmatpush1.bf16.msra.mxu1 %v4109_v43  ;;  %v393_v43 = vrot.slane %v391_v35, 7  ;;  %v4169_v35 = vld [vmem:[%s5641_s1 + $0x124] ss:$8 sps:$4 sm:$0xff]   ;;  %v4159_v52 = vld [vmem:[%s5641_s1 + $0x320] ss:$8 sps:$4 sm:$0xff]  }
  0x30   : > { %2594 = vmatpush1.bf16.msra.mxu0 %v4110_v44  ;;  %2209 = vmatprep.subr.bf16.mxu1 %v4111_v45  ;;  %v4135_v44 = vld [vmem:[%s5641_s1 + $0xf4] ss:$8 sps:$4 sm:$0xff]   ;;  %v701_v34 = vld [vmem:[#allocation2 + $0x24] sm:$0xf]  ;;  %v4299_v24 = vld [vmem:[#allocation2 + $0xc] sm:$0xff]  }
  0x31   : > { %2595 = vmatprep.subr.bf16.mxu0 %v4113_v46  ;;  %v4137_v45 = vld [vmem:[%s5641_s1 + $0x2f4] ss:$8 sps:$4 sm:$0xff]   ;;  %v389_v46 = vrot.slane %v385_v39, 4  ;;  %v398_v53 = vrot.slane %v393_v43, 4  ;;  %v4300_v54 = vld [vmem:[%s5641_s1 + $0x200] ss:$8 sps:$4 sm:$0xff]  }
  0x33   : > { %2210 = vmatpush1.bf16.msra.mxu1 %v4115_v47  ;;  %v4139_v47 = vld [vmem:[%s5641_s1 + $0xf0] ss:$8 sps:$4 sm:$0xff]   ;;  %v699_v12 = vsel %vm4553_vm5, %v398_v53, %v698_v8 }
  0x34   : > { %2596 = vmatpush1.bf16.msra.mxu0 %v4116_v48  ;;  %2211 = vmatprep.subr.bf16.mxu1 %v4117_v49  ;;  %v4140_v48 = vld [vmem:[%s5641_s1 + $0x2f0] ss:$8 sps:$4 sm:$0xff]   ;;  %v388_v49 = vor.u32 %v386_v32, %v385_v39  ;;  %700 = vst [vmem:[#allocation2 + $0x20] sm:$0x1] %v699_v12 }
  0x35   : > { %2597 = vmatprep.subr.bf16.mxu0 %v4119_v50  ;;  %v396_v50 = vor.u32 %v394_v36, %v393_v43  ;;  %v228_v39 = vld [vmem:[%s4532_s14 + $0x18] sm:$0xf]  ;;  %v274_v43 = vld [vmem:[#allocation2 + $0x30] sm:$0x1] }
  0x36   : > { %v695_v7 = vsel %vm4604_vm9, %v388_v49, %v694_v3  ;;  %v275_v49 = vsel %vm4553_vm5, 0, %v274_v43 }
  0x37   : > { %2212 = vmatpush1.bf16.msra.mxu1 %v4121_v60  ;;  %v321_v60 = vld [vmem:[#allocation2 + $0x2c] sm:$0x1]  ;;  %v397_v62 = vsel %vm4591_vm8, %v389_v46, %v396_v50  ;;  %696 = vst [vmem:[#allocation2 + $0x18] sm:$0xf] %v695_v7  ;;  %v4151_v46 = vld [vmem:[%s5641_s1 + $0x310] ss:$8 sps:$4 sm:$0xff]  }
  0x38   : > { %2598 = vmatpush1.bf16.msra.mxu0 %v4122_v6  ;;  %2213 = vmatprep.subr.bf16.mxu1 %v4123_v10  ;;  %v322_v0 = vsel %vm4562_vm6, 0, %v321_v60  ;;  %697 = vst [vmem:[#allocation2 + $0x1c] sm:$0xf] %v397_v62  ;;  %v4145_v6 = vld [vmem:[%s5641_s1 + $0x100] ss:$8 sps:$4 sm:$0xff]   ;;  %v411_v10 = vshll.u32 %v227_v57, 16 }
  0x39   : > { %2599 = vmatprep.subr.bf16.mxu0 %v4125_v11  ;;  %323 = vst [vmem:[#allocation2 + $0x2c] sm:$0x1] %v322_v0  ;;  %v4657_v11 = vld [vmem:[#allocation2 + $0xc] sm:$0xff]   ;;  %276 = vst [vmem:[#allocation2 + $0x30] sm:$0x1] %v275_v49  ;;  %v420_v62 = vshll.u32 %v228_v39, 16 }
  0x3a   : > { %v1013_v20 = vshll.u32 %v4657_v11, 16  ;;  %v413_v22 = vor.u32 %v411_v10, %v410_v13  ;;  %v4180_v7 = vld [vmem:[%s5641_s1 + $0x134] ss:$8 sps:$4 sm:$0xff]  }
  0x3b   : > { %2214 = vmatpush1.bf16.msra.mxu1 %v4127_v14  ;;  %v4144_v14 = vld [vmem:[#allocation2 + $0x14] ss:$0 sps:$4 sm:$0x11]  }
  0x3c   : > { %2600 = vmatpush1.bf16.msra.mxu0 %v4128_v15  ;;  %2215 = vmatprep.subr.bf16.mxu1 %v4129_v18  ;;  %v405_v15 = vor.u32 %v403_v4, %v402_v9  ;;  %v1210_v18 = vrot.slane %v4657_v11, 1  ;;  %v1211_v23 = vrot.slane %v4144_v14, 1  ;;  %v1018_v25 = vshll.u32 %v4144_v14, 16  ;;  %v4164_v9 = vld [vmem:[%s5641_s1 + $0x334] ss:$8 sps:$4 sm:$0xff]  }
  0x3d   : > { %2601 = vmatprep.subr.bf16.mxu0 %v4131_v19  ;;  %v1011_v19 = vshrl.u32 %v4657_v11, 16  ;;  %v1015_v27 = vrot.slane %v1013_v20, 1  ;;  %v414_v30 = vsel %vm4591_vm8, %v406_v17, %v413_v22 }
  0x3e   : > { %v4677_v31 = vsel %vm1206_vm10, %v1210_v18, %v1211_v23  ;;  %v1020_v32 = vrot.slane %v1018_v25, 1  ;;  %704 = vst [vmem:[#allocation2 + $0x28] sm:$0xf] %v414_v30  ;;  %v702_v37 = vsel %vm4604_vm9, %v405_v15, %v701_v34  ;;  %v1207_v15 = vrot.slane %v4546_v51, 1 }
  0x3f   : > { %2216 = vmatpush1.bf16.msra.mxu1 %v4133_v40  ;;  %2605 = vmatprep.mubr.bf16.mxu0 %v4677_v31  ;;  %v1016_v36 = vor.u32 %v1015_v27, %v1011_v19  ;;  %v229_v40 = vld [vmem:[%s4532_s14 + $0x1c] sm:$0xf]  ;;  %703 = vst [vmem:[#allocation2 + $0x24] sm:$0xf] %v702_v37 }
  0x40   : > { %2602 = vmatpush1.bf16.msra.mxu0 %v4134_v41  ;;  %2217 = vmatprep.subr.bf16.mxu1 %v4135_v44  ;;  %v705_v38 = vld [vmem:[#allocation2 + $0x2c] sm:$0x1]  ;;  %v4690_v41 = vld [vmem:[#allocation2 + $0x18] sm:$0xff]   ;;  %v417_v44 = vshrl.u32 %v228_v39, 16  ;;  %v425_v3 = vshrl.u32 %v229_v40, 16  ;;  %v428_v4 = vshll.u32 %v229_v40, 16 }
  0x41   : > { %2603 = vmatprep.subr.bf16.mxu0 %v4137_v45  ;;  %v706_v42 = vsel %vm4553_vm5, %v415_v26, %v705_v38  ;;  %v1021_v45 = vsel %vm997_vm2, %v1016_v36, %v1020_v32  ;;  %v1213_v50 = vrot.slane %v4690_v41, 1  ;;  %v1023_v53 = vshrl.u32 %v4690_v41, 16  ;;  %v708_v25 = vld [vmem:[#allocation2 + $0x30] sm:$0xf]  ;;  %v231_v39 = vld [vmem:[%s4532_s14 + $0x24] sm:$0xf] }
  0x42   : > { %707 = vst [vmem:[#allocation2 + $0x2c] sm:$0x1] %v706_v42  ;;  %v1025_v55 = vshll.u32 %v4690_v41, 16  ;;  %v419_v57 = vrot.slane %v417_v44, 7  ;;  %v427_v13 = vrot.slane %v425_v3, 7 }
  0x43   : > { %2218 = vmatpush1.bf16.msra.mxu1 %v4139_v47  ;;  %v4155_v47 = vld [vmem:[#allocation2 + $0x20] ss:$0 sps:$4 sm:$0x11]   ;;  %v4162_v26 = vld [vmem:[%s5641_s1 + $0x330] ss:$8 sps:$4 sm:$0xff]  }
  0x44   : > { %2604 = vmatpush1.bf16.msra.mxu0 %v4140_v48  ;;  %2380 = vmatprep.subr.bf16.mxu1 %v4147_v56  ;;  %v4167_v48 = vld [vmem:[%s5641_s1 + $0x120] ss:$8 sps:$4 sm:$0xff]   ;;  %v324_v56 = vld [vmem:[#allocation2 + $0x38] sm:$0x1]  ;;  %v1214_v58 = vrot.slane %v4155_v47, 1  ;;  %v1030_v60 = vshll.u32 %v4155_v47, 16  ;;  %v422_v10 = vor.u32 %v420_v62, %v419_v57  ;;  %v430_v19 = vor.u32 %v428_v4, %v427_v13 }
  0x45   : > { %2766 = vmatprep.subr.bf16.mxu0 %v4150_v61  ;;  %v325_v61 = vsel %vm4562_vm6, 0, %v324_v56  ;;  %v1027_v0 = vrot.slane %v1025_v55, 1  ;;  %v423_v12 = vrot.slane %v419_v57, 4  ;;  %v432_v20 = vrot.slane %v427_v13, 4  ;;  %v277_v40 = vld [vmem:[#allocation2 + $0x3c] sm:$0x1] }
  0x46   : > { %2220 = vmatmul.mubr.bf16.vlgmr.msra.gmra.mrb[0].mxu1 %v4546_v51  ;;  %326 = vst [vmem:[#allocation2 + $0x38] sm:$0x1] %v325_v61  ;;  %v4713_v5 = vsel %vm1206_vm10, %v1213_v50, %v1214_v58  ;;  %v4729_v14 = vld [vmem:[#allocation2 + $0x24] sm:$0xff]   ;;  %v4740_v51 = vsel %vm1206_vm10, %v1207_v15, %v1208_v63  ;;  %v709_v32 = vsel %vm4604_vm9, %v422_v10, %v708_v25  ;;  %v278_v44 = vsel %vm4553_vm5, 0, %v277_v40  ;;  %v4173_v62 = vld [vmem:[%s5641_s1 + $0x350] ss:$8 sps:$4 sm:$0xff]  }
  0x47   : > { %2381 = vmatpush1.bf16.msra.mxu1 %v4145_v6  ;;  %2606 = vmatmul.mubr.bf16.vlgmr.msra.gmra.mrb[0].mxu0 %v1021_v45  ;;  %v1032_v6 = vrot.slane %v1030_v60, 1  ;;  %v1028_v8 = vor.u32 %v1027_v0, %v1023_v53  ;;  %v1035_v22 = vshrl.u32 %v4729_v14, 16  ;;  %v1037_v23 = vshll.u32 %v4729_v14, 16  ;;  %710 = vst [vmem:[#allocation2 + $0x30] sm:$0xf] %v709_v32 }
  0x48   : > { %2382 = vmatprep.subr.bf16.mxu1 %v4158_v21  ;;  %2229 = vmatprep.mubr.bf16.mxu1 %v1021_v45  ;;  %v1216_v21 = vrot.slane %v4729_v14, 1  ;;  %v431_v30 = vsel %vm4591_vm8, %v423_v12, %v430_v19  ;;  %v327_v45 = vld [vmem:[#allocation2 + $0x44] sm:$0x1]  ;;  %v442_v47 = vshrl.u32 %v231_v39, 16  ;;  %279 = vst [vmem:[#allocation2 + $0x3c] sm:$0x1] %v278_v44 }
  0x49   : > { %2767 = vmatpush1.bf16.msra.mxu0 %v4148_v28  ;;  %2615 = vmatprep.mubr.bf16.mxu0 %v4713_v5  ;;  %v4733_v17 = vsel %vm997_vm2, %v1028_v8, %v1032_v6  ;;  %v4166_v18 = vld [vmem:[#allocation2 + $0x2c] ss:$0 sps:$4 sm:$0x11]   ;;  %711 = vst [vmem:[#allocation2 + $0x34] sm:$0xf] %v431_v30  ;;  %v445_v50 = vshll.u32 %v231_v39, 16 }
  0x4a   : > { %2768 = vmatprep.subr.bf16.mxu0 %v4153_v33  ;;  %v1217_v27 = vrot.slane %v4166_v18, 1  ;;  %v1042_v28 = vshll.u32 %v4166_v18, 16  ;;  %v1039_v33 = vrot.slane %v1037_v23, 1  ;;  %v4189_v53 = vld [vmem:[%s5641_s1 + $0x140] ss:$8 sps:$4 sm:$0xff]   ;;  %v444_v57 = vrot.slane %v442_v47, 7 }
  0x4b   : > { %2383 = vmatpush1.bf16.msra.mxu1 %v4156_v29  ;;  %v4172_v29 = vld [vmem:[%s5641_s1 + $0x344] ss:$8 sps:$4 sm:$0xff]   ;;  %v4170_v56 = vld [vmem:[%s5641_s1 + $0x340] ss:$8 sps:$4 sm:$0xff]   ;;  %v4175_v60 = vld [vmem:[%s5641_s1 + $0x354] ss:$8 sps:$4 sm:$0xff]  }
  0x4c   : > { %2384 = vmatprep.subr.bf16.mxu1 %v4169_v35  ;;  %v230_v35 = vld [vmem:[%s4532_s14 + $0x20] sm:$0xf]  ;;  %v4755_v36 = vsel %vm1206_vm10, %v1216_v21, %v1217_v27  ;;  %v1044_v37 = vrot.slane %v1042_v28, 1  ;;  %v1040_v43 = vor.u32 %v1039_v33, %v1035_v22  ;;  %v4191_v58 = vld [vmem:[%s5641_s1 + $0x144] ss:$8 sps:$4 sm:$0xff]   ;;  %v447_v63 = vor.u32 %v445_v50, %v444_v57 }
  0x4d   : > { %2769 = vmatpush1.bf16.msra.mxu0 %v4151_v46  ;;  %v712_v34 = vld [vmem:[#allocation2 + $0x38] sm:$0x1]  ;;  %v434_v42 = vshrl.u32 %v230_v35, 16  ;;  %v437_v46 = vshll.u32 %v230_v35, 16  ;;  %v449_v0 = vrot.slane %v444_v57, 4 }
  0x4e   : > { %2230 = vmatmul.mubr.bf16.gmra.mrb[4].mxu1 %v4657_v11  ;;  %v4178_v11 = vld [vmem:[%s5641_s1 + $0x130] ss:$8 sps:$4 sm:$0xff]   ;;  %2770 = vmatprep.subr.bf16.mxu0 %v4161_v1  ;;  %v713_v38 = vsel %vm4553_vm5, %v432_v20, %v712_v34  ;;  %v4770_v55 = vsel %vm997_vm2, %v1040_v43, %v1044_v37  ;;  %v232_v1 = vld [vmem:[%s4532_s14 + $0x28] sm:$0xf]  ;;  %v4183_v4 = vld [vmem:[%s5641_s1 + $0x364] ss:$8 sps:$4 sm:$0xff]  }
  0x4f   : > { %2385 = vmatpush1.bf16.msra.mxu1 %v4167_v48  ;;  %2239 = vmatprep.mubr.bf16.mxu1 %v4733_v17  ;;  %714 = vst [vmem:[#allocation2 + $0x38] sm:$0x1] %v713_v38  ;;  %v328_v48 = vsel %vm4562_vm6, 0, %v327_v45  ;;  %v436_v49 = vrot.slane %v434_v42, 7  ;;  %v233_v8 = vld [vmem:[%s4532_s14 + $0x2c] sm:$0xf] }
  0x50   : > { %2386 = vmatprep.subr.bf16.mxu1 %v4180_v7  ;;  %2616 = vmatmul.mubr.bf16.gmra.mrb[4].mxu0 %v4733_v17  ;;  %329 = vst [vmem:[#allocation2 + $0x44] sm:$0x1] %v328_v48  ;;  %v4787_v3 = vld [vmem:[#allocation2 + $0x30] sm:$0xff]   ;;  %v4181_v18 = vld [vmem:[%s5641_s1 + $0x360] ss:$8 sps:$4 sm:$0xff]   ;;  %v454_v30 = vshll.u32 %v232_v1, 16 }
  0x51   : > { %2771 = vmatpush1.bf16.msra.mxu0 %v4159_v52  ;;  %2625 = vmatprep.mubr.bf16.mxu0 %v4755_v36  ;;  %v440_v61 = vrot.slane %v436_v49, 4  ;;  %v439_v6 = vor.u32 %v437_v46, %v436_v49  ;;  %v451_v52 = vshrl.u32 %v232_v1, 16  ;;  %v330_v10 = vld [vmem:[#allocation2 + $0x50] sm:$0x1]  ;;  %v1219_v13 = vrot.slane %v4787_v3, 1 }
  0x52   : > { %2772 = vmatprep.subr.bf16.mxu0 %v4164_v9  ;;  %v280_v9 = vld [vmem:[#allocation2 + $0x48] sm:$0x1]  ;;  %v1049_v15 = vshll.u32 %v4787_v3, 16  ;;  %v715_v19 = vld [vmem:[#allocation2 + $0x3c] sm:$0xf]  ;;  %v331_v21 = vsel %vm4562_vm6, 0, %v330_v10 }
  0x53   : > { %2387 = vmatpush1.bf16.msra.mxu1 %v4178_v11  ;;  %v448_v7 = vsel %vm4591_vm8, %v440_v61, %v447_v63  ;;  %v1047_v11 = vshrl.u32 %v4787_v3, 16  ;;  %v281_v20 = vsel %vm4553_vm5, 0, %v280_v9  ;;  %v716_v25 = vsel %vm4604_vm9, %v439_v6, %v715_v19  ;;  %332 = vst [vmem:[#allocation2 + $0x50] sm:$0x1] %v331_v21  ;;  %v4200_v33 = vld [vmem:[%s5641_s1 + $0x150] ss:$8 sps:$4 sm:$0xff]  }
  0x54   : > { %2388 = vmatprep.subr.bf16.mxu1 %v4191_v58  ;;  %718 = vst [vmem:[#allocation2 + $0x40] sm:$0xf] %v448_v7  ;;  %282 = vst [vmem:[#allocation2 + $0x48] sm:$0x1] %v281_v20  ;;  %v453_v27 = vrot.slane %v451_v52, 7  ;;  %v1051_v28 = vrot.slane %v1049_v15, 1 }
  0x55   : > { %2773 = vmatpush1.bf16.msra.mxu0 %v4162_v26  ;;  %717 = vst [vmem:[#allocation2 + $0x3c] sm:$0xf] %v716_v25  ;;  %v459_v32 = vshrl.u32 %v233_v8, 16  ;;  %v462_v37 = vshll.u32 %v233_v8, 16  ;;  %v4202_v38 = vld [vmem:[%s5641_s1 + $0x154] ss:$8 sps:$4 sm:$0xff]  }
  0x56   : > { %2240 = vmatmul.mubr.bf16.gmra.mrb[8].mxu1 %v4690_v41  ;;  %2774 = vmatprep.subr.bf16.mxu0 %v4172_v29  ;;  %v4177_v12 = vld [vmem:[#allocation2 + $0x38] ss:$0 sps:$4 sm:$0x11]   ;;  %v1052_v39 = vor.u32 %v1051_v28, %v1047_v11  ;;  %v457_v40 = vrot.slane %v453_v27, 4  ;;  %v4194_v44 = vld [vmem:[%s5641_s1 + $0x384] ss:$8 sps:$4 sm:$0xff]   ;;  %v456_v45 = vor.u32 %v454_v30, %v453_v27 }
  0x57   : > { %2249 = vmatprep.mubr.bf16.mxu1 %v4770_v55  ;;  %2389 = vmatpush1.bf16.msra.mxu1 %v4189_v53  ;;  %v1220_v22 = vrot.slane %v4177_v12, 1  ;;  %v1054_v23 = vshll.u32 %v4177_v12, 16  ;;  %v719_v26 = vld [vmem:[#allocation2 + $0x44] sm:$0x1]  ;;  %v461_v42 = vrot.slane %v459_v32, 7 }
  0x58   : > { %2626 = vmatmul.mubr.bf16.gmra.mrb[8].mxu0 %v4770_v55  ;;  %v720_v29 = vsel %vm4553_vm5, %v449_v0, %v719_v26  ;;  %v4184_v43 = vld [vmem:[%s5641_s1 + $0x370] ss:$8 sps:$4 sm:$0xff]   ;;  %2390 = vmatprep.subr.bf16.mxu1 %v4202_v38  ;;  %v235_v50 = vld [vmem:[%s4532_s14 + $0x34] sm:$0xf]  ;;  %v4192_v57 = vld [vmem:[%s5641_s1 + $0x380] ss:$8 sps:$4 sm:$0xff]  }
  0x59   : > { %2775 = vmatpush1.bf16.msra.mxu0 %v4170_v56  ;;  %v4817_v34 = vsel %vm1206_vm10, %v1219_v13, %v1220_v22  ;;  %v1056_v35 = vrot.slane %v1054_v23, 1  ;;  %721 = vst [vmem:[#allocation2 + $0x44] sm:$0x1] %v720_v29  ;;  %v464_v47 = vor.u32 %v462_v37, %v461_v42  ;;  %v466_v48 = vrot.slane %v461_v42, 4  ;;  %v234_v49 = vld [vmem:[%s4532_s14 + $0x30] sm:$0xf] }
  0x5a   : > { %2776 = vmatprep.subr.bf16.mxu0 %v4175_v60  ;;  %2635 = vmatprep.mubr.bf16.mxu0 %v4817_v34  ;;  %v283_v53 = vld [vmem:[#allocation2 + $0x54] sm:$0x1]  ;;  %v333_v56 = vld [vmem:[#allocation2 + $0x5c] sm:$0x1]  ;;  %v726_v61 = vld [vmem:[#allocation2 + $0x50] sm:$0x1] }
  0x5b   : > { %v4830_v46 = vsel %vm997_vm2, %v1052_v39, %v1056_v35  ;;  %2391 = vmatpush1.bf16.msra.mxu1 %v4200_v33  ;;  %v465_v58 = vsel %vm4591_vm8, %v457_v40, %v464_v47  ;;  %v722_v60 = vld [vmem:[#allocation2 + $0x48] sm:$0xf]  ;;  %v334_v63 = vsel %vm4562_vm6, 0, %v333_v56  ;;  %v4197_v1 = vld [vmem:[%s5641_s1 + $0x394] ss:$8 sps:$4 sm:$0xff]   ;;  %v727_v6 = vsel %vm4553_vm5, %v466_v48, %v726_v61 }
  0x5c   : > { %v4845_v0 = vld [vmem:[#allocation2 + $0x3c] sm:$0xff]   ;;  %725 = vst [vmem:[#allocation2 + $0x4c] sm:$0xf] %v465_v58  ;;  %335 = vst [vmem:[#allocation2 + $0x5c] sm:$0x1] %v334_v63  ;;  %v468_v52 = vshrl.u32 %v234_v49, 16 }
  0x5d   : > { %2777 = vmatpush1.bf16.msra.mxu0 %v4173_v62  ;;  %v284_v62 = vsel %vm4553_vm5, 0, %v283_v53  ;;  %v471_v7 = vshll.u32 %v234_v49, 16  ;;  %728 = vst [vmem:[#allocation2 + $0x50] sm:$0x1] %v727_v6  ;;  %v476_v9 = vshrl.u32 %v235_v50, 16  ;;  %v1222_v10 = vrot.slane %v4845_v0, 1 }
  0x5e   : > { %2250 = vmatmul.mubr.bf16.gmra.mrb[12].mxu1 %v4729_v14  ;;  %v4186_v14 = vld [vmem:[%s5641_s1 + $0x374] ss:$8 sps:$4 sm:$0xff]   ;;  %2778 = vmatprep.subr.bf16.mxu0 %v4183_v4  ;;  %v723_v4 = vsel %vm4604_vm9, %v456_v45, %v722_v60  ;;  %285 = vst [vmem:[#allocation2 + $0x54] sm:$0x1] %v284_v62  ;;  %v1059_v12 = vshrl.u32 %v4845_v0, 16  ;;  %v1061_v13 = vshll.u32 %v4845_v0, 16 }
  0x5f   : > { %2259 = vmatprep.mubr.bf16.mxu1 %v4830_v46  ;;  %724 = vst [vmem:[#allocation2 + $0x48] sm:$0xf] %v723_v4  ;;  %v470_v11 = vrot.slane %v468_v52, 7  ;;  %v4211_v15 = vld [vmem:[%s5641_s1 + $0x160] ss:$8 sps:$4 sm:$0xff]   ;;  %v478_v20 = vrot.slane %v476_v9, 7 }
  0x60   : > { %2636 = vmatmul.mubr.bf16.gmra.mrb[12].mxu0 %v4830_v46  ;;  %v4188_v8 = vld [vmem:[#allocation2 + $0x44] ss:$0 sps:$4 sm:$0x11]   ;;  %v479_v21 = vshll.u32 %v235_v50, 16  ;;  %v1063_v23 = vrot.slane %v1061_v13, 1 }
  0x61   : > { %2779 = vmatpush1.bf16.msra.mxu0 %v4181_v18  ;;  %v1223_v18 = vrot.slane %v4188_v8, 1  ;;  %v1066_v19 = vshll.u32 %v4188_v8, 16  ;;  %v4213_v22 = vld [vmem:[%s5641_s1 + $0x164] ss:$8 sps:$4 sm:$0xff]   ;;  %v474_v25 = vrot.slane %v470_v11, 4  ;;  %v483_v29 = vrot.slane %v478_v20, 4 }
  0x62   : > { %2780 = vmatprep.subr.bf16.mxu0 %v4186_v14  ;;  %v473_v14 = vor.u32 %v471_v7, %v470_v11  ;;  %v481_v28 = vor.u32 %v479_v21, %v478_v20  ;;  %2392 = vmatprep.subr.bf16.mxu1 %v4213_v22  ;;  %v1064_v30 = vor.u32 %v1063_v23, %v1059_v12  ;;  %v4195_v32 = vld [vmem:[%s5641_s1 + $0x390] ss:$8 sps:$4 sm:$0xff]   ;;  %v4205_v33 = vld [vmem:[%s5641_s1 + $0x3a4] ss:$8 sps:$4 sm:$0xff]   ;;  %v4208_v49 = vld [vmem:[%s5641_s1 + $0x3b4] ss:$8 sps:$4 sm:$0xff]  }
  0x63   : > { %v4865_v26 = vsel %vm1206_vm10, %v1222_v10, %v1223_v18  ;;  %v1068_v27 = vrot.slane %v1066_v19, 1  ;;  %v236_v35 = vld [vmem:[%s4532_s14 + $0x38] sm:$0xf]  ;;  %v733_v39 = vld [vmem:[#allocation2 + $0x5c] sm:$0x1]  ;;  %2393 = vmatpush1.bf16.msra.mxu1 %v4211_v15 }
  0x64   : > { %2645 = vmatprep.mubr.bf16.mxu0 %v4865_v26  ;;  %v482_v37 = vsel %vm4591_vm8, %v474_v25, %v481_v28  ;;  %v734_v45 = vsel %vm4553_vm5, %v483_v29, %v733_v39  ;;  %v485_v47 = vshrl.u32 %v236_v35, 16  ;;  %v4199_v48 = vld [vmem:[#allocation2 + $0x50] ss:$0 sps:$4 sm:$0x11]   ;;  %v237_v50 = vld [vmem:[%s4532_s14 + $0x3c] sm:$0xf] }
  0x65   : > { %2781 = vmatpush1.bf16.msra.mxu0 %v4184_v43  ;;  %v729_v38 = vld [vmem:[#allocation2 + $0x54] sm:$0xf]  ;;  %v4878_v40 = vsel %vm997_vm2, %v1064_v30, %v1068_v27  ;;  %v4203_v43 = vld [vmem:[%s5641_s1 + $0x3a0] ss:$8 sps:$4 sm:$0xff]   ;;  %732 = vst [vmem:[#allocation2 + $0x58] sm:$0xf] %v482_v37 }
  0x66   : > { %2260 = vmatmul.mubr.bf16.gmra.mrb[16].mxu1 %v4787_v3  ;;  %2782 = vmatprep.subr.bf16.mxu0 %v4194_v44  ;;  %v4880_v42 = vld [vmem:[#allocation2 + $0x48] sm:$0xff]   ;;  %v730_v44 = vsel %vm4604_vm9, %v473_v14, %v729_v38  ;;  %735 = vst [vmem:[#allocation2 + $0x5c] sm:$0x1] %v734_v45  ;;  %v488_v53 = vshll.u32 %v236_v35, 16  ;;  %v286_v60 = vld [vmem:[#allocation2 + $0x60] sm:$0x1] }
  0x67   : > { %2269 = vmatprep.mubr.bf16.mxu1 %v4878_v40  ;;  %731 = vst [vmem:[#allocation2 + $0x54] sm:$0xf] %v730_v44  ;;  %v1225_v56 = vrot.slane %v4880_v42, 1  ;;  %v1073_v58 = vshll.u32 %v4880_v42, 16  ;;  %v487_v61 = vrot.slane %v485_v47, 7  ;;  %v1226_v62 = vrot.slane %v4199_v48, 1 }
  0x68   : > { %2646 = vmatmul.mubr.bf16.gmra.mrb[16].mxu0 %v4878_v40  ;;  %v1078_v63 = vshll.u32 %v4199_v48, 16  ;;  %v336_v4 = vld [vmem:[#allocation2 + $0x68] sm:$0x1]  ;;  %v493_v6 = vshrl.u32 %v237_v50, 16  ;;  %v4206_v12 = vld [vmem:[%s5641_s1 + $0x3b0] ss:$8 sps:$4 sm:$0xff]  }
  0x69   : > { %2783 = vmatpush1.bf16.msra.mxu0 %v4192_v57  ;;  %v1071_v57 = vshrl.u32 %v4880_v42, 16  ;;  %v1075_v52 = vrot.slane %v1073_v58, 1  ;;  %v337_v7 = vsel %vm4562_vm6, 0, %v336_v4  ;;  %v491_v8 = vrot.slane %v487_v61, 4  ;;  %v4216_v18 = vld [vmem:[%s5641_s1 + $0x3c4] ss:$8 sps:$4 sm:$0xff]  }
  0x6a   : > { %2784 = vmatprep.subr.bf16.mxu0 %v4197_v1  ;;  %v287_v1 = vsel %vm4553_vm5, 0, %v286_v60  ;;  %v4904_v9 = vsel %vm1206_vm10, %v1225_v56, %v1226_v62  ;;  %v1080_v10 = vrot.slane %v1078_v63, 1  ;;  %338 = vst [vmem:[#allocation2 + $0x68] sm:$0x1] %v337_v7  ;;  %v495_v13 = vrot.slane %v493_v6, 7 }
  0x6b   : > { %288 = vst [vmem:[#allocation2 + $0x60] sm:$0x1] %v287_v1  ;;  %v496_v11 = vshll.u32 %v237_v50, 16  ;;  %2655 = vmatprep.mubr.bf16.mxu0 %v4904_v9  ;;  %v1076_v15 = vor.u32 %v1075_v52, %v1071_v57  ;;  %v4222_v19 = vld [vmem:[%s5641_s1 + $0x170] ss:$8 sps:$4 sm:$0xff]   ;;  %v490_v25 = vor.u32 %v488_v53, %v487_v61 }
  0x6c   : > { %v4224_v20 = vld [vmem:[%s5641_s1 + $0x174] ss:$8 sps:$4 sm:$0xff]   ;;  %v4214_v14 = vld [vmem:[%s5641_s1 + $0x3c0] ss:$8 sps:$4 sm:$0xff]   ;;  %v500_v29 = vrot.slane %v495_v13, 4 }
  0x6d   : > { %2785 = vmatpush1.bf16.msra.mxu0 %v4195_v32  ;;  %v498_v21 = vor.u32 %v496_v11, %v495_v13  ;;  %v4920_v22 = vsel %vm997_vm2, %v1076_v15, %v1080_v10  ;;  %2394 = vmatprep.subr.bf16.mxu1 %v4224_v20  ;;  %v4210_v27 = vld [vmem:[#allocation2 + $0x5c] ss:$0 sps:$4 sm:$0x11]   ;;  %v4233_v48 = vld [vmem:[%s5641_s1 + $0x184] ss:$8 sps:$4 sm:$0xff]  }
  0x6e   : > { %2270 = vmatmul.mubr.bf16.gmra.mrb[20].mxu1 %v4845_v0  ;;  %2786 = vmatprep.subr.bf16.mxu0 %v4205_v33  ;;  %v4922_v23 = vld [vmem:[#allocation2 + $0x54] sm:$0xff]   ;;  %v1229_v37 = vrot.slane %v4210_v27, 1  ;;  %v1090_v38 = vshll.u32 %v4210_v27, 16  ;;  %v4227_v57 = vld [vmem:[%s5641_s1 + $0x3e4] ss:$8 sps:$4 sm:$0xff]  }
  0x6f   : > { %2279 = vmatprep.mubr.bf16.mxu1 %v4920_v22  ;;  %v499_v28 = vsel %vm4591_vm8, %v491_v8, %v498_v21  ;;  %v1228_v30 = vrot.slane %v4922_v23, 1  ;;  %v1083_v32 = vshrl.u32 %v4922_v23, 16  ;;  %v1085_v33 = vshll.u32 %v4922_v23, 16  ;;  %v4219_v35 = vld [vmem:[%s5641_s1 + $0x3d4] ss:$8 sps:$4 sm:$0xff]   ;;  %2395 = vmatpush1.bf16.msra.mxu1 %v4222_v19 }
  0x70   : > { %2656 = vmatmul.mubr.bf16.gmra.mrb[20].mxu0 %v4920_v22  ;;  %739 = vst [vmem:[#allocation2 + $0x64] sm:$0xf] %v499_v28  ;;  %v1092_v50 = vrot.slane %v1090_v38, 1  ;;  %v4217_v53 = vld [vmem:[%s5641_s1 + $0x3d0] ss:$8 sps:$4 sm:$0xff]   ;;  %2396 = vmatprep.subr.bf16.mxu1 %v4233_v48 }
  0x71   : > { %2787 = vmatpush1.bf16.msra.mxu0 %v4203_v43  ;;  %v4231_v43 = vld [vmem:[%s5641_s1 + $0x180] ss:$8 sps:$4 sm:$0xff]   ;;  %v1087_v44 = vrot.slane %v1085_v33, 1  ;;  %v239_v61 = vld [vmem:[%s4532_s14 + $0x44] sm:$0xf] }
  0x72   : > { %2788 = vmatprep.subr.bf16.mxu0 %v4208_v49  ;;  %v736_v39 = vld [vmem:[#allocation2 + $0x60] sm:$0xf]  ;;  %v740_v47 = vld [vmem:[#allocation2 + $0x68] sm:$0x1]  ;;  %v4947_v49 = vsel %vm1206_vm10, %v1228_v30, %v1229_v37  ;;  %v289_v62 = vld [vmem:[#allocation2 + $0x6c] sm:$0x1] }
  0x73   : > { %v737_v45 = vsel %vm4604_vm9, %v490_v25, %v736_v39  ;;  %v741_v56 = vsel %vm4553_vm5, %v500_v29, %v740_v47  ;;  %2665 = vmatprep.mubr.bf16.mxu0 %v4947_v49  ;;  %v1088_v58 = vor.u32 %v1087_v44, %v1083_v32  ;;  %v238_v60 = vld [vmem:[%s4532_s14 + $0x40] sm:$0xf]  ;;  %v290_v63 = vsel %vm4553_vm5, 0, %v289_v62  ;;  %v339_v1 = vld [vmem:[#allocation2 + $0x74] sm:$0x1]  ;;  %2397 = vmatpush1.bf16.msra.mxu1 %v4231_v43 }
  0x74   : > { %738 = vst [vmem:[#allocation2 + $0x60] sm:$0xf] %v737_v45  ;;  %742 = vst [vmem:[#allocation2 + $0x68] sm:$0x1] %v741_v56  ;;  %v502_v4 = vshrl.u32 %v238_v60, 16  ;;  %v505_v6 = vshll.u32 %v238_v60, 16 }
  0x75   : > { %2789 = vmatpush1.bf16.msra.mxu0 %v4206_v12  ;;  %v510_v52 = vshrl.u32 %v239_v61, 16  ;;  %v4963_v7 = vsel %vm997_vm2, %v1088_v58, %v1092_v50  ;;  %v4225_v8 = vld [vmem:[%s5641_s1 + $0x3e0] ss:$8 sps:$4 sm:$0xff]   ;;  %291 = vst [vmem:[#allocation2 + $0x6c] sm:$0x1] %v290_v63  ;;  %v340_v10 = vsel %vm4562_vm6, 0, %v339_v1 }
  0x76   : > { %2280 = vmatmul.mubr.bf16.gmra.mrb[24].mxu1 %v4880_v42  ;;  %2790 = vmatprep.subr.bf16.mxu0 %v4216_v18  ;;  %v513_v12 = vshll.u32 %v239_v61, 16  ;;  %v4239_v13 = vld [vmem:[%s5641_s1 + $0x190] ss:$8 sps:$4 sm:$0xff]   ;;  %v4230_v11 = vld [vmem:[%s5641_s1 + $0x3f4] ss:$8 sps:$4 sm:$0xff]   ;;  %v504_v15 = vrot.slane %v502_v4, 7 }
  0x77   : > { %2289 = vmatprep.mubr.bf16.mxu1 %v4963_v7  ;;  %341 = vst [vmem:[#allocation2 + $0x74] sm:$0x1] %v340_v10  ;;  %v512_v18 = vrot.slane %v510_v52, 7  ;;  %v4241_v19 = vld [vmem:[%s5641_s1 + $0x194] ss:$8 sps:$4 sm:$0xff]  }
  0x78   : > { %2666 = vmatmul.mubr.bf16.gmra.mrb[24].mxu0 %v4963_v7  ;;  %v240_v20 = vld [vmem:[%s4532_s14 + $0x48] sm:$0xf]  ;;  %v241_v21 = vld [vmem:[%s4532_s14 + $0x4c] sm:$0xf]  ;;  %v508_v25 = vrot.slane %v504_v15, 4  ;;  %2398 = vmatprep.subr.bf16.mxu1 %v4241_v19  ;;  %v507_v33 = vor.u32 %v505_v6, %v504_v15 }
  0x79   : > { %2791 = vmatpush1.bf16.msra.mxu0 %v4214_v14  ;;  %v292_v14 = vld [vmem:[#allocation2 + $0x78] sm:$0x1]  ;;  %v515_v27 = vor.u32 %v513_v12, %v512_v18  ;;  %v517_v28 = vrot.slane %v512_v18, 4  ;;  %v342_v29 = vld [vmem:[#allocation2 + $0x80] sm:$0x1]  ;;  %2399 = vmatpush1.bf16.msra.mxu1 %v4239_v13  ;;  %v519_v38 = vshrl.u32 %v240_v20, 16 }
  0x7a   : > { %2792 = vmatprep.subr.bf16.mxu0 %v4219_v35  ;;  %v4228_v32 = vld [vmem:[%s5641_s1 + $0x3f0] ss:$8 sps:$4 sm:$0xff]   ;;  %v293_v35 = vsel %vm4553_vm5, 0, %v292_v14  ;;  %v343_v37 = vsel %vm4562_vm6, 0, %v342_v29  ;;  %v4236_v43 = vld [vmem:[%s5641_s1 + $0x404] ss:$8 sps:$4 sm:$0xff]  }
  0x7b   : > { %v4984_v30 = vld [vmem:[#allocation2 + $0x60] sm:$0xff]   ;;  %v4221_v39 = vld [vmem:[#allocation2 + $0x68] ss:$0 sps:$4 sm:$0x11]   ;;  %v516_v44 = vsel %vm4591_vm8, %v508_v25, %v515_v27  ;;  %294 = vst [vmem:[#allocation2 + $0x78] sm:$0x1] %v293_v35 }
  0x7c   : > { %344 = vst [vmem:[#allocation2 + $0x80] sm:$0x1] %v343_v37  ;;  %v522_v45 = vshll.u32 %v240_v20, 16  ;;  %v1231_v47 = vrot.slane %v4984_v30, 1  ;;  %v1095_v48 = vshrl.u32 %v4984_v30, 16  ;;  %v1097_v50 = vshll.u32 %v4984_v30, 16 }
  0x7d   : > { %2793 = vmatpush1.bf16.msra.mxu0 %v4217_v53  ;;  %746 = vst [vmem:[#allocation2 + $0x70] sm:$0xf] %v516_v44  ;;  %v521_v53 = vrot.slane %v519_v38, 7  ;;  %v4244_v56 = vld [vmem:[%s5641_s1 + $0x1a0] ss:$8 sps:$4 sm:$0xff]   ;;  %v1102_v58 = vshll.u32 %v4221_v39, 16 }
  0x7e   : > { %2290 = vmatmul.mubr.bf16.gmra.mrb[28].mxu1 %v4922_v23  ;;  %2794 = vmatprep.subr.bf16.mxu0 %v4227_v57  ;;  %v1232_v57 = vrot.slane %v4221_v39, 1  ;;  %v743_v60 = vld [vmem:[#allocation2 + $0x6c] sm:$0xf]  ;;  %v527_v61 = vshrl.u32 %v241_v21, 16  ;;  %v530_v62 = vshll.u32 %v241_v21, 16  ;;  %v1099_v63 = vrot.slane %v1097_v50, 1 }
  0x7f   : > { %v744_v1 = vsel %vm4604_vm9, %v507_v33, %v743_v60  ;;  %v747_v4 = vld [vmem:[#allocation2 + $0x74] sm:$0x1]  ;;  %v524_v6 = vor.u32 %v522_v45, %v521_v53  ;;  %v525_v52 = vrot.slane %v521_v53, 4  ;;  %v1104_v12 = vrot.slane %v1102_v58, 1  ;;  %v242_v18 = vld [vmem:[%s4532_s14 + $0x50] sm:$0xf] }
  0x80   : > { %v5010_v10 = vsel %vm1206_vm10, %v1231_v47, %v1232_v57  ;;  %745 = vst [vmem:[#allocation2 + $0x6c] sm:$0xf] %v744_v1  ;;  %v748_v13 = vsel %vm4553_vm5, %v517_v28, %v747_v4  ;;  %v1100_v15 = vor.u32 %v1099_v63, %v1095_v48  ;;  %v243_v19 = vld [vmem:[%s4532_s14 + $0x54] sm:$0xf]  ;;  %v295_v14 = vld [vmem:[#allocation2 + $0x84] sm:$0x1] }
  0x81   : > { %2795 = vmatpush1.bf16.msra.mxu0 %v4225_v8  ;;  %v4246_v8 = vld [vmem:[%s5641_s1 + $0x1a4] ss:$8 sps:$4 sm:$0xff]   ;;  %2675 = vmatprep.mubr.bf16.mxu0 %v5010_v10  ;;  %749 = vst [vmem:[#allocation2 + $0x74] sm:$0x1] %v748_v13  ;;  %v536_v27 = vshrl.u32 %v242_v18, 16  ;;  %v296_v35 = vsel %vm4553_vm5, 0, %v295_v14 }
  0x82   : > { %2796 = vmatprep.subr.bf16.mxu0 %v4230_v11  ;;  %v529_v11 = vrot.slane %v527_v61, 7  ;;  %2400 = vmatprep.subr.bf16.mxu1 %v4246_v8  ;;  %v345_v25 = vld [vmem:[#allocation2 + $0x8c] sm:$0x1]  ;;  %v5018_v29 = vsel %vm997_vm2, %v1100_v15, %v1104_v12  ;;  %v750_v33 = vld [vmem:[#allocation2 + $0x78] sm:$0xf]  ;;  %v539_v44 = vshll.u32 %v242_v18, 16 }
  0x83   : > { %v754_v28 = vld [vmem:[#allocation2 + $0x80] sm:$0x1]  ;;  %2401 = vmatpush1.bf16.msra.mxu1 %v4244_v56  ;;  %2676 = vmatmul.mubr.bf16.gmra.mrb[28].mxu0 %v5018_v29  ;;  %v751_v38 = vsel %vm4604_vm9, %v524_v6, %v750_v33  ;;  %297 = vst [vmem:[#allocation2 + $0x84] sm:$0x1] %v296_v35  ;;  %v544_v45 = vshrl.u32 %v243_v19, 16  ;;  %v547_v47 = vshll.u32 %v243_v19, 16 }
  0x84   : > { %v532_v20 = vor.u32 %v530_v62, %v529_v11  ;;  %v534_v21 = vrot.slane %v529_v11, 4  ;;  %2299 = vmatprep.mubr.bf16.mxu1 %v5018_v29  ;;  %2798 = vmatprep.mubr.bf16.mxu0 %v4733_v17  ;;  %752 = vst [vmem:[#allocation2 + $0x78] sm:$0xf] %v751_v38  ;;  %v4252_v48 = vld [vmem:[%s5641_s1 + $0x1b0] ss:$8 sps:$4 sm:$0xff]  }
  0x85   : > { %2797 = vmatpush1.bf16.msra.mxu0 %v4228_v32  ;;  %v346_v32 = vsel %vm4562_vm6, 0, %v345_v25  ;;  %v4254_v50 = vld [vmem:[%s5641_s1 + $0x1b4] ss:$8 sps:$4 sm:$0xff]   ;;  %v244_v53 = vld [vmem:[%s4532_s14 + $0x58] sm:$0xf]  ;;  %v546_v58 = vrot.slane %v544_v45, 7 }
  0x86   : > { %2959 = vmatprep.subr.bf16.mxu0 %v4236_v43  ;;  %v533_v37 = vsel %vm4591_vm8, %v525_v52, %v532_v20  ;;  %v755_v39 = vsel %vm4553_vm5, %v534_v21, %v754_v28  ;;  %347 = vst [vmem:[#allocation2 + $0x8c] sm:$0x1] %v346_v32  ;;  %v538_v43 = vrot.slane %v536_v27, 7  ;;  %2300 = vmatmul.mubr.bf16.gmra.mrb[32].mxu1 %v4984_v30  ;;  %v4234_v17 = vld [vmem:[%s5641_s1 + $0x400] ss:$8 sps:$4 sm:$0xff]   ;;  %v553_v63 = vshrl.u32 %v244_v53, 16 }
  0x87   : > { %753 = vst [vmem:[#allocation2 + $0x7c] sm:$0xf] %v533_v37  ;;  %756 = vst [vmem:[#allocation2 + $0x80] sm:$0x1] %v755_v39  ;;  %v5044_v56 = vld [vmem:[#allocation2 + $0x6c] sm:$0xff]   ;;  %2402 = vmatprep.subr.bf16.mxu1 %v4254_v50  ;;  %v549_v6 = vor.u32 %v547_v47, %v546_v58  ;;  %v551_v52 = vrot.slane %v546_v58, 4 }
  0x88   : > { %v542_v57 = vrot.slane %v538_v43, 4  ;;  %v5046_v60 = vld [vmem:[#allocation2 + $0x74] ss:$0 sps:$4 sm:$0x11]   ;;  %v541_v62 = vor.u32 %v539_v44, %v538_v43  ;;  %v1107_v1 = vshrl.u32 %v5044_v56, 16  ;;  %v1109_v4 = vshll.u32 %v5044_v56, 16  ;;  %2403 = vmatpush1.bf16.msra.mxu1 %v4252_v48 }
  0x89   : > { %v4249_v61 = vld [vmem:[%s5641_s1 + $0x414] ss:$8 sps:$4 sm:$0xff]   ;;  %v298_v12 = vld [vmem:[#allocation2 + $0x90] sm:$0x1]  ;;  %v1114_v13 = vshll.u32 %v5046_v60, 16  ;;  %v5057_v18 = vrot.slane %v553_v63, 7 }
  0x8a   : > { %v245_v8 = vld [vmem:[%s4532_s14 + $0x5c] sm:$0xf]  ;;  %v299_v11 = vsel %vm4553_vm5, 0, %v298_v12  ;;  %v348_v15 = vld [vmem:[#allocation2 + $0x98] sm:$0x1]  ;;  %v556_v19 = vshll.u32 %v244_v53, 16  ;;  %v550_v14 = vsel %vm4591_vm8, %v542_v57, %v549_v6 }
  0x8b   : > { %v1111_v20 = vrot.slane %v1109_v4, 1  ;;  %v4247_v21 = vld [vmem:[%s5641_s1 + $0x410] ss:$8 sps:$4 sm:$0xff]   ;;  %v757_v25 = vld [vmem:[#allocation2 + $0x84] sm:$0xf]  ;;  %v349_v33 = vsel %vm4562_vm6, 0, %v348_v15  ;;  %2799 = vmatmul.mubr.bf16.vlgmr.msra.gmra.mrb[0].mxu0 %v4690_v41 }
  0x8c   : > { %300 = vst [vmem:[#allocation2 + $0x90] sm:$0x1] %v299_v11  ;;  %v1116_v28 = vrot.slane %v1114_v13, 1  ;;  %v758_v32 = vsel %vm4604_vm9, %v541_v62, %v757_v25  ;;  %760 = vst [vmem:[#allocation2 + $0x88] sm:$0xf] %v550_v14  ;;  %2960 = vmatpush1.bf16.msra.mxu0 %v4234_v17  ;;  %2808 = vmatprep.mubr.bf16.mxu0 %v4770_v55  ;;  %v559_v41 = vrot.slane %v5057_v18, 4 }
  0x8d   : > { %v761_v27 = vld [vmem:[#allocation2 + $0x8c] sm:$0x1]  ;;  %350 = vst [vmem:[#allocation2 + $0x98] sm:$0x1] %v349_v33  ;;  %v1112_v38 = vor.u32 %v1111_v20, %v1107_v1  ;;  %759 = vst [vmem:[#allocation2 + $0x84] sm:$0xf] %v758_v32  ;;  %2961 = vmatprep.subr.bf16.mxu0 %v4249_v61  ;;  %v558_v50 = vor.u32 %v556_v19, %v5057_v18 }
  0x8e   : > { %v5067_v35 = vld [vmem:[#allocation2 + $0x78] sm:$0xff]   ;;  %v762_v37 = vsel %vm4553_vm5, %v551_v52, %v761_v27  ;;  %v5074_v39 = vld [vmem:[#allocation2 + $0x80] ss:$0 sps:$4 sm:$0x11]   ;;  %v561_v45 = vshrl.u32 %v245_v8, 16  ;;  %v564_v47 = vshll.u32 %v245_v8, 16 }
  0x8f   : > { %763 = vst [vmem:[#allocation2 + $0x8c] sm:$0x1] %v762_v37  ;;  %v1119_v43 = vshrl.u32 %v5067_v35, 16  ;;  %v1121_v44 = vshll.u32 %v5067_v35, 16  ;;  %v5080_v48 = vsel %vm997_vm2, %v1112_v38, %v1116_v28  ;;  %v1126_v55 = vshll.u32 %v5074_v39, 16  ;;  %v5106_v25 = vld [vmem:[#allocation2 + $0x24] sm:$0xff]  }
  0x90   : > { %v4257_v53 = vld [vmem:[%s5641_s1 + $0x1c0] ss:$8 sps:$4 sm:$0xff]   ;;  %v4259_v17 = vld [vmem:[%s5641_s1 + $0x1c4] ss:$8 sps:$4 sm:$0xff]   ;;  %2309 = vmatprep.mubr.bf16.mxu1 %v5080_v48  ;;  %v563_v58 = vrot.slane %v561_v45, 7  ;;  %2962 = vmatpush1.bf16.msra.mxu0 %v4247_v21 }
  0x91   : > { %v1123_v57 = vrot.slane %v1121_v44, 1  ;;  %v4260_v61 = vld [vmem:[%s5641_s1 + $0x420] ss:$8 sps:$4 sm:$0xff]   ;;  %v4262_v62 = vld [vmem:[%s5641_s1 + $0x424] ss:$8 sps:$4 sm:$0xff]   ;;  %2310 = vmatmul.mubr.bf16.gmra.mrb[36].mxu1 %v5044_v56  ;;  %v1128_v1 = vrot.slane %v1126_v55, 1  ;;  %2404 = vmatprep.subr.bf16.mxu1 %v4259_v17 }
  0x92   : > { %v246_v63 = vld [vmem:[%s4532_s14 + $0x60] sm:$0xf]  ;;  %v247_v4 = vld [vmem:[%s4532_s14 + $0x64] sm:$0xf]  ;;  %v301_v6 = vld [vmem:[#allocation2 + $0x9c] sm:$0x1]  ;;  %v566_v12 = vor.u32 %v564_v47, %v563_v58  ;;  %2963 = vmatprep.subr.bf16.mxu0 %v4262_v62  ;;  %2405 = vmatpush1.bf16.msra.mxu1 %v4257_v53 }
  0x93   : > { %v570_v52 = vshrl.u32 %v246_v63, 16  ;;  %v1124_v8 = vor.u32 %v1123_v57, %v1119_v43  ;;  %v568_v13 = vrot.slane %v563_v58, 4  ;;  %v764_v11 = vld [vmem:[#allocation2 + $0x90] sm:$0xf]  ;;  %v302_v15 = vsel %vm4553_vm5, 0, %v301_v6  ;;  %2809 = vmatmul.mubr.bf16.gmra.mrb[4].mxu0 %v5106_v25 }
  0x94   : > { %v351_v18 = vld [vmem:[#allocation2 + $0xa4] sm:$0x1]  ;;  %v765_v19 = vsel %vm4604_vm9, %v558_v50, %v764_v11  ;;  %v768_v20 = vld [vmem:[#allocation2 + $0x98] sm:$0x1]  ;;  %303 = vst [vmem:[#allocation2 + $0x9c] sm:$0x1] %v302_v15  ;;  %v567_v28 = vsel %vm4591_vm8, %v559_v41, %v566_v12  ;;  %2818 = vmatprep.mubr.bf16.mxu0 %v4830_v46  ;;  %2964 = vmatpush1.bf16.msra.mxu0 %v4260_v61 }
  0x95   : > { %v352_v21 = vsel %vm4562_vm6, 0, %v351_v18  ;;  %v572_v14 = vrot.slane %v570_v52, 7  ;;  %v5110_v27 = vsel %vm997_vm2, %v1124_v8, %v1128_v1  ;;  %v5112_v33 = vld [vmem:[#allocation2 + $0x84] sm:$0xff]   ;;  %766 = vst [vmem:[#allocation2 + $0x90] sm:$0xf] %v765_v19  ;;  %v769_v32 = vsel %vm4553_vm5, %v568_v13, %v768_v20 }
  0x96   : > { %353 = vst [vmem:[#allocation2 + $0xa4] sm:$0x1] %v352_v21  ;;  %v573_v37 = vshll.u32 %v246_v63, 16  ;;  %2319 = vmatprep.mubr.bf16.mxu1 %v5110_v27  ;;  %v5120_v38 = vld [vmem:[#allocation2 + $0x8c] ss:$0 sps:$4 sm:$0x11]  }
  0x97   : > { %767 = vst [vmem:[#allocation2 + $0x94] sm:$0xf] %v567_v28  ;;  %770 = vst [vmem:[#allocation2 + $0x98] sm:$0x1] %v769_v32  ;;  %v576_v43 = vrot.slane %v572_v14, 4  ;;  %v578_v44 = vshrl.u32 %v247_v4, 16 }
  0x98   : > { %v581_v45 = vshll.u32 %v247_v4, 16  ;;  %v1131_v41 = vshrl.u32 %v5112_v33, 16  ;;  %v1133_v47 = vshll.u32 %v5112_v33, 16  ;;  %v4265_v55 = vld [vmem:[%s5641_s1 + $0x1d0] ss:$8 sps:$4 sm:$0xff]   ;;  %v1138_v50 = vshll.u32 %v5120_v38, 16 }
  0x99   : > { %v575_v46 = vor.u32 %v573_v37, %v572_v14  ;;  %v580_v53 = vrot.slane %v578_v44, 7  ;;  %v4267_v17 = vld [vmem:[%s5641_s1 + $0x1d4] ss:$8 sps:$4 sm:$0xff]   ;;  %v248_v57 = vld [vmem:[%s4532_s14 + $0x68] sm:$0xf]  ;;  %2320 = vmatmul.mubr.bf16.gmra.mrb[40].mxu1 %v5067_v35 }
  0x9a   : > { %v1135_v58 = vrot.slane %v1133_v47, 1  ;;  %v249_v62 = vld [vmem:[%s4532_s14 + $0x6c] sm:$0xf]  ;;  %v304_v63 = vld [vmem:[#allocation2 + $0xa8] sm:$0x1]  ;;  %v587_v1 = vshrl.u32 %v248_v57, 16  ;;  %2406 = vmatprep.subr.bf16.mxu1 %v4267_v17 }
  0x9b   : > { %v1140_v61 = vrot.slane %v1138_v50, 1  ;;  %v583_v4 = vor.u32 %v581_v45, %v580_v53  ;;  %v585_v6 = vrot.slane %v580_v53, 4  ;;  %v305_v52 = vsel %vm4553_vm5, 0, %v304_v63  ;;  %v354_v8 = vld [vmem:[#allocation2 + $0xb0] sm:$0x1]  ;;  %2407 = vmatpush1.bf16.msra.mxu1 %v4265_v55  ;;  %2819 = vmatmul.mubr.bf16.gmra.mrb[8].mxu0 %v4787_v3 }
  0x9c   : > { %v1136_v12 = vor.u32 %v1135_v58, %v1131_v41  ;;  %v771_v13 = vld [vmem:[#allocation2 + $0x9c] sm:$0xf]  ;;  %306 = vst [vmem:[#allocation2 + $0xa8] sm:$0x1] %v305_v52  ;;  %v355_v11 = vsel %vm4562_vm6, 0, %v354_v8  ;;  %v589_v15 = vrot.slane %v587_v1, 7  ;;  %2828 = vmatprep.mubr.bf16.mxu0 %v4878_v40 }
  0x9d   : > { %v590_v18 = vshll.u32 %v248_v57, 16  ;;  %v584_v19 = vsel %vm4591_vm8, %v576_v43, %v583_v4  ;;  %v772_v20 = vsel %vm4604_vm9, %v575_v46, %v771_v13  ;;  %v775_v21 = vld [vmem:[#allocation2 + $0xa4] sm:$0x1]  ;;  %356 = vst [vmem:[#allocation2 + $0xb0] sm:$0x1] %v355_v11  ;;  %v595_v14 = vshrl.u32 %v249_v62, 16 }
  0x9e   : > { %v598_v28 = vshll.u32 %v249_v62, 16  ;;  %v5144_v32 = vsel %vm997_vm2, %v1136_v12, %v1140_v61  ;;  %v5146_v37 = vld [vmem:[#allocation2 + $0x90] sm:$0xff]   ;;  %773 = vst [vmem:[#allocation2 + $0x9c] sm:$0xf] %v772_v20  ;;  %774 = vst [vmem:[#allocation2 + $0xa0] sm:$0xf] %v584_v19  ;;  %v776_v44 = vsel %vm4553_vm5, %v585_v6, %v775_v21 }
  0x9f   : > { %v593_v43 = vrot.slane %v589_v15, 4  ;;  %2329 = vmatprep.mubr.bf16.mxu1 %v5144_v32  ;;  %v5152_v45 = vld [vmem:[#allocation2 + $0x98] ss:$0 sps:$4 sm:$0x11]   ;;  %777 = vst [vmem:[#allocation2 + $0xa4] sm:$0x1] %v776_v44  ;;  %v592_v50 = vor.u32 %v590_v18, %v589_v15 }
  0xa0   : > { %v597_v3 = vrot.slane %v595_v14, 7  ;;  %v4270_v41 = vld [vmem:[%s5641_s1 + $0x1e0] ss:$8 sps:$4 sm:$0xff]   ;;  %v1143_v47 = vshrl.u32 %v5146_v37, 16  ;;  %v1145_v55 = vshll.u32 %v5146_v37, 16  ;;  %v1150_v40 = vshll.u32 %v5152_v45, 16 }
  0xa1   : > { %v4272_v46 = vld [vmem:[%s5641_s1 + $0x1e4] ss:$8 sps:$4 sm:$0xff]   ;;  %v4273_v57 = vld [vmem:[%s5641_s1 + $0x430] ss:$8 sps:$4 sm:$0xff]   ;;  %v4275_v58 = vld [vmem:[%s5641_s1 + $0x434] ss:$8 sps:$4 sm:$0xff]   ;;  %2330 = vmatmul.mubr.bf16.gmra.mrb[44].mxu1 %v5112_v33 }
  0xa2   : > { %v600_v53 = vor.u32 %v598_v28, %v597_v3  ;;  %v602_v17 = vrot.slane %v597_v3, 4  ;;  %v1147_v62 = vrot.slane %v1145_v55, 1  ;;  %2408 = vmatprep.subr.bf16.mxu1 %v4272_v46  ;;  %v250_v63 = vld [vmem:[%s4532_s14 + $0x70] sm:$0xf]  ;;  %v251_v1 = vld [vmem:[%s4532_s14 + $0x74] sm:$0xf]  ;;  %2965 = vmatprep.subr.bf16.mxu0 %v4275_v58 }
  0xa3   : > { %v1152_v61 = vrot.slane %v1150_v40, 1  ;;  %v778_v6 = vld [vmem:[#allocation2 + $0xa8] sm:$0xf]  ;;  %v307_v52 = vld [vmem:[#allocation2 + $0xb4] sm:$0x1]  ;;  %v604_v8 = vshrl.u32 %v250_v63, 16  ;;  %2409 = vmatpush1.bf16.msra.mxu1 %v4270_v41  ;;  %2966 = vmatpush1.bf16.msra.mxu0 %v4273_v57 }
  0xa4   : > { %v601_v4 = vsel %vm4591_vm8, %v593_v43, %v600_v53  ;;  %v1148_v12 = vor.u32 %v1147_v62, %v1143_v47  ;;  %v779_v13 = vsel %vm4604_vm9, %v592_v50, %v778_v6  ;;  %v782_v11 = vld [vmem:[#allocation2 + $0xb0] sm:$0x1]  ;;  %v308_v15 = vsel %vm4553_vm5, 0, %v307_v52  ;;  %v357_v18 = vld [vmem:[#allocation2 + $0xbc] sm:$0x1]  ;;  %2829 = vmatmul.mubr.bf16.gmra.mrb[12].mxu0 %v4845_v0 }
  0xa5   : > { %781 = vst [vmem:[#allocation2 + $0xac] sm:$0xf] %v601_v4  ;;  %v607_v19 = vshll.u32 %v250_v63, 16  ;;  %v5178_v20 = vld [vmem:[#allocation2 + $0x9c] sm:$0xff]   ;;  %780 = vst [vmem:[#allocation2 + $0xa8] sm:$0xf] %v779_v13  ;;  %v783_v21 = vsel %vm4553_vm5, %v602_v17, %v782_v11  ;;  %2838 = vmatprep.mubr.bf16.mxu0 %v4920_v22 }
  0xa6   : > { %309 = vst [vmem:[#allocation2 + $0xb4] sm:$0x1] %v308_v15  ;;  %v358_v14 = vsel %vm4562_vm6, 0, %v357_v18  ;;  %v5186_v28 = vsel %vm997_vm2, %v1148_v12, %v1152_v61  ;;  %v5188_v44 = vld [vmem:[#allocation2 + $0xa4] ss:$0 sps:$4 sm:$0x11]  }
  0xa7   : > { %784 = vst [vmem:[#allocation2 + $0xb0] sm:$0x1] %v783_v21  ;;  %359 = vst [vmem:[#allocation2 + $0xbc] sm:$0x1] %v358_v14  ;;  %v606_v43 = vrot.slane %v604_v8, 7  ;;  %2339 = vmatprep.mubr.bf16.mxu1 %v5186_v28  ;;  %v1155_v3 = vshrl.u32 %v5178_v20, 16 }
  0xa8   : > { %v1157_v41 = vshll.u32 %v5178_v20, 16  ;;  %v612_v47 = vshrl.u32 %v251_v1, 16  ;;  %v615_v55 = vshll.u32 %v251_v1, 16  ;;  %v1162_v0 = vshll.u32 %v5188_v44, 16  ;;  %v4278_v46 = vld [vmem:[%s5641_s1 + $0x1f0] ss:$8 sps:$4 sm:$0xff]  }
  0xa9   : > { %v610_v50 = vrot.slane %v606_v43, 4  ;;  %v4280_v40 = vld [vmem:[%s5641_s1 + $0x1f4] ss:$8 sps:$4 sm:$0xff]   ;;  %v609_v17 = vor.u32 %v607_v19, %v606_v43  ;;  %v4281_v57 = vld [vmem:[%s5641_s1 + $0x440] ss:$8 sps:$4 sm:$0xff]   ;;  %2340 = vmatmul.mubr.bf16.gmra.mrb[48].mxu1 %v5146_v37 }
  0xaa   : > { %v1159_v53 = vrot.slane %v1157_v41, 1  ;;  %v614_v22 = vrot.slane %v612_v47, 7  ;;  %v1164_v58 = vrot.slane %v1162_v0, 1  ;;  %2410 = vmatprep.subr.bf16.mxu1 %v4280_v40  ;;  %v4283_v62 = vld [vmem:[%s5641_s1 + $0x444] ss:$8 sps:$4 sm:$0xff]  }
  0xab   : > { %v4284_v4 = vld [vmem:[%s5641_s1 + $0x450] ss:$8 sps:$4 sm:$0xff]   ;;  %v4286_v6 = vld [vmem:[%s5641_s1 + $0x454] ss:$8 sps:$4 sm:$0xff]   ;;  %2411 = vmatpush1.bf16.msra.mxu1 %v4278_v46  ;;  %2967 = vmatprep.subr.bf16.mxu0 %v4283_v62  ;;  %v4298_v18 = vld [vmem:[%s5641_s1 + $0x204] ss:$8 sps:$4 sm:$0xff]  }
  0xac   : > { %v1160_v63 = vor.u32 %v1159_v53, %v1155_v3  ;;  %v617_v1 = vor.u32 %v615_v55, %v614_v22  ;;  %v619_v61 = vrot.slane %v614_v22, 4  ;;  %v5214_v52 = vld [vmem:[#allocation2 + $0xa8] sm:$0xff]   ;;  %3748 = vmatprep.subr.bf16.mxu1 %v4298_v18  ;;  %2968 = vmatpush1.bf16.msra.mxu0 %v4281_v57  ;;  %v252_v47 = vld [vmem:[%s4532_s14 + $0x78] sm:$0xf]  ;;  %v253_v0 = vld [vmem:[%s4532_s14 + $0x7c] sm:$0xf]  ;;  %s5543_s14 = scalar_lea.vmem %s5643_s3, %s3746_s21 }
  0xad   : > { %v785_v8 = vld [vmem:[#allocation2 + $0xb4] sm:$0xf]  ;;  %2839 = vmatmul.mubr.bf16.gmra.mrb[16].mxu0 %v4880_v42  ;;  %v1167_v19 = vshrl.u32 %v5214_v52, 16  ;;  %v1169_v21 = vshll.u32 %v5214_v52, 16  ;;  %2969 = vmatprep.subr.bf16.mxu0 %v4286_v6  ;;  %v4287_v42 = vld [vmem:[%s5641_s1 + $0x460] ss:$8 sps:$4 sm:$0xff]  }
  0xae   : > { %v5217_v12 = vsel %vm997_vm2, %v1160_v63, %v1164_v58  ;;  %v5219_v13 = vld [vmem:[#allocation2 + $0xb0] ss:$0 sps:$4 sm:$0x11]   ;;  %v618_v11 = vsel %vm4591_vm8, %v610_v50, %v617_v1  ;;  %v786_v15 = vsel %vm4604_vm9, %v609_v17, %v785_v8  ;;  %v789_v14 = vld [vmem:[#allocation2 + $0xbc] sm:$0x1]  ;;  %2848 = vmatprep.mubr.bf16.mxu0 %v4963_v7  ;;  %v621_v7 = vshrl.u32 %v252_v47, 16 }
  0xaf   : > { %2349 = vmatprep.mubr.bf16.mxu1 %v5217_v12  ;;  %787 = vst [vmem:[#allocation2 + $0xb4] sm:$0xf] %v786_v15  ;;  %788 = vst [vmem:[#allocation2 + $0xb8] sm:$0xf] %v618_v11  ;;  %v1174_v43 = vshll.u32 %v5219_v13, 16  ;;  %v790_v3 = vsel %vm4553_vm5, %v619_v61, %v789_v14  ;;  %v1171_v55 = vrot.slane %v1169_v21, 1 }
  0xb0   : > { %v4289_v41 = vld [vmem:[%s5641_s1 + $0x464] ss:$8 sps:$4 sm:$0xff]   ;;  %791 = vst [vmem:[#allocation2 + $0xbc] sm:$0x1] %v790_v3  ;;  %v310_v50 = vld [vmem:[#allocation2 + $0xc0] sm:$0x1]  ;;  %2970 = vmatpush1.bf16.msra.mxu0 %v4284_v4 }
  0xb1   : > { %v1176_v46 = vrot.slane %v1174_v43, 1  ;;  %v311_v40 = vsel %vm4553_vm5, 0, %v310_v50  ;;  %v360_v53 = vld [vmem:[#allocation2 + $0xc8] sm:$0x1]  ;;  %v624_v17 = vshll.u32 %v252_v47, 16  ;;  %v629_v22 = vshrl.u32 %v253_v0, 16  ;;  %2971 = vmatprep.subr.bf16.mxu0 %v4289_v41  ;;  %2350 = vmatmul.mubr.bf16.gmra.mrb[52].mxu1 %v5178_v20 }
  0xb2   : > { %v1172_v57 = vor.u32 %v1171_v55, %v1167_v19  ;;  %312 = vst [vmem:[#allocation2 + $0xc0] sm:$0x1] %v311_v40  ;;  %v361_v58 = vsel %vm4562_vm6, 0, %v360_v53  ;;  %v623_v62 = vrot.slane %v621_v7, 7  ;;  %v632_v63 = vshll.u32 %v253_v0, 16  ;;  %v4301_v50 = vld [vmem:[#allocation2 + $0x18] sm:$0xff]  }
  0xb3   : > { %362 = vst [vmem:[#allocation2 + $0xc8] sm:$0x1] %v361_v58  ;;  %v631_v1 = vrot.slane %v629_v22, 7  ;;  %v4292_v61 = vld [vmem:[%s5641_s1 + $0x470] ss:$8 sps:$4 sm:$0xff]  }
  0xb4   : > { %v4294_v4 = vld [vmem:[%s5641_s1 + $0x474] ss:$8 sps:$4 sm:$0xff]   ;;  %v5256_v6 = vsel %vm997_vm2, %v1172_v57, %v1176_v46  ;;  %v627_v8 = vrot.slane %v623_v62, 4  ;;  %2972 = vmatpush1.bf16.msra.mxu0 %v4287_v42  ;;  %v626_v15 = vor.u32 %v624_v17, %v623_v62  ;;  %v4304_v46 = vld [vmem:[%s5641_s1 + $0x224] ss:$8 sps:$4 sm:$0xff]  }
  0xb5   : > { %2359 = vmatprep.mubr.bf16.mxu1 %v5256_v6  ;;  %v634_v11 = vor.u32 %v632_v63, %v631_v1  ;;  %2849 = vmatmul.mubr.bf16.gmra.mrb[20].mxu0 %v4922_v23  ;;  %v636_v21 = vrot.slane %v631_v1, 4  ;;  %v4302_v7 = vld [vmem:[%s5641_s1 + $0x214] ss:$8 sps:$4 sm:$0xff]   ;;  %v4305_v40 = vld [vmem:[%s5641_s1 + $0x220] ss:$8 sps:$4 sm:$0xff]  }
  0xb6   : > { %v5259_v59 = vld [vmem:[#allocation2 + $0xb4] sm:$0xff]   ;;  %2973 = vmatprep.subr.bf16.mxu0 %v4294_v4  ;;  %2858 = vmatprep.mubr.bf16.mxu0 %v5018_v29  ;;  %v4310_v22 = vld [vmem:[%s5641_s1 + $0x240] ss:$8 sps:$4 sm:$0xff]   ;;  %v4313_v62 = vld [vmem:[%s5641_s1 + $0x264] ss:$8 sps:$4 sm:$0xff]  }
  0xb7   : > { %v5263_v18 = vld [vmem:[#allocation2 + $0xbc] ss:$0 sps:$4 sm:$0x11]   ;;  %v635_v19 = vsel %vm4591_vm8, %v627_v8, %v634_v11  ;;  %v1179_v14 = vshrl.u32 %v5259_v59, 16  ;;  %v1181_v43 = vshll.u32 %v5259_v59, 16  ;;  %v4309_v17 = vld [vmem:[#allocation2 + $0x30] sm:$0xff]  }
  0xb8   : > { %795 = vst [vmem:[#allocation2 + $0xc4] sm:$0xf] %v635_v19  ;;  %v1186_v3 = vshll.u32 %v5263_v18, 16  ;;  %2974 = vmatpush1.bf16.msra.mxu0 %v4292_v61  ;;  %v4306_v53 = vld [vmem:[%s5641_s1 + $0x234] ss:$8 sps:$4 sm:$0xff]  }
  0xb9   : > { %v792_v42 = vld [vmem:[#allocation2 + $0xc0] sm:$0xf]  ;;  %v1183_v23 = vrot.slane %v1181_v43, 1  ;;  %2360 = vmatmul.mubr.bf16.gmra.mrb[56].mxu1 %v5214_v52  ;;  %v4311_v57 = vld [vmem:[%s5641_s1 + $0x254] ss:$8 sps:$4 sm:$0xff]  }
  0xba   : > { %v793_v41 = vsel %vm4604_vm9, %v626_v15, %v792_v42  ;;  %v796_v29 = vld [vmem:[#allocation2 + $0xc8] sm:$0x1]  ;;  %v1188_v47 = vrot.slane %v1186_v3, 1  ;;  %v4312_v58 = vld [vmem:[%s5641_s1 + $0x250] ss:$8 sps:$4 sm:$0xff]   ;;  %v4314_v63 = vld [vmem:[#allocation2 + $0x3c] sm:$0xff]  }
  0xbb   : > { %794 = vst [vmem:[#allocation2 + $0xc0] sm:$0xf] %v793_v41  ;;  %v797_v16 = vsel %vm4553_vm5, %v636_v21, %v796_v29  ;;  %v1184_v55 = vor.u32 %v1183_v23, %v1179_v14  ;;  %v4315_v61 = vld [vmem:[%s5641_s1 + $0x260] ss:$8 sps:$4 sm:$0xff]   ;;  %v4316_v4 = vld [vmem:[%s5641_s1 + $0x274] ss:$8 sps:$4 sm:$0xff]  }
  0xbc   : > { %798 = vst [vmem:[#allocation2 + $0xc8] sm:$0x1] %v797_v16  ;;  %v4317_v15 = vld [vmem:[%s5641_s1 + $0x270] ss:$8 sps:$4 sm:$0xff]   ;;  %v4318_v19 = vld [vmem:[%s5641_s1 + $0x284] ss:$8 sps:$4 sm:$0xff]  }
  0xbd   : > { %2859 = vmatmul.mubr.bf16.gmra.mrb[24].mxu0 %v4984_v30  ;;  %v5277_v0 = vsel %vm997_vm2, %v1184_v55, %v1188_v47  ;;  %v4319_v21 = vld [vmem:[#allocation2 + $0x48] sm:$0xff]   ;;  %v4321_v41 = vld [vmem:[%s5641_s1 + $0x294] ss:$8 sps:$4 sm:$0xff]  }
  0xbe   : > { %2369 = vmatprep.mubr.bf16.mxu1 %v5277_v0  ;;  %2868 = vmatprep.mubr.bf16.mxu0 %v5080_v48  ;;  %v5353_v42 = vld [vmem:[#allocation2 + $0xcc] sm:$0xff]   ;;  %v4320_v23 = vld [vmem:[%s5641_s1 + $0x280] ss:$8 sps:$4 sm:$0xff]   ;;  %v5363_v16 = vld [vmem:[#allocation2 + $0xd4] ss:$0 sps:$4 sm:$0x11]  }
  0xbf   : > { %v1309_v55 = vshll.u32 %v5353_v42, 16 }
  0xc1   : > { %2370 = vmatmul.mubr.bf16.gmra.mrb[60].mxu1 %v5259_v59 }
  0xc2   : > { %2412 = vmatprep.mubr.bf16.mxu1 %v4299_v24  ;;  %v5331_v1 = vld [vmem:[#allocation2 + $0xc0] sm:$0xff]   ;;  %v4322_v24 = vld [vmem:[%s5641_s1 + $0x290] ss:$8 sps:$4 sm:$0xff]  }
  0xc3   : > { %v5341_v8 = vld [vmem:[#allocation2 + $0xc8] ss:$0 sps:$4 sm:$0x11]   ;;  %v1283_v11 = vshll.u32 %v5331_v1, 16  ;;  %v1281_v14 = vshrl.u32 %v5331_v1, 16 }
  0xc4   : > { %v1288_v3 = vshll.u32 %v5341_v8, 16 }
  0xc5   : > { %2869 = vmatmul.mubr.bf16.gmra.mrb[28].mxu0 %v5044_v56  ;;  %v1285_v43 = vrot.slane %v1283_v11, 1  ;;  %v4334_v11 = vld [vmem:[%s5641_s1 + $0x2f4] ss:$8 sps:$4 sm:$0xff]  }
  0xc6   : > { %2878 = vmatprep.mubr.bf16.mxu0 %v5110_v27  ;;  %v1290_v47 = vrot.slane %v1288_v3, 1  ;;  %v1238_v3 = vrot.slane %v5074_v39, 1  ;;  %v1244_v39 = vrot.slane %v5152_v45, 1  ;;  %v1250_v45 = vrot.slane %v5219_v13, 1 }
  0xc7   : > { %v1286_v29 = vor.u32 %v1285_v43, %v1281_v14  ;;  %v1237_v43 = vrot.slane %v5067_v35, 1 }
  0xc9   : > { %2413 = vmatmul.mubr.bf16.vlgmr.msra.gmra.mrb[0].mxu1 %v4740_v51  ;;  %v4303_v51 = vld [vmem:[%s5641_s1 + $0x210] ss:$8 sps:$4 sm:$0xff]  }
  0xca   : > { %3764 = vmatpush1.bf16.msra.mxu1 %v4300_v54  ;;  %2422 = vmatprep.mubr.bf16.mxu1 %v4301_v50  ;;  %v4323_v54 = vld [vmem:[%s5641_s1 + $0x2a4] ss:$8 sps:$4 sm:$0xff]   ;;  %v4324_v50 = vld [vmem:[#allocation2 + $0x54] sm:$0xff]  }
  0xcb   : > { %3749 = vmatprep.subr.bf16.mxu1 %v4302_v7  ;;  %v5374_v7 = vsel %vm997_vm2, %v1286_v29, %v1290_v47 }
  0xcd   : > { %2879 = vmatmul.mubr.bf16.gmra.mrb[32].mxu0 %v5067_v35 }
  0xce   : > { %2888 = vmatprep.mubr.bf16.mxu0 %v5144_v32  ;;  %3765 = vmatpush1.bf16.msra.mxu1 %v4303_v51  ;;  %v1307_v51 = vshrl.u32 %v5353_v42, 16 }
  0xcf   : > { %3750 = vmatprep.subr.bf16.mxu1 %v4304_v46  ;;  %v1311_v46 = vrot.slane %v1309_v55, 1 }
  0xd1   : > { %2423 = vmatmul.mubr.bf16.gmra.mrb[4].mxu1 %v4677_v31  ;;  %v4307_v31 = vld [vmem:[%s5641_s1 + $0x230] ss:$8 sps:$4 sm:$0xff]  }
  0xd2   : > { %2432 = vmatprep.mubr.bf16.mxu1 %v5106_v25  ;;  %3766 = vmatpush1.bf16.msra.mxu1 %v4305_v40  ;;  %v4308_v25 = vld [vmem:[%s5641_s1 + $0x244] ss:$8 sps:$4 sm:$0xff]   ;;  %v1314_v40 = vshll.u32 %v5363_v16, 16 }
  0xd3   : > { %3751 = vmatprep.subr.bf16.mxu1 %v4306_v53  ;;  %v4325_v53 = vld [vmem:[%s5641_s1 + $0x2a0] ss:$8 sps:$4 sm:$0xff]  }
  0xd5   : > { %2889 = vmatmul.mubr.bf16.gmra.mrb[36].mxu0 %v5112_v33 }
  0xd6   : > { %2898 = vmatprep.mubr.bf16.mxu0 %v5186_v28  ;;  %3767 = vmatpush1.bf16.msra.mxu1 %v4307_v31  ;;  %v4326_v31 = vld [vmem:[%s5641_s1 + $0x2b4] ss:$8 sps:$4 sm:$0xff]  }
  0xd7   : > { %3752 = vmatprep.subr.bf16.mxu1 %v4308_v25  ;;  %v1312_v25 = vor.u32 %v1311_v46, %v1307_v51 }
  0xd9   : > { %2433 = vmatmul.mubr.bf16.gmra.mrb[8].mxu1 %v4713_v5 }
  0xda   : > { %2442 = vmatprep.mubr.bf16.mxu1 %v4309_v17  ;;  %3768 = vmatpush1.bf16.msra.mxu1 %v4310_v22  ;;  %v1316_v17 = vrot.slane %v1314_v40, 1  ;;  %v4327_v22 = vld [vmem:[%s5641_s1 + $0x2b0] ss:$8 sps:$4 sm:$0xff]  }
  0xdb   : > { %3753 = vmatprep.subr.bf16.mxu1 %v4311_v57  ;;  %v4328_v57 = vld [vmem:[%s5641_s1 + $0x2c4] ss:$8 sps:$4 sm:$0xff]  }
  0xdd   : > { %2899 = vmatmul.mubr.bf16.gmra.mrb[40].mxu0 %v5146_v37 }
  0xde   : > { %2908 = vmatprep.mubr.bf16.mxu0 %v5217_v12  ;;  %3769 = vmatpush1.bf16.msra.mxu1 %v4312_v58  ;;  %v1317_v58 = vsel %vm997_vm2, %v1312_v25, %v1316_v17 }
  0xdf   : > { %3754 = vmatprep.subr.bf16.mxu1 %v4313_v62  ;;  %v4329_v62 = vld [vmem:[%s5641_s1 + $0x2c0] ss:$8 sps:$4 sm:$0xff]  }
  0xe1   : > { %2443 = vmatmul.mubr.bf16.gmra.mrb[12].mxu1 %v4755_v36 }
  0xe2   : > { %2452 = vmatprep.mubr.bf16.mxu1 %v4314_v63  ;;  %3770 = vmatpush1.bf16.msra.mxu1 %v4315_v61  ;;  %v4330_v63 = vld [vmem:[%s5641_s1 + $0x2d4] ss:$8 sps:$4 sm:$0xff]   ;;  %v4331_v61 = vld [vmem:[%s5641_s1 + $0x2d0] ss:$8 sps:$4 sm:$0xff]  }
  0xe3   : > { %3755 = vmatprep.subr.bf16.mxu1 %v4316_v4  ;;  %v4333_v4 = vld [vmem:[%s5641_s1 + $0x2e0] ss:$8 sps:$4 sm:$0xff]  }
  0xe5   : > { %2909 = vmatmul.mubr.bf16.gmra.mrb[44].mxu0 %v5178_v20 }
  0xe6   : > { %2918 = vmatprep.mubr.bf16.mxu0 %v5256_v6  ;;  %3771 = vmatpush1.bf16.msra.mxu1 %v4317_v15  ;;  %v4335_v15 = vld [vmem:[%s5641_s1 + $0x2f0] ss:$8 sps:$4 sm:$0xff]  }
  0xe7   : > { %3756 = vmatprep.subr.bf16.mxu1 %v4318_v19  ;;  %v1234_v19 = vrot.slane %v5044_v56, 1 }
  0xe9   : > { %2453 = vmatmul.mubr.bf16.gmra.mrb[16].mxu1 %v4817_v34 }
  0xea   : > { %2462 = vmatprep.mubr.bf16.mxu1 %v4319_v21  ;;  %3772 = vmatpush1.bf16.msra.mxu1 %v4320_v23  ;;  %v1235_v21 = vrot.slane %v5046_v60, 1  ;;  %v1241_v60 = vrot.slane %v5120_v38, 1  ;;  %v1247_v38 = vrot.slane %v5188_v44, 1  ;;  %v1253_v44 = vrot.slane %v5263_v18, 1 }
  0xeb   : > { %3757 = vmatprep.subr.bf16.mxu1 %v4321_v41 }
  0xec   : > { %v1236_v14 = vsel %vm1206_vm10, %v1234_v19, %v1235_v21 }
  0xed   : > { %2919 = vmatmul.mubr.bf16.gmra.mrb[48].mxu0 %v5214_v52 }
  0xee   : > { %2928 = vmatprep.mubr.bf16.mxu0 %v5277_v0  ;;  %3773 = vmatpush1.bf16.msra.mxu1 %v4322_v24 }
  0xef   : > { %3758 = vmatprep.subr.bf16.mxu1 %v4323_v54 }
  0xf1   : > { %2463 = vmatmul.mubr.bf16.gmra.mrb[20].mxu1 %v4865_v26 }
  0xf2   : > { %2472 = vmatprep.mubr.bf16.mxu1 %v4324_v50  ;;  %3774 = vmatpush1.bf16.msra.mxu1 %v4325_v53 }
  0xf3   : > { %3759 = vmatprep.subr.bf16.mxu1 %v4326_v31 }
  0xf5   : > { %2929 = vmatmul.mubr.bf16.gmra.mrb[52].mxu0 %v5259_v59 }
  0xf6   : > { %2938 = vmatprep.mubr.bf16.mxu0 %v5374_v7  ;;  %3775 = vmatpush1.bf16.msra.mxu1 %v4327_v22 }
  0xf7   : > { %3760 = vmatprep.subr.bf16.mxu1 %v4328_v57 }
  0xf9   : > { %2473 = vmatmul.mubr.bf16.gmra.mrb[24].mxu1 %v4904_v9 }
  0xfa   : > { %2482 = vmatprep.mubr.bf16.mxu1 %v4984_v30  ;;  %3776 = vmatpush1.bf16.msra.mxu1 %v4329_v62  ;;  %v4332_v30 = vld [vmem:[%s5641_s1 + $0x2e4] ss:$8 sps:$4 sm:$0xff]  }
  0xfb   : > { %3761 = vmatprep.subr.bf16.mxu1 %v4330_v63 }
  0xfd   : > { %2939 = vmatmul.mubr.bf16.gmra.mrb[56].mxu0 %v5331_v1 }
  0xfe   : > { %2948 = vmatprep.mubr.bf16.mxu0 %v1317_v58  ;;  %3777 = vmatpush1.bf16.msra.mxu1 %v4331_v61 }
  0xff   : > { %3762 = vmatprep.subr.bf16.mxu1 %v4332_v30 }
 0x101   : > { %2483 = vmatmul.mubr.bf16.gmra.mrb[28].mxu1 %v4947_v49 }
 0x102   : > { %2492 = vmatprep.mubr.bf16.mxu1 %v5044_v56  ;;  %3778 = vmatpush1.bf16.msra.mxu1 %v4333_v4  ;;  %v1239_v56 = vsel %vm1206_vm10, %v1237_v43, %v1238_v3 }
 0x103   : > { %3763 = vmatprep.subr.bf16.mxu1 %v4334_v11 }
 0x105   : > { %2949 = vmatmul.mubr.bf16.gmra.mrb[60].mxu0 %v5353_v42 }
 0x106   : > { %2991 = vmatprep.mubr.bf16.mxu0 %v4344_v2  ;;  %3779 = vmatpush1.bf16.msra.mxu1 %v4335_v15 }
 0x109   : > { %2493 = vmatmul.mubr.bf16.gmra.mrb[32].mxu1 %v5010_v10 }
 0x10a   : > { %2502 = vmatprep.mubr.bf16.mxu1 %v5067_v35 }
 0x10d   : > { %2992 = vmatmul.mubr.bf16.vlgmr.msra.gmra.mrb[0].mxu0 %v4713_v5  ;;  %v1240_v5 = vrot.slane %v5112_v33, 1 }
 0x10e   : > { %3001 = vmatprep.mubr.bf16.mxu0 %v4344_v2 }
 0x10f   : > { %v1242_v35 = vsel %vm1206_vm10, %v1240_v5, %v1241_v60 }
 0x111   : > { %2503 = vmatmul.mubr.bf16.gmra.mrb[36].mxu1 %v1236_v14 }
 0x112   : > { %2512 = vmatprep.mubr.bf16.mxu1 %v5112_v33 }
 0x115   : > { %3002 = vmatmul.mubr.bf16.gmra.mrb[4].mxu0 %v4755_v36  ;;  %v1243_v36 = vrot.slane %v5146_v37, 1 }
 0x116   : > { %3011 = vmatprep.mubr.bf16.mxu0 %v4344_v2 }
 0x117   : > { %v1245_v33 = vsel %vm1206_vm10, %v1243_v36, %v1244_v39 }
 0x119   : > { %2513 = vmatmul.mubr.bf16.gmra.mrb[40].mxu1 %v1239_v56 }
 0x11a   : > { %2522 = vmatprep.mubr.bf16.mxu1 %v5146_v37 }
 0x11d   : > { %3012 = vmatmul.mubr.bf16.gmra.mrb[8].mxu0 %v4817_v34  ;;  %v1246_v34 = vrot.slane %v5178_v20, 1 }
 0x11e   : > { %3021 = vmatprep.mubr.bf16.mxu0 %v4344_v2 }
 0x11f   : > { %v1248_v37 = vsel %vm1206_vm10, %v1246_v34, %v1247_v38 }
 0x121   : > { %2523 = vmatmul.mubr.bf16.gmra.mrb[44].mxu1 %v1242_v35 }
 0x122   : > { %2532 = vmatprep.mubr.bf16.mxu1 %v5178_v20 }
 0x125   : > { %3022 = vmatmul.mubr.bf16.gmra.mrb[12].mxu0 %v4865_v26  ;;  %v1249_v26 = vrot.slane %v5214_v52, 1 }
 0x126   : > { %3031 = vmatprep.mubr.bf16.mxu0 %v4344_v2 }
 0x127   : > { %v1251_v20 = vsel %vm1206_vm10, %v1249_v26, %v1250_v45 }
 0x129   : > { %2533 = vmatmul.mubr.bf16.gmra.mrb[48].mxu1 %v1245_v33 }
 0x12a   : > { %2542 = vmatprep.mubr.bf16.mxu1 %v5214_v52 }
 0x12d   : > { %3032 = vmatmul.mubr.bf16.gmra.mrb[16].mxu0 %v4904_v9  ;;  %v1252_v9 = vrot.slane %v5259_v59, 1 }
 0x12e   : > { %3041 = vmatprep.mubr.bf16.mxu0 %v4344_v2 }
 0x12f   : > { %v1254_v52 = vsel %vm1206_vm10, %v1252_v9, %v1253_v44 }
 0x131   : > { %2543 = vmatmul.mubr.bf16.gmra.mrb[52].mxu1 %v1248_v37 }
 0x132   : > { %2552 = vmatprep.mubr.bf16.mxu1 %v5259_v59 }
 0x135   : > { %3042 = vmatmul.mubr.bf16.gmra.mrb[20].mxu0 %v4947_v49  ;;  %v1293_v49 = vrot.slane %v5331_v1, 1 }
 0x136   : > { %3051 = vmatprep.mubr.bf16.mxu0 %v4344_v2 }
 0x139   : > { %2553 = vmatmul.mubr.bf16.gmra.mrb[56].mxu1 %v1251_v20 }
 0x13a   : > { %2562 = vmatprep.mubr.bf16.mxu1 %v5331_v1 }
 0x13d   : > { %3052 = vmatmul.mubr.bf16.gmra.mrb[24].mxu0 %v5010_v10  ;;  %v1294_v10 = vrot.slane %v5341_v8, 1 }
 0x13e   : > { %3061 = vmatprep.mubr.bf16.mxu0 %v4344_v2 }
 0x141   : > { %2563 = vmatmul.mubr.bf16.gmra.mrb[60].mxu1 %v1254_v52 }
 0x142   : > { %2685 = vmatprep.mubr.bf16.mxu1 %v1236_v14 }
 0x145   : > { %3062 = vmatmul.mubr.bf16.gmra.mrb[28].mxu0 %v1236_v14 }
 0x146   : > { %3071 = vmatprep.mubr.bf16.mxu0 %v4344_v2 }
 0x149   : > { %2686 = vmatmul.mubr.bf16.vlgmr.msra.gmra.mrb[32].mxu1 %v5080_v48  ;;  %v1295_v48 = vsel %vm1206_vm10, %v1293_v49, %v1294_v10 }
 0x14a   : > { %2695 = vmatprep.mubr.bf16.mxu1 %v1239_v56 }
 0x14d   : > { %3072 = vmatmul.mubr.bf16.gmra.mrb[32].mxu0 %v1239_v56 }
 0x14e   : > { %3081 = vmatprep.mubr.bf16.mxu0 %v4344_v2 }
 0x151   : > { %2696 = vmatmul.mubr.bf16.gmra.mrb[36].mxu1 %v5110_v27  ;;  %v1319_v27 = vrot.slane %v5353_v42, 1 }
 0x152   : > { %2705 = vmatprep.mubr.bf16.mxu1 %v1242_v35 }
 0x155   : > { %3082 = vmatmul.mubr.bf16.gmra.mrb[36].mxu0 %v1242_v35 }
 0x156   : > { %3091 = vmatprep.mubr.bf16.mxu0 %v4344_v2 }
 0x159   : > { %2706 = vmatmul.mubr.bf16.gmra.mrb[40].mxu1 %v5144_v32  ;;  %v1320_v32 = vrot.slane %v5363_v16, 1 }
 0x15a   : > { %2715 = vmatprep.mubr.bf16.mxu1 %v1245_v33 }
 0x15d   : > { %3092 = vmatmul.mubr.bf16.gmra.mrb[40].mxu0 %v1245_v33 }
 0x15e   : > { %3101 = vmatprep.mubr.bf16.mxu0 %v4344_v2 }
 0x161   : > { %2716 = vmatmul.mubr.bf16.gmra.mrb[44].mxu1 %v5186_v28  ;;  %v1321_v28 = vsel %vm1206_vm10, %v1319_v27, %v1320_v32 }
 0x162   : > { %2725 = vmatprep.mubr.bf16.mxu1 %v1248_v37 }
 0x165   : > { %3102 = vmatmul.mubr.bf16.gmra.mrb[44].mxu0 %v1248_v37 }
 0x166   : > { %3111 = vmatprep.mubr.bf16.mxu0 %v4344_v2 }
 0x169   : > { %2726 = vmatmul.mubr.bf16.gmra.mrb[48].mxu1 %v5217_v12 }
 0x16a   : > { %2735 = vmatprep.mubr.bf16.mxu1 %v1251_v20 }
 0x16d   : > { %3112 = vmatmul.mubr.bf16.gmra.mrb[48].mxu0 %v1251_v20 }
 0x16e   : > { %3121 = vmatprep.mubr.bf16.mxu0 %v4344_v2 }
 0x171   : > { %2736 = vmatmul.mubr.bf16.gmra.mrb[52].mxu1 %v5256_v6 }
 0x172   : > { %2745 = vmatprep.mubr.bf16.mxu1 %v1254_v52 }
 0x175   : > { %3122 = vmatmul.mubr.bf16.gmra.mrb[52].mxu0 %v1254_v52 }
 0x176   : > { %3131 = vmatprep.mubr.bf16.mxu0 %v4344_v2 }
 0x179   : > { %2746 = vmatmul.mubr.bf16.gmra.mrb[56].mxu1 %v5277_v0 }
 0x17a   : > { %2755 = vmatprep.mubr.bf16.mxu1 %v1295_v48 }
 0x17d   : > { %3132 = vmatmul.mubr.bf16.gmra.mrb[56].mxu0 %v1295_v48 }
 0x17e   : > { %3141 = vmatprep.mubr.bf16.mxu0 %v4344_v2 }
 0x181   : > { %2756 = vmatmul.mubr.bf16.gmra.mrb[60].mxu1 %v5374_v7 }
 0x185   : > { %3142 = vmatmul.mubr.bf16.gmra.mrb[60].mxu0 %v1321_v28 }
 0x19c   : > { %v2414_v12 = vpop.f32.mrb[0].mxu1 }
 0x19d   : > { %v2416_v13 = vpop.f32.mrb[1].mxu1 }
 0x19e   : > { %v2418_v6 = vpop.f32.mrb[2].mxu1 }
 0x19f   : > { %v2420_v59 = vpop.f32.mrb[3].mxu1 }
 0x1a4   : > { %v2424_v18 = vpop.f32.mrb[4].mxu1 }
 0x1a5   : > { %v2426_v0 = vpop.f32.mrb[5].mxu1 }
 0x1a6   : > { %v2428_v1 = vpop.f32.mrb[6].mxu1 }
 0x1a7   : > { %v2430_v8 = vpop.f32.mrb[7].mxu1 }
 0x1ac   : > { %v5486_v23 = vpop.f32.mrb[8].mxu1 }
 0x1ad   : > { %v5488_v2 = vpop.f32.mrb[9].mxu1 }
 0x1ae   : > { %v5490_v42 = vpop.f32.mrb[10].mxu1 }
 0x1af   : > { %v5492_v41 = vpop.f32.mrb[11].mxu1 }
 0x1b4   : > { %v5494_v29 = vpop.f32.mrb[12].mxu1 }
 0x1b5   : > { %v5496_v47 = vpop.f32.mrb[13].mxu1 }
 0x1b6   : > { %v5498_v16 = vpop.f32.mrb[14].mxu1 }
 0x1b7   : > { %v5500_v55 = vpop.f32.mrb[15].mxu1 }
 0x1bc   : > { %v5502_v24 = vpop.f32.mrb[16].mxu1 }
 0x1bd   : > { %v5504_v54 = vpop.f32.mrb[17].mxu1 }
 0x1be   : > { %v5506_v50 = vpop.f32.mrb[18].mxu1 }
 0x1bf   : > { %v5508_v7 = vpop.f32.mrb[19].mxu1 }
 0x1c4   : > { %v5510_v51 = vpop.f32.mrb[20].mxu1 }
 0x1c5   : > { %v5512_v46 = vpop.f32.mrb[21].mxu1 }
 0x1c6   : > { %v5514_v40 = vpop.f32.mrb[22].mxu1 }
 0x1c7   : > { %v5516_v53 = vpop.f32.mrb[23].mxu1 }
 0x1cc   : > { %v5518_v31 = vpop.f32.mrb[24].mxu1 }
 0x1cd   : > { %v5520_v25 = vpop.f32.mrb[25].mxu1 }
 0x1ce   : > { %v5522_v17 = vpop.f32.mrb[26].mxu1 }
 0x1cf   : > { %v5524_v22 = vpop.f32.mrb[27].mxu1 }
 0x1d4   : > { %v5526_v57 = vpop.f32.mrb[28].mxu1 }
 0x1d5   : > { %v5528_v58 = vpop.f32.mrb[29].mxu1 }
 0x1d6   : > { %v5530_v62 = vpop.f32.mrb[30].mxu1 }
 0x1d7   : > { %v5532_v63 = vpop.f32.mrb[31].mxu1 }
 0x1e0   : > { %v2993_v61 = vpop.f32.mrb[0].mxu0 }
 0x1e1   : > { %v3780_v30 = vadd.f32 %v2993_v61, %v2414_v12  ;;  %v2995_v4 = vpop.f32.mrb[1].mxu0 }
 0x1e2   : > { %v3781_v11 = vadd.f32 %v2995_v4, %v2416_v13  ;;  %v2997_v15 = vpop.f32.mrb[2].mxu0 }
 0x1e3   : > { %3152 = vst [vmem:[%s5538_s24] sm:$0xff] %v3780_v30  ;;  %v3782_v19 = vadd.f32 %v2997_v15, %v2418_v6  ;;  %v2999_v21 = vpop.f32.mrb[3].mxu0  ;;  %v3254_v43 = vmul.f32 %v3780_v30, %v3780_v30 }
 0x1e4   : > { %3184 = vst [vmem:[%s5543_s14] sm:$0xff] %v3781_v11  ;;  %v3783_v14 = vadd.f32 %v2999_v21, %v2420_v59  ;;  %v3362_v5 = vmul.f32 %v3781_v11, %v3781_v11 }
 0x1e5   : > { %3153 = vst [vmem:[%s5538_s24 + $0x8] sm:$0xff] %v3782_v19  ;;  %v3216_v3 = vadd.f32 %v3782_v19, %v3780_v30  ;;  %v3255_v56 = vmul.f32 %v3782_v19, %v3782_v19 }
 0x1e6   : > { %3185 = vst [vmem:[%s5543_s14 + $0x8] sm:$0xff] %v3783_v14  ;;  %v3324_v60 = vadd.f32 %v3783_v14, %v3781_v11  ;;  %v3363_v35 = vmul.f32 %v3783_v14, %v3783_v14 }
 0x1e7   : > { %v3286_v36 = vadd.f32 %v3255_v56, %v3254_v43 }
 0x1e8   : > { %v3394_v39 = vadd.f32 %v3363_v35, %v3362_v5  ;;  %v3003_v33 = vpop.f32.mrb[4].mxu0 }
 0x1e9   : > { %v3784_v34 = vadd.f32 %v3003_v33, %v2424_v18  ;;  %v3005_v38 = vpop.f32.mrb[5].mxu0 }
 0x1ea   : > { %v3785_v37 = vadd.f32 %v3005_v38, %v2426_v0  ;;  %v3007_v26 = vpop.f32.mrb[6].mxu0 }
 0x1eb   : > { %3154 = vst [vmem:[%s5538_s24 + $0x10] sm:$0xff] %v3784_v34  ;;  %v3217_v45 = vadd.f32 %v3784_v34, %v3216_v3  ;;  %v3256_v20 = vmul.f32 %v3784_v34, %v3784_v34  ;;  %v3786_v9 = vadd.f32 %v3007_v26, %v2428_v1  ;;  %v3009_v44 = vpop.f32.mrb[7].mxu0 }
 0x1ec   : > { %3186 = vst [vmem:[%s5543_s14 + $0x10] sm:$0xff] %v3785_v37  ;;  %v3325_v52 = vadd.f32 %v3785_v37, %v3324_v60  ;;  %v3364_v49 = vmul.f32 %v3785_v37, %v3785_v37  ;;  %v3787_v10 = vadd.f32 %v3009_v44, %v2430_v8 }
 0x1ed   : > { %v3287_v48 = vadd.f32 %v3286_v36, %v3256_v20  ;;  %3155 = vst [vmem:[%s5538_s24 + $0x18] sm:$0xff] %v3786_v9  ;;  %v3218_v27 = vadd.f32 %v3786_v9, %v3217_v45  ;;  %v3257_v32 = vmul.f32 %v3786_v9, %v3786_v9 }
 0x1ee   : > { %v3395_v28 = vadd.f32 %v3394_v39, %v3364_v49  ;;  %3187 = vst [vmem:[%s5543_s14 + $0x18] sm:$0xff] %v3787_v10  ;;  %v3326_v12 = vadd.f32 %v3787_v10, %v3325_v52  ;;  %v3365_v13 = vmul.f32 %v3787_v10, %v3787_v10 }
 0x1ef   : > { %v3288_v6 = vadd.f32 %v3287_v48, %v3257_v32 }
 0x1f0   : > { %v3396_v59 = vadd.f32 %v3395_v28, %v3365_v13  ;;  %v3013_v18 = vpop.f32.mrb[8].mxu0 }
 0x1f1   : > { %v3788_v0 = vadd.f32 %v3013_v18, %v5486_v23  ;;  %v3015_v1 = vpop.f32.mrb[9].mxu0 }
 0x1f2   : > { %v3789_v61 = vadd.f32 %v3015_v1, %v5488_v2  ;;  %v3017_v8 = vpop.f32.mrb[10].mxu0 }
 0x1f3   : > { %3156 = vst [vmem:[%s5538_s24 + $0x20] sm:$0xff] %v3788_v0  ;;  %v3219_v30 = vadd.f32 %v3788_v0, %v3218_v27  ;;  %v3258_v4 = vmul.f32 %v3788_v0, %v3788_v0  ;;  %v3790_v11 = vadd.f32 %v3017_v8, %v5490_v42  ;;  %v3019_v15 = vpop.f32.mrb[11].mxu0 }
 0x1f4   : > { %3188 = vst [vmem:[%s5543_s14 + $0x20] sm:$0xff] %v3789_v61  ;;  %v3327_v19 = vadd.f32 %v3789_v61, %v3326_v12  ;;  %v3366_v21 = vmul.f32 %v3789_v61, %v3789_v61  ;;  %v3791_v14 = vadd.f32 %v3019_v15, %v5492_v41 }
 0x1f5   : > { %v3289_v43 = vadd.f32 %v3288_v6, %v3258_v4  ;;  %3157 = vst [vmem:[%s5538_s24 + $0x28] sm:$0xff] %v3790_v11  ;;  %v3220_v23 = vadd.f32 %v3790_v11, %v3219_v30  ;;  %v3259_v3 = vmul.f32 %v3790_v11, %v3790_v11 }
 0x1f6   : > { %v3397_v56 = vadd.f32 %v3396_v59, %v3366_v21  ;;  %3189 = vst [vmem:[%s5543_s14 + $0x28] sm:$0xff] %v3791_v14  ;;  %v3328_v2 = vadd.f32 %v3791_v14, %v3327_v19  ;;  %v3367_v5 = vmul.f32 %v3791_v14, %v3791_v14 }
 0x1f7   : > { %v3290_v60 = vadd.f32 %v3289_v43, %v3259_v3 }
 0x1f8   : > { %v3398_v35 = vadd.f32 %v3397_v56, %v3367_v5  ;;  %v3023_v42 = vpop.f32.mrb[12].mxu0 }
 0x1f9   : > { %v3792_v36 = vadd.f32 %v3023_v42, %v5494_v29  ;;  %v3025_v39 = vpop.f32.mrb[13].mxu0 }
 0x1fa   : > { %v3793_v33 = vadd.f32 %v3025_v39, %v5496_v47  ;;  %v3027_v41 = vpop.f32.mrb[14].mxu0 }
 0x1fb   : > { %3158 = vst [vmem:[%s5538_s24 + $0x30] sm:$0xff] %v3792_v36  ;;  %v3221_v34 = vadd.f32 %v3792_v36, %v3220_v23  ;;  %v3260_v38 = vmul.f32 %v3792_v36, %v3792_v36  ;;  %v3794_v37 = vadd.f32 %v3027_v41, %v5498_v16  ;;  %v3029_v26 = vpop.f32.mrb[15].mxu0 }
 0x1fc   : > { %3190 = vst [vmem:[%s5543_s14 + $0x30] sm:$0xff] %v3793_v33  ;;  %v3329_v45 = vadd.f32 %v3793_v33, %v3328_v2  ;;  %v3368_v20 = vmul.f32 %v3793_v33, %v3793_v33  ;;  %v3795_v9 = vadd.f32 %v3029_v26, %v5500_v55 }
 0x1fd   : > { %v3291_v44 = vadd.f32 %v3290_v60, %v3260_v38  ;;  %3159 = vst [vmem:[%s5538_s24 + $0x38] sm:$0xff] %v3794_v37  ;;  %v3222_v29 = vadd.f32 %v3794_v37, %v3221_v34  ;;  %v3261_v52 = vmul.f32 %v3794_v37, %v3794_v37 }
 0x1fe   : > { %v3399_v49 = vadd.f32 %v3398_v35, %v3368_v20  ;;  %3191 = vst [vmem:[%s5543_s14 + $0x38] sm:$0xff] %v3795_v9  ;;  %v3330_v47 = vadd.f32 %v3795_v9, %v3329_v45  ;;  %v3369_v10 = vmul.f32 %v3795_v9, %v3795_v9 }
 0x1ff   : > { %v3292_v48 = vadd.f32 %v3291_v44, %v3261_v52 }
 0x200   : > { %v3400_v27 = vadd.f32 %v3399_v49, %v3369_v10  ;;  %v3033_v16 = vpop.f32.mrb[16].mxu0 }
 0x201   : > { %v3796_v32 = vadd.f32 %v3033_v16, %v5502_v24  ;;  %v3035_v28 = vpop.f32.mrb[17].mxu0 }
 0x202   : > { %v3797_v12 = vadd.f32 %v3035_v28, %v5504_v54  ;;  %v3037_v55 = vpop.f32.mrb[18].mxu0 }
 0x203   : > { %3160 = vst [vmem:[%s5538_s24 + $0x40] sm:$0xff] %v3796_v32  ;;  %v3223_v13 = vadd.f32 %v3796_v32, %v3222_v29  ;;  %v3262_v6 = vmul.f32 %v3796_v32, %v3796_v32  ;;  %v3798_v59 = vadd.f32 %v3037_v55, %v5506_v50  ;;  %v3039_v18 = vpop.f32.mrb[19].mxu0 }
 0x204   : > { %3192 = vst [vmem:[%s5543_s14 + $0x40] sm:$0xff] %v3797_v12  ;;  %v3331_v0 = vadd.f32 %v3797_v12, %v3330_v47  ;;  %v3370_v1 = vmul.f32 %v3797_v12, %v3797_v12  ;;  %v3799_v61 = vadd.f32 %v3039_v18, %v5508_v7 }
 0x205   : > { %v3293_v8 = vadd.f32 %v3292_v48, %v3262_v6  ;;  %3161 = vst [vmem:[%s5538_s24 + $0x48] sm:$0xff] %v3798_v59  ;;  %v3224_v24 = vadd.f32 %v3798_v59, %v3223_v13  ;;  %v3263_v30 = vmul.f32 %v3798_v59, %v3798_v59 }
 0x206   : > { %v3401_v4 = vadd.f32 %v3400_v27, %v3370_v1  ;;  %3193 = vst [vmem:[%s5543_s14 + $0x48] sm:$0xff] %v3799_v61  ;;  %v3332_v54 = vadd.f32 %v3799_v61, %v3331_v0  ;;  %v3371_v11 = vmul.f32 %v3799_v61, %v3799_v61 }
 0x207   : > { %v3294_v15 = vadd.f32 %v3293_v8, %v3263_v30 }
 0x208   : > { %v3402_v19 = vadd.f32 %v3401_v4, %v3371_v11  ;;  %v3043_v50 = vpop.f32.mrb[20].mxu0 }
 0x209   : > { %v3800_v21 = vadd.f32 %v3043_v50, %v5510_v51  ;;  %v3045_v14 = vpop.f32.mrb[21].mxu0 }
 0x20a   : > { %v3801_v43 = vadd.f32 %v3045_v14, %v5512_v46  ;;  %v3047_v7 = vpop.f32.mrb[22].mxu0 }
 0x20b   : > { %3162 = vst [vmem:[%s5538_s24 + $0x50] sm:$0xff] %v3800_v21  ;;  %v3225_v23 = vadd.f32 %v3800_v21, %v3224_v24  ;;  %v3264_v3 = vmul.f32 %v3800_v21, %v3800_v21  ;;  %v3802_v56 = vadd.f32 %v3047_v7, %v5514_v40  ;;  %v3049_v2 = vpop.f32.mrb[23].mxu0 }
 0x20c   : > { %3194 = vst [vmem:[%s5543_s14 + $0x50] sm:$0xff] %v3801_v43  ;;  %v3333_v5 = vadd.f32 %v3801_v43, %v3332_v54  ;;  %v3372_v60 = vmul.f32 %v3801_v43, %v3801_v43  ;;  %v3803_v35 = vadd.f32 %v3049_v2, %v5516_v53 }
 0x20d   : > { %v3295_v42 = vadd.f32 %v3294_v15, %v3264_v3  ;;  %3163 = vst [vmem:[%s5538_s24 + $0x58] sm:$0xff] %v3802_v56  ;;  %v3226_v51 = vadd.f32 %v3802_v56, %v3225_v23  ;;  %v3265_v36 = vmul.f32 %v3802_v56, %v3802_v56 }
 0x20e   : > { %v3403_v39 = vadd.f32 %v3402_v19, %v3372_v60  ;;  %3195 = vst [vmem:[%s5543_s14 + $0x58] sm:$0xff] %v3803_v35  ;;  %v3334_v46 = vadd.f32 %v3803_v35, %v3333_v5  ;;  %v3373_v33 = vmul.f32 %v3803_v35, %v3803_v35 }
 0x20f   : > { %v3296_v41 = vadd.f32 %v3295_v42, %v3265_v36 }
 0x210   : > { %v3404_v34 = vadd.f32 %v3403_v39, %v3373_v33  ;;  %v3053_v40 = vpop.f32.mrb[24].mxu0 }
 0x211   : > { %v3804_v38 = vadd.f32 %v3053_v40, %v5518_v31  ;;  %v3055_v37 = vpop.f32.mrb[25].mxu0 }
 0x212   : > { %v3805_v26 = vadd.f32 %v3055_v37, %v5520_v25  ;;  %v3057_v53 = vpop.f32.mrb[26].mxu0 }
 0x213   : > { %3164 = vst [vmem:[%s5538_s24 + $0x60] sm:$0xff] %v3804_v38  ;;  %v3227_v45 = vadd.f32 %v3804_v38, %v3226_v51  ;;  %v3266_v20 = vmul.f32 %v3804_v38, %v3804_v38  ;;  %v3806_v9 = vadd.f32 %v3057_v53, %v5522_v17  ;;  %v3059_v44 = vpop.f32.mrb[27].mxu0 }
 0x214   : > { %3196 = vst [vmem:[%s5543_s14 + $0x60] sm:$0xff] %v3805_v26  ;;  %v3335_v29 = vadd.f32 %v3805_v26, %v3334_v46  ;;  %v3374_v52 = vmul.f32 %v3805_v26, %v3805_v26  ;;  %v3807_v49 = vadd.f32 %v3059_v44, %v5524_v22 }
 0x215   : > { %v3297_v47 = vadd.f32 %v3296_v41, %v3266_v20  ;;  %3165 = vst [vmem:[%s5538_s24 + $0x68] sm:$0xff] %v3806_v9  ;;  %v3228_v31 = vadd.f32 %v3806_v9, %v3227_v45  ;;  %v3267_v10 = vmul.f32 %v3806_v9, %v3806_v9 }
 0x216   : > { %v3405_v48 = vadd.f32 %v3404_v34, %v3374_v52  ;;  %3197 = vst [vmem:[%s5543_s14 + $0x68] sm:$0xff] %v3807_v49  ;;  %v3336_v25 = vadd.f32 %v3807_v49, %v3335_v29  ;;  %v3375_v27 = vmul.f32 %v3807_v49, %v3807_v49 }
 0x217   : > { %v3298_v16 = vadd.f32 %v3297_v47, %v3267_v10 }
 0x218   : > { %v3406_v32 = vadd.f32 %v3405_v48, %v3375_v27  ;;  %v3063_v17 = vpop.f32.mrb[28].mxu0 }
 0x219   : > { %v3808_v28 = vadd.f32 %v3063_v17, %v5526_v57  ;;  %v3065_v12 = vpop.f32.mrb[29].mxu0 }
 0x21a   : > { %v3809_v55 = vadd.f32 %v3065_v12, %v5528_v58  ;;  %v3067_v22 = vpop.f32.mrb[30].mxu0 }
 0x21b   : > { %3166 = vst [vmem:[%s5538_s24 + $0x70] sm:$0xff] %v3808_v28  ;;  %v3229_v13 = vadd.f32 %v3808_v28, %v3228_v31  ;;  %v3268_v6 = vmul.f32 %v3808_v28, %v3808_v28  ;;  %v3810_v59 = vadd.f32 %v3067_v22, %v5530_v62  ;;  %v3069_v18 = vpop.f32.mrb[31].mxu0 }
 0x21c   : > { %3198 = vst [vmem:[%s5543_s14 + $0x70] sm:$0xff] %v3809_v55  ;;  %v3337_v0 = vadd.f32 %v3809_v55, %v3336_v25  ;;  %v3376_v1 = vmul.f32 %v3809_v55, %v3809_v55  ;;  %v3811_v61 = vadd.f32 %v3069_v18, %v5532_v63  ;;  %v2687_v30 = vpop.f32.mrb[32].mxu1 }
 0x21d   : > { %v3299_v8 = vadd.f32 %v3298_v16, %v3268_v6  ;;  %3167 = vst [vmem:[%s5538_s24 + $0x78] sm:$0xff] %v3810_v59  ;;  %v3230_v24 = vadd.f32 %v3810_v59, %v3229_v13  ;;  %v3269_v57 = vmul.f32 %v3810_v59, %v3810_v59  ;;  %v2689_v11 = vpop.f32.mrb[33].mxu1 }
 0x21e   : > { %v3407_v58 = vadd.f32 %v3406_v32, %v3376_v1  ;;  %3199 = vst [vmem:[%s5543_s14 + $0x78] sm:$0xff] %v3811_v61  ;;  %v3338_v4 = vadd.f32 %v3811_v61, %v3337_v0  ;;  %v3377_v54 = vmul.f32 %v3811_v61, %v3811_v61  ;;  %v2691_v62 = vpop.f32.mrb[34].mxu1 }
 0x21f   : > { %v3300_v15 = vadd.f32 %v3299_v8, %v3269_v57  ;;  %v2693_v21 = vpop.f32.mrb[35].mxu1 }
 0x220   : > { %v3408_v19 = vadd.f32 %v3407_v58, %v3377_v54  ;;  %v3073_v50 = vpop.f32.mrb[32].mxu0 }
 0x221   : > { %v3812_v14 = vadd.f32 %v3073_v50, %v2687_v30  ;;  %v3075_v63 = vpop.f32.mrb[33].mxu0 }
 0x222   : > { %v3813_v43 = vadd.f32 %v3075_v63, %v2689_v11  ;;  %v3077_v7 = vpop.f32.mrb[34].mxu0 }
 0x223   : > { %3168 = vst [vmem:[%s5538_s24 + $0x80] sm:$0xff] %v3812_v14  ;;  %v3231_v23 = vadd.f32 %v3812_v14, %v3230_v24  ;;  %v3270_v3 = vmul.f32 %v3812_v14, %v3812_v14  ;;  %v3814_v56 = vadd.f32 %v3077_v7, %v2691_v62  ;;  %v3079_v2 = vpop.f32.mrb[35].mxu0 }
 0x224   : > { %3200 = vst [vmem:[%s5543_s14 + $0x80] sm:$0xff] %v3813_v43  ;;  %v3339_v5 = vadd.f32 %v3813_v43, %v3338_v4  ;;  %v3378_v60 = vmul.f32 %v3813_v43, %v3813_v43  ;;  %v3815_v35 = vadd.f32 %v3079_v2, %v2693_v21  ;;  %v2697_v39 = vpop.f32.mrb[36].mxu1 }
 0x225   : > { %v3301_v42 = vadd.f32 %v3300_v15, %v3270_v3  ;;  %3169 = vst [vmem:[%s5538_s24 + $0x88] sm:$0xff] %v3814_v56  ;;  %v3232_v51 = vadd.f32 %v3814_v56, %v3231_v23  ;;  %v3271_v36 = vmul.f32 %v3814_v56, %v3814_v56  ;;  %v2699_v34 = vpop.f32.mrb[37].mxu1 }
 0x226   : > { %v3409_v46 = vadd.f32 %v3408_v19, %v3378_v60  ;;  %3201 = vst [vmem:[%s5543_s14 + $0x88] sm:$0xff] %v3815_v35  ;;  %v3340_v33 = vadd.f32 %v3815_v35, %v3339_v5  ;;  %v3379_v41 = vmul.f32 %v3815_v35, %v3815_v35  ;;  %v2701_v38 = vpop.f32.mrb[38].mxu1 }
 0x227   : > { %v3302_v40 = vadd.f32 %v3301_v42, %v3271_v36  ;;  %v2703_v53 = vpop.f32.mrb[39].mxu1 }
 0x228   : > { %v3410_v37 = vadd.f32 %v3409_v46, %v3379_v41  ;;  %v3083_v26 = vpop.f32.mrb[36].mxu0 }
 0x229   : > { %v3816_v45 = vadd.f32 %v3083_v26, %v2697_v39  ;;  %v3085_v20 = vpop.f32.mrb[37].mxu0 }
 0x22a   : > { %v3817_v9 = vadd.f32 %v3085_v20, %v2699_v34  ;;  %v3087_v44 = vpop.f32.mrb[38].mxu0 }
 0x22b   : > { %3170 = vst [vmem:[%s5538_s24 + $0x90] sm:$0xff] %v3816_v45  ;;  %v3233_v29 = vadd.f32 %v3816_v45, %v3232_v51  ;;  %v3272_v52 = vmul.f32 %v3816_v45, %v3816_v45  ;;  %v3818_v49 = vadd.f32 %v3087_v44, %v2701_v38  ;;  %v3089_v47 = vpop.f32.mrb[39].mxu0 }
 0x22c   : > { %3202 = vst [vmem:[%s5543_s14 + $0x90] sm:$0xff] %v3817_v9  ;;  %v3341_v31 = vadd.f32 %v3817_v9, %v3340_v33  ;;  %v3380_v10 = vmul.f32 %v3817_v9, %v3817_v9  ;;  %v3819_v48 = vadd.f32 %v3089_v47, %v2703_v53  ;;  %v2707_v32 = vpop.f32.mrb[40].mxu1 }
 0x22d   : > { %v3303_v25 = vadd.f32 %v3302_v40, %v3272_v52  ;;  %3171 = vst [vmem:[%s5538_s24 + $0x98] sm:$0xff] %v3818_v49  ;;  %v3234_v27 = vadd.f32 %v3818_v49, %v3233_v29  ;;  %v3273_v16 = vmul.f32 %v3818_v49, %v3818_v49  ;;  %v2709_v55 = vpop.f32.mrb[41].mxu1 }
 0x22e   : > { %v3411_v17 = vadd.f32 %v3410_v37, %v3380_v10  ;;  %3203 = vst [vmem:[%s5543_s14 + $0x98] sm:$0xff] %v3819_v48  ;;  %v3342_v28 = vadd.f32 %v3819_v48, %v3341_v31  ;;  %v3381_v12 = vmul.f32 %v3819_v48, %v3819_v48  ;;  %v2711_v13 = vpop.f32.mrb[42].mxu1 }
 0x22f   : > { %v3304_v22 = vadd.f32 %v3303_v25, %v3273_v16  ;;  %v2713_v18 = vpop.f32.mrb[43].mxu1 }
 0x230   : > { %v3412_v6 = vadd.f32 %v3411_v17, %v3381_v12  ;;  %v3093_v59 = vpop.f32.mrb[40].mxu0 }
 0x231   : > { %v3820_v0 = vadd.f32 %v3093_v59, %v2707_v32  ;;  %v3095_v1 = vpop.f32.mrb[41].mxu0 }
 0x232   : > { %v3821_v61 = vadd.f32 %v3095_v1, %v2709_v55  ;;  %v3097_v8 = vpop.f32.mrb[42].mxu0 }
 0x233   : > { %3172 = vst [vmem:[%s5538_s24 + $0xa0] sm:$0xff] %v3820_v0  ;;  %v3235_v24 = vadd.f32 %v3820_v0, %v3234_v27  ;;  %v3274_v57 = vmul.f32 %v3820_v0, %v3820_v0  ;;  %v3822_v30 = vadd.f32 %v3097_v8, %v2711_v13  ;;  %v3099_v58 = vpop.f32.mrb[43].mxu0 }
 0x234   : > { %3204 = vst [vmem:[%s5543_s14 + $0xa0] sm:$0xff] %v3821_v61  ;;  %v3343_v4 = vadd.f32 %v3821_v61, %v3342_v28  ;;  %v3382_v54 = vmul.f32 %v3821_v61, %v3821_v61  ;;  %v3823_v11 = vadd.f32 %v3099_v58, %v2713_v18  ;;  %v2717_v50 = vpop.f32.mrb[44].mxu1 }
 0x235   : > { %v3305_v15 = vadd.f32 %v3304_v22, %v3274_v57  ;;  %3173 = vst [vmem:[%s5538_s24 + $0xa8] sm:$0xff] %v3822_v30  ;;  %v3236_v62 = vadd.f32 %v3822_v30, %v3235_v24  ;;  %v3275_v19 = vmul.f32 %v3822_v30, %v3822_v30  ;;  %v2719_v43 = vpop.f32.mrb[45].mxu1 }
 0x236   : > { %v3413_v21 = vadd.f32 %v3412_v6, %v3382_v54  ;;  %3205 = vst [vmem:[%s5543_s14 + $0xa8] sm:$0xff] %v3823_v11  ;;  %v3344_v14 = vadd.f32 %v3823_v11, %v3343_v4  ;;  %v3383_v63 = vmul.f32 %v3823_v11, %v3823_v11  ;;  %v2721_v23 = vpop.f32.mrb[46].mxu1 }
 0x237   : > { %v3306_v7 = vadd.f32 %v3305_v15, %v3275_v19  ;;  %v2723_v2 = vpop.f32.mrb[47].mxu1 }
 0x238   : > { %v3414_v3 = vadd.f32 %v3413_v21, %v3383_v63  ;;  %v3103_v56 = vpop.f32.mrb[44].mxu0 }
 0x239   : > { %v3824_v5 = vadd.f32 %v3103_v56, %v2717_v50  ;;  %v3105_v60 = vpop.f32.mrb[45].mxu0 }
 0x23a   : > { %v3825_v35 = vadd.f32 %v3105_v60, %v2719_v43  ;;  %v3107_v42 = vpop.f32.mrb[46].mxu0 }
 0x23b   : > { %3174 = vst [vmem:[%s5538_s24 + $0xb0] sm:$0xff] %v3824_v5  ;;  %v3237_v51 = vadd.f32 %v3824_v5, %v3236_v62  ;;  %v3276_v36 = vmul.f32 %v3824_v5, %v3824_v5  ;;  %v3826_v39 = vadd.f32 %v3107_v42, %v2721_v23  ;;  %v3109_v46 = vpop.f32.mrb[47].mxu0 }
 0x23c   : > { %3206 = vst [vmem:[%s5543_s14 + $0xb0] sm:$0xff] %v3825_v35  ;;  %v3345_v33 = vadd.f32 %v3825_v35, %v3344_v14  ;;  %v3384_v41 = vmul.f32 %v3825_v35, %v3825_v35  ;;  %v3827_v34 = vadd.f32 %v3109_v46, %v2723_v2  ;;  %v2727_v26 = vpop.f32.mrb[48].mxu1 }
 0x23d   : > { %v3307_v40 = vadd.f32 %v3306_v7, %v3276_v36  ;;  %3175 = vst [vmem:[%s5538_s24 + $0xb8] sm:$0xff] %v3826_v39  ;;  %v3238_v38 = vadd.f32 %v3826_v39, %v3237_v51  ;;  %v3277_v37 = vmul.f32 %v3826_v39, %v3826_v39  ;;  %v2729_v9 = vpop.f32.mrb[49].mxu1 }
 0x23e   : > { %v3415_v53 = vadd.f32 %v3414_v3, %v3384_v41  ;;  %3207 = vst [vmem:[%s5543_s14 + $0xb8] sm:$0xff] %v3827_v34  ;;  %v3346_v45 = vadd.f32 %v3827_v34, %v3345_v33  ;;  %v3385_v20 = vmul.f32 %v3827_v34, %v3827_v34  ;;  %v2731_v29 = vpop.f32.mrb[50].mxu1 }
 0x23f   : > { %v3308_v44 = vadd.f32 %v3307_v40, %v3277_v37  ;;  %v2733_v47 = vpop.f32.mrb[51].mxu1 }
 0x240   : > { %v3416_v52 = vadd.f32 %v3415_v53, %v3385_v20  ;;  %v3113_v49 = vpop.f32.mrb[48].mxu0 }
 0x241   : > { %v3828_v31 = vadd.f32 %v3113_v49, %v2727_v26  ;;  %v3115_v10 = vpop.f32.mrb[49].mxu0 }
 0x242   : > { %v3829_v48 = vadd.f32 %v3115_v10, %v2729_v9  ;;  %v3117_v25 = vpop.f32.mrb[50].mxu0 }
 0x243   : > { %3176 = vst [vmem:[%s5538_s24 + $0xc0] sm:$0xff] %v3828_v31  ;;  %v3239_v27 = vadd.f32 %v3828_v31, %v3238_v38  ;;  %v3278_v16 = vmul.f32 %v3828_v31, %v3828_v31  ;;  %v3830_v32 = vadd.f32 %v3117_v25, %v2731_v29  ;;  %v3119_v17 = vpop.f32.mrb[51].mxu0 }
 0x244   : > { %3208 = vst [vmem:[%s5543_s14 + $0xc0] sm:$0xff] %v3829_v48  ;;  %v3347_v28 = vadd.f32 %v3829_v48, %v3346_v45  ;;  %v3386_v12 = vmul.f32 %v3829_v48, %v3829_v48  ;;  %v3831_v55 = vadd.f32 %v3119_v17, %v2733_v47  ;;  %v2737_v59 = vpop.f32.mrb[52].mxu1 }
 0x245   : > { %v3309_v22 = vadd.f32 %v3308_v44, %v3278_v16  ;;  %3177 = vst [vmem:[%s5538_s24 + $0xc8] sm:$0xff] %v3830_v32  ;;  %v3240_v13 = vadd.f32 %v3830_v32, %v3239_v27  ;;  %v3279_v6 = vmul.f32 %v3830_v32, %v3830_v32  ;;  %v2739_v61 = vpop.f32.mrb[53].mxu1 }
 0x246   : > { %v3417_v18 = vadd.f32 %v3416_v52, %v3386_v12  ;;  %3209 = vst [vmem:[%s5543_s14 + $0xc8] sm:$0xff] %v3831_v55  ;;  %v3348_v0 = vadd.f32 %v3831_v55, %v3347_v28  ;;  %v3387_v1 = vmul.f32 %v3831_v55, %v3831_v55  ;;  %v2741_v24 = vpop.f32.mrb[54].mxu1 }
 0x247   : > { %v3310_v8 = vadd.f32 %v3309_v22, %v3279_v6  ;;  %v2743_v58 = vpop.f32.mrb[55].mxu1 }
 0x248   : > { %v3418_v57 = vadd.f32 %v3417_v18, %v3387_v1  ;;  %v3123_v30 = vpop.f32.mrb[52].mxu0 }
 0x249   : > { %v3832_v4 = vadd.f32 %v3123_v30, %v2737_v59  ;;  %v3125_v54 = vpop.f32.mrb[53].mxu0 }
 0x24a   : > { %v3833_v11 = vadd.f32 %v3125_v54, %v2739_v61  ;;  %v3127_v15 = vpop.f32.mrb[54].mxu0 }
 0x24b   : > { %3178 = vst [vmem:[%s5538_s24 + $0xd0] sm:$0xff] %v3832_v4  ;;  %v3241_v62 = vadd.f32 %v3832_v4, %v3240_v13  ;;  %v3280_v19 = vmul.f32 %v3832_v4, %v3832_v4  ;;  %v3834_v50 = vadd.f32 %v3127_v15, %v2741_v24  ;;  %v3129_v21 = vpop.f32.mrb[55].mxu0 }
 0x24c   : > { %3210 = vst [vmem:[%s5543_s14 + $0xd0] sm:$0xff] %v3833_v11  ;;  %v3349_v14 = vadd.f32 %v3833_v11, %v3348_v0  ;;  %v3388_v63 = vmul.f32 %v3833_v11, %v3833_v11  ;;  %v3835_v43 = vadd.f32 %v3129_v21, %v2743_v58  ;;  %v2747_v56 = vpop.f32.mrb[56].mxu1 }
 0x24d   : > { %v3311_v7 = vadd.f32 %v3310_v8, %v3280_v19  ;;  %3179 = vst [vmem:[%s5538_s24 + $0xd8] sm:$0xff] %v3834_v50  ;;  %v3242_v23 = vadd.f32 %v3834_v50, %v3241_v62  ;;  %v3281_v3 = vmul.f32 %v3834_v50, %v3834_v50  ;;  %v2749_v35 = vpop.f32.mrb[57].mxu1 }
 0x24e   : > { %v3419_v2 = vadd.f32 %v3418_v57, %v3388_v63  ;;  %3211 = vst [vmem:[%s5543_s14 + $0xd8] sm:$0xff] %v3835_v43  ;;  %v3350_v5 = vadd.f32 %v3835_v43, %v3349_v14  ;;  %v3389_v60 = vmul.f32 %v3835_v43, %v3835_v43  ;;  %v2751_v51 = vpop.f32.mrb[58].mxu1 }
 0x24f   : > { %v3312_v42 = vadd.f32 %v3311_v7, %v3281_v3  ;;  %v2753_v46 = vpop.f32.mrb[59].mxu1 }
 0x250   : > { %v3420_v36 = vadd.f32 %v3419_v2, %v3389_v60  ;;  %v3133_v39 = vpop.f32.mrb[56].mxu0 }
 0x251   : > { %v3836_v33 = vadd.f32 %v3133_v39, %v2747_v56  ;;  %v3135_v41 = vpop.f32.mrb[57].mxu0 }
 0x252   : > { %v3837_v34 = vadd.f32 %v3135_v41, %v2749_v35  ;;  %v3137_v40 = vpop.f32.mrb[58].mxu0 }
 0x253   : > { %3180 = vst [vmem:[%s5538_s24 + $0xe0] sm:$0xff] %v3836_v33  ;;  %v3243_v38 = vadd.f32 %v3836_v33, %v3242_v23  ;;  %v3282_v37 = vmul.f32 %v3836_v33, %v3836_v33  ;;  %v3838_v26 = vadd.f32 %v3137_v40, %v2751_v51  ;;  %v3139_v53 = vpop.f32.mrb[59].mxu0 }
 0x254   : > { %3212 = vst [vmem:[%s5543_s14 + $0xe0] sm:$0xff] %v3837_v34  ;;  %v3351_v45 = vadd.f32 %v3837_v34, %v3350_v5  ;;  %v3390_v20 = vmul.f32 %v3837_v34, %v3837_v34  ;;  %v3839_v9 = vadd.f32 %v3139_v53, %v2753_v46  ;;  %v2757_v49 = vpop.f32.mrb[60].mxu1 }
 0x255   : > { %v3313_v44 = vadd.f32 %v3312_v42, %v3282_v37  ;;  %3181 = vst [vmem:[%s5538_s24 + $0xe8] sm:$0xff] %v3838_v26  ;;  %v3244_v29 = vadd.f32 %v3838_v26, %v3243_v38  ;;  %v3283_v52 = vmul.f32 %v3838_v26, %v3838_v26  ;;  %v2759_v48 = vpop.f32.mrb[61].mxu1 }
 0x256   : > { %v3421_v47 = vadd.f32 %v3420_v36, %v3390_v20  ;;  %3213 = vst [vmem:[%s5543_s14 + $0xe8] sm:$0xff] %v3839_v9  ;;  %v3352_v31 = vadd.f32 %v3839_v9, %v3351_v45  ;;  %v3391_v10 = vmul.f32 %v3839_v9, %v3839_v9  ;;  %v2761_v27 = vpop.f32.mrb[62].mxu1 }
 0x257   : > { %v3314_v25 = vadd.f32 %v3313_v44, %v3283_v52  ;;  %v2763_v17 = vpop.f32.mrb[63].mxu1 }
 0x258   : > { %v3422_v16 = vadd.f32 %v3421_v47, %v3391_v10  ;;  %v3143_v32 = vpop.f32.mrb[60].mxu0 }
 0x259   : > { %v3840_v28 = vadd.f32 %v3143_v32, %v2757_v49  ;;  %v3145_v12 = vpop.f32.mrb[61].mxu0 }
 0x25a   : > { %v3841_v55 = vadd.f32 %v3145_v12, %v2759_v48  ;;  %v3147_v22 = vpop.f32.mrb[62].mxu0 }
 0x25b   : > { %3182 = vst [vmem:[%s5538_s24 + $0xf0] sm:$0xff] %v3840_v28  ;;  %v3245_v13 = vadd.f32 %v3840_v28, %v3244_v29  ;;  %v3284_v6 = vmul.f32 %v3840_v28, %v3840_v28  ;;  %v3842_v59 = vadd.f32 %v3147_v22, %v2761_v27  ;;  %v3149_v18 = vpop.f32.mrb[63].mxu0 }
 0x25c   : > { %3214 = vst [vmem:[%s5543_s14 + $0xf0] sm:$0xff] %v3841_v55  ;;  %v3353_v0 = vadd.f32 %v3841_v55, %v3352_v31  ;;  %v3392_v1 = vmul.f32 %v3841_v55, %v3841_v55  ;;  %v3843_v61 = vadd.f32 %v3149_v18, %v2763_v17 }
 0x25d   : > { %v3315_v8 = vadd.f32 %v3314_v25, %v3284_v6  ;;  %3183 = vst [vmem:[%s5538_s24 + $0xf8] sm:$0xff] %v3842_v59  ;;  %v3246_v24 = vadd.f32 %v3842_v59, %v3245_v13  ;;  %v3285_v57 = vmul.f32 %v3842_v59, %v3842_v59 }
 0x25e   : > { %v3423_v30 = vadd.f32 %v3422_v16, %v3392_v1  ;;  %3215 = vst [vmem:[%s5543_s14 + $0xf8] sm:$0xff] %v3843_v61  ;;  %v3354_v58 = vadd.f32 %v3843_v61, %v3353_v0  ;;  %v3393_v4 = vmul.f32 %v3843_v61, %v3843_v61 }
 0x25f   : > { %v3247_v54 = vrot.slane %v3246_v24, 4  ;;  %v3316_v11 = vadd.f32 %v3315_v8, %v3285_v57 }
 0x260   : > { %v3355_v15 = vrot.slane %v3354_v58, 4  ;;  %v3424_v62 = vadd.f32 %v3423_v30, %v3393_v4 }
 0x261   : > { %v3248_v19 = vadd.f32 %v3247_v54, %v3246_v24  ;;  %v3317_v50 = vrot.slane %v3316_v11, 4 }
 0x262   : > { %v3356_v21 = vadd.f32 %v3355_v15, %v3354_v58  ;;  %v3425_v14 = vrot.slane %v3424_v62, 4 }
 0x263   : > { %v3249_v63 = vrot.slane %v3248_v19, 2  ;;  %v3318_v43 = vadd.f32 %v3317_v50, %v3316_v11 }
 0x264   : > { %v3357_v7 = vrot.slane %v3356_v21, 2  ;;  %v3426_v23 = vadd.f32 %v3425_v14, %v3424_v62 }
 0x265   : > { %v3250_v3 = vadd.f32 %v3249_v63, %v3248_v19  ;;  %v3319_v56 = vrot.slane %v3318_v43, 2 }
 0x266   : > { %v3358_v2 = vadd.f32 %v3357_v7, %v3356_v21  ;;  %v3427_v5 = vrot.slane %v3426_v23, 2 }
 0x267   : > { %v3251_v60 = vrot.slane %v3250_v3, 1  ;;  %v3320_v35 = vadd.f32 %v3319_v56, %v3318_v43 }
 0x268   : > { %v3359_v42 = vrot.slane %v3358_v2, 1  ;;  %v3428_v51 = vadd.f32 %v3427_v5, %v3426_v23 }
 0x269   : > { %v3252_v36 = vadd.f32 %v3251_v60, %v3250_v3  ;;  %v3321_v39 = vrot.slane %v3320_v35, 1 }
 0x26a   : > { %v3360_v46 = vadd.f32 %v3359_v42, %v3358_v2  ;;  %v3429_v33 = vrot.slane %v3428_v51, 1 }
 0x26b   : > { %3253 = vst [vmem:[%s220_s30] sm:$0x1] %v3252_v36  ;;  %v3322_v41 = vadd.f32 %v3321_v39, %v3320_v35 }
 0x26c   : > { %3361 = vst [vmem:[%s220_s30 + $0x2] sm:$0x1] %v3360_v46  ;;  %v3430_v34 = vadd.f32 %v3429_v33, %v3428_v51 }
 0x26d   : > { %3323 = vst [vmem:[%s220_s30 + $0x1] sm:$0x1] %v3322_v41 }
 0x26e   : > { %3431 = vst [vmem:[%s220_s30 + $0x3] sm:$0x1] %v3430_v34 }
 0x26f PF: > { %s15_s15 = sadd.s32 1, %s4342_s15  }
 0x270   : > { %p12_p4 = scmp.ge.s32.totalorder %s15_s15, 4  }
 0x272   :  { %14 = sbr.rel (!%p12_p4) target bundleno = 1 (0x1), region = 84 }

</bundles_post_ra>
